<compile_context>
chip_gen: v6e
topology: v6e:2x2x1
jax: 0.10.0
libtpu: 0.0.40
codegen_flags: <defaults>
</compile_context>

<pallas_src>
import functools

import jax
import jax.numpy as jnp
from jax import lax
from jax.experimental import pallas as pl
from jax.experimental.pallas import tpu as pltpu

_OFFSETS = tuple((dy, dx) for dy in (-1, 0, 1) for dx in (-1, 0, 1))


def _basic_layer_kernel(x_ref, m_ref, w1_ref, b1_ref, w2_ref, b2_ref,
                        o_ref, stack_ref, y1_ref, *, H, W, NB):
    # x_ref    : (NB, C, H*W)   f32   NB images, channels on sublanes
    # m_ref    : (9*C, H*W)     f32   0/1 padding masks, tap k at rows [k*C,..)
    # w*_ref   : (C, 9*C)       bf16  folded conv+BN weights [cout,(ky*3+kx)*C+cin]
    # b*_ref   : (C, 1)         f32   folded BN bias
    # o_ref    : (NB, C, H*W)   f32
    # stack_ref: (9*C, NB*H*W)  bf16  VMEM scratch: tap-stacked MXU operand
    # y1_ref   : (C, NB*H*W)    f32   VMEM scratch: first conv activations
    C = x_ref.shape[1]
    HW = H * W

    def emit_taps(read_src):
        # Fill stack_ref: rows [k*C, (k+1)*C) = tap k, lanes [b*HW, (b+1)*HW)
        # = image b.  Rolls are per image -> no cross-image pixel leakage.
        for b in range(NB):
            src = read_src(b)                                   # (C, HW) f32
            lanes = pl.ds(b * HW, HW)
            for k, (dy, dx) in enumerate(_OFFSETS):
                amt = dy * W + dx
                if amt == 0:
                    t = src                                     # centre tap
                else:
                    t = pltpu.roll(src, shift=(-amt) % HW, axis=1)
                    t = t * m_ref[pl.ds(k * C, C), :]           # zero padding
                stack_ref[pl.ds(k * C, C), lanes] = t.astype(jnp.bfloat16)

    # conv1 (+ folded BN1) + ReLU -- one K=9C matmul for the whole block.
    emit_taps(lambda b: x_ref[b])
    y1 = jnp.dot(w1_ref[...], stack_ref[...],
                 preferred_element_type=jnp.float32)            # (C, NB*HW)
    y1_ref[...] = jnp.maximum(y1 + b1_ref[...], 0.0)

    # conv2 (+ folded BN2) + ReLU.
    emit_taps(lambda b: y1_ref[:, pl.ds(b * HW, HW)])
    y2 = jnp.dot(w2_ref[...], stack_ref[...],
                 preferred_element_type=jnp.float32)            # (C, NB*HW)
    y2 = jnp.maximum(y2 + b2_ref[...], 0.0)

    # Residual add (the module applies ReLU before the add) + per-image store.
    for b in range(NB):
        o_ref[b] = (y2[:, b * HW:(b + 1) * HW] + x_ref[b]).astype(o_ref.dtype)


def _pick_block_batch(n, target):
    """Largest divisor of n that is <= target, preferring a grid of >= 2 steps
    (v7x has 2 TensorCores; a 1-step grid would idle one of them)."""
    divisors = [d for d in range(1, n + 1) if n % d == 0]
    nb = max(d for d in divisors if d <= target)
    if nb == n and n > 1:
        nb = max(d for d in divisors if d < n)
    return nb


def _make_masks(H, W, C):
    """(9*C, H*W) f32 0/1 validity masks (zero-padding), tap k at rows
    [k*C, (k+1)*C); replicated over C so the in-kernel read is a plain
    aligned (C, HW) load."""
    pos = jnp.arange(H * W, dtype=jnp.int32)
    hh, ww = pos // W, pos % W
    rows = []
    for dy, dx in _OFFSETS:
        valid = ((hh + dy >= 0) & (hh + dy < H) &
                 (ww + dx >= 0) & (ww + dx < W)).astype(jnp.float32)
        rows.append(jnp.broadcast_to(valid[None, :], (C, H * W)))
    return jnp.concatenate(rows, axis=0)


def basic_layer_pallas(x, w1, b1, w2, b2, *, block_batch=8):
    """x: (N, C, H, W) f32 NCHW.  w*: (C, 9*C) bf16 folded.  b*: (C, 1) f32."""
    N, C, H, W = x.shape
    HW = H * W
    NB = _pick_block_batch(N, block_batch)
    x_flat = x.reshape(N, C, HW)                        # free reshape
    masks = _make_masks(H, W, C)

    grid_spec = pltpu.PrefetchScalarGridSpec(
        num_scalar_prefetch=0,
        grid=(N // NB,),
        in_specs=[
            pl.BlockSpec((NB, C, HW), lambda n: (n, 0, 0)),   # activations
            pl.BlockSpec((9 * C, HW), lambda n: (0, 0)),      # padding masks
            pl.BlockSpec((C, 9 * C), lambda n: (0, 0)),       # w1 (folded)
            pl.BlockSpec((C, 1), lambda n: (0, 0)),           # b1 (folded)
            pl.BlockSpec((C, 9 * C), lambda n: (0, 0)),       # w2 (folded)
            pl.BlockSpec((C, 1), lambda n: (0, 0)),           # b2 (folded)
        ],
        out_specs=pl.BlockSpec((NB, C, HW), lambda n: (n, 0, 0)),
        scratch_shapes=[
            pltpu.VMEM((9 * C, NB * HW), jnp.bfloat16),       # tap stack
            pltpu.VMEM((C, NB * HW), jnp.float32),            # y1
        ],
    )

    out = pl.pallas_call(
        functools.partial(_basic_layer_kernel, H=H, W=W, NB=NB),
        out_shape=jax.ShapeDtypeStruct((N, C, HW), jnp.float32),
        grid_spec=grid_spec,
        compiler_params=pltpu.CompilerParams(
            # parallel batch axis: both TCs busy on v7x, serial loop elsewhere
            dimension_semantics=("parallel",)),
    )(x_flat, masks, w1, b1, w2, b2)
    return out.reshape(N, C, H, W)


def _make_params(key, c_in, c_out, eps=1e-5):
    """Conv2d(bias=False) + BatchNorm2d params; BN folded into conv (inference)."""
    k1, k2, k3, k4, k5 = jax.random.split(key, 5)
    fan_in = c_in * 9
    bound = 1.0 / (fan_in ** 0.5)
    w_oihw = jax.random.uniform(k1, (c_out, c_in, 3, 3), jnp.float32,
                                -bound, bound)
    gamma = 1.0 + 0.1 * jax.random.normal(k2, (c_out,), jnp.float32)
    beta = 0.1 * jax.random.normal(k3, (c_out,), jnp.float32)
    mean = 0.1 * jax.random.normal(k4, (c_out,), jnp.float32)
    var = jnp.abs(jax.random.normal(k5, (c_out,), jnp.float32)) + 0.5

    scale = gamma / jnp.sqrt(var + eps)                     # (Cout,)
    w_fold = w_oihw * scale[:, None, None, None]            # (Cout,Cin,3,3)
    bias = beta - mean * scale                              # (Cout,)
    # kernel layout: (Cout, 9*Cin) with index [cout, (ky*3+kx)*Cin + cin]
    w_stack = jnp.transpose(w_fold, (0, 2, 3, 1)).reshape(c_out, 9 * c_in)
    return w_fold, w_stack.astype(jnp.bfloat16), bias.reshape(c_out, 1)


def _reference(x, w1_fold, b1, w2_fold, b2):
    """Pure-XLA reference mirroring the kernel's bf16-MXU / f32-accum math."""
    dn = ("NCHW", "OIHW", "NCHW")

    def convbnrelu(inp, w, b):
        y = lax.conv_general_dilated(
            inp.astype(jnp.bfloat16), w.astype(jnp.bfloat16),
            window_strides=(1, 1), padding="SAME",
            dimension_numbers=dn, preferred_element_type=jnp.float32)
        return jnp.maximum(y + b.reshape(1, -1, 1, 1), 0.0)

    y1 = convbnrelu(x, w1_fold, b1)
    y2 = convbnrelu(y1, w2_fold, b2)
    return y2 + x


if __name__ == "__main__":
    key = jax.random.PRNGKey(0)
    kx, kp1, kp2 = jax.random.split(key, 3)

    N, C, H, W = 8, 32, 16, 16          # module fixes C=32; NB=4 -> 2 grid steps
    x = jax.random.normal(kx, (N, C, H, W), jnp.float32)

    w1_fold, w1, b1 = _make_params(kp1, C, C)
    w2_fold, w2, b2 = _make_params(kp2, C, C)

    out = jax.block_until_ready(basic_layer_pallas(x, w1, b1, w2, b2))
    ref = jax.block_until_ready(_reference(x, w1_fold, b1, w2_fold, b2))

    max_err = float(jnp.max(jnp.abs(out - ref)))
    assert jnp.allclose(out, ref, atol=2e-2, rtol=2e-2), max_err
    print("KERNEL_OK")
</pallas_src>

<mosaic_0001>
module attributes {stable_mosaic.version = 11 : i64} {
  func.func @_basic_layer_kernel(%arg0: i32, %arg1: memref<4x32x256xf32, #tpu.memory_space<vmem>>, %arg2: memref<288x256xf32, #tpu.memory_space<vmem>>, %arg3: memref<32x288xbf16, #tpu.memory_space<vmem>>, %arg4: memref<32x1xf32, #tpu.memory_space<vmem>>, %arg5: memref<32x288xbf16, #tpu.memory_space<vmem>>, %arg6: memref<32x1xf32, #tpu.memory_space<vmem>>, %arg7: memref<4x32x256xf32, #tpu.memory_space<vmem>>, %arg8: memref<288x1024xbf16, #tpu.memory_space<vmem>>, %arg9: memref<32x1024xf32, #tpu.memory_space<vmem>>) attributes {dimension_semantics = [#tpu.dimension_semantics<parallel>], iteration_bounds = array<i64: 2>, scalar_prefetch = 0 : i64, scratch_operands = 2 : i64, tpu.core_type = #tpu.core_type<tc>, window_params = [{transform_indices = @transform_0, window_bounds = array<i64: 4, 32, 256>}, {pipeline_mode = #tpu.pipeline_mode<synchronous>, transform_indices = @transform_1, window_bounds = array<i64: 288, 256>}, {pipeline_mode = #tpu.pipeline_mode<synchronous>, transform_indices = @transform_2, window_bounds = array<i64: 32, 288>}, {pipeline_mode = #tpu.pipeline_mode<synchronous>, transform_indices = @transform_3, window_bounds = array<i64: 32, 1>}, {pipeline_mode = #tpu.pipeline_mode<synchronous>, transform_indices = @transform_4, window_bounds = array<i64: 32, 288>}, {pipeline_mode = #tpu.pipeline_mode<synchronous>, transform_indices = @transform_5, window_bounds = array<i64: 32, 1>}, {transform_indices = @transform_6, window_bounds = array<i64: 4, 32, 256>}]} {
    %c0 = arith.constant 0 : index
    %c0_0 = arith.constant 0 : index
    %c0_1 = arith.constant 0 : index
    %0 = vector.load %arg1[%c0, %c0_0, %c0_1] : memref<4x32x256xf32, #tpu.memory_space<vmem>>, vector<1x32x256xf32>
    %1 = vector.shape_cast %0 : vector<1x32x256xf32> to vector<32x256xf32>
    %c17_i32 = arith.constant 17 : i32
    %2 = tpu.dynamic_rotate %1 by %c17_i32 dim 1 : vector<32x256xf32>, i32 -> vector<32x256xf32>
    %c0_2 = arith.constant 0 : index
    %c0_3 = arith.constant 0 : index
    %3 = vector.load %arg2[%c0_2, %c0_3] : memref<288x256xf32, #tpu.memory_space<vmem>>, vector<32x256xf32>
    %4 = arith.mulf %2, %3 : vector<32x256xf32>
    %5 = arith.truncf %4 : vector<32x256xf32> to vector<32x256xbf16>
    %c0_4 = arith.constant 0 : index
    %c0_5 = arith.constant 0 : index
    %6 = vector.load %arg8[%c0_4, %c0_5] : memref<288x1024xbf16, #tpu.memory_space<vmem>>, vector<32x256xbf16>
    tpu.vector_store %arg8[%c0_4, %c0_5], %5 {strides = array<i32>} : memref<288x1024xbf16, #tpu.memory_space<vmem>>, vector<32x256xbf16>,
    %c16_i32 = arith.constant 16 : i32
    %7 = tpu.dynamic_rotate %1 by %c16_i32 dim 1 : vector<32x256xf32>, i32 -> vector<32x256xf32>
    %c32 = arith.constant 32 : index
    %c0_6 = arith.constant 0 : index
    %8 = vector.load %arg2[%c32, %c0_6] : memref<288x256xf32, #tpu.memory_space<vmem>>, vector<32x256xf32>
    %9 = arith.mulf %7, %8 : vector<32x256xf32>
    %10 = arith.truncf %9 : vector<32x256xf32> to vector<32x256xbf16>
    %c32_7 = arith.constant 32 : index
    %c0_8 = arith.constant 0 : index
    %11 = vector.load %arg8[%c32_7, %c0_8] : memref<288x1024xbf16, #tpu.memory_space<vmem>>, vector<32x256xbf16>
    tpu.vector_store %arg8[%c32_7, %c0_8], %10 {strides = array<i32>} : memref<288x1024xbf16, #tpu.memory_space<vmem>>, vector<32x256xbf16>,
    %c15_i32 = arith.constant 15 : i32
    %12 = tpu.dynamic_rotate %1 by %c15_i32 dim 1 : vector<32x256xf32>, i32 -> vector<32x256xf32>
    %c64 = arith.constant 64 : index
    %c0_9 = arith.constant 0 : index
    %13 = vector.load %arg2[%c64, %c0_9] : memref<288x256xf32, #tpu.memory_space<vmem>>, vector<32x256xf32>
    %14 = arith.mulf %12, %13 : vector<32x256xf32>
    %15 = arith.truncf %14 : vector<32x256xf32> to vector<32x256xbf16>
    %c64_10 = arith.constant 64 : index
    %c0_11 = arith.constant 0 : index
    %16 = vector.load %arg8[%c64_10, %c0_11] : memref<288x1024xbf16, #tpu.memory_space<vmem>>, vector<32x256xbf16>
    tpu.vector_store %arg8[%c64_10, %c0_11], %15 {strides = array<i32>} : memref<288x1024xbf16, #tpu.memory_space<vmem>>, vector<32x256xbf16>,
    %c1_i32 = arith.constant 1 : i32
    %17 = tpu.dynamic_rotate %1 by %c1_i32 dim 1 : vector<32x256xf32>, i32 -> vector<32x256xf32>
    %c96 = arith.constant 96 : index
    %c0_12 = arith.constant 0 : index
    %18 = vector.load %arg2[%c96, %c0_12] : memref<288x256xf32, #tpu.memory_space<vmem>>, vector<32x256xf32>
    %19 = arith.mulf %17, %18 : vector<32x256xf32>
    %20 = arith.truncf %19 : vector<32x256xf32> to vector<32x256xbf16>
    %c96_13 = arith.constant 96 : index
    %c0_14 = arith.constant 0 : index
    %21 = vector.load %arg8[%c96_13, %c0_14] : memref<288x1024xbf16, #tpu.memory_space<vmem>>, vector<32x256xbf16>
    tpu.vector_store %arg8[%c96_13, %c0_14], %20 {strides = array<i32>} : memref<288x1024xbf16, #tpu.memory_space<vmem>>, vector<32x256xbf16>,
    %22 = arith.truncf %1 : vector<32x256xf32> to vector<32x256xbf16>
    %c128 = arith.constant 128 : index
    %c0_15 = arith.constant 0 : index
    %23 = vector.load %arg8[%c128, %c0_15] : memref<288x1024xbf16, #tpu.memory_space<vmem>>, vector<32x256xbf16>
    tpu.vector_store %arg8[%c128, %c0_15], %22 {strides = array<i32>} : memref<288x1024xbf16, #tpu.memory_space<vmem>>, vector<32x256xbf16>,
    %c255_i32 = arith.constant 255 : i32
    %24 = tpu.dynamic_rotate %1 by %c255_i32 dim 1 : vector<32x256xf32>, i32 -> vector<32x256xf32>
    %c160 = arith.constant 160 : index
    %c0_16 = arith.constant 0 : index
    %25 = vector.load %arg2[%c160, %c0_16] : memref<288x256xf32, #tpu.memory_space<vmem>>, vector<32x256xf32>
    %26 = arith.mulf %24, %25 : vector<32x256xf32>
    %27 = arith.truncf %26 : vector<32x256xf32> to vector<32x256xbf16>
    %c160_17 = arith.constant 160 : index
    %c0_18 = arith.constant 0 : index
    %28 = vector.load %arg8[%c160_17, %c0_18] : memref<288x1024xbf16, #tpu.memory_space<vmem>>, vector<32x256xbf16>
    tpu.vector_store %arg8[%c160_17, %c0_18], %27 {strides = array<i32>} : memref<288x1024xbf16, #tpu.memory_space<vmem>>, vector<32x256xbf16>,
    %c241_i32 = arith.constant 241 : i32
    %29 = tpu.dynamic_rotate %1 by %c241_i32 dim 1 : vector<32x256xf32>, i32 -> vector<32x256xf32>
    %c192 = arith.constant 192 : index
    %c0_19 = arith.constant 0 : index
    %30 = vector.load %arg2[%c192, %c0_19] : memref<288x256xf32, #tpu.memory_space<vmem>>, vector<32x256xf32>
    %31 = arith.mulf %29, %30 : vector<32x256xf32>
    %32 = arith.truncf %31 : vector<32x256xf32> to vector<32x256xbf16>
    %c192_20 = arith.constant 192 : index
    %c0_21 = arith.constant 0 : index
    %33 = vector.load %arg8[%c192_20, %c0_21] : memref<288x1024xbf16, #tpu.memory_space<vmem>>, vector<32x256xbf16>
    tpu.vector_store %arg8[%c192_20, %c0_21], %32 {strides = array<i32>} : memref<288x1024xbf16, #tpu.memory_space<vmem>>, vector<32x256xbf16>,
    %c240_i32 = arith.constant 240 : i32
    %34 = tpu.dynamic_rotate %1 by %c240_i32 dim 1 : vector<32x256xf32>, i32 -> vector<32x256xf32>
    %c224 = arith.constant 224 : index
    %c0_22 = arith.constant 0 : index
    %35 = vector.load %arg2[%c224, %c0_22] : memref<288x256xf32, #tpu.memory_space<vmem>>, vector<32x256xf32>
    %36 = arith.mulf %34, %35 : vector<32x256xf32>
    %37 = arith.truncf %36 : vector<32x256xf32> to vector<32x256xbf16>
    %c224_23 = arith.constant 224 : index
    %c0_24 = arith.constant 0 : index
    %38 = vector.load %arg8[%c224_23, %c0_24] : memref<288x1024xbf16, #tpu.memory_space<vmem>>, vector<32x256xbf16>
    tpu.vector_store %arg8[%c224_23, %c0_24], %37 {strides = array<i32>} : memref<288x1024xbf16, #tpu.memory_space<vmem>>, vector<32x256xbf16>,
    %c239_i32 = arith.constant 239 : i32
    %39 = tpu.dynamic_rotate %1 by %c239_i32 dim 1 : vector<32x256xf32>, i32 -> vector<32x256xf32>
    %c256 = arith.constant 256 : index
    %c0_25 = arith.constant 0 : index
    %40 = vector.load %arg2[%c256, %c0_25] : memref<288x256xf32, #tpu.memory_space<vmem>>, vector<32x256xf32>
    %41 = arith.mulf %39, %40 : vector<32x256xf32>
    %42 = arith.truncf %41 : vector<32x256xf32> to vector<32x256xbf16>
    %c256_26 = arith.constant 256 : index
    %c0_27 = arith.constant 0 : index
    %43 = vector.load %arg8[%c256_26, %c0_27] : memref<288x1024xbf16, #tpu.memory_space<vmem>>, vector<32x256xbf16>
    tpu.vector_store %arg8[%c256_26, %c0_27], %42 {strides = array<i32>} : memref<288x1024xbf16, #tpu.memory_space<vmem>>, vector<32x256xbf16>,
    %c1 = arith.constant 1 : index
    %c0_28 = arith.constant 0 : index
    %c0_29 = arith.constant 0 : index
    %44 = vector.load %arg1[%c1, %c0_28, %c0_29] : memref<4x32x256xf32, #tpu.memory_space<vmem>>, vector<1x32x256xf32>
    %45 = vector.shape_cast %44 : vector<1x32x256xf32> to vector<32x256xf32>
    %c17_i32_30 = arith.constant 17 : i32
    %46 = tpu.dynamic_rotate %45 by %c17_i32_30 dim 1 : vector<32x256xf32>, i32 -> vector<32x256xf32>
    %c0_31 = arith.constant 0 : index
    %c0_32 = arith.constant 0 : index
    %47 = vector.load %arg2[%c0_31, %c0_32] : memref<288x256xf32, #tpu.memory_space<vmem>>, vector<32x256xf32>
    %48 = arith.mulf %46, %47 : vector<32x256xf32>
    %49 = arith.truncf %48 : vector<32x256xf32> to vector<32x256xbf16>
    %c0_33 = arith.constant 0 : index
    %c256_34 = arith.constant 256 : index
    %50 = vector.load %arg8[%c0_33, %c256_34] : memref<288x1024xbf16, #tpu.memory_space<vmem>>, vector<32x256xbf16>
    tpu.vector_store %arg8[%c0_33, %c256_34], %49 {strides = array<i32>} : memref<288x1024xbf16, #tpu.memory_space<vmem>>, vector<32x256xbf16>,
    %c16_i32_35 = arith.constant 16 : i32
    %51 = tpu.dynamic_rotate %45 by %c16_i32_35 dim 1 : vector<32x256xf32>, i32 -> vector<32x256xf32>
    %c32_36 = arith.constant 32 : index
    %c0_37 = arith.constant 0 : index
    %52 = vector.load %arg2[%c32_36, %c0_37] : memref<288x256xf32, #tpu.memory_space<vmem>>, vector<32x256xf32>
    %53 = arith.mulf %51, %52 : vector<32x256xf32>
    %54 = arith.truncf %53 : vector<32x256xf32> to vector<32x256xbf16>
    %c32_38 = arith.constant 32 : index
    %c256_39 = arith.constant 256 : index
    %55 = vector.load %arg8[%c32_38, %c256_39] : memref<288x1024xbf16, #tpu.memory_space<vmem>>, vector<32x256xbf16>
    tpu.vector_store %arg8[%c32_38, %c256_39], %54 {strides = array<i32>} : memref<288x1024xbf16, #tpu.memory_space<vmem>>, vector<32x256xbf16>,
    %c15_i32_40 = arith.constant 15 : i32
    %56 = tpu.dynamic_rotate %45 by %c15_i32_40 dim 1 : vector<32x256xf32>, i32 -> vector<32x256xf32>
    %c64_41 = arith.constant 64 : index
    %c0_42 = arith.constant 0 : index
    %57 = vector.load %arg2[%c64_41, %c0_42] : memref<288x256xf32, #tpu.memory_space<vmem>>, vector<32x256xf32>
    %58 = arith.mulf %56, %57 : vector<32x256xf32>
    %59 = arith.truncf %58 : vector<32x256xf32> to vector<32x256xbf16>
    %c64_43 = arith.constant 64 : index
    %c256_44 = arith.constant 256 : index
    %60 = vector.load %arg8[%c64_43, %c256_44] : memref<288x1024xbf16, #tpu.memory_space<vmem>>, vector<32x256xbf16>
    tpu.vector_store %arg8[%c64_43, %c256_44], %59 {strides = array<i32>} : memref<288x1024xbf16, #tpu.memory_space<vmem>>, vector<32x256xbf16>,
    %c1_i32_45 = arith.constant 1 : i32
    %61 = tpu.dynamic_rotate %45 by %c1_i32_45 dim 1 : vector<32x256xf32>, i32 -> vector<32x256xf32>
    %c96_46 = arith.constant 96 : index
    %c0_47 = arith.constant 0 : index
    %62 = vector.load %arg2[%c96_46, %c0_47] : memref<288x256xf32, #tpu.memory_space<vmem>>, vector<32x256xf32>
    %63 = arith.mulf %61, %62 : vector<32x256xf32>
    %64 = arith.truncf %63 : vector<32x256xf32> to vector<32x256xbf16>
    %c96_48 = arith.constant 96 : index
    %c256_49 = arith.constant 256 : index
    %65 = vector.load %arg8[%c96_48, %c256_49] : memref<288x1024xbf16, #tpu.memory_space<vmem>>, vector<32x256xbf16>
    tpu.vector_store %arg8[%c96_48, %c256_49], %64 {strides = array<i32>} : memref<288x1024xbf16, #tpu.memory_space<vmem>>, vector<32x256xbf16>,
    %66 = arith.truncf %45 : vector<32x256xf32> to vector<32x256xbf16>
    %c128_50 = arith.constant 128 : index
    %c256_51 = arith.constant 256 : index
    %67 = vector.load %arg8[%c128_50, %c256_51] : memref<288x1024xbf16, #tpu.memory_space<vmem>>, vector<32x256xbf16>
    tpu.vector_store %arg8[%c128_50, %c256_51], %66 {strides = array<i32>} : memref<288x1024xbf16, #tpu.memory_space<vmem>>, vector<32x256xbf16>,
    %c255_i32_52 = arith.constant 255 : i32
    %68 = tpu.dynamic_rotate %45 by %c255_i32_52 dim 1 : vector<32x256xf32>, i32 -> vector<32x256xf32>
    %c160_53 = arith.constant 160 : index
    %c0_54 = arith.constant 0 : index
    %69 = vector.load %arg2[%c160_53, %c0_54] : memref<288x256xf32, #tpu.memory_space<vmem>>, vector<32x256xf32>
    %70 = arith.mulf %68, %69 : vector<32x256xf32>
    %71 = arith.truncf %70 : vector<32x256xf32> to vector<32x256xbf16>
    %c160_55 = arith.constant 160 : index
    %c256_56 = arith.constant 256 : index
    %72 = vector.load %arg8[%c160_55, %c256_56] : memref<288x1024xbf16, #tpu.memory_space<vmem>>, vector<32x256xbf16>
    tpu.vector_store %arg8[%c160_55, %c256_56], %71 {strides = array<i32>} : memref<288x1024xbf16, #tpu.memory_space<vmem>>, vector<32x256xbf16>,
    %c241_i32_57 = arith.constant 241 : i32
    %73 = tpu.dynamic_rotate %45 by %c241_i32_57 dim 1 : vector<32x256xf32>, i32 -> vector<32x256xf32>
    %c192_58 = arith.constant 192 : index
    %c0_59 = arith.constant 0 : index
    %74 = vector.load %arg2[%c192_58, %c0_59] : memref<288x256xf32, #tpu.memory_space<vmem>>, vector<32x256xf32>
    %75 = arith.mulf %73, %74 : vector<32x256xf32>
    %76 = arith.truncf %75 : vector<32x256xf32> to vector<32x256xbf16>
    %c192_60 = arith.constant 192 : index
    %c256_61 = arith.constant 256 : index
    %77 = vector.load %arg8[%c192_60, %c256_61] : memref<288x1024xbf16, #tpu.memory_space<vmem>>, vector<32x256xbf16>
    tpu.vector_store %arg8[%c192_60, %c256_61], %76 {strides = array<i32>} : memref<288x1024xbf16, #tpu.memory_space<vmem>>, vector<32x256xbf16>,
    %c240_i32_62 = arith.constant 240 : i32
    %78 = tpu.dynamic_rotate %45 by %c240_i32_62 dim 1 : vector<32x256xf32>, i32 -> vector<32x256xf32>
    %c224_63 = arith.constant 224 : index
    %c0_64 = arith.constant 0 : index
    %79 = vector.load %arg2[%c224_63, %c0_64] : memref<288x256xf32, #tpu.memory_space<vmem>>, vector<32x256xf32>
    %80 = arith.mulf %78, %79 : vector<32x256xf32>
    %81 = arith.truncf %80 : vector<32x256xf32> to vector<32x256xbf16>
    %c224_65 = arith.constant 224 : index
    %c256_66 = arith.constant 256 : index
    %82 = vector.load %arg8[%c224_65, %c256_66] : memref<288x1024xbf16, #tpu.memory_space<vmem>>, vector<32x256xbf16>
    tpu.vector_store %arg8[%c224_65, %c256_66], %81 {strides = array<i32>} : memref<288x1024xbf16, #tpu.memory_space<vmem>>, vector<32x256xbf16>,
    %c239_i32_67 = arith.constant 239 : i32
    %83 = tpu.dynamic_rotate %45 by %c239_i32_67 dim 1 : vector<32x256xf32>, i32 -> vector<32x256xf32>
    %c256_68 = arith.constant 256 : index
    %c0_69 = arith.constant 0 : index
    %84 = vector.load %arg2[%c256_68, %c0_69] : memref<288x256xf32, #tpu.memory_space<vmem>>, vector<32x256xf32>
    %85 = arith.mulf %83, %84 : vector<32x256xf32>
    %86 = arith.truncf %85 : vector<32x256xf32> to vector<32x256xbf16>
    %c256_70 = arith.constant 256 : index
    %c256_71 = arith.constant 256 : index
    %87 = vector.load %arg8[%c256_70, %c256_71] : memref<288x1024xbf16, #tpu.memory_space<vmem>>, vector<32x256xbf16>
    tpu.vector_store %arg8[%c256_70, %c256_71], %86 {strides = array<i32>} : memref<288x1024xbf16, #tpu.memory_space<vmem>>, vector<32x256xbf16>,
    %c2 = arith.constant 2 : index
    %c0_72 = arith.constant 0 : index
    %c0_73 = arith.constant 0 : index
    %88 = vector.load %arg1[%c2, %c0_72, %c0_73] : memref<4x32x256xf32, #tpu.memory_space<vmem>>, vector<1x32x256xf32>
    %89 = vector.shape_cast %88 : vector<1x32x256xf32> to vector<32x256xf32>
    %c17_i32_74 = arith.constant 17 : i32
    %90 = tpu.dynamic_rotate %89 by %c17_i32_74 dim 1 : vector<32x256xf32>, i32 -> vector<32x256xf32>
    %c0_75 = arith.constant 0 : index
    %c0_76 = arith.constant 0 : index
    %91 = vector.load %arg2[%c0_75, %c0_76] : memref<288x256xf32, #tpu.memory_space<vmem>>, vector<32x256xf32>
    %92 = arith.mulf %90, %91 : vector<32x256xf32>
    %93 = arith.truncf %92 : vector<32x256xf32> to vector<32x256xbf16>
    %c0_77 = arith.constant 0 : index
    %c512 = arith.constant 512 : index
    %94 = vector.load %arg8[%c0_77, %c512] : memref<288x1024xbf16, #tpu.memory_space<vmem>>, vector<32x256xbf16>
    tpu.vector_store %arg8[%c0_77, %c512], %93 {strides = array<i32>} : memref<288x1024xbf16, #tpu.memory_space<vmem>>, vector<32x256xbf16>,
    %c16_i32_78 = arith.constant 16 : i32
    %95 = tpu.dynamic_rotate %89 by %c16_i32_78 dim 1 : vector<32x256xf32>, i32 -> vector<32x256xf32>
    %c32_79 = arith.constant 32 : index
    %c0_80 = arith.constant 0 : index
    %96 = vector.load %arg2[%c32_79, %c0_80] : memref<288x256xf32, #tpu.memory_space<vmem>>, vector<32x256xf32>
    %97 = arith.mulf %95, %96 : vector<32x256xf32>
    %98 = arith.truncf %97 : vector<32x256xf32> to vector<32x256xbf16>
    %c32_81 = arith.constant 32 : index
    %c512_82 = arith.constant 512 : index
    %99 = vector.load %arg8[%c32_81, %c512_82] : memref<288x1024xbf16, #tpu.memory_space<vmem>>, vector<32x256xbf16>
    tpu.vector_store %arg8[%c32_81, %c512_82], %98 {strides = array<i32>} : memref<288x1024xbf16, #tpu.memory_space<vmem>>, vector<32x256xbf16>,
    %c15_i32_83 = arith.constant 15 : i32
    %100 = tpu.dynamic_rotate %89 by %c15_i32_83 dim 1 : vector<32x256xf32>, i32 -> vector<32x256xf32>
    %c64_84 = arith.constant 64 : index
    %c0_85 = arith.constant 0 : index
    %101 = vector.load %arg2[%c64_84, %c0_85] : memref<288x256xf32, #tpu.memory_space<vmem>>, vector<32x256xf32>
    %102 = arith.mulf %100, %101 : vector<32x256xf32>
    %103 = arith.truncf %102 : vector<32x256xf32> to vector<32x256xbf16>
    %c64_86 = arith.constant 64 : index
    %c512_87 = arith.constant 512 : index
    %104 = vector.load %arg8[%c64_86, %c512_87] : memref<288x1024xbf16, #tpu.memory_space<vmem>>, vector<32x256xbf16>
    tpu.vector_store %arg8[%c64_86, %c512_87], %103 {strides = array<i32>} : memref<288x1024xbf16, #tpu.memory_space<vmem>>, vector<32x256xbf16>,
    %c1_i32_88 = arith.constant 1 : i32
    %105 = tpu.dynamic_rotate %89 by %c1_i32_88 dim 1 : vector<32x256xf32>, i32 -> vector<32x256xf32>
    %c96_89 = arith.constant 96 : index
    %c0_90 = arith.constant 0 : index
    %106 = vector.load %arg2[%c96_89, %c0_90] : memref<288x256xf32, #tpu.memory_space<vmem>>, vector<32x256xf32>
    %107 = arith.mulf %105, %106 : vector<32x256xf32>
    %108 = arith.truncf %107 : vector<32x256xf32> to vector<32x256xbf16>
    %c96_91 = arith.constant 96 : index
    %c512_92 = arith.constant 512 : index
    %109 = vector.load %arg8[%c96_91, %c512_92] : memref<288x1024xbf16, #tpu.memory_space<vmem>>, vector<32x256xbf16>
    tpu.vector_store %arg8[%c96_91, %c512_92], %108 {strides = array<i32>} : memref<288x1024xbf16, #tpu.memory_space<vmem>>, vector<32x256xbf16>,
    %110 = arith.truncf %89 : vector<32x256xf32> to vector<32x256xbf16>
    %c128_93 = arith.constant 128 : index
    %c512_94 = arith.constant 512 : index
    %111 = vector.load %arg8[%c128_93, %c512_94] : memref<288x1024xbf16, #tpu.memory_space<vmem>>, vector<32x256xbf16>
    tpu.vector_store %arg8[%c128_93, %c512_94], %110 {strides = array<i32>} : memref<288x1024xbf16, #tpu.memory_space<vmem>>, vector<32x256xbf16>,
    %c255_i32_95 = arith.constant 255 : i32
    %112 = tpu.dynamic_rotate %89 by %c255_i32_95 dim 1 : vector<32x256xf32>, i32 -> vector<32x256xf32>
    %c160_96 = arith.constant 160 : index
    %c0_97 = arith.constant 0 : index
    %113 = vector.load %arg2[%c160_96, %c0_97] : memref<288x256xf32, #tpu.memory_space<vmem>>, vector<32x256xf32>
    %114 = arith.mulf %112, %113 : vector<32x256xf32>
    %115 = arith.truncf %114 : vector<32x256xf32> to vector<32x256xbf16>
    %c160_98 = arith.constant 160 : index
    %c512_99 = arith.constant 512 : index
    %116 = vector.load %arg8[%c160_98, %c512_99] : memref<288x1024xbf16, #tpu.memory_space<vmem>>, vector<32x256xbf16>
    tpu.vector_store %arg8[%c160_98, %c512_99], %115 {strides = array<i32>} : memref<288x1024xbf16, #tpu.memory_space<vmem>>, vector<32x256xbf16>,
    %c241_i32_100 = arith.constant 241 : i32
    %117 = tpu.dynamic_rotate %89 by %c241_i32_100 dim 1 : vector<32x256xf32>, i32 -> vector<32x256xf32>
    %c192_101 = arith.constant 192 : index
    %c0_102 = arith.constant 0 : index
    %118 = vector.load %arg2[%c192_101, %c0_102] : memref<288x256xf32, #tpu.memory_space<vmem>>, vector<32x256xf32>
    %119 = arith.mulf %117, %118 : vector<32x256xf32>
    %120 = arith.truncf %119 : vector<32x256xf32> to vector<32x256xbf16>
    %c192_103 = arith.constant 192 : index
    %c512_104 = arith.constant 512 : index
    %121 = vector.load %arg8[%c192_103, %c512_104] : memref<288x1024xbf16, #tpu.memory_space<vmem>>, vector<32x256xbf16>
    tpu.vector_store %arg8[%c192_103, %c512_104], %120 {strides = array<i32>} : memref<288x1024xbf16, #tpu.memory_space<vmem>>, vector<32x256xbf16>,
    %c240_i32_105 = arith.constant 240 : i32
    %122 = tpu.dynamic_rotate %89 by %c240_i32_105 dim 1 : vector<32x256xf32>, i32 -> vector<32x256xf32>
    %c224_106 = arith.constant 224 : index
    %c0_107 = arith.constant 0 : index
    %123 = vector.load %arg2[%c224_106, %c0_107] : memref<288x256xf32, #tpu.memory_space<vmem>>, vector<32x256xf32>
    %124 = arith.mulf %122, %123 : vector<32x256xf32>
    %125 = arith.truncf %124 : vector<32x256xf32> to vector<32x256xbf16>
    %c224_108 = arith.constant 224 : index
    %c512_109 = arith.constant 512 : index
    %126 = vector.load %arg8[%c224_108, %c512_109] : memref<288x1024xbf16, #tpu.memory_space<vmem>>, vector<32x256xbf16>
    tpu.vector_store %arg8[%c224_108, %c512_109], %125 {strides = array<i32>} : memref<288x1024xbf16, #tpu.memory_space<vmem>>, vector<32x256xbf16>,
    %c239_i32_110 = arith.constant 239 : i32
    %127 = tpu.dynamic_rotate %89 by %c239_i32_110 dim 1 : vector<32x256xf32>, i32 -> vector<32x256xf32>
    %c256_111 = arith.constant 256 : index
    %c0_112 = arith.constant 0 : index
    %128 = vector.load %arg2[%c256_111, %c0_112] : memref<288x256xf32, #tpu.memory_space<vmem>>, vector<32x256xf32>
    %129 = arith.mulf %127, %128 : vector<32x256xf32>
    %130 = arith.truncf %129 : vector<32x256xf32> to vector<32x256xbf16>
    %c256_113 = arith.constant 256 : index
    %c512_114 = arith.constant 512 : index
    %131 = vector.load %arg8[%c256_113, %c512_114] : memref<288x1024xbf16, #tpu.memory_space<vmem>>, vector<32x256xbf16>
    tpu.vector_store %arg8[%c256_113, %c512_114], %130 {strides = array<i32>} : memref<288x1024xbf16, #tpu.memory_space<vmem>>, vector<32x256xbf16>,
    %c3 = arith.constant 3 : index
    %c0_115 = arith.constant 0 : index
    %c0_116 = arith.constant 0 : index
    %132 = vector.load %arg1[%c3, %c0_115, %c0_116] : memref<4x32x256xf32, #tpu.memory_space<vmem>>, vector<1x32x256xf32>
    %133 = vector.shape_cast %132 : vector<1x32x256xf32> to vector<32x256xf32>
    %c17_i32_117 = arith.constant 17 : i32
    %134 = tpu.dynamic_rotate %133 by %c17_i32_117 dim 1 : vector<32x256xf32>, i32 -> vector<32x256xf32>
    %c0_118 = arith.constant 0 : index
    %c0_119 = arith.constant 0 : index
    %135 = vector.load %arg2[%c0_118, %c0_119] : memref<288x256xf32, #tpu.memory_space<vmem>>, vector<32x256xf32>
    %136 = arith.mulf %134, %135 : vector<32x256xf32>
    %137 = arith.truncf %136 : vector<32x256xf32> to vector<32x256xbf16>
    %c0_120 = arith.constant 0 : index
    %c768 = arith.constant 768 : index
    %138 = vector.load %arg8[%c0_120, %c768] : memref<288x1024xbf16, #tpu.memory_space<vmem>>, vector<32x256xbf16>
    tpu.vector_store %arg8[%c0_120, %c768], %137 {strides = array<i32>} : memref<288x1024xbf16, #tpu.memory_space<vmem>>, vector<32x256xbf16>,
    %c16_i32_121 = arith.constant 16 : i32
    %139 = tpu.dynamic_rotate %133 by %c16_i32_121 dim 1 : vector<32x256xf32>, i32 -> vector<32x256xf32>
    %c32_122 = arith.constant 32 : index
    %c0_123 = arith.constant 0 : index
    %140 = vector.load %arg2[%c32_122, %c0_123] : memref<288x256xf32, #tpu.memory_space<vmem>>, vector<32x256xf32>
    %141 = arith.mulf %139, %140 : vector<32x256xf32>
    %142 = arith.truncf %141 : vector<32x256xf32> to vector<32x256xbf16>
    %c32_124 = arith.constant 32 : index
    %c768_125 = arith.constant 768 : index
    %143 = vector.load %arg8[%c32_124, %c768_125] : memref<288x1024xbf16, #tpu.memory_space<vmem>>, vector<32x256xbf16>
    tpu.vector_store %arg8[%c32_124, %c768_125], %142 {strides = array<i32>} : memref<288x1024xbf16, #tpu.memory_space<vmem>>, vector<32x256xbf16>,
    %c15_i32_126 = arith.constant 15 : i32
    %144 = tpu.dynamic_rotate %133 by %c15_i32_126 dim 1 : vector<32x256xf32>, i32 -> vector<32x256xf32>
    %c64_127 = arith.constant 64 : index
    %c0_128 = arith.constant 0 : index
    %145 = vector.load %arg2[%c64_127, %c0_128] : memref<288x256xf32, #tpu.memory_space<vmem>>, vector<32x256xf32>
    %146 = arith.mulf %144, %145 : vector<32x256xf32>
    %147 = arith.truncf %146 : vector<32x256xf32> to vector<32x256xbf16>
    %c64_129 = arith.constant 64 : index
    %c768_130 = arith.constant 768 : index
    %148 = vector.load %arg8[%c64_129, %c768_130] : memref<288x1024xbf16, #tpu.memory_space<vmem>>, vector<32x256xbf16>
    tpu.vector_store %arg8[%c64_129, %c768_130], %147 {strides = array<i32>} : memref<288x1024xbf16, #tpu.memory_space<vmem>>, vector<32x256xbf16>,
    %c1_i32_131 = arith.constant 1 : i32
    %149 = tpu.dynamic_rotate %133 by %c1_i32_131 dim 1 : vector<32x256xf32>, i32 -> vector<32x256xf32>
    %c96_132 = arith.constant 96 : index
    %c0_133 = arith.constant 0 : index
    %150 = vector.load %arg2[%c96_132, %c0_133] : memref<288x256xf32, #tpu.memory_space<vmem>>, vector<32x256xf32>
    %151 = arith.mulf %149, %150 : vector<32x256xf32>
    %152 = arith.truncf %151 : vector<32x256xf32> to vector<32x256xbf16>
    %c96_134 = arith.constant 96 : index
    %c768_135 = arith.constant 768 : index
    %153 = vector.load %arg8[%c96_134, %c768_135] : memref<288x1024xbf16, #tpu.memory_space<vmem>>, vector<32x256xbf16>
    tpu.vector_store %arg8[%c96_134, %c768_135], %152 {strides = array<i32>} : memref<288x1024xbf16, #tpu.memory_space<vmem>>, vector<32x256xbf16>,
    %154 = arith.truncf %133 : vector<32x256xf32> to vector<32x256xbf16>
    %c128_136 = arith.constant 128 : index
    %c768_137 = arith.constant 768 : index
    %155 = vector.load %arg8[%c128_136, %c768_137] : memref<288x1024xbf16, #tpu.memory_space<vmem>>, vector<32x256xbf16>
    tpu.vector_store %arg8[%c128_136, %c768_137], %154 {strides = array<i32>} : memref<288x1024xbf16, #tpu.memory_space<vmem>>, vector<32x256xbf16>,
    %c255_i32_138 = arith.constant 255 : i32
    %156 = tpu.dynamic_rotate %133 by %c255_i32_138 dim 1 : vector<32x256xf32>, i32 -> vector<32x256xf32>
    %c160_139 = arith.constant 160 : index
    %c0_140 = arith.constant 0 : index
    %157 = vector.load %arg2[%c160_139, %c0_140] : memref<288x256xf32, #tpu.memory_space<vmem>>, vector<32x256xf32>
    %158 = arith.mulf %156, %157 : vector<32x256xf32>
    %159 = arith.truncf %158 : vector<32x256xf32> to vector<32x256xbf16>
    %c160_141 = arith.constant 160 : index
    %c768_142 = arith.constant 768 : index
    %160 = vector.load %arg8[%c160_141, %c768_142] : memref<288x1024xbf16, #tpu.memory_space<vmem>>, vector<32x256xbf16>
    tpu.vector_store %arg8[%c160_141, %c768_142], %159 {strides = array<i32>} : memref<288x1024xbf16, #tpu.memory_space<vmem>>, vector<32x256xbf16>,
    %c241_i32_143 = arith.constant 241 : i32
    %161 = tpu.dynamic_rotate %133 by %c241_i32_143 dim 1 : vector<32x256xf32>, i32 -> vector<32x256xf32>
    %c192_144 = arith.constant 192 : index
    %c0_145 = arith.constant 0 : index
    %162 = vector.load %arg2[%c192_144, %c0_145] : memref<288x256xf32, #tpu.memory_space<vmem>>, vector<32x256xf32>
    %163 = arith.mulf %161, %162 : vector<32x256xf32>
    %164 = arith.truncf %163 : vector<32x256xf32> to vector<32x256xbf16>
    %c192_146 = arith.constant 192 : index
    %c768_147 = arith.constant 768 : index
    %165 = vector.load %arg8[%c192_146, %c768_147] : memref<288x1024xbf16, #tpu.memory_space<vmem>>, vector<32x256xbf16>
    tpu.vector_store %arg8[%c192_146, %c768_147], %164 {strides = array<i32>} : memref<288x1024xbf16, #tpu.memory_space<vmem>>, vector<32x256xbf16>,
    %c240_i32_148 = arith.constant 240 : i32
    %166 = tpu.dynamic_rotate %133 by %c240_i32_148 dim 1 : vector<32x256xf32>, i32 -> vector<32x256xf32>
    %c224_149 = arith.constant 224 : index
    %c0_150 = arith.constant 0 : index
    %167 = vector.load %arg2[%c224_149, %c0_150] : memref<288x256xf32, #tpu.memory_space<vmem>>, vector<32x256xf32>
    %168 = arith.mulf %166, %167 : vector<32x256xf32>
    %169 = arith.truncf %168 : vector<32x256xf32> to vector<32x256xbf16>
    %c224_151 = arith.constant 224 : index
    %c768_152 = arith.constant 768 : index
    %170 = vector.load %arg8[%c224_151, %c768_152] : memref<288x1024xbf16, #tpu.memory_space<vmem>>, vector<32x256xbf16>
    tpu.vector_store %arg8[%c224_151, %c768_152], %169 {strides = array<i32>} : memref<288x1024xbf16, #tpu.memory_space<vmem>>, vector<32x256xbf16>,
    %c239_i32_153 = arith.constant 239 : i32
    %171 = tpu.dynamic_rotate %133 by %c239_i32_153 dim 1 : vector<32x256xf32>, i32 -> vector<32x256xf32>
    %c256_154 = arith.constant 256 : index
    %c0_155 = arith.constant 0 : index
    %172 = vector.load %arg2[%c256_154, %c0_155] : memref<288x256xf32, #tpu.memory_space<vmem>>, vector<32x256xf32>
    %173 = arith.mulf %171, %172 : vector<32x256xf32>
    %174 = arith.truncf %173 : vector<32x256xf32> to vector<32x256xbf16>
    %c256_156 = arith.constant 256 : index
    %c768_157 = arith.constant 768 : index
    %175 = vector.load %arg8[%c256_156, %c768_157] : memref<288x1024xbf16, #tpu.memory_space<vmem>>, vector<32x256xbf16>
    tpu.vector_store %arg8[%c256_156, %c768_157], %174 {strides = array<i32>} : memref<288x1024xbf16, #tpu.memory_space<vmem>>, vector<32x256xbf16>,
    %c0_158 = arith.constant 0 : index
    %c0_159 = arith.constant 0 : index
    %176 = vector.load %arg3[%c0_158, %c0_159] : memref<32x288xbf16, #tpu.memory_space<vmem>>, vector<32x288xbf16>
    %c0_160 = arith.constant 0 : index
    %c0_161 = arith.constant 0 : index
    %177 = vector.load %arg8[%c0_160, %c0_161] : memref<288x1024xbf16, #tpu.memory_space<vmem>>, vector<288x1024xbf16>
    %cst = arith.constant dense<0.000000e+00> : vector<32x1024xf32>
    %178 = tpu.matmul %176, %177, %cst {dimension_numbers = #tpu.dot_dimension_numbers<[1], [0], [0], [1], [0, 0, 1, 1], [], []>} : vector<32x288xbf16>, vector<288x1024xbf16>, vector<32x1024xf32> -> vector<32x1024xf32>
    %c0_162 = arith.constant 0 : index
    %c0_163 = arith.constant 0 : index
    %179 = vector.load %arg4[%c0_162, %c0_163] : memref<32x1xf32, #tpu.memory_space<vmem>>, vector<32x1xf32>
    %180 = vector.broadcast %179 : vector<32x1xf32> to vector<32x1024xf32>
    %181 = arith.addf %178, %180 : vector<32x1024xf32>
    %cst_164 = arith.constant 0.000000e+00 : f32
    %182 = vector.broadcast %cst_164 : f32 to vector<32x1024xf32>
    %183 = arith.maximumf %181, %182 : vector<32x1024xf32>
    %c0_165 = arith.constant 0 : index
    %c0_166 = arith.constant 0 : index
    %184 = vector.load %arg9[%c0_165, %c0_166] : memref<32x1024xf32, #tpu.memory_space<vmem>>, vector<32x1024xf32>
    tpu.vector_store %arg9[%c0_165, %c0_166], %183 {strides = array<i32>} : memref<32x1024xf32, #tpu.memory_space<vmem>>, vector<32x1024xf32>,
    %c0_167 = arith.constant 0 : index
    %c0_168 = arith.constant 0 : index
    %185 = vector.load %arg9[%c0_167, %c0_168] : memref<32x1024xf32, #tpu.memory_space<vmem>>, vector<32x256xf32>
    %c17_i32_169 = arith.constant 17 : i32
    %186 = tpu.dynamic_rotate %185 by %c17_i32_169 dim 1 : vector<32x256xf32>, i32 -> vector<32x256xf32>
    %c0_170 = arith.constant 0 : index
    %c0_171 = arith.constant 0 : index
    %187 = vector.load %arg2[%c0_170, %c0_171] : memref<288x256xf32, #tpu.memory_space<vmem>>, vector<32x256xf32>
    %188 = arith.mulf %186, %187 : vector<32x256xf32>
    %189 = arith.truncf %188 : vector<32x256xf32> to vector<32x256xbf16>
    %c0_172 = arith.constant 0 : index
    %c0_173 = arith.constant 0 : index
    %190 = vector.load %arg8[%c0_172, %c0_173] : memref<288x1024xbf16, #tpu.memory_space<vmem>>, vector<32x256xbf16>
    tpu.vector_store %arg8[%c0_172, %c0_173], %189 {strides = array<i32>} : memref<288x1024xbf16, #tpu.memory_space<vmem>>, vector<32x256xbf16>,
    %c16_i32_174 = arith.constant 16 : i32
    %191 = tpu.dynamic_rotate %185 by %c16_i32_174 dim 1 : vector<32x256xf32>, i32 -> vector<32x256xf32>
    %c32_175 = arith.constant 32 : index
    %c0_176 = arith.constant 0 : index
    %192 = vector.load %arg2[%c32_175, %c0_176] : memref<288x256xf32, #tpu.memory_space<vmem>>, vector<32x256xf32>
    %193 = arith.mulf %191, %192 : vector<32x256xf32>
    %194 = arith.truncf %193 : vector<32x256xf32> to vector<32x256xbf16>
    %c32_177 = arith.constant 32 : index
    %c0_178 = arith.constant 0 : index
    %195 = vector.load %arg8[%c32_177, %c0_178] : memref<288x1024xbf16, #tpu.memory_space<vmem>>, vector<32x256xbf16>
    tpu.vector_store %arg8[%c32_177, %c0_178], %194 {strides = array<i32>} : memref<288x1024xbf16, #tpu.memory_space<vmem>>, vector<32x256xbf16>,
    %c15_i32_179 = arith.constant 15 : i32
    %196 = tpu.dynamic_rotate %185 by %c15_i32_179 dim 1 : vector<32x256xf32>, i32 -> vector<32x256xf32>
    %c64_180 = arith.constant 64 : index
    %c0_181 = arith.constant 0 : index
    %197 = vector.load %arg2[%c64_180, %c0_181] : memref<288x256xf32, #tpu.memory_space<vmem>>, vector<32x256xf32>
    %198 = arith.mulf %196, %197 : vector<32x256xf32>
    %199 = arith.truncf %198 : vector<32x256xf32> to vector<32x256xbf16>
    %c64_182 = arith.constant 64 : index
    %c0_183 = arith.constant 0 : index
    %200 = vector.load %arg8[%c64_182, %c0_183] : memref<288x1024xbf16, #tpu.memory_space<vmem>>, vector<32x256xbf16>
    tpu.vector_store %arg8[%c64_182, %c0_183], %199 {strides = array<i32>} : memref<288x1024xbf16, #tpu.memory_space<vmem>>, vector<32x256xbf16>,
    %c1_i32_184 = arith.constant 1 : i32
    %201 = tpu.dynamic_rotate %185 by %c1_i32_184 dim 1 : vector<32x256xf32>, i32 -> vector<32x256xf32>
    %c96_185 = arith.constant 96 : index
    %c0_186 = arith.constant 0 : index
    %202 = vector.load %arg2[%c96_185, %c0_186] : memref<288x256xf32, #tpu.memory_space<vmem>>, vector<32x256xf32>
    %203 = arith.mulf %201, %202 : vector<32x256xf32>
    %204 = arith.truncf %203 : vector<32x256xf32> to vector<32x256xbf16>
    %c96_187 = arith.constant 96 : index
    %c0_188 = arith.constant 0 : index
    %205 = vector.load %arg8[%c96_187, %c0_188] : memref<288x1024xbf16, #tpu.memory_space<vmem>>, vector<32x256xbf16>
    tpu.vector_store %arg8[%c96_187, %c0_188], %204 {strides = array<i32>} : memref<288x1024xbf16, #tpu.memory_space<vmem>>, vector<32x256xbf16>,
    %206 = arith.truncf %185 : vector<32x256xf32> to vector<32x256xbf16>
    %c128_189 = arith.constant 128 : index
    %c0_190 = arith.constant 0 : index
    %207 = vector.load %arg8[%c128_189, %c0_190] : memref<288x1024xbf16, #tpu.memory_space<vmem>>, vector<32x256xbf16>
    tpu.vector_store %arg8[%c128_189, %c0_190], %206 {strides = array<i32>} : memref<288x1024xbf16, #tpu.memory_space<vmem>>, vector<32x256xbf16>,
    %c255_i32_191 = arith.constant 255 : i32
    %208 = tpu.dynamic_rotate %185 by %c255_i32_191 dim 1 : vector<32x256xf32>, i32 -> vector<32x256xf32>
    %c160_192 = arith.constant 160 : index
    %c0_193 = arith.constant 0 : index
    %209 = vector.load %arg2[%c160_192, %c0_193] : memref<288x256xf32, #tpu.memory_space<vmem>>, vector<32x256xf32>
    %210 = arith.mulf %208, %209 : vector<32x256xf32>
    %211 = arith.truncf %210 : vector<32x256xf32> to vector<32x256xbf16>
    %c160_194 = arith.constant 160 : index
    %c0_195 = arith.constant 0 : index
    %212 = vector.load %arg8[%c160_194, %c0_195] : memref<288x1024xbf16, #tpu.memory_space<vmem>>, vector<32x256xbf16>
    tpu.vector_store %arg8[%c160_194, %c0_195], %211 {strides = array<i32>} : memref<288x1024xbf16, #tpu.memory_space<vmem>>, vector<32x256xbf16>,
    %c241_i32_196 = arith.constant 241 : i32
    %213 = tpu.dynamic_rotate %185 by %c241_i32_196 dim 1 : vector<32x256xf32>, i32 -> vector<32x256xf32>
    %c192_197 = arith.constant 192 : index
    %c0_198 = arith.constant 0 : index
    %214 = vector.load %arg2[%c192_197, %c0_198] : memref<288x256xf32, #tpu.memory_space<vmem>>, vector<32x256xf32>
    %215 = arith.mulf %213, %214 : vector<32x256xf32>
    %216 = arith.truncf %215 : vector<32x256xf32> to vector<32x256xbf16>
    %c192_199 = arith.constant 192 : index
    %c0_200 = arith.constant 0 : index
    %217 = vector.load %arg8[%c192_199, %c0_200] : memref<288x1024xbf16, #tpu.memory_space<vmem>>, vector<32x256xbf16>
    tpu.vector_store %arg8[%c192_199, %c0_200], %216 {strides = array<i32>} : memref<288x1024xbf16, #tpu.memory_space<vmem>>, vector<32x256xbf16>,
    %c240_i32_201 = arith.constant 240 : i32
    %218 = tpu.dynamic_rotate %185 by %c240_i32_201 dim 1 : vector<32x256xf32>, i32 -> vector<32x256xf32>
    %c224_202 = arith.constant 224 : index
    %c0_203 = arith.constant 0 : index
    %219 = vector.load %arg2[%c224_202, %c0_203] : memref<288x256xf32, #tpu.memory_space<vmem>>, vector<32x256xf32>
    %220 = arith.mulf %218, %219 : vector<32x256xf32>
    %221 = arith.truncf %220 : vector<32x256xf32> to vector<32x256xbf16>
    %c224_204 = arith.constant 224 : index
    %c0_205 = arith.constant 0 : index
    %222 = vector.load %arg8[%c224_204, %c0_205] : memref<288x1024xbf16, #tpu.memory_space<vmem>>, vector<32x256xbf16>
    tpu.vector_store %arg8[%c224_204, %c0_205], %221 {strides = array<i32>} : memref<288x1024xbf16, #tpu.memory_space<vmem>>, vector<32x256xbf16>,
    %c239_i32_206 = arith.constant 239 : i32
    %223 = tpu.dynamic_rotate %185 by %c239_i32_206 dim 1 : vector<32x256xf32>, i32 -> vector<32x256xf32>
    %c256_207 = arith.constant 256 : index
    %c0_208 = arith.constant 0 : index
    %224 = vector.load %arg2[%c256_207, %c0_208] : memref<288x256xf32, #tpu.memory_space<vmem>>, vector<32x256xf32>
    %225 = arith.mulf %223, %224 : vector<32x256xf32>
    %226 = arith.truncf %225 : vector<32x256xf32> to vector<32x256xbf16>
    %c256_209 = arith.constant 256 : index
    %c0_210 = arith.constant 0 : index
    %227 = vector.load %arg8[%c256_209, %c0_210] : memref<288x1024xbf16, #tpu.memory_space<vmem>>, vector<32x256xbf16>
    tpu.vector_store %arg8[%c256_209, %c0_210], %226 {strides = array<i32>} : memref<288x1024xbf16, #tpu.memory_space<vmem>>, vector<32x256xbf16>,
    %c0_211 = arith.constant 0 : index
    %c256_212 = arith.constant 256 : index
    %228 = vector.load %arg9[%c0_211, %c256_212] : memref<32x1024xf32, #tpu.memory_space<vmem>>, vector<32x256xf32>
    %c17_i32_213 = arith.constant 17 : i32
    %229 = tpu.dynamic_rotate %228 by %c17_i32_213 dim 1 : vector<32x256xf32>, i32 -> vector<32x256xf32>
    %c0_214 = arith.constant 0 : index
    %c0_215 = arith.constant 0 : index
    %230 = vector.load %arg2[%c0_214, %c0_215] : memref<288x256xf32, #tpu.memory_space<vmem>>, vector<32x256xf32>
    %231 = arith.mulf %229, %230 : vector<32x256xf32>
    %232 = arith.truncf %231 : vector<32x256xf32> to vector<32x256xbf16>
    %c0_216 = arith.constant 0 : index
    %c256_217 = arith.constant 256 : index
    %233 = vector.load %arg8[%c0_216, %c256_217] : memref<288x1024xbf16, #tpu.memory_space<vmem>>, vector<32x256xbf16>
    tpu.vector_store %arg8[%c0_216, %c256_217], %232 {strides = array<i32>} : memref<288x1024xbf16, #tpu.memory_space<vmem>>, vector<32x256xbf16>,
    %c16_i32_218 = arith.constant 16 : i32
    %234 = tpu.dynamic_rotate %228 by %c16_i32_218 dim 1 : vector<32x256xf32>, i32 -> vector<32x256xf32>
    %c32_219 = arith.constant 32 : index
    %c0_220 = arith.constant 0 : index
    %235 = vector.load %arg2[%c32_219, %c0_220] : memref<288x256xf32, #tpu.memory_space<vmem>>, vector<32x256xf32>
    %236 = arith.mulf %234, %235 : vector<32x256xf32>
    %237 = arith.truncf %236 : vector<32x256xf32> to vector<32x256xbf16>
    %c32_221 = arith.constant 32 : index
    %c256_222 = arith.constant 256 : index
    %238 = vector.load %arg8[%c32_221, %c256_222] : memref<288x1024xbf16, #tpu.memory_space<vmem>>, vector<32x256xbf16>
    tpu.vector_store %arg8[%c32_221, %c256_222], %237 {strides = array<i32>} : memref<288x1024xbf16, #tpu.memory_space<vmem>>, vector<32x256xbf16>,
    %c15_i32_223 = arith.constant 15 : i32
    %239 = tpu.dynamic_rotate %228 by %c15_i32_223 dim 1 : vector<32x256xf32>, i32 -> vector<32x256xf32>
    %c64_224 = arith.constant 64 : index
    %c0_225 = arith.constant 0 : index
    %240 = vector.load %arg2[%c64_224, %c0_225] : memref<288x256xf32, #tpu.memory_space<vmem>>, vector<32x256xf32>
    %241 = arith.mulf %239, %240 : vector<32x256xf32>
    %242 = arith.truncf %241 : vector<32x256xf32> to vector<32x256xbf16>
    %c64_226 = arith.constant 64 : index
    %c256_227 = arith.constant 256 : index
    %243 = vector.load %arg8[%c64_226, %c256_227] : memref<288x1024xbf16, #tpu.memory_space<vmem>>, vector<32x256xbf16>
    tpu.vector_store %arg8[%c64_226, %c256_227], %242 {strides = array<i32>} : memref<288x1024xbf16, #tpu.memory_space<vmem>>, vector<32x256xbf16>,
    %c1_i32_228 = arith.constant 1 : i32
    %244 = tpu.dynamic_rotate %228 by %c1_i32_228 dim 1 : vector<32x256xf32>, i32 -> vector<32x256xf32>
    %c96_229 = arith.constant 96 : index
    %c0_230 = arith.constant 0 : index
    %245 = vector.load %arg2[%c96_229, %c0_230] : memref<288x256xf32, #tpu.memory_space<vmem>>, vector<32x256xf32>
    %246 = arith.mulf %244, %245 : vector<32x256xf32>
    %247 = arith.truncf %246 : vector<32x256xf32> to vector<32x256xbf16>
    %c96_231 = arith.constant 96 : index
    %c256_232 = arith.constant 256 : index
    %248 = vector.load %arg8[%c96_231, %c256_232] : memref<288x1024xbf16, #tpu.memory_space<vmem>>, vector<32x256xbf16>
    tpu.vector_store %arg8[%c96_231, %c256_232], %247 {strides = array<i32>} : memref<288x1024xbf16, #tpu.memory_space<vmem>>, vector<32x256xbf16>,
    %249 = arith.truncf %228 : vector<32x256xf32> to vector<32x256xbf16>
    %c128_233 = arith.constant 128 : index
    %c256_234 = arith.constant 256 : index
    %250 = vector.load %arg8[%c128_233, %c256_234] : memref<288x1024xbf16, #tpu.memory_space<vmem>>, vector<32x256xbf16>
    tpu.vector_store %arg8[%c128_233, %c256_234], %249 {strides = array<i32>} : memref<288x1024xbf16, #tpu.memory_space<vmem>>, vector<32x256xbf16>,
    %c255_i32_235 = arith.constant 255 : i32
    %251 = tpu.dynamic_rotate %228 by %c255_i32_235 dim 1 : vector<32x256xf32>, i32 -> vector<32x256xf32>
    %c160_236 = arith.constant 160 : index
    %c0_237 = arith.constant 0 : index
    %252 = vector.load %arg2[%c160_236, %c0_237] : memref<288x256xf32, #tpu.memory_space<vmem>>, vector<32x256xf32>
    %253 = arith.mulf %251, %252 : vector<32x256xf32>
    %254 = arith.truncf %253 : vector<32x256xf32> to vector<32x256xbf16>
    %c160_238 = arith.constant 160 : index
    %c256_239 = arith.constant 256 : index
    %255 = vector.load %arg8[%c160_238, %c256_239] : memref<288x1024xbf16, #tpu.memory_space<vmem>>, vector<32x256xbf16>
    tpu.vector_store %arg8[%c160_238, %c256_239], %254 {strides = array<i32>} : memref<288x1024xbf16, #tpu.memory_space<vmem>>, vector<32x256xbf16>,
    %c241_i32_240 = arith.constant 241 : i32
    %256 = tpu.dynamic_rotate %228 by %c241_i32_240 dim 1 : vector<32x256xf32>, i32 -> vector<32x256xf32>
    %c192_241 = arith.constant 192 : index
    %c0_242 = arith.constant 0 : index
    %257 = vector.load %arg2[%c192_241, %c0_242] : memref<288x256xf32, #tpu.memory_space<vmem>>, vector<32x256xf32>
    %258 = arith.mulf %256, %257 : vector<32x256xf32>
    %259 = arith.truncf %258 : vector<32x256xf32> to vector<32x256xbf16>
    %c192_243 = arith.constant 192 : index
    %c256_244 = arith.constant 256 : index
    %260 = vector.load %arg8[%c192_243, %c256_244] : memref<288x1024xbf16, #tpu.memory_space<vmem>>, vector<32x256xbf16>
    tpu.vector_store %arg8[%c192_243, %c256_244], %259 {strides = array<i32>} : memref<288x1024xbf16, #tpu.memory_space<vmem>>, vector<32x256xbf16>,
    %c240_i32_245 = arith.constant 240 : i32
    %261 = tpu.dynamic_rotate %228 by %c240_i32_245 dim 1 : vector<32x256xf32>, i32 -> vector<32x256xf32>
    %c224_246 = arith.constant 224 : index
    %c0_247 = arith.constant 0 : index
    %262 = vector.load %arg2[%c224_246, %c0_247] : memref<288x256xf32, #tpu.memory_space<vmem>>, vector<32x256xf32>
    %263 = arith.mulf %261, %262 : vector<32x256xf32>
    %264 = arith.truncf %263 : vector<32x256xf32> to vector<32x256xbf16>
    %c224_248 = arith.constant 224 : index
    %c256_249 = arith.constant 256 : index
    %265 = vector.load %arg8[%c224_248, %c256_249] : memref<288x1024xbf16, #tpu.memory_space<vmem>>, vector<32x256xbf16>
    tpu.vector_store %arg8[%c224_248, %c256_249], %264 {strides = array<i32>} : memref<288x1024xbf16, #tpu.memory_space<vmem>>, vector<32x256xbf16>,
    %c239_i32_250 = arith.constant 239 : i32
    %266 = tpu.dynamic_rotate %228 by %c239_i32_250 dim 1 : vector<32x256xf32>, i32 -> vector<32x256xf32>
    %c256_251 = arith.constant 256 : index
    %c0_252 = arith.constant 0 : index
    %267 = vector.load %arg2[%c256_251, %c0_252] : memref<288x256xf32, #tpu.memory_space<vmem>>, vector<32x256xf32>
    %268 = arith.mulf %266, %267 : vector<32x256xf32>
    %269 = arith.truncf %268 : vector<32x256xf32> to vector<32x256xbf16>
    %c256_253 = arith.constant 256 : index
    %c256_254 = arith.constant 256 : index
    %270 = vector.load %arg8[%c256_253, %c256_254] : memref<288x1024xbf16, #tpu.memory_space<vmem>>, vector<32x256xbf16>
    tpu.vector_store %arg8[%c256_253, %c256_254], %269 {strides = array<i32>} : memref<288x1024xbf16, #tpu.memory_space<vmem>>, vector<32x256xbf16>,
    %c0_255 = arith.constant 0 : index
    %c512_256 = arith.constant 512 : index
    %271 = vector.load %arg9[%c0_255, %c512_256] : memref<32x1024xf32, #tpu.memory_space<vmem>>, vector<32x256xf32>
    %c17_i32_257 = arith.constant 17 : i32
    %272 = tpu.dynamic_rotate %271 by %c17_i32_257 dim 1 : vector<32x256xf32>, i32 -> vector<32x256xf32>
    %c0_258 = arith.constant 0 : index
    %c0_259 = arith.constant 0 : index
    %273 = vector.load %arg2[%c0_258, %c0_259] : memref<288x256xf32, #tpu.memory_space<vmem>>, vector<32x256xf32>
    %274 = arith.mulf %272, %273 : vector<32x256xf32>
    %275 = arith.truncf %274 : vector<32x256xf32> to vector<32x256xbf16>
    %c0_260 = arith.constant 0 : index
    %c512_261 = arith.constant 512 : index
    %276 = vector.load %arg8[%c0_260, %c512_261] : memref<288x1024xbf16, #tpu.memory_space<vmem>>, vector<32x256xbf16>
    tpu.vector_store %arg8[%c0_260, %c512_261], %275 {strides = array<i32>} : memref<288x1024xbf16, #tpu.memory_space<vmem>>, vector<32x256xbf16>,
    %c16_i32_262 = arith.constant 16 : i32
    %277 = tpu.dynamic_rotate %271 by %c16_i32_262 dim 1 : vector<32x256xf32>, i32 -> vector<32x256xf32>
    %c32_263 = arith.constant 32 : index
    %c0_264 = arith.constant 0 : index
    %278 = vector.load %arg2[%c32_263, %c0_264] : memref<288x256xf32, #tpu.memory_space<vmem>>, vector<32x256xf32>
    %279 = arith.mulf %277, %278 : vector<32x256xf32>
    %280 = arith.truncf %279 : vector<32x256xf32> to vector<32x256xbf16>
    %c32_265 = arith.constant 32 : index
    %c512_266 = arith.constant 512 : index
    %281 = vector.load %arg8[%c32_265, %c512_266] : memref<288x1024xbf16, #tpu.memory_space<vmem>>, vector<32x256xbf16>
    tpu.vector_store %arg8[%c32_265, %c512_266], %280 {strides = array<i32>} : memref<288x1024xbf16, #tpu.memory_space<vmem>>, vector<32x256xbf16>,
    %c15_i32_267 = arith.constant 15 : i32
    %282 = tpu.dynamic_rotate %271 by %c15_i32_267 dim 1 : vector<32x256xf32>, i32 -> vector<32x256xf32>
    %c64_268 = arith.constant 64 : index
    %c0_269 = arith.constant 0 : index
    %283 = vector.load %arg2[%c64_268, %c0_269] : memref<288x256xf32, #tpu.memory_space<vmem>>, vector<32x256xf32>
    %284 = arith.mulf %282, %283 : vector<32x256xf32>
    %285 = arith.truncf %284 : vector<32x256xf32> to vector<32x256xbf16>
    %c64_270 = arith.constant 64 : index
    %c512_271 = arith.constant 512 : index
    %286 = vector.load %arg8[%c64_270, %c512_271] : memref<288x1024xbf16, #tpu.memory_space<vmem>>, vector<32x256xbf16>
    tpu.vector_store %arg8[%c64_270, %c512_271], %285 {strides = array<i32>} : memref<288x1024xbf16, #tpu.memory_space<vmem>>, vector<32x256xbf16>,
    %c1_i32_272 = arith.constant 1 : i32
    %287 = tpu.dynamic_rotate %271 by %c1_i32_272 dim 1 : vector<32x256xf32>, i32 -> vector<32x256xf32>
    %c96_273 = arith.constant 96 : index
    %c0_274 = arith.constant 0 : index
    %288 = vector.load %arg2[%c96_273, %c0_274] : memref<288x256xf32, #tpu.memory_space<vmem>>, vector<32x256xf32>
    %289 = arith.mulf %287, %288 : vector<32x256xf32>
    %290 = arith.truncf %289 : vector<32x256xf32> to vector<32x256xbf16>
    %c96_275 = arith.constant 96 : index
    %c512_276 = arith.constant 512 : index
    %291 = vector.load %arg8[%c96_275, %c512_276] : memref<288x1024xbf16, #tpu.memory_space<vmem>>, vector<32x256xbf16>
    tpu.vector_store %arg8[%c96_275, %c512_276], %290 {strides = array<i32>} : memref<288x1024xbf16, #tpu.memory_space<vmem>>, vector<32x256xbf16>,
    %292 = arith.truncf %271 : vector<32x256xf32> to vector<32x256xbf16>
    %c128_277 = arith.constant 128 : index
    %c512_278 = arith.constant 512 : index
    %293 = vector.load %arg8[%c128_277, %c512_278] : memref<288x1024xbf16, #tpu.memory_space<vmem>>, vector<32x256xbf16>
    tpu.vector_store %arg8[%c128_277, %c512_278], %292 {strides = array<i32>} : memref<288x1024xbf16, #tpu.memory_space<vmem>>, vector<32x256xbf16>,
    %c255_i32_279 = arith.constant 255 : i32
    %294 = tpu.dynamic_rotate %271 by %c255_i32_279 dim 1 : vector<32x256xf32>, i32 -> vector<32x256xf32>
    %c160_280 = arith.constant 160 : index
    %c0_281 = arith.constant 0 : index
    %295 = vector.load %arg2[%c160_280, %c0_281] : memref<288x256xf32, #tpu.memory_space<vmem>>, vector<32x256xf32>
    %296 = arith.mulf %294, %295 : vector<32x256xf32>
    %297 = arith.truncf %296 : vector<32x256xf32> to vector<32x256xbf16>
    %c160_282 = arith.constant 160 : index
    %c512_283 = arith.constant 512 : index
    %298 = vector.load %arg8[%c160_282, %c512_283] : memref<288x1024xbf16, #tpu.memory_space<vmem>>, vector<32x256xbf16>
    tpu.vector_store %arg8[%c160_282, %c512_283], %297 {strides = array<i32>} : memref<288x1024xbf16, #tpu.memory_space<vmem>>, vector<32x256xbf16>,
    %c241_i32_284 = arith.constant 241 : i32
    %299 = tpu.dynamic_rotate %271 by %c241_i32_284 dim 1 : vector<32x256xf32>, i32 -> vector<32x256xf32>
    %c192_285 = arith.constant 192 : index
    %c0_286 = arith.constant 0 : index
    %300 = vector.load %arg2[%c192_285, %c0_286] : memref<288x256xf32, #tpu.memory_space<vmem>>, vector<32x256xf32>
    %301 = arith.mulf %299, %300 : vector<32x256xf32>
    %302 = arith.truncf %301 : vector<32x256xf32> to vector<32x256xbf16>
    %c192_287 = arith.constant 192 : index
    %c512_288 = arith.constant 512 : index
    %303 = vector.load %arg8[%c192_287, %c512_288] : memref<288x1024xbf16, #tpu.memory_space<vmem>>, vector<32x256xbf16>
    tpu.vector_store %arg8[%c192_287, %c512_288], %302 {strides = array<i32>} : memref<288x1024xbf16, #tpu.memory_space<vmem>>, vector<32x256xbf16>,
    %c240_i32_289 = arith.constant 240 : i32
    %304 = tpu.dynamic_rotate %271 by %c240_i32_289 dim 1 : vector<32x256xf32>, i32 -> vector<32x256xf32>
    %c224_290 = arith.constant 224 : index
    %c0_291 = arith.constant 0 : index
    %305 = vector.load %arg2[%c224_290, %c0_291] : memref<288x256xf32, #tpu.memory_space<vmem>>, vector<32x256xf32>
    %306 = arith.mulf %304, %305 : vector<32x256xf32>
    %307 = arith.truncf %306 : vector<32x256xf32> to vector<32x256xbf16>
    %c224_292 = arith.constant 224 : index
    %c512_293 = arith.constant 512 : index
    %308 = vector.load %arg8[%c224_292, %c512_293] : memref<288x1024xbf16, #tpu.memory_space<vmem>>, vector<32x256xbf16>
    tpu.vector_store %arg8[%c224_292, %c512_293], %307 {strides = array<i32>} : memref<288x1024xbf16, #tpu.memory_space<vmem>>, vector<32x256xbf16>,
    %c239_i32_294 = arith.constant 239 : i32
    %309 = tpu.dynamic_rotate %271 by %c239_i32_294 dim 1 : vector<32x256xf32>, i32 -> vector<32x256xf32>
    %c256_295 = arith.constant 256 : index
    %c0_296 = arith.constant 0 : index
    %310 = vector.load %arg2[%c256_295, %c0_296] : memref<288x256xf32, #tpu.memory_space<vmem>>, vector<32x256xf32>
    %311 = arith.mulf %309, %310 : vector<32x256xf32>
    %312 = arith.truncf %311 : vector<32x256xf32> to vector<32x256xbf16>
    %c256_297 = arith.constant 256 : index
    %c512_298 = arith.constant 512 : index
    %313 = vector.load %arg8[%c256_297, %c512_298] : memref<288x1024xbf16, #tpu.memory_space<vmem>>, vector<32x256xbf16>
    tpu.vector_store %arg8[%c256_297, %c512_298], %312 {strides = array<i32>} : memref<288x1024xbf16, #tpu.memory_space<vmem>>, vector<32x256xbf16>,
    %c0_299 = arith.constant 0 : index
    %c768_300 = arith.constant 768 : index
    %314 = vector.load %arg9[%c0_299, %c768_300] : memref<32x1024xf32, #tpu.memory_space<vmem>>, vector<32x256xf32>
    %c17_i32_301 = arith.constant 17 : i32
    %315 = tpu.dynamic_rotate %314 by %c17_i32_301 dim 1 : vector<32x256xf32>, i32 -> vector<32x256xf32>
    %c0_302 = arith.constant 0 : index
    %c0_303 = arith.constant 0 : index
    %316 = vector.load %arg2[%c0_302, %c0_303] : memref<288x256xf32, #tpu.memory_space<vmem>>, vector<32x256xf32>
    %317 = arith.mulf %315, %316 : vector<32x256xf32>
    %318 = arith.truncf %317 : vector<32x256xf32> to vector<32x256xbf16>
    %c0_304 = arith.constant 0 : index
    %c768_305 = arith.constant 768 : index
    %319 = vector.load %arg8[%c0_304, %c768_305] : memref<288x1024xbf16, #tpu.memory_space<vmem>>, vector<32x256xbf16>
    tpu.vector_store %arg8[%c0_304, %c768_305], %318 {strides = array<i32>} : memref<288x1024xbf16, #tpu.memory_space<vmem>>, vector<32x256xbf16>,
    %c16_i32_306 = arith.constant 16 : i32
    %320 = tpu.dynamic_rotate %314 by %c16_i32_306 dim 1 : vector<32x256xf32>, i32 -> vector<32x256xf32>
    %c32_307 = arith.constant 32 : index
    %c0_308 = arith.constant 0 : index
    %321 = vector.load %arg2[%c32_307, %c0_308] : memref<288x256xf32, #tpu.memory_space<vmem>>, vector<32x256xf32>
    %322 = arith.mulf %320, %321 : vector<32x256xf32>
    %323 = arith.truncf %322 : vector<32x256xf32> to vector<32x256xbf16>
    %c32_309 = arith.constant 32 : index
    %c768_310 = arith.constant 768 : index
    %324 = vector.load %arg8[%c32_309, %c768_310] : memref<288x1024xbf16, #tpu.memory_space<vmem>>, vector<32x256xbf16>
    tpu.vector_store %arg8[%c32_309, %c768_310], %323 {strides = array<i32>} : memref<288x1024xbf16, #tpu.memory_space<vmem>>, vector<32x256xbf16>,
    %c15_i32_311 = arith.constant 15 : i32
    %325 = tpu.dynamic_rotate %314 by %c15_i32_311 dim 1 : vector<32x256xf32>, i32 -> vector<32x256xf32>
    %c64_312 = arith.constant 64 : index
    %c0_313 = arith.constant 0 : index
    %326 = vector.load %arg2[%c64_312, %c0_313] : memref<288x256xf32, #tpu.memory_space<vmem>>, vector<32x256xf32>
    %327 = arith.mulf %325, %326 : vector<32x256xf32>
    %328 = arith.truncf %327 : vector<32x256xf32> to vector<32x256xbf16>
    %c64_314 = arith.constant 64 : index
    %c768_315 = arith.constant 768 : index
    %329 = vector.load %arg8[%c64_314, %c768_315] : memref<288x1024xbf16, #tpu.memory_space<vmem>>, vector<32x256xbf16>
    tpu.vector_store %arg8[%c64_314, %c768_315], %328 {strides = array<i32>} : memref<288x1024xbf16, #tpu.memory_space<vmem>>, vector<32x256xbf16>,
    %c1_i32_316 = arith.constant 1 : i32
    %330 = tpu.dynamic_rotate %314 by %c1_i32_316 dim 1 : vector<32x256xf32>, i32 -> vector<32x256xf32>
    %c96_317 = arith.constant 96 : index
    %c0_318 = arith.constant 0 : index
    %331 = vector.load %arg2[%c96_317, %c0_318] : memref<288x256xf32, #tpu.memory_space<vmem>>, vector<32x256xf32>
    %332 = arith.mulf %330, %331 : vector<32x256xf32>
    %333 = arith.truncf %332 : vector<32x256xf32> to vector<32x256xbf16>
    %c96_319 = arith.constant 96 : index
    %c768_320 = arith.constant 768 : index
    %334 = vector.load %arg8[%c96_319, %c768_320] : memref<288x1024xbf16, #tpu.memory_space<vmem>>, vector<32x256xbf16>
    tpu.vector_store %arg8[%c96_319, %c768_320], %333 {strides = array<i32>} : memref<288x1024xbf16, #tpu.memory_space<vmem>>, vector<32x256xbf16>,
    %335 = arith.truncf %314 : vector<32x256xf32> to vector<32x256xbf16>
    %c128_321 = arith.constant 128 : index
    %c768_322 = arith.constant 768 : index
    %336 = vector.load %arg8[%c128_321, %c768_322] : memref<288x1024xbf16, #tpu.memory_space<vmem>>, vector<32x256xbf16>
    tpu.vector_store %arg8[%c128_321, %c768_322], %335 {strides = array<i32>} : memref<288x1024xbf16, #tpu.memory_space<vmem>>, vector<32x256xbf16>,
    %c255_i32_323 = arith.constant 255 : i32
    %337 = tpu.dynamic_rotate %314 by %c255_i32_323 dim 1 : vector<32x256xf32>, i32 -> vector<32x256xf32>
    %c160_324 = arith.constant 160 : index
    %c0_325 = arith.constant 0 : index
    %338 = vector.load %arg2[%c160_324, %c0_325] : memref<288x256xf32, #tpu.memory_space<vmem>>, vector<32x256xf32>
    %339 = arith.mulf %337, %338 : vector<32x256xf32>
    %340 = arith.truncf %339 : vector<32x256xf32> to vector<32x256xbf16>
    %c160_326 = arith.constant 160 : index
    %c768_327 = arith.constant 768 : index
    %341 = vector.load %arg8[%c160_326, %c768_327] : memref<288x1024xbf16, #tpu.memory_space<vmem>>, vector<32x256xbf16>
    tpu.vector_store %arg8[%c160_326, %c768_327], %340 {strides = array<i32>} : memref<288x1024xbf16, #tpu.memory_space<vmem>>, vector<32x256xbf16>,
    %c241_i32_328 = arith.constant 241 : i32
    %342 = tpu.dynamic_rotate %314 by %c241_i32_328 dim 1 : vector<32x256xf32>, i32 -> vector<32x256xf32>
    %c192_329 = arith.constant 192 : index
    %c0_330 = arith.constant 0 : index
    %343 = vector.load %arg2[%c192_329, %c0_330] : memref<288x256xf32, #tpu.memory_space<vmem>>, vector<32x256xf32>
    %344 = arith.mulf %342, %343 : vector<32x256xf32>
    %345 = arith.truncf %344 : vector<32x256xf32> to vector<32x256xbf16>
    %c192_331 = arith.constant 192 : index
    %c768_332 = arith.constant 768 : index
    %346 = vector.load %arg8[%c192_331, %c768_332] : memref<288x1024xbf16, #tpu.memory_space<vmem>>, vector<32x256xbf16>
    tpu.vector_store %arg8[%c192_331, %c768_332], %345 {strides = array<i32>} : memref<288x1024xbf16, #tpu.memory_space<vmem>>, vector<32x256xbf16>,
    %c240_i32_333 = arith.constant 240 : i32
    %347 = tpu.dynamic_rotate %314 by %c240_i32_333 dim 1 : vector<32x256xf32>, i32 -> vector<32x256xf32>
    %c224_334 = arith.constant 224 : index
    %c0_335 = arith.constant 0 : index
    %348 = vector.load %arg2[%c224_334, %c0_335] : memref<288x256xf32, #tpu.memory_space<vmem>>, vector<32x256xf32>
    %349 = arith.mulf %347, %348 : vector<32x256xf32>
    %350 = arith.truncf %349 : vector<32x256xf32> to vector<32x256xbf16>
    %c224_336 = arith.constant 224 : index
    %c768_337 = arith.constant 768 : index
    %351 = vector.load %arg8[%c224_336, %c768_337] : memref<288x1024xbf16, #tpu.memory_space<vmem>>, vector<32x256xbf16>
    tpu.vector_store %arg8[%c224_336, %c768_337], %350 {strides = array<i32>} : memref<288x1024xbf16, #tpu.memory_space<vmem>>, vector<32x256xbf16>,
    %c239_i32_338 = arith.constant 239 : i32
    %352 = tpu.dynamic_rotate %314 by %c239_i32_338 dim 1 : vector<32x256xf32>, i32 -> vector<32x256xf32>
    %c256_339 = arith.constant 256 : index
    %c0_340 = arith.constant 0 : index
    %353 = vector.load %arg2[%c256_339, %c0_340] : memref<288x256xf32, #tpu.memory_space<vmem>>, vector<32x256xf32>
    %354 = arith.mulf %352, %353 : vector<32x256xf32>
    %355 = arith.truncf %354 : vector<32x256xf32> to vector<32x256xbf16>
    %c256_341 = arith.constant 256 : index
    %c768_342 = arith.constant 768 : index
    %356 = vector.load %arg8[%c256_341, %c768_342] : memref<288x1024xbf16, #tpu.memory_space<vmem>>, vector<32x256xbf16>
    tpu.vector_store %arg8[%c256_341, %c768_342], %355 {strides = array<i32>} : memref<288x1024xbf16, #tpu.memory_space<vmem>>, vector<32x256xbf16>,
    %c0_343 = arith.constant 0 : index
    %c0_344 = arith.constant 0 : index
    %357 = vector.load %arg5[%c0_343, %c0_344] : memref<32x288xbf16, #tpu.memory_space<vmem>>, vector<32x288xbf16>
    %c0_345 = arith.constant 0 : index
    %c0_346 = arith.constant 0 : index
    %358 = vector.load %arg8[%c0_345, %c0_346] : memref<288x1024xbf16, #tpu.memory_space<vmem>>, vector<288x1024xbf16>
    %cst_347 = arith.constant dense<0.000000e+00> : vector<32x1024xf32>
    %359 = tpu.matmul %357, %358, %cst_347 {dimension_numbers = #tpu.dot_dimension_numbers<[1], [0], [0], [1], [0, 0, 1, 1], [], []>} : vector<32x288xbf16>, vector<288x1024xbf16>, vector<32x1024xf32> -> vector<32x1024xf32>
    %c0_348 = arith.constant 0 : index
    %c0_349 = arith.constant 0 : index
    %360 = vector.load %arg6[%c0_348, %c0_349] : memref<32x1xf32, #tpu.memory_space<vmem>>, vector<32x1xf32>
    %361 = vector.broadcast %360 : vector<32x1xf32> to vector<32x1024xf32>
    %362 = arith.addf %359, %361 : vector<32x1024xf32>
    %cst_350 = arith.constant 0.000000e+00 : f32
    %363 = vector.broadcast %cst_350 : f32 to vector<32x1024xf32>
    %364 = arith.maximumf %362, %363 : vector<32x1024xf32>
    %365 = vector.extract_strided_slice %364 {offsets = [0, 0], sizes = [32, 256], strides = [1, 1]} : vector<32x1024xf32> to vector<32x256xf32>
    %c0_351 = arith.constant 0 : index
    %c0_352 = arith.constant 0 : index
    %c0_353 = arith.constant 0 : index
    %366 = vector.load %arg1[%c0_351, %c0_352, %c0_353] : memref<4x32x256xf32, #tpu.memory_space<vmem>>, vector<1x32x256xf32>
    %367 = vector.shape_cast %366 : vector<1x32x256xf32> to vector<32x256xf32>
    %368 = arith.addf %365, %367 : vector<32x256xf32>
    %c0_354 = arith.constant 0 : index
    %c0_355 = arith.constant 0 : index
    %c0_356 = arith.constant 0 : index
    %369 = vector.load %arg7[%c0_354, %c0_355, %c0_356] : memref<4x32x256xf32, #tpu.memory_space<vmem>>, vector<1x32x256xf32>
    %370 = vector.shape_cast %369 : vector<1x32x256xf32> to vector<32x256xf32>
    %371 = vector.shape_cast %368 : vector<32x256xf32> to vector<1x32x256xf32>
    tpu.vector_store %arg7[%c0_354, %c0_355, %c0_356], %371 {strides = array<i32>} : memref<4x32x256xf32, #tpu.memory_space<vmem>>, vector<1x32x256xf32>,
    %372 = vector.extract_strided_slice %364 {offsets = [0, 256], sizes = [32, 256], strides = [1, 1]} : vector<32x1024xf32> to vector<32x256xf32>
    %c1_357 = arith.constant 1 : index
    %c0_358 = arith.constant 0 : index
    %c0_359 = arith.constant 0 : index
    %373 = vector.load %arg1[%c1_357, %c0_358, %c0_359] : memref<4x32x256xf32, #tpu.memory_space<vmem>>, vector<1x32x256xf32>
    %374 = vector.shape_cast %373 : vector<1x32x256xf32> to vector<32x256xf32>
    %375 = arith.addf %372, %374 : vector<32x256xf32>
    %c1_360 = arith.constant 1 : index
    %c0_361 = arith.constant 0 : index
    %c0_362 = arith.constant 0 : index
    %376 = vector.load %arg7[%c1_360, %c0_361, %c0_362] : memref<4x32x256xf32, #tpu.memory_space<vmem>>, vector<1x32x256xf32>
    %377 = vector.shape_cast %376 : vector<1x32x256xf32> to vector<32x256xf32>
    %378 = vector.shape_cast %375 : vector<32x256xf32> to vector<1x32x256xf32>
    tpu.vector_store %arg7[%c1_360, %c0_361, %c0_362], %378 {strides = array<i32>} : memref<4x32x256xf32, #tpu.memory_space<vmem>>, vector<1x32x256xf32>,
    %379 = vector.extract_strided_slice %364 {offsets = [0, 512], sizes = [32, 256], strides = [1, 1]} : vector<32x1024xf32> to vector<32x256xf32>
    %c2_363 = arith.constant 2 : index
    %c0_364 = arith.constant 0 : index
    %c0_365 = arith.constant 0 : index
    %380 = vector.load %arg1[%c2_363, %c0_364, %c0_365] : memref<4x32x256xf32, #tpu.memory_space<vmem>>, vector<1x32x256xf32>
    %381 = vector.shape_cast %380 : vector<1x32x256xf32> to vector<32x256xf32>
    %382 = arith.addf %379, %381 : vector<32x256xf32>
    %c2_366 = arith.constant 2 : index
    %c0_367 = arith.constant 0 : index
    %c0_368 = arith.constant 0 : index
    %383 = vector.load %arg7[%c2_366, %c0_367, %c0_368] : memref<4x32x256xf32, #tpu.memory_space<vmem>>, vector<1x32x256xf32>
    %384 = vector.shape_cast %383 : vector<1x32x256xf32> to vector<32x256xf32>
    %385 = vector.shape_cast %382 : vector<32x256xf32> to vector<1x32x256xf32>
    tpu.vector_store %arg7[%c2_366, %c0_367, %c0_368], %385 {strides = array<i32>} : memref<4x32x256xf32, #tpu.memory_space<vmem>>, vector<1x32x256xf32>,
    %386 = vector.extract_strided_slice %364 {offsets = [0, 768], sizes = [32, 256], strides = [1, 1]} : vector<32x1024xf32> to vector<32x256xf32>
    %c3_369 = arith.constant 3 : index
    %c0_370 = arith.constant 0 : index
    %c0_371 = arith.constant 0 : index
    %387 = vector.load %arg1[%c3_369, %c0_370, %c0_371] : memref<4x32x256xf32, #tpu.memory_space<vmem>>, vector<1x32x256xf32>
    %388 = vector.shape_cast %387 : vector<1x32x256xf32> to vector<32x256xf32>
    %389 = arith.addf %386, %388 : vector<32x256xf32>
    %c3_372 = arith.constant 3 : index
    %c0_373 = arith.constant 0 : index
    %c0_374 = arith.constant 0 : index
    %390 = vector.load %arg7[%c3_372, %c0_373, %c0_374] : memref<4x32x256xf32, #tpu.memory_space<vmem>>, vector<1x32x256xf32>
    %391 = vector.shape_cast %390 : vector<1x32x256xf32> to vector<32x256xf32>
    %392 = vector.shape_cast %389 : vector<32x256xf32> to vector<1x32x256xf32>
    tpu.vector_store %arg7[%c3_372, %c0_373, %c0_374], %392 {strides = array<i32>} : memref<4x32x256xf32, #tpu.memory_space<vmem>>, vector<1x32x256xf32>,
    return
  }
  func.func @transform_0(%arg0: i32) -> (i32, i32, i32) {
    %c0_i32 = arith.constant 0 : i32
    %c0_i32_0 = arith.constant 0 : i32
    %c0_i32_1 = arith.constant 0 : i32
    return %arg0, %c0_i32, %c0_i32_0 : i32, i32, i32
  }
  func.func @transform_1(%arg0: i32) -> (i32, i32) {
    %c0_i32 = arith.constant 0 : i32
    %c0_i32_0 = arith.constant 0 : i32
    %c0_i32_1 = arith.constant 0 : i32
    return %c0_i32, %c0_i32_0 : i32, i32
  }
  func.func @transform_2(%arg0: i32) -> (i32, i32) {
    %c0_i32 = arith.constant 0 : i32
    %c0_i32_0 = arith.constant 0 : i32
    %c0_i32_1 = arith.constant 0 : i32
    return %c0_i32, %c0_i32_0 : i32, i32
  }
  func.func @transform_3(%arg0: i32) -> (i32, i32) {
    %c0_i32 = arith.constant 0 : i32
    %c0_i32_0 = arith.constant 0 : i32
    %c0_i32_1 = arith.constant 0 : i32
    return %c0_i32, %c0_i32_0 : i32, i32
  }
  func.func @transform_4(%arg0: i32) -> (i32, i32) {
    %c0_i32 = arith.constant 0 : i32
    %c0_i32_0 = arith.constant 0 : i32
    %c0_i32_1 = arith.constant 0 : i32
    return %c0_i32, %c0_i32_0 : i32, i32
  }
  func.func @transform_5(%arg0: i32) -> (i32, i32) {
    %c0_i32 = arith.constant 0 : i32
    %c0_i32_0 = arith.constant 0 : i32
    %c0_i32_1 = arith.constant 0 : i32
    return %c0_i32, %c0_i32_0 : i32, i32
  }
  func.func @transform_6(%arg0: i32) -> (i32, i32, i32) {
    %c0_i32 = arith.constant 0 : i32
    %c0_i32_0 = arith.constant 0 : i32
    %c0_i32_1 = arith.constant 0 : i32
    return %arg0, %c0_i32, %c0_i32_0 : i32, i32, i32
  }
}

</mosaic_0001>

<bundles_post_ra>
// kernel: tpu_custom_call.1
= control target key start
LH: loop header
LB: loop body
LE: loop exit
PB: predicated region body
PF: predicated region fallthrough
CT: control target
= control target key end

     0   :  { %11 = vsyncpa [#allocation5], 0  ;;  %s14048_s0 = inlined_call_operand.hbm [shape: f32[8,32,256], index: 0, kind: input, shape index: {}]   ;;  %s14049_s1 = inlined_call_operand.hbm [shape: f32[288,256], index: 1, kind: input, shape index: {}]   ;;  %s14050_s2 = inlined_call_operand.vmem [shape: bf16[32,288], index: 2, kind: input, shape index: {}]   ;;  %s14051_s3 = inlined_call_operand.vmem [shape: f32[32,1], index: 3, kind: input, shape index: {}]   ;;  %s14052_s4 = inlined_call_operand.hbm [shape: bf16[32,288], index: 4, kind: input, shape index: {}]   ;;  %s14053_s5 = inlined_call_operand.vmem [shape: f32[32,1], index: 5, kind: input, shape index: {}]   ;;  %s14054_s6 = inlined_call_operand.hbm [shape: f32[8,32,256], index: 6, kind: output, shape index: {}]  }
   0x1   :  { %13 = vsyncpa [#allocation5 + $0x1], 0 }
   0x2   :  { %14 = vsyncpa [#allocation8], 0 }
   0x3   :  { %15 = vsyncpa [#allocation6], 0 }
   0x4   :  { %17 = vsyncpa [#allocation6 + $0x1], 0  ;;  %s9604_s21 = smov 0   ;;  %s9606_s22 = smov 0  }
   0x5   :  { %s9608_s23 = smov 0   ;;  %s9610_s24 = smov 0  }
   0x6 LB: > { %s9625_s25 = sadd.s32 4294967295, %s9549_s24   ;;  %s7971_s26 = sadd.s32 4294967294, %s9549_s24   ;;  %s9549_s24 = sphi %s9610_s24, %s14480_s24   ;;  %s9545_s23 = sphi %s9608_s23, %s14479_s23   ;;  %s9541_s22 = sphi %s9606_s22, %s14478_s22   ;;  %s9537_s21 = sphi %s9604_s21, %s14477_s21  }
   0x7   : > { %p43_p0 = scmp.ne.s32.totalorder %s9541_s22, %s9537_s21  ;;  %p14055_p1 = scmp.eq.s32.totalorder %s9625_s25, 0 }
   0x8   : > { %p172_p2 = scmp.eq.s32.totalorder %s9625_s25, 1  ;;  %p178_p3 = scmp.eq.s32.totalorder %s7971_s26, 1 }
   0x9   : > { %p9634_p4 = por %p14055_p1, %p43_p0  ;;  %p7972_p5 = scmp.ge.s32.totalorder %s9549_s24, 1 }
   0xa   : > { %p9639_p6 = por %p178_p3, %p43_p0  ;;  %p185_p7 = scmp.lt.s32.totalorder %s9549_s24, 3 }
   0xb   : > { %s14202_s27 = scalar_select %p9634_p4, 1, 0 }
   0xc   : > { %s14203_s28 = scalar_select %p9639_p6, 1, 0 }
   0xd   : > { %p9644_p8 = pnand %p7972_p5, %p185_p7  ;;  %s9551_s30 = smov [#allocation7]  }
   0xe   : > { %s197_s7 = sshll.u32 %s9551_s30, 4  ;;  %s9552_s9 = smov [#allocation9]   ;;  %s198_s7 = int_to_ptr.vmem [resolvable:$true] %s197_s7 }
   0xf   : > { %s14204_s29 = scalar_select %p9644_p8, 1, 0 }
  0x10   : > { %p9259_p9 = pneg %p9644_p8  ;;  %s216_s10 = sshll.u32 %s9552_s9, 4  ;;  %s217_s10 = int_to_ptr.vmem [resolvable:$true] %s216_s10 }
  0x11   : > { %s9412_s11 = scalar_lea.vmem %s198_s7, 9216  ;;  %p9420_p5 = scmp.lt.s32.totalorder %s198_s7, %s198_s7 }
  0x12   : > { %p9653_p11 = pnand %p9259_p9, %p14055_p1  ;;  %p9413_p13 = scmp.ne.s32.totalorder %s198_s7, %s9412_s11 }
  0x13   : > { %p9421_p7 = scmp.lt.s32.totalorder %s9412_s11, %s9412_s11 }
  0x14   : > { %p9403_p12 = pneg %p9653_p11 }
  0x15   : > { %p9422_p10 = por %p9421_p7, %p9420_p5 }
  0x16   : > { %p9415_p0 = pnand %p9413_p13, %p9403_p12 }
  0x18   : > { %p9416_p3 = pneg %p9415_p0 }
  0x1a   : > { %p9423_p9 = pnand %p9422_p10, %p9416_p3 }
  0x1c   : > { %9426 = shalt.err (!%p9423_p9)
}
  0x1d   : > { %s14056_s12 = smov 256   ;;  %s14057_s13 = smov 16  }
  0x1e   : > { %9262 = dma.hbm_to_vmem [thread:$0]  (!%p9653_p11), %s14049_s1, 9216, %s198_s7, [#allocation8], %s14056_s12, %s14056_s12, %s14057_s13  }
  0x1f   : > { %s9438_s16 = scalar_lea.vmem %s217_s10, 768  ;;  %p9446_p10 = scmp.lt.s32.totalorder %s217_s10, %s217_s10 }
  0x20   : > { %p9439_p13 = scmp.ne.s32.totalorder %s217_s10, %s9438_s16  ;;  %p9447_p3 = scmp.lt.s32.totalorder %s9438_s16, %s9438_s16 }
  0x22   : > { %p9441_p0 = pnand %p9439_p13, %p9403_p12  ;;  %p9448_p7 = por %p9447_p3, %p9446_p10 }
  0x24   : > { %p9442_p5 = pneg %p9441_p0 }
  0x26   : > { %p9449_p9 = pnand %p9448_p7, %p9442_p5 }
  0x28   : > { %9452 = shalt.err (!%p9449_p9)
}
  0x29   : > { %s9555_s17 = smov 192   ;;  %s9556_s18 = smov 12  }
  0x2a   : > { %9265 = dma.hbm_to_vmem [thread:$0]  (!%p9653_p11), %s14052_s4, 768, %s217_s10, [#allocation8], %s9555_s17, %s9555_s17, %s9556_s18  }
  0x2b   : > { %s9679_s26 = sadd.s32 1, %s9549_s24   ;;  %s30_s7 = sadd.s32 1, %s9545_s23 }
  0x2c   : > { %s27_s30 = ssub.s32 %s9549_s24, %s9679_s26  ;;  %p37_p13 = scmp.ne.s32.totalorder %s9545_s23, %s9541_s22 }
  0x2d   : > { %p28_p12 = scmp.eq.s32.totalorder %s27_s30, 0  ;;  %p38_p0 = scmp.eq.s32.totalorder %s9549_s24, 0 }
  0x2e   : > { %p9692_p10 = por %p172_p2, %p37_p13  ;;  %p9276_p3 = scmp.lt.s32.totalorder %s9549_s24, 2 }
  0x2f   : > { %s9688_s9 = scalar_select %p28_p12, %s9545_s23, %s30_s7  }
  0x30   : > { %p39_p5 = por %p38_p0, %p37_p13  ;;  %s233_s8 = sand.u32 1, %s9545_s23  }
  0x31   : > { %s14206_s11 = scalar_select %p9692_p10, 1, 0 }
  0x32   : > { %s7976_s14 = sshll.u32 %s233_s8, 8  ;;  %s8668_s10 = sshll.u32 %s9549_s24, 12 }
  0x33   : > { %s9702_s17 = scalar_lea.hbm %s14048_s0, %s8668_s10  ;;  %s237_s18 = scalar_lea.vmem [#allocation4], %s7976_s14 }
  0x34   : > { %s245_s19 = sshll.u32 %s237_s18, 4  ;;  %p9706_p2 = pnand %p9276_p3, %p39_p5  ;;  %s9704_s19 = int_to_ptr.vmem [resolvable:$true] %s245_s19 }
  0x35   : > { %s9710_s30 = scalar_lea.sflag [#allocation5], %s233_s8  ;;  %s9453_s7 = scalar_lea.hbm %s9702_s17, 4096 }
  0x36   : > { %p9454_p11 = scmp.ne.s32.totalorder %s9702_s17, %s9453_s7  ;;  %p9455_p7 = pneg %p9706_p2 }
  0x37   : > { %s9458_s14 = scalar_lea.hbm %s14048_s0, 8192  ;;  %p9459_p13 = scmp.lt.s32.totalorder %s9702_s17, %s14048_s0 }
  0x38   : > { %p9456_p9 = pnand %p9455_p7, %p9454_p11  ;;  %p9460_p0 = scmp.lt.s32.totalorder %s9458_s14, %s9453_s7 }
  0x3a   : > { %p9457_p12 = pneg %p9456_p9  ;;  %p9461_p5 = por %p9460_p0, %p9459_p13 }
  0x3c   : > { %p9462_p3 = pnand %p9461_p5, %p9457_p12 }
  0x3e   : > { %9465 = shalt.err (!%p9462_p3)
}
  0x3f   : > { %s9466_s8 = scalar_lea.vmem %s9704_s19, 4096  ;;  %s9557_s12 = smov [#allocation4]  }
  0x40   : > { %p9467_p1 = scmp.ne.s32.totalorder %s9704_s19, %s9466_s8  ;;  %s9471_s13 = sshll.u32 %s9557_s12, 4  ;;  %s9472_s13 = int_to_ptr.vmem [resolvable:$false] %s9471_s13 }
  0x41   : > { %s9473_s10 = scalar_lea.vmem %s9472_s13, 8192  ;;  %p9474_p9 = scmp.lt.s32.totalorder %s9704_s19, %s9472_s13 }
  0x42   : > { %p9469_p6 = pnand %p9467_p1, %p9455_p7  ;;  %p9475_p10 = scmp.lt.s32.totalorder %s9473_s10, %s9466_s8 }
  0x44   : > { %p9470_p11 = pneg %p9469_p6  ;;  %p9476_p4 = por %p9475_p10, %p9474_p9 }
  0x46   : > { %p9477_p8 = pnand %p9476_p4, %p9470_p11 }
  0x48   : > { %9480 = shalt.err (!%p9477_p8)
}
  0x49   : > { %s14208_s7 = smov 16   ;;  %s14209_s15 = smov 256  }
  0x4a   : > { %9269 = dma.hbm_to_vmem [thread:$0]  (!%p9706_p2), %s9702_s17, 4096, %s9704_s19, %s9710_s30, %s14209_s15, %s14209_s15, %s14208_s7  }
  0x4b   : > { %p14210_p1 = scmp.ne.s32.totalorder %s14204_s29, 0 }
  0x4d   : > { %257 = sbr.rel (%p14210_p1) target bundleno = 1593 (0x639), region = 44 }
  0x52   : > { %s9737_s12 = sand.u32 1, %s9541_s22   ;;  %p14211_p4 = scmp.ne.s32.totalorder %s14202_s27, 0 }
  0x53   : > { %s14107_s13 = sshll.u32 %s9737_s12, 8  ;;  %s260_s14 = scalar_lea.sflag [#allocation5], %s9737_s12 }
  0x54   : > { %s9743_s20 = scalar_lea.vmem [#allocation4], %s14107_s13 }
  0x55   : > { %9524 = dma.done.wait (%p14211_p4), %s260_s14, 4096  }
  0x56   : > { %9526 = vsyncadd (%p14211_p4), %s260_s14, 4294963200  ;;  %p14212_p6 = scmp.eq.s32.totalorder %s9625_s25, 0 }
  0x58   : > { %9528 = dma.done.wait (%p14212_p6), [#allocation8], 9984   ;;  %p14213_p8 = pmov %p14212_p6 }
  0x59   : > { %v9754_v0 = vld [vmem:[%s9743_s20 + $0x20] sm:$0xff]  ;;  %s14108_s27 = smov 17   ;;  %v9764_v2 = vld [vmem:[%s9743_s20 + $0x30] sm:$0xff]  ;;  %v9774_v4 = vld [vmem:[%s9743_s20 + $0x18] sm:$0xff]  ;;  %s9559_s29 = smov 16   ;;  %v327_v40 = vlaneseq  ;;  %vm3562_vm8 = vcmask 261120  }
  0x5a   : > { %9530 = vsyncadd (%p14213_p8), [#allocation8], 4294957312  ;;  %v9757_v1 = vld [vmem:[%s9743_s20] sm:$0xff]  ;;  %315 = vrot.lane.b32.xlu1 %v9754_v0, %s14108_s27  ;;  %v9767_v3 = vld [vmem:[%s9743_s20 + $0x10] sm:$0xff]  ;;  %s9560_s17 = smov 15   ;;  %s9561_s19 = smov 1  }
  0x5b   : > { %311 = vrot.lane.b32.xlu0 %v9757_v1, %s14108_s27  ;;  %v9777_v5 = vld [vmem:[%s9743_s20 + $0x8] sm:$0xff]  ;;  %v9784_v6 = vld [vmem:[%s9743_s20 + $0x38] sm:$0xff]  ;;  %s9562_s30 = smov 127   ;;  %s14148_s16 = smov 113   ;;  %v9918_v14 = vld [vmem:[%s9743_s20 + $0x50] sm:$0xff]  ;;  %v10011_v43 = vand.u32 127, %v327_v40 }
  0x5c   : > { %v9787_v7 = vld [vmem:[%s9743_s20 + $0x28] sm:$0xff]  ;;  %s14146_s18 = smov 112   ;;  %s14144_s8 = smov 111   ;;  %v9925_v17 = vld [vmem:[%s9743_s20 + $0x40] sm:$0xff]  ;;  %v9932_v18 = vld [vmem:[%s9743_s20 + $0x70] sm:$0xff] }
  0x5d   : > { %v9939_v21 = vld [vmem:[%s9743_s20 + $0x60] sm:$0xff]  ;;  %v9946_v22 = vld [vmem:[%s9743_s20 + $0x58] sm:$0xff]  ;;  %v9953_v25 = vld [vmem:[%s9743_s20 + $0x48] sm:$0xff]  ;;  %vm536_vm0 = vcmp.lt.s32.totalorder %v10011_v43, 1  ;;  %vm467_vm1 = vcmp.lt.s32.totalorder %v10011_v43, 15  ;;  %vm398_vm2 = vcmp.lt.s32.totalorder %v10011_v43, 16 }
  0x5e   : > { %317 = vrot.lane.b32.xlu1 %v9764_v2, %s14108_s27  ;;  %v9960_v26 = vld [vmem:[%s9743_s20 + $0x78] sm:$0xff]  ;;  %v9967_v29 = vld [vmem:[%s9743_s20 + $0x68] sm:$0xff]  ;;  %v10035_v54 = vld [vmem:[#allocation7 + $0xe0] sm:$0xff]  ;;  %vm329_vm3 = vcmp.lt.s32.totalorder %v10011_v43, 17  ;;  %vm771_vm4 = vcmp.lt.s32.totalorder %v10011_v43, 112  ;;  %vm702_vm5 = vcmp.lt.s32.totalorder %v10011_v43, 113 }
  0x5f   : > { %313 = vrot.lane.b32.xlu0 %v9767_v3, %s14108_s27  ;;  %v10018_v48 = vld [vmem:[#allocation7 + $0xd8] sm:$0xff]  ;;  %v10022_v50 = vld [vmem:[#allocation7 + $0xc8] sm:$0xff]  ;;  %14218 = vst [vmem:[#allocation18_spill] sm:$0xff] %v10035_v54  ;;  %v10037_v55 = vld [vmem:[#allocation7 + $0xf0] sm:$0xff]  ;;  %vm633_vm6 = vcmp.lt.s32.totalorder %v10011_v43, 127  ;;  %vm840_vm7 = vcmp.lt.s32.totalorder %v10011_v43, 111 }
  0x60   : > { %14214 = vst [vmem:[#allocation14_spill] sm:$0xff] %v10018_v48  ;;  %14215 = vst [vmem:[#allocation15_spill] sm:$0xff] %v10022_v50  ;;  %v10028_v52 = vld [vmem:[#allocation7 + $0xe8] sm:$0xff]  ;;  %v10033_v53 = vld [vmem:[#allocation7 + $0xf8] sm:$0xff]  ;;  %s14338_s13 = smov 17   ;;  %s14383_s7 = smov 113  }
  0x61   : > { %14216 = vst [vmem:[#allocation16_spill] sm:$0xff] %v10028_v52  ;;  %14217 = vst [vmem:[#allocation17_spill] sm:$0xff] %v10033_v53  ;;  %v10053_v40 = vld [vmem:[#allocation7 + $0xd0] sm:$0xff]  ;;  %s14473_s10 = sshll.u32 %s9737_s12, 8  ;;  %p14474_p2 = scmp.ne.s32.totalorder %s14206_s11, 0 }
  0x62   : > { %321 = vrot.lane.b32.xlu1 %v9774_v4, %s14108_s27  ;;  %14219 = vst [vmem:[#allocation19_spill] sm:$0xff] %v10037_v55 }
  0x63   : > { %319 = vrot.lane.b32.xlu0 %v9777_v5, %s14108_s27 }
  0x66   : > { %325 = vrot.lane.b32.xlu1 %v9784_v6, %s14108_s27 }
  0x67   : > { %323 = vrot.lane.b32.xlu0 %v9787_v7, %s14108_s27 }
  0x6a   : > { %384 = vrot.lane.b32.xlu1 %v9767_v3, %s9559_s29 }
  0x6b   : > { %382 = vrot.lane.b32.xlu0 %v9757_v1, %s9559_s29 }
  0x6e   : > { %388 = vrot.lane.b32.xlu1 %v9764_v2, %s9559_s29 }
  0x6f   : > { %386 = vrot.lane.b32.xlu0 %v9754_v0, %s9559_s29 }
  0x72   : > { %392 = vrot.lane.b32.xlu1 %v9774_v4, %s9559_s29 }
  0x73   : > { %390 = vrot.lane.b32.xlu0 %v9777_v5, %s9559_s29 }
  0x76   : > { %396 = vrot.lane.b32.xlu1 %v9784_v6, %s9559_s29 }
  0x77   : > { %394 = vrot.lane.b32.xlu0 %v9787_v7, %s9559_s29 }
  0x7a   : > { %453 = vrot.lane.b32.xlu1 %v9767_v3, %s9560_s17 }
  0x7b   : > { %451 = vrot.lane.b32.xlu0 %v9757_v1, %s9560_s17 }
  0x7e   : > { %457 = vrot.lane.b32.xlu1 %v9764_v2, %s9560_s17 }
  0x7f   : > { %455 = vrot.lane.b32.xlu0 %v9754_v0, %s9560_s17 }
  0x82   : > { %461 = vrot.lane.b32.xlu1 %v9774_v4, %s9560_s17 }
  0x83   : > { %459 = vrot.lane.b32.xlu0 %v9777_v5, %s9560_s17 }
  0x86   : > { %465 = vrot.lane.b32.xlu1 %v9784_v6, %s9560_s17 }
  0x87   : > { %463 = vrot.lane.b32.xlu0 %v9787_v7, %s9560_s17 }
  0x8a   : > { %522 = vrot.lane.b32.xlu1 %v9767_v3, %s9561_s19 }
  0x8b   : > { %520 = vrot.lane.b32.xlu0 %v9757_v1, %s9561_s19 }
  0x8e   : > { %526 = vrot.lane.b32.xlu1 %v9764_v2, %s9561_s19 }
  0x8f   : > { %524 = vrot.lane.b32.xlu0 %v9754_v0, %s9561_s19 }
  0x92   : > { %530 = vrot.lane.b32.xlu1 %v9774_v4, %s9561_s19 }
  0x93   : > { %528 = vrot.lane.b32.xlu0 %v9777_v5, %s9561_s19 }
  0x96   : > { %534 = vrot.lane.b32.xlu1 %v9784_v6, %s9561_s19 }
  0x97   : > { %532 = vrot.lane.b32.xlu0 %v9787_v7, %s9561_s19 }
  0x9a   : > { %619 = vrot.lane.b32.xlu1 %v9767_v3, %s9562_s30 }
  0x9b   : > { %617 = vrot.lane.b32.xlu0 %v9757_v1, %s9562_s30 }
  0x9e   : > { %623 = vrot.lane.b32.xlu1 %v9764_v2, %s9562_s30 }
  0x9f   : > { %621 = vrot.lane.b32.xlu0 %v9754_v0, %s9562_s30 }
  0xa2   : > { %627 = vrot.lane.b32.xlu1 %v9774_v4, %s9562_s30 }
  0xa3   : > { %625 = vrot.lane.b32.xlu0 %v9777_v5, %s9562_s30 }
  0xa6   : > { %631 = vrot.lane.b32.xlu1 %v9784_v6, %s9562_s30 }
  0xa7   : > { %629 = vrot.lane.b32.xlu0 %v9787_v7, %s9562_s30 }
  0xaa   : > { %688 = vrot.lane.b32.xlu1 %v9767_v3, %s14148_s16 }
  0xab   : > { %686 = vrot.lane.b32.xlu0 %v9757_v1, %s14148_s16 }
  0xae   : > { %692 = vrot.lane.b32.xlu1 %v9764_v2, %s14148_s16 }
  0xaf   : > { %690 = vrot.lane.b32.xlu0 %v9754_v0, %s14148_s16 }
  0xb2   : > { %696 = vrot.lane.b32.xlu1 %v9774_v4, %s14148_s16 }
  0xb3   : > { %694 = vrot.lane.b32.xlu0 %v9777_v5, %s14148_s16 }
  0xb6   : > { %700 = vrot.lane.b32.xlu1 %v9784_v6, %s14148_s16 }
  0xb7   : > { %698 = vrot.lane.b32.xlu0 %v9787_v7, %s14148_s16 }
  0xba   : > { %757 = vrot.lane.b32.xlu1 %v9767_v3, %s14146_s18 }
  0xbb   : > { %755 = vrot.lane.b32.xlu0 %v9757_v1, %s14146_s18 }
  0xbe   : > { %761 = vrot.lane.b32.xlu1 %v9764_v2, %s14146_s18 }
  0xbf   : > { %759 = vrot.lane.b32.xlu0 %v9754_v0, %s14146_s18 }
  0xc2   : > { %765 = vrot.lane.b32.xlu1 %v9774_v4, %s14146_s18 }
  0xc3   : > { %763 = vrot.lane.b32.xlu0 %v9777_v5, %s14146_s18 }
  0xc6   : > { %769 = vrot.lane.b32.xlu1 %v9784_v6, %s14146_s18 }
  0xc7   : > { %767 = vrot.lane.b32.xlu0 %v9787_v7, %s14146_s18 }
  0xca   : > { %826 = vrot.lane.b32.xlu1 %v9767_v3, %s14144_s8 }
  0xcb   : > { %824 = vrot.lane.b32.xlu0 %v9757_v1, %s14144_s8 }
  0xcc   : > { %v9893_v8 = vpop.permute.xlu1 %315 }
  0xcd   : > { %v9895_v9 = vpop.permute.xlu0 %311 }
  0xce   : > { %830 = vrot.lane.b32.xlu1 %v9764_v2, %s14144_s8 }
  0xcf   : > { %828 = vrot.lane.b32.xlu0 %v9754_v0, %s14144_s8 }
  0xd0   : > { %v9901_v10 = vpop.permute.xlu1 %317 }
  0xd1   : > { %v9903_v11 = vpop.permute.xlu0 %313 }
  0xd2   : > { %834 = vrot.lane.b32.xlu1 %v9774_v4, %s14144_s8 }
  0xd3   : > { %832 = vrot.lane.b32.xlu0 %v9777_v5, %s14144_s8 }
  0xd4   : > { %v9909_v12 = vpop.permute.xlu1 %321 }
  0xd5   : > { %v9911_v13 = vpop.permute.xlu0 %319 }
  0xd6   : > { %838 = vrot.lane.b32.xlu1 %v9784_v6, %s14144_s8 }
  0xd7   : > { %836 = vrot.lane.b32.xlu0 %v9787_v7, %s14144_s8 }
  0xd8   : > { %v9920_v15 = vpop.permute.xlu1 %325 }
  0xd9   : > { %v9922_v16 = vpop.permute.xlu0 %323 }
  0xda   : > { %904 = vrot.lane.b32.xlu1 %v9918_v14, %s14108_s27 }
  0xdb   : > { %902 = vrot.lane.b32.xlu0 %v9925_v17, %s14108_s27 }
  0xdc   : > { %v9934_v19 = vpop.permute.xlu1 %384 }
  0xdd   : > { %v9936_v20 = vpop.permute.xlu0 %382 }
  0xde   : > { %908 = vrot.lane.b32.xlu1 %v9932_v18, %s14108_s27 }
  0xdf   : > { %906 = vrot.lane.b32.xlu0 %v9939_v21, %s14108_s27 }
  0xe0   : > { %v9948_v23 = vpop.permute.xlu1 %388 }
  0xe1   : > { %v9950_v24 = vpop.permute.xlu0 %386 }
  0xe2   : > { %912 = vrot.lane.b32.xlu1 %v9946_v22, %s14108_s27 }
  0xe3   : > { %910 = vrot.lane.b32.xlu0 %v9953_v25, %s14108_s27 }
  0xe4   : > { %v9962_v27 = vpop.permute.xlu1 %392 }
  0xe5   : > { %v9964_v28 = vpop.permute.xlu0 %390 }
  0xe6   : > { %916 = vrot.lane.b32.xlu1 %v9960_v26, %s14108_s27 }
  0xe7   : > { %914 = vrot.lane.b32.xlu0 %v9967_v29, %s14108_s27 }
  0xe8   : > { %v9973_v30 = vpop.permute.xlu1 %396 }
  0xe9   : > { %v9975_v31 = vpop.permute.xlu0 %394 }
  0xea   : > { %972 = vrot.lane.b32.xlu1 %v9918_v14, %s9559_s29 }
  0xeb   : > { %970 = vrot.lane.b32.xlu0 %v9925_v17, %s9559_s29 }
  0xec   : > { %v9981_v32 = vpop.permute.xlu1 %453 }
  0xed   : > { %v9983_v33 = vpop.permute.xlu0 %451 }
  0xee   : > { %976 = vrot.lane.b32.xlu1 %v9932_v18, %s9559_s29 }
  0xef   : > { %974 = vrot.lane.b32.xlu0 %v9939_v21, %s9559_s29 }
  0xf0   : > { %v458_v34 = vpop.permute.xlu1 %457 }
  0xf1   : > { %v9989_v35 = vpop.permute.xlu0 %455 }
  0xf2   : > { %980 = vrot.lane.b32.xlu1 %v9946_v22, %s9559_s29 }
  0xf3   : > { %978 = vrot.lane.b32.xlu0 %v9953_v25, %s9559_s29 }
  0xf4   : > { %v9995_v36 = vpop.permute.xlu1 %461 }
  0xf5   : > { %v9997_v37 = vpop.permute.xlu0 %459 }
  0xf6   : > { %984 = vrot.lane.b32.xlu1 %v9960_v26, %s9559_s29 }
  0xf7   : > { %982 = vrot.lane.b32.xlu0 %v9967_v29, %s9559_s29 }
  0xf8   : > { %v466_v38 = vpop.permute.xlu1 %465 }
  0xf9   : > { %v464_v39 = vpop.permute.xlu0 %463 }
  0xfa   : > { %1040 = vrot.lane.b32.xlu1 %v9918_v14, %s9560_s17 }
  0xfb   : > { %1038 = vrot.lane.b32.xlu0 %v9925_v17, %s9560_s17 }
  0xfc   : > { %v523_v41 = vpop.permute.xlu1 %522 }
  0xfd   : > { %v521_v42 = vpop.permute.xlu0 %520 }
  0xfe   : > { %1044 = vrot.lane.b32.xlu1 %v9932_v18, %s9560_s17 }
  0xff   : > { %1042 = vrot.lane.b32.xlu0 %v9939_v21, %s9560_s17 }
 0x100   : > { %v527_v44 = vpop.permute.xlu1 %526 }
 0x101   : > { %v525_v45 = vpop.permute.xlu0 %524 }
 0x102   : > { %1048 = vrot.lane.b32.xlu1 %v9946_v22, %s9560_s17 }
 0x103   : > { %1046 = vrot.lane.b32.xlu0 %v9953_v25, %s9560_s17 }
 0x104   : > { %v531_v46 = vpop.permute.xlu1 %530 }
 0x105   : > { %v529_v47 = vpop.permute.xlu0 %528  ;;  %v538_v49 = vsel %vm536_vm0, %v523_v41, %v531_v46  ;;  %v542_v56 = vsel %vm536_vm0, %v531_v46, %v523_v41  ;;  %v10055_v41 = vld [vmem:[#allocation7 + $0xc0] sm:$0xff] }
 0x106   : > { %v537_v51 = vsel %vm536_vm0, %v521_v42, %v529_v47  ;;  %1052 = vrot.lane.b32.xlu1 %v9960_v26, %s9560_s17  ;;  %v556_v57 = vmul.f32 %v10018_v48, %v538_v49  ;;  %v541_v58 = vsel %vm536_vm0, %v529_v47, %v521_v42  ;;  %v10088_v48 = vld [vmem:[#allocation7 + $0xa0] sm:$0xff] }
 0x107   : > { %1050 = vrot.lane.b32.xlu0 %v9967_v29, %s9560_s17  ;;  %v554_v59 = vmul.f32 %v10022_v50, %v537_v51  ;;  %v10063_v51 = vld [vmem:[#allocation7 + $0xb8] sm:$0xff]  ;;  %v553_v50 = vmul.f32 %v10055_v41, %v541_v58 }
 0x108   : > { %v535_v60 = vpop.permute.xlu1 %534 }
 0x109   : > { %v533_v61 = vpop.permute.xlu0 %532  ;;  %v544_v62 = vsel %vm536_vm0, %v535_v60, %v527_v44  ;;  %v540_v3 = vsel %vm536_vm0, %v527_v44, %v535_v60  ;;  %v471_v44 = vsel %vm467_vm1, %v458_v34, %v466_v38  ;;  %v470_v60 = vsel %vm467_vm1, %v9989_v35, %v464_v39 }
 0x10a   : > { %v543_v63 = vsel %vm536_vm0, %v533_v61, %v525_v45  ;;  %v539_v1 = vsel %vm536_vm0, %v525_v45, %v533_v61  ;;  %1108 = vrot.lane.b32.xlu1 %v9918_v14, %s9561_s19  ;;  %v560_v46 = vmul.f32 %v10033_v53, %v540_v3  ;;  %v559_v49 = vmul.f32 %v10037_v55, %v544_v62  ;;  %v10067_v45 = vld [vmem:[#allocation7 + $0xa8] sm:$0xff]  ;;  %v10085_v53 = vld [vmem:[#allocation7 + $0xb0] sm:$0xff] }
 0x10b   : > { %v558_v42 = vmul.f32 %v10028_v52, %v539_v1  ;;  %v557_v47 = vmul.f32 %v10035_v54, %v543_v63  ;;  %1106 = vrot.lane.b32.xlu0 %v9925_v17, %s9561_s19  ;;  %v475_v61 = vsel %vm467_vm1, %v466_v38, %v458_v34  ;;  %v474_v52 = vsel %vm467_vm1, %v464_v39, %v9989_v35  ;;  %v10099_v39 = vld [vmem:[#allocation7 + $0x88] sm:$0xff] }
 0x10c   : > { %v10076_v63 = vpop.permute.xlu1 %619  ;;  %v555_v54 = vmul.f32 %v10053_v40, %v542_v56  ;;  %v491_v55 = vmul.f32 %v10063_v51, %v471_v44  ;;  %v489_v34 = vmul.f32 %v10067_v45, %v470_v60  ;;  %v9008_v38 = vpack.c.bf16 %v556_v57, %v554_v59  ;;  %14221 = vst [vmem:[#allocation21_spill] sm:$0xff] %v10099_v39  ;;  %v10124_v60 = vld [vmem:[#allocation7 + $0x80] sm:$0xff] }
 0x10d   : > { %v10078_v62 = vpop.permute.xlu0 %617  ;;  %v9016_v1 = vpack.c.bf16 %v560_v46, %v558_v42  ;;  %v9015_v3 = vpack.c.bf16 %v559_v49, %v557_v47  ;;  %v10093_v42 = vld [vmem:[#allocation7 + $0x98] sm:$0xff]  ;;  %v469_v35 = vsel %vm467_vm1, %v9981_v32, %v9995_v36  ;;  %v468_v56 = vsel %vm467_vm1, %v9983_v33, %v9997_v37  ;;  %14222 = vst [vmem:[#allocation22_spill] sm:$0xff] %v10124_v60 }
 0x10e   : > { %1112 = vrot.lane.b32.xlu1 %v9932_v18, %s9561_s19  ;;  %14220 = vst [vmem:[#allocation20_spill] sm:$0xff] %v10093_v42  ;;  %v473_v57 = vsel %vm467_vm1, %v9995_v36, %v9981_v32  ;;  %v14067_v46 = vmov 0   ;;  %v490_v47 = vmul.f32 %v10085_v53, %v475_v61  ;;  %v488_v49 = vmul.f32 %v10088_v48, %v474_v52  ;;  %v10121_v32 = vld [vmem:[#allocation7 + $0x90] sm:$0xff]  ;;  %v10133_v52 = vld [vmem:[#allocation7 + $0x78] sm:$0xff] }
 0x10f   : > { %3569 = vmatprep.subr.bf16.mxu0 %v9016_v1  ;;  %1110 = vrot.lane.b32.xlu0 %v9939_v21, %s9561_s19  ;;  %v9007_v44 = vpack.c.bf16 %v555_v54, %v553_v50  ;;  %v487_v36 = vmul.f32 %v10093_v42, %v469_v35  ;;  %v472_v1 = vsel %vm467_vm1, %v9997_v37, %v9983_v33 }
 0x110   : > { %3570 = vmatpush1.bf16.msra.mxu0 %v9015_v3  ;;  %v10111_v58 = vpop.permute.xlu1 %623  ;;  %3654 = vmatprep.mubr.bf16.mxu1 %v14067_v46  ;;  %v485_v61 = vmul.f32 %v10099_v39, %v468_v56  ;;  %v9000_v50 = vpack.c.bf16 %v491_v55, %v489_v34  ;;  %14223 = vst [vmem:[#allocation23_spill] sm:$0xff] %v10133_v52  ;;  %v10139_v3 = vld [vmem:[#allocation7 + $0x68] sm:$0xff] }
 0x111   : > { %3571 = vmatprep.subr.bf16.mxu0 %v9008_v38  ;;  %v10113_v59 = vpop.permute.xlu0 %621  ;;  %9329 = vset.pattern.permute.xlu1 %v14067_v46  ;;  %v402_v54 = vsel %vm398_vm2, %v9948_v23, %v9973_v30  ;;  %14224 = vst [vmem:[#allocation24_spill] sm:$0xff] %v10139_v3  ;;  %v401_v33 = vsel %vm398_vm2, %v9950_v24, %v9975_v31 }
 0x112   : > { %9328 = vset.pattern.permute.xlu0 %v14067_v46  ;;  %1116 = vrot.lane.b32.xlu1 %v9946_v22, %s9561_s19  ;;  %v406_v34 = vsel %vm398_vm2, %v9973_v30, %v9948_v23  ;;  %v486_v38 = vmul.f32 %v10121_v32, %v473_v57  ;;  %v484_v35 = vmul.f32 %v10124_v60, %v472_v1  ;;  %v10157_v46 = vld [vmem:[#allocation7 + $0x70] sm:$0xff]  ;;  %v10169_v30 = vld [vmem:[#allocation7 + $0x58] sm:$0xff] }
 0x113   : > { %1114 = vrot.lane.b32.xlu0 %v9953_v25, %s9561_s19  ;;  %v8999_v56 = vpack.c.bf16 %v490_v47, %v488_v49  ;;  %14225 = vst [vmem:[#allocation25_spill] sm:$0xff] %v10157_v46  ;;  %v422_v39 = vmul.f32 %v10133_v52, %v402_v54  ;;  %v420_v42 = vmul.f32 %v10139_v3, %v401_v33  ;;  %14227 = vst [vmem:[#allocation27_spill] sm:$0xff] %v10169_v30  ;;  %v10175_v47 = vld [vmem:[#allocation7 + $0x48] sm:$0xff]  ;;  %v10194_v33 = vld [vmem:[#allocation7 + $0x50] sm:$0xff] }
 0x114   : > { %3572 = vmatpush1.bf16.msra.mxu0 %v9007_v44  ;;  %v10147_v37 = vpop.permute.xlu1 %627  ;;  %v10160_v44 = vld [vmem:[#allocation7 + $0x60] sm:$0xff]  ;;  %v8992_v23 = vpack.c.bf16 %v487_v36, %v485_v61  ;;  %v400_v57 = vsel %vm398_vm2, %v9934_v19, %v9962_v27  ;;  %14228 = vst [vmem:[#allocation28_spill] sm:$0xff] %v10175_v47  ;;  %v404_v36 = vsel %vm398_vm2, %v9962_v27, %v9934_v19  ;;  %14229 = vst [vmem:[#allocation29_spill] sm:$0xff] %v10194_v33  ;;  %v10206_v27 = vld [vmem:[#allocation7 + $0x38] sm:$0xff] }
 0x115   : > { %3573 = vmatprep.subr.bf16.mxu0 %v9000_v50  ;;  %v10149_v55 = vpop.permute.xlu0 %625  ;;  %14226 = vst [vmem:[#allocation26_spill] sm:$0xff] %v10160_v44  ;;  %v405_v50 = vsel %vm398_vm2, %v9975_v31, %v9950_v24  ;;  %v399_v24 = vsel %vm398_vm2, %v9936_v20, %v9964_v28  ;;  %v421_v1 = vmul.f32 %v10157_v46, %v406_v34  ;;  %v10197_v3 = vld [vmem:[#allocation7 + $0x40] sm:$0xff]  ;;  %14231 = vst [vmem:[#allocation31_spill] sm:$0xff] %v10206_v27  ;;  %v10431_v60 = vld [vmem:[#allocation7 + $0x158] sm:$0xff] }
 0x116   : > { %1120 = vrot.lane.b32.xlu1 %v9960_v26, %s9561_s19  ;;  %v419_v61 = vmul.f32 %v10160_v44, %v405_v50  ;;  %v8991_v54 = vpack.c.bf16 %v486_v38, %v484_v35  ;;  %14230 = vst [vmem:[#allocation30_spill] sm:$0xff] %v10197_v3  ;;  %v416_v52 = vmul.f32 %v10175_v47, %v399_v24  ;;  %v10212_v38 = vld [vmem:[#allocation7 + $0x28] sm:$0xff]  ;;  %v10230_v24 = vld [vmem:[#allocation7 + $0x30] sm:$0xff]  ;;  %v10375_v46 = vld [vmem:[#allocation7 + $0x1a0] sm:$0xff] }
 0x117   : > { %1118 = vrot.lane.b32.xlu0 %v9967_v29, %s9561_s19  ;;  %v8984_v19 = vpack.c.bf16 %v422_v39, %v420_v42  ;;  %v333_v34 = vsel %vm329_vm3, %v9901_v10, %v9920_v15  ;;  %14232 = vst [vmem:[#allocation32_spill] sm:$0xff] %v10212_v38  ;;  %v337_v39 = vsel %vm329_vm3, %v9920_v15, %v9901_v10  ;;  %14233 = vst [vmem:[#allocation33_spill] sm:$0xff] %v10230_v24  ;;  %v10242_v15 = vld [vmem:[#allocation7 + $0x18] sm:$0xff] }
 0x118   : > { %3574 = vmatpush1.bf16.msra.mxu0 %v8999_v56  ;;  %v10184_v31 = vpop.permute.xlu1 %631  ;;  %v418_v56 = vmul.f32 %v10169_v30, %v400_v57  ;;  %v417_v35 = vmul.f32 %v10194_v33, %v404_v36  ;;  %v8983_v57 = vpack.c.bf16 %v421_v1, %v419_v61  ;;  %v353_v47 = vmul.f32 %v10206_v27, %v333_v34  ;;  %v10248_v1 = vld [vmem:[#allocation7 + $0x8] sm:$0xff] }
 0x119   : > { %3575 = vmatprep.subr.bf16.mxu0 %v8992_v23  ;;  %v10186_v49 = vpop.permute.xlu0 %629  ;;  %v403_v23 = vsel %vm398_vm2, %v9964_v28, %v9936_v20  ;;  %v332_v20 = vsel %vm329_vm3, %v9893_v8, %v9922_v16  ;;  %14235 = vst [vmem:[#allocation35_spill] sm:$0xff] %v10242_v15  ;;  %v331_v36 = vsel %vm329_vm3, %v9903_v11, %v9909_v12  ;;  %14236 = vst [vmem:[#allocation36_spill] sm:$0xff] %v10248_v1 }
 0x11a   : > { %1204 = vrot.lane.b32.xlu1 %v9918_v14, %s9562_s30  ;;  %v415_v50 = vmul.f32 %v10197_v3, %v403_v23  ;;  %v351_v30 = vmul.f32 %v10212_v38, %v332_v20  ;;  %v8976_v10 = vpack.c.bf16 %v418_v56, %v416_v52  ;;  %v335_v61 = vsel %vm329_vm3, %v9909_v12, %v9903_v11  ;;  %v10266_v20 = vld [vmem:[#allocation7 + $0x10] sm:$0xff] }
 0x11b   : > { %1202 = vrot.lane.b32.xlu0 %v9925_v17, %s9562_s30  ;;  %v352_v56 = vmul.f32 %v10230_v24, %v337_v39  ;;  %14237 = vst [vmem:[#allocation37_spill] sm:$0xff] %v10266_v20  ;;  %v349_v38 = vmul.f32 %v10242_v15, %v331_v36  ;;  %14255 = vst [vmem:[#allocation55_spill] sm:$0xff] %v10431_v60 }
 0x11c   : > { %3576 = vmatpush1.bf16.msra.mxu0 %v8991_v54  ;;  %v10220_v28 = vpop.permute.xlu1 %688  ;;  %v10233_v54 = vld [vmem:[#allocation7 + $0x20] sm:$0xff]  ;;  %v8975_v34 = vpack.c.bf16 %v417_v35, %v415_v50  ;;  %v8968_v11 = vpack.c.bf16 %v353_v47, %v351_v30  ;;  %v348_v35 = vmul.f32 %v10266_v20, %v335_v61 }
 0x11d   : > { %3577 = vmatprep.subr.bf16.mxu0 %v8984_v19  ;;  %v10222_v42 = vpop.permute.xlu0 %686  ;;  %14234 = vst [vmem:[#allocation34_spill] sm:$0xff] %v10233_v54  ;;  %v336_v19 = vsel %vm329_vm3, %v9922_v16, %v9893_v8  ;;  %v330_v8 = vsel %vm329_vm3, %v9895_v9, %v9911_v13 }
 0x11e   : > { %1208 = vrot.lane.b32.xlu1 %v9932_v18, %s9562_s30  ;;  %v350_v23 = vmul.f32 %v10233_v54, %v336_v19  ;;  %v347_v27 = vmul.f32 %v10248_v1, %v330_v8 }
 0x11f   : > { %1206 = vrot.lane.b32.xlu0 %v9939_v21, %s9562_s30 }
 0x120   : > { %3578 = vmatpush1.bf16.msra.mxu0 %v8983_v57  ;;  %v10256_v16 = vpop.permute.xlu1 %692  ;;  %v10269_v57 = vld [vmem:[#allocation7] sm:$0xff] }
 0x121   : > { %3579 = vmatprep.subr.bf16.mxu0 %v8976_v10  ;;  %v10258_v52 = vpop.permute.xlu0 %690  ;;  %14238 = vst [vmem:[#allocation38_spill] sm:$0xff] %v10269_v57  ;;  %v334_v10 = vsel %vm329_vm3, %v9911_v13, %v9895_v9  ;;  %v8967_v9 = vpack.c.bf16 %v352_v56, %v350_v23  ;;  %v8960_v13 = vpack.c.bf16 %v349_v38, %v347_v27  ;;  %v10303_v23 = vld [vmem:[#allocation7 + $0x1d8] sm:$0xff] }
 0x122   : > { %1212 = vrot.lane.b32.xlu1 %v9946_v22, %s9562_s30  ;;  %v346_v50 = vmul.f32 %v10269_v57, %v334_v10  ;;  %14239 = vst [vmem:[#allocation39_spill] sm:$0xff] %v10303_v23  ;;  %v10307_v10 = vld [vmem:[#allocation7 + $0x1c8] sm:$0xff] }
 0x123   : > { %1210 = vrot.lane.b32.xlu0 %v9953_v25, %s9562_s30  ;;  %14240 = vst [vmem:[#allocation40_spill] sm:$0xff] %v10307_v10 }
 0x124   : > { %3580 = vmatpush1.bf16.msra.mxu0 %v8975_v34  ;;  %v10280_v12 = vpop.permute.xlu1 %696  ;;  %v8959_v19 = vpack.c.bf16 %v348_v35, %v346_v50  ;;  %v10313_v35 = vld [vmem:[#allocation7 + $0x1f0] sm:$0xff]  ;;  %v10318_v50 = vld [vmem:[#allocation7 + $0x1f8] sm:$0xff] }
 0x125   : > { %3581 = vmatprep.subr.bf16.mxu0 %v8968_v11  ;;  %v10282_v39 = vpop.permute.xlu0 %694  ;;  %14241 = vst [vmem:[#allocation41_spill] sm:$0xff] %v10313_v35  ;;  %14242 = vst [vmem:[#allocation42_spill] sm:$0xff] %v10318_v50 }
 0x126   : > { %1216 = vrot.lane.b32.xlu1 %v9960_v26, %s9562_s30 }
 0x127   : > { %1214 = vrot.lane.b32.xlu0 %v9967_v29, %s9562_s30 }
 0x128   : > { %3582 = vmatpush1.bf16.msra.mxu0 %v8967_v9  ;;  %v701_v30 = vpop.permute.xlu1 %700  ;;  %v10320_v9 = vld [vmem:[#allocation7 + $0x1e0] sm:$0xff] }
 0x129   : > { %3583 = vmatprep.subr.bf16.mxu0 %v8960_v13  ;;  %v699_v47 = vpop.permute.xlu0 %698  ;;  %14243 = vst [vmem:[#allocation43_spill] sm:$0xff] %v10320_v9  ;;  %v10322_v13 = vld [vmem:[#allocation7 + $0x1e8] sm:$0xff] }
 0x12a   : > { %1272 = vrot.lane.b32.xlu1 %v9918_v14, %s14148_s16  ;;  %14244 = vst [vmem:[#allocation44_spill] sm:$0xff] %v10322_v13 }
 0x12b   : > { %1270 = vrot.lane.b32.xlu0 %v9925_v17, %s14148_s16 }
 0x12c   : > { %3584 = vmatpush1.bf16.msra.mxu0 %v8959_v19  ;;  %v758_v36 = vpop.permute.xlu1 %757 }
 0x12d   : > { %v756_v8 = vpop.permute.xlu0 %755 }
 0x12e   : > { %1276 = vrot.lane.b32.xlu1 %v9932_v18, %s14148_s16 }
 0x12f   : > { %1274 = vrot.lane.b32.xlu0 %v9939_v21, %s14148_s16 }
 0x130   : > { %v762_v27 = vpop.permute.xlu1 %761 }
 0x131   : > { %v760_v38 = vpop.permute.xlu0 %759 }
 0x132   : > { %1280 = vrot.lane.b32.xlu1 %v9946_v22, %s14148_s16 }
 0x133   : > { %1278 = vrot.lane.b32.xlu0 %v9953_v25, %s14148_s16 }
 0x134   : > { %v766_v61 = vpop.permute.xlu1 %765 }
 0x135   : > { %v764_v56 = vpop.permute.xlu0 %763  ;;  %v777_v34 = vsel %vm771_vm4, %v766_v61, %v758_v36  ;;  %v773_v19 = vsel %vm771_vm4, %v758_v36, %v766_v61  ;;  %v10338_v61 = vld [vmem:[#allocation7 + $0x1d0] sm:$0xff] }
 0x136   : > { %v776_v11 = vsel %vm771_vm4, %v764_v56, %v756_v8  ;;  %1284 = vrot.lane.b32.xlu1 %v9960_v26, %s14148_s16  ;;  %v791_v57 = vmul.f32 %v10303_v23, %v777_v34  ;;  %v772_v20 = vsel %vm771_vm4, %v756_v8, %v764_v56  ;;  %14245 = vst [vmem:[#allocation45_spill] sm:$0xff] %v10338_v61  ;;  %v10340_v34 = vld [vmem:[#allocation7 + $0x1c0] sm:$0xff]  ;;  %v10372_v23 = vld [vmem:[#allocation7 + $0x1b0] sm:$0xff] }
 0x137   : > { %1282 = vrot.lane.b32.xlu0 %v9967_v29, %s14148_s16  ;;  %v789_v1 = vmul.f32 %v10307_v10, %v776_v11  ;;  %14246 = vst [vmem:[#allocation46_spill] sm:$0xff] %v10340_v34 }
 0x138   : > { %v770_v15 = vpop.permute.xlu1 %769 }
 0x139   : > { %v768_v54 = vpop.permute.xlu0 %767  ;;  %v775_v24 = vsel %vm771_vm4, %v762_v27, %v770_v15  ;;  %v779_v3 = vsel %vm771_vm4, %v770_v15, %v762_v27  ;;  %v10348_v15 = vld [vmem:[#allocation7 + $0x1b8] sm:$0xff]  ;;  %v10353_v27 = vld [vmem:[#allocation7 + $0x1a8] sm:$0xff] }
 0x13a   : > { %v774_v33 = vsel %vm771_vm4, %v760_v38, %v768_v54  ;;  %v778_v36 = vsel %vm771_vm4, %v768_v54, %v760_v38  ;;  %v794_v8 = vmul.f32 %v10313_v35, %v775_v24  ;;  %v795_v56 = vmul.f32 %v10318_v50, %v779_v3  ;;  %1340 = vrot.lane.b32.xlu1 %v9918_v14, %s14146_s18 }
 0x13b   : > { %v792_v11 = vmul.f32 %v10320_v9, %v774_v33  ;;  %v793_v10 = vmul.f32 %v10322_v13, %v778_v36  ;;  %14247 = vst [vmem:[#allocation47_spill] sm:$0xff] %v10348_v15  ;;  %v710_v54 = vsel %vm702_vm5, %v701_v30, %v10256_v16  ;;  %14248 = vst [vmem:[#allocation48_spill] sm:$0xff] %v10353_v27  ;;  %1338 = vrot.lane.b32.xlu0 %v9925_v17, %s14146_s18 }
 0x13c   : > { %v709_v24 = vsel %vm702_vm5, %v699_v47, %v10258_v52  ;;  %v10360_v3 = vpop.permute.xlu1 %826  ;;  %v706_v13 = vsel %vm702_vm5, %v10256_v16, %v701_v30  ;;  %v705_v9 = vsel %vm702_vm5, %v10258_v52, %v699_v47  ;;  %v790_v50 = vmul.f32 %v10338_v61, %v773_v19  ;;  %v10381_v52 = vld [vmem:[#allocation7 + $0x198] sm:$0xff]  ;;  %v10387_v30 = vld [vmem:[#allocation7 + $0x188] sm:$0xff] }
 0x13d   : > { %v10362_v33 = vpop.permute.xlu0 %824  ;;  %v9080_v38 = vpack.c.bf16 %v795_v56, %v793_v10  ;;  %v9079_v36 = vpack.c.bf16 %v794_v8, %v792_v11  ;;  %v788_v35 = vmul.f32 %v10340_v34, %v772_v20  ;;  %v726_v44 = vmul.f32 %v10348_v15, %v710_v54  ;;  %14249 = vst [vmem:[#allocation49_spill] sm:$0xff] %v10381_v52  ;;  %v10411_v54 = vld [vmem:[#allocation7 + $0x168] sm:$0xff] }
 0x13e   : > { %v724_v10 = vmul.f32 %v10353_v27, %v709_v24  ;;  %1344 = vrot.lane.b32.xlu1 %v9932_v18, %s14146_s18  ;;  %v9072_v16 = vpack.c.bf16 %v791_v57, %v789_v1  ;;  %v708_v20 = vsel %vm702_vm5, %v10280_v12, %v10220_v28  ;;  %14250 = vst [vmem:[#allocation50_spill] sm:$0xff] %v10387_v30  ;;  %v10395_v1 = vld [vmem:[#allocation7 + $0x178] sm:$0xff]  ;;  %14252 = vst [vmem:[#allocation52_spill] sm:$0xff] %v10411_v54  ;;  %v10413_v24 = vld [vmem:[#allocation7 + $0x190] sm:$0xff] }
 0x13f   : > { %3585 = vmatprep.subr.bf16.mxu0 %v9080_v38  ;;  %v707_v47 = vsel %vm702_vm5, %v10282_v39, %v10222_v42  ;;  %1342 = vrot.lane.b32.xlu0 %v9939_v21, %s14146_s18  ;;  %14251 = vst [vmem:[#allocation51_spill] sm:$0xff] %v10395_v1  ;;  %v641_v57 = vsel %vm633_vm6, %v10184_v31, %v10111_v58  ;;  %14253 = vst [vmem:[#allocation53_spill] sm:$0xff] %v10413_v24  ;;  %v10415_v38 = vld [vmem:[#allocation7 + $0x180] sm:$0xff] }
 0x140   : > { %3586 = vmatpush2.bf16.msra.mxu0 %v9079_v36  ;;  %v640_v19 = vsel %vm633_vm6, %v10186_v49, %v10113_v59  ;;  %v704_v8 = vsel %vm702_vm5, %v10220_v28, %v10280_v12  ;;  %v831_v56 = vpop.permute.xlu1 %830  ;;  %14254 = vst [vmem:[#allocation54_spill] sm:$0xff] %v10415_v38  ;;  %v703_v36 = vsel %vm702_vm5, %v10222_v42, %v10282_v39 }
 0x141   : > { %3587 = vmatprep.subr.bf16.mxu0 %v9072_v16  ;;  %v10409_v11 = vpop.permute.xlu0 %828  ;;  %v725_v27 = vmul.f32 %v10372_v23, %v706_v13  ;;  %v723_v34 = vmul.f32 %v10375_v46, %v705_v9  ;;  %v9071_v28 = vpack.c.bf16 %v790_v50, %v788_v35  ;;  %v639_v12 = vsel %vm633_vm6, %v10147_v37, %v10076_v63  ;;  %v10450_v50 = vld [vmem:[#allocation7 + $0x170] sm:$0xff]  ;;  %v10453_v13 = vld [vmem:[#allocation7 + $0x160] sm:$0xff] }
 0x142   : > { %v722_v16 = vmul.f32 %v10381_v52, %v708_v20  ;;  %v720_v61 = vmul.f32 %v10387_v30, %v707_v47  ;;  %1348 = vrot.lane.b32.xlu1 %v9946_v22, %s14146_s18  ;;  %v9064_v15 = vpack.c.bf16 %v726_v44, %v724_v10  ;;  %v638_v42 = vsel %vm633_vm6, %v10149_v55, %v10078_v62  ;;  %v10448_v44 = vld [vmem:[#allocation7 + $0x148] sm:$0xff] }
 0x143   : > { %v637_v39 = vsel %vm633_vm6, %v10111_v58, %v10184_v31  ;;  %v636_v35 = vsel %vm633_vm6, %v10113_v59, %v10186_v49  ;;  %1346 = vrot.lane.b32.xlu0 %v9953_v25, %s14146_s18  ;;  %14256 = vst [vmem:[#allocation56_spill] sm:$0xff] %v10448_v44  ;;  %14257 = vst [vmem:[#allocation57_spill] sm:$0xff] %v10450_v50  ;;  %v657_v9 = vmul.f32 %v10395_v1, %v641_v57  ;;  %v14278_v1 = vld [vmem:[#allocation17_spill] sm:$0xff] }
 0x144   : > { %3588 = vmatpush2.bf16.msra.mxu0 %v9071_v28  ;;  %14258 = vst [vmem:[#allocation58_spill] sm:$0xff] %v10453_v13  ;;  %v655_v58 = vmul.f32 %v10411_v54, %v640_v19  ;;  %v721_v31 = vmul.f32 %v10413_v24, %v704_v8  ;;  %v719_v59 = vmul.f32 %v10415_v38, %v703_v36  ;;  %v835_v49 = vpop.permute.xlu1 %834  ;;  %v10467_v19 = vld [vmem:[#allocation7 + $0x218] sm:$0xff]  ;;  %v10486_v36 = vld [vmem:[#allocation7 + $0x208] sm:$0xff] }
 0x145   : > { %3589 = vmatprep.subr.bf16.mxu0 %v9064_v15  ;;  %v833_v10 = vpop.permute.xlu0 %832  ;;  %v635_v20 = vsel %vm633_vm6, %v10076_v63, %v10147_v37  ;;  %v9063_v47 = vpack.c.bf16 %v725_v27, %v723_v34  ;;  %v653_v28 = vmul.f32 %v10431_v60, %v639_v12  ;;  %v634_v57 = vsel %vm633_vm6, %v10078_v62, %v10149_v55  ;;  %v10479_v62 = vld [vmem:[#allocation7 + $0x238] sm:$0xff]  ;;  %v10481_v55 = vld [vmem:[#allocation7 + $0x230] sm:$0xff] }
 0x146   : > { %14259 = vst [vmem:[#allocation59_spill] sm:$0xff] %v10467_v19  ;;  %v846_v15 = vsel %vm840_vm7, %v835_v49, %v10360_v3  ;;  %1352 = vrot.lane.b32.xlu1 %v9960_v26, %s14146_s18  ;;  %v9056_v8 = vpack.c.bf16 %v722_v16, %v720_v61  ;;  %v651_v63 = vmul.f32 %v10448_v44, %v638_v42  ;;  %14260 = vst [vmem:[#allocation60_spill] sm:$0xff] %v10479_v62  ;;  %v14277_v24 = vld [vmem:[#allocation19_spill] sm:$0xff] }
 0x147   : > { %v656_v37 = vmul.f32 %v10450_v50, %v637_v39  ;;  %v654_v34 = vmul.f32 %v10453_v13, %v636_v35  ;;  %1350 = vrot.lane.b32.xlu0 %v9967_v29, %s14146_s18  ;;  %14261 = vst [vmem:[#allocation61_spill] sm:$0xff] %v10481_v55  ;;  %v842_v27 = vsel %vm840_vm7, %v10360_v3, %v835_v49  ;;  %14262 = vst [vmem:[#allocation62_spill] sm:$0xff] %v10486_v36  ;;  %v10491_v39 = vld [vmem:[#allocation7 + $0x228] sm:$0xff]  ;;  %v10493_v35 = vld [vmem:[#allocation7 + $0x220] sm:$0xff] }
 0x148   : > { %3590 = vmatpush2.bf16.msra.mxu0 %v9063_v47  ;;  %v845_v61 = vsel %vm840_vm7, %v833_v10, %v10362_v33  ;;  %v839_v12 = vpop.permute.xlu1 %838  ;;  %v9055_v16 = vpack.c.bf16 %v721_v31, %v719_v59  ;;  %v9048_v42 = vpack.c.bf16 %v657_v9, %v655_v58  ;;  %14263 = vst [vmem:[#allocation63_spill] sm:$0xff] %v10491_v39  ;;  %14264 = vst [vmem:[#allocation64_spill] sm:$0xff] %v10493_v35  ;;  %v10515_v59 = vld [vmem:[#allocation7 + $0x140] sm:$0xff] }
 0x149   : > { %3591 = vmatprep.subr.bf16.mxu0 %v9056_v8  ;;  %v860_v47 = vmul.f32 %v10467_v19, %v846_v15  ;;  %v841_v3 = vsel %vm840_vm7, %v10362_v33, %v833_v10  ;;  %v844_v49 = vsel %vm840_vm7, %v831_v56, %v839_v12  ;;  %v837_v13 = vpop.permute.xlu0 %836  ;;  %v848_v50 = vsel %vm840_vm7, %v839_v12, %v831_v56  ;;  %v10503_v8 = vld [vmem:[#allocation7 + $0x150] sm:$0xff]  ;;  %v10519_v10 = vld [vmem:[#allocation7 + $0x200] sm:$0xff] }
 0x14a   : > { %14265 = vst [vmem:[#allocation65_spill] sm:$0xff] %v10503_v8  ;;  %v843_v9 = vsel %vm840_vm7, %v10409_v11, %v837_v13  ;;  %1408 = vrot.lane.b32.xlu1 %v9918_v14, %s14144_s8  ;;  %v847_v33 = vsel %vm840_vm7, %v837_v13, %v10409_v11  ;;  %v864_v58 = vmul.f32 %v10479_v62, %v848_v50  ;;  %14266 = vst [vmem:[#allocation66_spill] sm:$0xff] %v10515_v59  ;;  %v10517_v56 = vld [vmem:[#allocation7 + $0x210] sm:$0xff] }
 0x14b   : > { %v863_v31 = vmul.f32 %v10481_v55, %v844_v49  ;;  %14267 = vst [vmem:[#allocation67_spill] sm:$0xff] %v10517_v56  ;;  %14268 = vst [vmem:[#allocation68_spill] sm:$0xff] %v10519_v10  ;;  %v858_v15 = vmul.f32 %v10486_v36, %v845_v61  ;;  %1406 = vrot.lane.b32.xlu0 %v9925_v17, %s14144_s8  ;;  %v862_v14 = vmul.f32 %v10491_v39, %v847_v33  ;;  %v14276_v19 = vld [vmem:[#allocation14_spill] sm:$0xff] }
 0x14c   : > { %3592 = vmatpush2.bf16.msra.mxu0 %v9055_v16  ;;  %v861_v11 = vmul.f32 %v10493_v35, %v843_v9  ;;  %v10526_v13 = vpop.permute.xlu1 %904  ;;  %v652_v50 = vmul.f32 %v10503_v8, %v635_v20  ;;  %v650_v55 = vmul.f32 %v10515_v59, %v634_v57  ;;  %v859_v61 = vmul.f32 %v10517_v56, %v842_v27  ;;  %v10686_v56 = vld [vmem:[%s14050_s2 + $0x1c] ss:$12 sps:$4 sm:$0xff]   ;;  %v10693_v8 = vld [vmem:[%s14050_s2 + $0x18] ss:$12 sps:$4 sm:$0xff]  }
 0x14d   : > { %3593 = vmatprep.subr.bf16.mxu0 %v9048_v42  ;;  %v10529_v12 = vpop.permute.xlu0 %902  ;;  %v9096_v49 = vpack.c.bf16 %v864_v58, %v862_v14  ;;  %v857_v17 = vmul.f32 %v10519_v10, %v841_v3  ;;  %v9047_v16 = vpack.c.bf16 %v656_v37, %v654_v34  ;;  %v10539_v42 = vld [vmem:[%s14050_s2 + $0x4] ss:$12 sps:$4 sm:$0xff]   ;;  %v9040_v20 = vpack.c.bf16 %v653_v28, %v651_v63  ;;  %v10557_v28 = vld [vmem:[%s14050_s2 + $0x8] ss:$12 sps:$4 sm:$0xff]   ;;  %v10610_v58 = vld [vmem:[%s9743_s20 + $0x98] sm:$0xff] }
 0x14e   : > { %v9095_v62 = vpack.c.bf16 %v863_v31, %v861_v11  ;;  %1412 = vrot.lane.b32.xlu1 %v9932_v18, %s14144_s8  ;;  %14269 = vst [vmem:[#allocation69_spill] sm:$0xff] %v10539_v42  ;;  %v9088_v9 = vpack.c.bf16 %v860_v47, %v858_v15  ;;  %v9032_v18 = vpack.c.bf16 %v9784_v6, %v9787_v7  ;;  %14270 = vst [vmem:[#allocation70_spill] sm:$0xff] %v10557_v28  ;;  %v10572_v63 = vld [vmem:[%s9743_s20 + $0x90] sm:$0xff]  ;;  %v9346_v34 = vld [vmem:[%s9743_s20] sm:$0xff] }
 0x14f   : > { %1410 = vrot.lane.b32.xlu0 %v9939_v21, %s14144_s8  ;;  %3634 = vmatprep.subr.bf16.mxu1 %v9096_v49  ;;  %v9039_v37 = vpack.c.bf16 %v652_v50, %v650_v55  ;;  %v9087_v21 = vpack.c.bf16 %v859_v61, %v857_v17  ;;  %v9031_v7 = vpack.c.bf16 %v9764_v2, %v9754_v0  ;;  %v10579_v2 = vld [vmem:[%s9743_s20 + $0x80] sm:$0xff]  ;;  %v10616_v15 = vld [vmem:[%s9743_s20 + $0x88] sm:$0xff]  ;;  %v10625_v11 = vld [vmem:[%s9743_s20 + $0xb8] sm:$0xff] }
 0x150   : > { %3594 = vmatpush2.bf16.msra.mxu0 %v9047_v16  ;;  %3635 = vmatpush1.bf16.msra.mxu1 %v9095_v62  ;;  %v10543_v57 = vpop.permute.xlu1 %908  ;;  %v14271_v62 = vmov 0   ;;  %v10596_v55 = vld [vmem:[%s14050_s2] ss:$12 sps:$4 sm:$0xff]   ;;  %14274 = vst [vmem:[#allocation73_spill] sm:$0xff] %v10686_v56  ;;  %14275 = vst [vmem:[#allocation74_spill] sm:$0xff] %v10693_v8 }
 0x151   : > { %3595 = vmatprep.subr.bf16.mxu0 %v9040_v20  ;;  %3636 = vmatprep.subr.bf16.mxu1 %v9088_v9  ;;  %v10545_v27 = vpop.permute.xlu0 %906  ;;  %14272 = vst [vmem:[#allocation71_spill] sm:$0xff] %v10596_v55  ;;  %v10601_v3 = vld [vmem:[%s9743_s20 + $0xa0] sm:$0xff]  ;;  %v10630_v49 = vld [vmem:[%s9743_s20 + $0xa8] sm:$0xff] }
 0x152   : > { %1416 = vrot.lane.b32.xlu1 %v9946_v22, %s14144_s8  ;;  %3601 = vmatprep.mubr.bf16.mxu0 %v10539_v42  ;;  %v10679_v10 = vld [vmem:[%s14050_s2 + $0x20] ss:$12 sps:$4 sm:$0xff]  }
 0x153   : > { %1414 = vrot.lane.b32.xlu0 %v9953_v25, %s14144_s8  ;;  %v9024_v25 = vpack.c.bf16 %v9774_v4, %v9777_v5  ;;  %v9347_v4 = vld [vmem:[%s9743_s20 + $0x10] sm:$0xff]  ;;  %14273 = vst [vmem:[#allocation72_spill] sm:$0xff] %v10679_v10 }
 0x154   : > { %3596 = vmatpush2.bf16.msra.mxu0 %v9039_v37  ;;  %3637 = vmatpush1.bf16.msra.mxu1 %v9087_v21  ;;  %v10559_v6 = vpop.permute.xlu1 %912  ;;  %v9023_v5 = vpack.c.bf16 %v9347_v4, %v9346_v34 }
 0x155   : > { %v10563_v22 = vpop.permute.xlu0 %910  ;;  %3597 = vmatprep.subr.bf16.mxu0 %v9032_v18 }
 0x156   : > { %1420 = vrot.lane.b32.xlu1 %v9960_v26, %s14144_s8 }
 0x157   : > { %1418 = vrot.lane.b32.xlu0 %v9967_v29, %s14144_s8  ;;  %8303 = vmatmul.mubr.msk.bf16.vlgmr.msra.gmra.mxu1 %vm3562_vm8, %v10557_v28  ;;  %v10591_v29 = vld [vmem:[%s9743_s20 + $0xb0] sm:$0xff] }
 0x158   : > { %v10576_v0 = vpop.permute.xlu1 %916  ;;  %3598 = vmatpush2.bf16.msra.mxu0 %v9031_v7  ;;  %3664 = vmatprep.mubr.bf16.mxu1 %v14271_v62 }
 0x159   : > { %v10584_v26 = vpop.permute.xlu0 %914  ;;  %3599 = vmatprep.subr.bf16.mxu0 %v9024_v25 }
 0x15a   : > { %1485 = vrot.lane.b32.xlu1 %v10572_v63, %s14108_s27 }
 0x15b   : > { %1483 = vrot.lane.b32.xlu0 %v10579_v2, %s14108_s27 }
 0x15c   : > { %v10598_v47 = vpop.permute.xlu1 %972  ;;  %3600 = vmatpush2.bf16.msra.mxu0 %v9023_v5 }
 0x15d   : > { %v10603_v33 = vpop.permute.xlu0 %970 }
 0x15e   : > { %1489 = vrot.lane.b32.xlu1 %v10591_v29, %s14108_s27 }
 0x15f   : > { %1487 = vrot.lane.b32.xlu0 %v10601_v3, %s14108_s27  ;;  %3602 = vmatmul.mubr.bf16.vlgmr.msra.gmra.mxu0 %v10596_v55 }
 0x160   : > { %v10613_v31 = vpop.permute.xlu1 %976  ;;  %8304 = vmatmul.mubr.msk.bf16.gmra.mxu1 %vm3562_vm8, %v10679_v10  ;;  %3611 = vmatprep.mubr.bf16.mxu0 %v10686_v56 }
 0x161   : > { %v10618_v14 = vpop.permute.xlu0 %974  ;;  %3707 = vmatprep.mubr.bf16.mxu1 %v10539_v42 }
 0x162   : > { %1493 = vrot.lane.b32.xlu1 %v10610_v58, %s14108_s27 }
 0x163   : > { %1491 = vrot.lane.b32.xlu0 %v10616_v15, %s14108_s27 }
 0x164   : > { %v10627_v50 = vpop.permute.xlu1 %980 }
 0x165   : > { %v10632_v61 = vpop.permute.xlu0 %978 }
 0x166   : > { %1497 = vrot.lane.b32.xlu1 %v10625_v11, %s14108_s27 }
 0x167   : > { %1495 = vrot.lane.b32.xlu0 %v10630_v49, %s14108_s27  ;;  %3612 = vmatmul.mubr.bf16.gmra.mxu0 %v10693_v8  ;;  %s14384_s27 = smov 112  }
 0x168   : > { %v10638_v17 = vpop.permute.xlu1 %984  ;;  %3760 = vmatprep.mubr.bf16.mxu0 %v14271_v62 }
 0x169   : > { %v10640_v16 = vpop.permute.xlu0 %982 }
 0x16a   : > { %1553 = vrot.lane.b32.xlu1 %v10572_v63, %s9559_s29 }
 0x16b   : > { %1551 = vrot.lane.b32.xlu0 %v10579_v2, %s9559_s29 }
 0x16c   : > { %v10646_v20 = vpop.permute.xlu1 %1040 }
 0x16d   : > { %v10648_v9 = vpop.permute.xlu0 %1038 }
 0x16e   : > { %1557 = vrot.lane.b32.xlu1 %v10591_v29, %s9559_s29 }
 0x16f   : > { %1555 = vrot.lane.b32.xlu0 %v10601_v3, %s9559_s29 }
 0x170   : > { %v1045_v18 = vpop.permute.xlu1 %1044 }
 0x171   : > { %v1043_v37 = vpop.permute.xlu0 %1042 }
 0x172   : > { %1561 = vrot.lane.b32.xlu1 %v10610_v58, %s9559_s29 }
 0x173   : > { %1559 = vrot.lane.b32.xlu0 %v10616_v15, %s9559_s29 }
 0x174   : > { %v10658_v21 = vpop.permute.xlu1 %1048 }
 0x175   : > { %v10660_v7 = vpop.permute.xlu0 %1046 }
 0x176   : > { %1565 = vrot.lane.b32.xlu1 %v10625_v11, %s9559_s29 }
 0x177   : > { %1563 = vrot.lane.b32.xlu0 %v10630_v49, %s9559_s29 }
 0x178   : > { %v1053_v25 = vpop.permute.xlu1 %1052 }
 0x179   : > { %v1051_v34 = vpop.permute.xlu0 %1050  ;;  %v1057_v10 = vsel %vm467_vm1, %v1045_v18, %v1053_v25 }
 0x17a   : > { %1621 = vrot.lane.b32.xlu1 %v10572_v63, %s9560_s17 }
 0x17b   : > { %1619 = vrot.lane.b32.xlu0 %v10579_v2, %s9560_s17 }
 0x17c   : > { %v1109_v4 = vpop.permute.xlu1 %1108 }
 0x17d   : > { %v1107_v5 = vpop.permute.xlu0 %1106 }
 0x17e   : > { %1625 = vrot.lane.b32.xlu1 %v10591_v29, %s9560_s17 }
 0x17f   : > { %1623 = vrot.lane.b32.xlu0 %v10601_v3, %s9560_s17 }
 0x180   : > { %v1113_v55 = vpop.permute.xlu1 %1112 }
 0x181   : > { %v1111_v28 = vpop.permute.xlu0 %1110 }
 0x182   : > { %1629 = vrot.lane.b32.xlu1 %v10610_v58, %s9560_s17 }
 0x183   : > { %1627 = vrot.lane.b32.xlu0 %v10616_v15, %s9560_s17 }
 0x184   : > { %v1117_v59 = vpop.permute.xlu1 %1116 }
 0x185   : > { %v1115_v39 = vpop.permute.xlu0 %1114  ;;  %v1123_v35 = vsel %vm536_vm0, %v1109_v4, %v1117_v59  ;;  %v1127_v42 = vsel %vm536_vm0, %v1117_v59, %v1109_v4  ;;  %v14281_v4 = vld [vmem:[#allocation16_spill] sm:$0xff] }
 0x186   : > { %1633 = vrot.lane.b32.xlu1 %v10625_v11, %s9560_s17  ;;  %v1122_v36 = vsel %vm536_vm0, %v1107_v5, %v1115_v39  ;;  %v1141_v44 = vmul.f32 %v1123_v35, %v14276_v19  ;;  %v1126_v19 = vsel %vm536_vm0, %v1115_v39, %v1107_v5  ;;  %v14279_v35 = vld [vmem:[#allocation15_spill] sm:$0xff]  ;;  %v1061_v39 = vsel %vm467_vm1, %v1053_v25, %v1045_v18 }
 0x187   : > { %1631 = vrot.lane.b32.xlu0 %v10630_v49, %s9560_s17  ;;  %v1139_v59 = vmul.f32 %v1122_v36, %v14279_v35  ;;  %v1077_v36 = vmul.f32 %v1057_v10, %v10063_v51  ;;  %v1060_v5 = vsel %vm467_vm1, %v1051_v34, %v1043_v37  ;;  %v1076_v10 = vmul.f32 %v1061_v39, %v10085_v53 }
 0x188   : > { %v1121_v56 = vpop.permute.xlu1 %1120  ;;  %v988_v53 = vsel %vm398_vm2, %v10618_v14, %v10640_v16 }
 0x189   : > { %v1125_v60 = vsel %vm536_vm0, %v1113_v55, %v1121_v56  ;;  %v1129_v8 = vsel %vm536_vm0, %v1121_v56, %v1113_v55  ;;  %v1119_v38 = vpop.permute.xlu0 %1118  ;;  %v14280_v56 = vld [vmem:[#allocation18_spill] sm:$0xff] }
 0x18a   : > { %v1144_v54 = vmul.f32 %v1129_v8, %v14277_v24  ;;  %v1145_v30 = vmul.f32 %v1125_v60, %v14278_v1  ;;  %v1124_v52 = vsel %vm536_vm0, %v1111_v28, %v1119_v38  ;;  %v1128_v62 = vsel %vm536_vm0, %v1119_v38, %v1111_v28  ;;  %1689 = vrot.lane.b32.xlu1 %v10572_v63, %s9561_s19 }
 0x18b   : > { %v1142_v55 = vmul.f32 %v1128_v62, %v14280_v56  ;;  %v1143_v24 = vmul.f32 %v1124_v52, %v14281_v4  ;;  %1687 = vrot.lane.b32.xlu0 %v10579_v2, %s9561_s19  ;;  %v1056_v60 = vsel %vm467_vm1, %v1043_v37, %v1051_v34  ;;  %v1140_v62 = vmul.f32 %v1127_v42, %v10053_v40  ;;  %v14282_v37 = vld [vmem:[#allocation20_spill] sm:$0xff]  ;;  %v14284_v56 = vld [vmem:[#allocation22_spill] sm:$0xff] }
 0x18c   : > { %v10733_v1 = vpop.permute.xlu1 %1204  ;;  %v1138_v52 = vmul.f32 %v1126_v19, %v10055_v41  ;;  %v1055_v40 = vsel %vm467_vm1, %v10646_v20, %v10658_v21  ;;  %v1054_v41 = vsel %vm467_vm1, %v10648_v9, %v10660_v7  ;;  %v1074_v42 = vmul.f32 %v1060_v5, %v10088_v48  ;;  %v14283_v19 = vld [vmem:[#allocation21_spill] sm:$0xff]  ;;  %v14288_v5 = vld [vmem:[#allocation26_spill] sm:$0xff] }
 0x18d   : > { %v9017_v38 = vpack.c.bf16 %v1144_v54, %v1142_v55  ;;  %v10735_v8 = vpop.permute.xlu0 %1202  ;;  %v9018_v28 = vpack.c.bf16 %v1145_v30, %v1143_v24  ;;  %v1075_v54 = vmul.f32 %v1056_v60, %v10067_v45  ;;  %v9010_v30 = vpack.c.bf16 %v1141_v44, %v1139_v59  ;;  %v14285_v24 = vld [vmem:[#allocation23_spill] sm:$0xff] }
 0x18e   : > { %1693 = vrot.lane.b32.xlu1 %v10591_v29, %s9561_s19  ;;  %v1059_v44 = vsel %vm467_vm1, %v10658_v21, %v10646_v20  ;;  %v9009_v18 = vpack.c.bf16 %v1140_v62, %v1138_v52  ;;  %v1073_v25 = vmul.f32 %v1055_v40, %v14282_v37  ;;  %v1058_v34 = vsel %vm467_vm1, %v10660_v7, %v10648_v9  ;;  %v14287_v62 = vld [vmem:[#allocation25_spill] sm:$0xff]  ;;  %v14289_v40 = vld [vmem:[#allocation27_spill] sm:$0xff] }
 0x18f   : > { %1691 = vrot.lane.b32.xlu0 %v10601_v3, %s9561_s19  ;;  %3675 = vmatprep.subr.bf16.mxu1 %v9018_v28  ;;  %v1071_v35 = vmul.f32 %v1054_v41, %v14283_v19  ;;  %v9002_v20 = vpack.c.bf16 %v1077_v36, %v1075_v54  ;;  %v989_v48 = vsel %vm398_vm2, %v10613_v31, %v10638_v17  ;;  %v14286_v28 = vld [vmem:[#allocation24_spill] sm:$0xff]  ;;  %v14292_v19 = vld [vmem:[#allocation30_spill] sm:$0xff] }
 0x190   : > { %3676 = vmatpush1.bf16.msra.mxu1 %v9017_v38  ;;  %v10757_v51 = vpop.permute.xlu1 %1208  ;;  %v993_v7 = vsel %vm398_vm2, %v10638_v17, %v10613_v31  ;;  %v1072_v59 = vmul.f32 %v1059_v44, %v10121_v32  ;;  %v1070_v55 = vmul.f32 %v1058_v34, %v14284_v56  ;;  %v9001_v4 = vpack.c.bf16 %v1076_v10, %v1074_v42  ;;  %v14290_v10 = vld [vmem:[#allocation28_spill] sm:$0xff] }
 0x191   : > { %3677 = vmatprep.subr.bf16.mxu1 %v9010_v30  ;;  %v10759_v45 = vpop.permute.xlu0 %1206  ;;  %v1009_v60 = vmul.f32 %v989_v48, %v14285_v24  ;;  %v992_v38 = vsel %vm398_vm2, %v10640_v16, %v10618_v14  ;;  %v1007_v39 = vmul.f32 %v988_v53, %v14286_v28  ;;  %v8994_v31 = vpack.c.bf16 %v1073_v25, %v1071_v35  ;;  %v14291_v25 = vld [vmem:[#allocation29_spill] sm:$0xff]  ;;  %v14293_v48 = vld [vmem:[#allocation31_spill] sm:$0xff] }
 0x192   : > { %1697 = vrot.lane.b32.xlu1 %v10610_v58, %s9561_s19  ;;  %v987_v32 = vsel %vm398_vm2, %v10598_v47, %v10627_v50  ;;  %v986_v17 = vsel %vm398_vm2, %v10603_v33, %v10632_v61  ;;  %v991_v16 = vsel %vm398_vm2, %v10627_v50, %v10598_v47  ;;  %v1008_v52 = vmul.f32 %v993_v7, %v14287_v62  ;;  %v14295_v24 = vld [vmem:[#allocation33_spill] sm:$0xff] }
 0x193   : > { %1695 = vrot.lane.b32.xlu0 %v10616_v15, %s9561_s19  ;;  %v1006_v54 = vmul.f32 %v992_v38, %v14288_v5  ;;  %v8993_v30 = vpack.c.bf16 %v1072_v59, %v1070_v55  ;;  %v1005_v41 = vmul.f32 %v987_v32, %v14289_v40  ;;  %v990_v44 = vsel %vm398_vm2, %v10632_v61, %v10603_v33  ;;  %v14294_v59 = vld [vmem:[#allocation32_spill] sm:$0xff]  ;;  %v14296_v38 = vld [vmem:[#allocation34_spill] sm:$0xff]  ;;  %v14299_v5 = vld [vmem:[#allocation37_spill] sm:$0xff] }
 0x194   : > { %3678 = vmatpush1.bf16.msra.mxu1 %v9009_v18  ;;  %v10785_v21 = vpop.permute.xlu1 %1212  ;;  %v1003_v42 = vmul.f32 %v986_v17, %v14290_v10  ;;  %v8986_v47 = vpack.c.bf16 %v1009_v60, %v1007_v39  ;;  %v921_v50 = vsel %vm329_vm3, %v10543_v57, %v10576_v0  ;;  %v920_v18 = vsel %vm329_vm3, %v10545_v27, %v10584_v26 }
 0x195   : > { %3679 = vmatprep.subr.bf16.mxu1 %v9002_v20  ;;  %v10787_v9 = vpop.permute.xlu0 %1210  ;;  %v925_v61 = vsel %vm329_vm3, %v10576_v0, %v10543_v57  ;;  %v1004_v34 = vmul.f32 %v991_v16, %v14291_v25  ;;  %v1002_v35 = vmul.f32 %v990_v44, %v14292_v19  ;;  %v8985_v20 = vpack.c.bf16 %v1008_v52, %v1006_v54  ;;  %v14298_v16 = vld [vmem:[#allocation36_spill] sm:$0xff] }
 0x196   : > { %1701 = vrot.lane.b32.xlu1 %v10625_v11, %s9561_s19  ;;  %v941_v53 = vmul.f32 %v921_v50, %v14293_v48  ;;  %v924_v7 = vsel %vm329_vm3, %v10584_v26, %v10545_v27  ;;  %v939_v56 = vmul.f32 %v920_v18, %v14294_v59  ;;  %v8978_v57 = vpack.c.bf16 %v1005_v41, %v1003_v42 }
 0x197   : > { %1699 = vrot.lane.b32.xlu0 %v10630_v49, %s9561_s19  ;;  %v919_v0 = vsel %vm329_vm3, %v10526_v13, %v10559_v6  ;;  %v918_v55 = vsel %vm329_vm3, %v10529_v12, %v10563_v22  ;;  %v923_v26 = vsel %vm329_vm3, %v10559_v6, %v10526_v13  ;;  %v940_v60 = vmul.f32 %v925_v61, %v14295_v24 }
 0x198   : > { %3680 = vmatpush1.bf16.msra.mxu1 %v9001_v4  ;;  %v10813_v36 = vpop.permute.xlu1 %1216  ;;  %v938_v28 = vmul.f32 %v924_v7, %v14296_v38  ;;  %v8977_v39 = vpack.c.bf16 %v1004_v34, %v1002_v35  ;;  %v922_v17 = vsel %vm329_vm3, %v10563_v22, %v10529_v12  ;;  %v935_v62 = vmul.f32 %v918_v55, %v14298_v16  ;;  %v14306_v16 = vld [vmem:[#allocation44_spill] sm:$0xff] }
 0x199   : > { %3681 = vmatprep.subr.bf16.mxu1 %v8994_v31  ;;  %v10815_v14 = vpop.permute.xlu0 %1214  ;;  %v14297_v31 = vld [vmem:[#allocation35_spill] sm:$0xff]  ;;  %v8970_v13 = vpack.c.bf16 %v941_v53, %v939_v56  ;;  %v936_v54 = vmul.f32 %v923_v26, %v14299_v5  ;;  %v14303_v26 = vld [vmem:[#allocation42_spill] sm:$0xff] }
 0x19a   : > { %1785 = vrot.lane.b32.xlu1 %v10572_v63, %s9562_s30  ;;  %v937_v32 = vmul.f32 %v919_v0, %v14297_v31  ;;  %v8969_v41 = vpack.c.bf16 %v940_v60, %v938_v28  ;;  %v14301_v53 = vld [vmem:[#allocation39_spill] sm:$0xff]  ;;  %v14302_v0 = vld [vmem:[#allocation41_spill] sm:$0xff] }
 0x19b   : > { %1783 = vrot.lane.b32.xlu0 %v10579_v2, %s9562_s30 }
 0x19c   : > { %3682 = vmatpush1.bf16.msra.mxu1 %v8993_v30  ;;  %v10841_v37 = vpop.permute.xlu1 %1272  ;;  %v14300_v30 = vld [vmem:[#allocation38_spill] sm:$0xff]  ;;  %v8962_v12 = vpack.c.bf16 %v937_v32, %v935_v62  ;;  %v14305_v32 = vld [vmem:[#allocation43_spill] sm:$0xff] }
 0x19d   : > { %3683 = vmatprep.subr.bf16.mxu1 %v8986_v47  ;;  %v10843_v33 = vpop.permute.xlu0 %1270  ;;  %v934_v40 = vmul.f32 %v922_v17, %v14300_v30 }
 0x19e   : > { %1789 = vrot.lane.b32.xlu1 %v10591_v29, %s9562_s30 }
 0x19f   : > { %1787 = vrot.lane.b32.xlu0 %v10601_v3, %s9562_s30  ;;  %v8961_v10 = vpack.c.bf16 %v936_v54, %v934_v40 }
 0x1a0   : > { %3684 = vmatpush1.bf16.msra.mxu1 %v8985_v20  ;;  %v10869_v4 = vpop.permute.xlu1 %1276 }
 0x1a1   : > { %3685 = vmatprep.subr.bf16.mxu1 %v8978_v57  ;;  %v10871_v27 = vpop.permute.xlu0 %1274 }
 0x1a2   : > { %1793 = vrot.lane.b32.xlu1 %v10610_v58, %s9562_s30 }
 0x1a3   : > { %1791 = vrot.lane.b32.xlu0 %v10616_v15, %s9562_s30 }
 0x1a4   : > { %3686 = vmatpush1.bf16.msra.mxu1 %v8977_v39  ;;  %v10889_v6 = vpop.permute.xlu1 %1280  ;;  %v14304_v39 = vld [vmem:[#allocation40_spill] sm:$0xff] }
 0x1a5   : > { %3687 = vmatprep.subr.bf16.mxu1 %v8970_v13  ;;  %v10891_v52 = vpop.permute.xlu0 %1278 }
 0x1a6   : > { %1797 = vrot.lane.b32.xlu1 %v10625_v11, %s9562_s30 }
 0x1a7   : > { %1795 = vrot.lane.b32.xlu0 %v10630_v49, %s9562_s30 }
 0x1a8   : > { %3688 = vmatpush1.bf16.msra.mxu1 %v8969_v41  ;;  %v1285_v22 = vpop.permute.xlu1 %1284 }
 0x1a9   : > { %3689 = vmatprep.subr.bf16.mxu1 %v8962_v12  ;;  %v1283_v44 = vpop.permute.xlu0 %1282  ;;  %v1293_v19 = vsel %vm702_vm5, %v1285_v22, %v10869_v4  ;;  %v1289_v41 = vsel %vm702_vm5, %v10869_v4, %v1285_v22  ;;  %v14307_v12 = vld [vmem:[#allocation47_spill] sm:$0xff]  ;;  %v1223_v22 = vsel %vm633_vm6, %v10785_v21, %v10733_v1 }
 0x1aa   : > { %1853 = vrot.lane.b32.xlu1 %v10572_v63, %s14148_s16  ;;  %v1292_v13 = vsel %vm702_vm5, %v1283_v44, %v10871_v27 }
 0x1ab   : > { %1851 = vrot.lane.b32.xlu0 %v10579_v2, %s14148_s16 }
 0x1ac   : > { %3690 = vmatpush1.bf16.msra.mxu1 %v8961_v10  ;;  %v1341_v42 = vpop.permute.xlu1 %1340  ;;  %v1309_v10 = vmul.f32 %v1293_v19, %v14307_v12  ;;  %v1291_v19 = vsel %vm702_vm5, %v10889_v6, %v10841_v37 }
 0x1ad   : > { %v1339_v47 = vpop.permute.xlu0 %1338 }
 0x1ae   : > { %1857 = vrot.lane.b32.xlu1 %v10591_v29, %s14148_s16 }
 0x1af   : > { %1855 = vrot.lane.b32.xlu0 %v10601_v3, %s14148_s16 }
 0x1b0   : > { %v1345_v50 = vpop.permute.xlu1 %1344 }
 0x1b1   : > { %v1343_v18 = vpop.permute.xlu0 %1342 }
 0x1b2   : > { %1861 = vrot.lane.b32.xlu1 %v10610_v58, %s14148_s16 }
 0x1b3   : > { %1859 = vrot.lane.b32.xlu0 %v10616_v15, %s14148_s16 }
 0x1b4   : > { %v1349_v61 = vpop.permute.xlu1 %1348 }
 0x1b5   : > { %v1347_v25 = vpop.permute.xlu0 %1346  ;;  %v1359_v34 = vsel %vm771_vm4, %v1349_v61, %v1341_v42  ;;  %v1355_v48 = vsel %vm771_vm4, %v1341_v42, %v1349_v61  ;;  %v14308_v42 = vld [vmem:[#allocation45_spill] sm:$0xff]  ;;  %v1288_v61 = vsel %vm702_vm5, %v10871_v27, %v1283_v44  ;;  %v1290_v27 = vsel %vm702_vm5, %v10891_v52, %v10843_v33 }
 0x1b6   : > { %1865 = vrot.lane.b32.xlu1 %v10625_v11, %s14148_s16  ;;  %v1358_v35 = vsel %vm771_vm4, %v1347_v25, %v1339_v47  ;;  %v1373_v7 = vmul.f32 %v1359_v34, %v14301_v53  ;;  %v1354_v28 = vsel %vm771_vm4, %v1339_v47, %v1347_v25  ;;  %v1372_v47 = vmul.f32 %v1355_v48, %v14308_v42  ;;  %v14310_v25 = vld [vmem:[#allocation48_spill] sm:$0xff] }
 0x1b7   : > { %1863 = vrot.lane.b32.xlu0 %v10630_v49, %s14148_s16  ;;  %v1371_v31 = vmul.f32 %v1358_v35, %v14304_v39  ;;  %v1307_v34 = vmul.f32 %v1292_v13, %v14310_v25  ;;  %v1225_v35 = vsel %vm633_vm6, %v10813_v36, %v10757_v51  ;;  %v1287_v48 = vsel %vm702_vm5, %v10841_v37, %v10889_v6  ;;  %v14316_v39 = vld [vmem:[#allocation54_spill] sm:$0xff] }
 0x1b8   : > { %v1353_v20 = vpop.permute.xlu1 %1352  ;;  %v1286_v53 = vsel %vm702_vm5, %v10843_v33, %v10891_v52  ;;  %v1221_v37 = vsel %vm633_vm6, %v10757_v51, %v10813_v36  ;;  %v14311_v33 = vld [vmem:[#allocation49_spill] sm:$0xff]  ;;  %v14312_v52 = vld [vmem:[#allocation50_spill] sm:$0xff]  ;;  %v1220_v51 = vsel %vm633_vm6, %v10759_v45, %v10815_v14 }
 0x1b9   : > { %v1357_v59 = vsel %vm771_vm4, %v1345_v50, %v1353_v20  ;;  %v1361_v56 = vsel %vm771_vm4, %v1353_v20, %v1345_v50  ;;  %v1351_v57 = vpop.permute.xlu0 %1350  ;;  %v14309_v50 = vld [vmem:[#allocation46_spill] sm:$0xff]  ;;  %v9074_v4 = vpack.c.bf16 %v1373_v7, %v1371_v31  ;;  %v1224_v20 = vsel %vm633_vm6, %v10815_v14, %v10759_v45  ;;  %v14318_v14 = vld [vmem:[#allocation56_spill] sm:$0xff] }
 0x1ba   : > { %v1376_v55 = vmul.f32 %v1357_v59, %v14302_v0  ;;  %v1377_v24 = vmul.f32 %v1361_v56, %v14303_v26  ;;  %v1356_v60 = vsel %vm771_vm4, %v1343_v18, %v1351_v57  ;;  %v1360_v38 = vsel %vm771_vm4, %v1351_v57, %v1343_v18  ;;  %1921 = vrot.lane.b32.xlu1 %v10572_v63, %s14146_s18 }
 0x1bb   : > { %v1374_v17 = vmul.f32 %v1356_v60, %v14305_v32  ;;  %v1375_v62 = vmul.f32 %v1360_v38, %v14306_v16  ;;  %1919 = vrot.lane.b32.xlu0 %v10579_v2, %s14146_s18  ;;  %v1370_v18 = vmul.f32 %v1354_v28, %v14309_v50  ;;  %v1222_v59 = vsel %vm633_vm6, %v10787_v9, %v10735_v8  ;;  %v14315_v38 = vld [vmem:[#allocation53_spill] sm:$0xff]  ;;  %v14317_v16 = vld [vmem:[#allocation55_spill] sm:$0xff] }
 0x1bc   : > { %v1409_v5 = vpop.permute.xlu1 %1408  ;;  %v1308_v56 = vmul.f32 %v1289_v41, %v10372_v23  ;;  %v1306_v57 = vmul.f32 %v1288_v61, %v10375_v46  ;;  %v1305_v6 = vmul.f32 %v1291_v19, %v14311_v33  ;;  %v9066_v26 = vpack.c.bf16 %v1309_v10, %v1307_v34  ;;  %v14313_v23 = vld [vmem:[#allocation51_spill] sm:$0xff]  ;;  %v14314_v46 = vld [vmem:[#allocation52_spill] sm:$0xff]  ;;  %v14319_v41 = vld [vmem:[#allocation57_spill] sm:$0xff] }
 0x1bd   : > { %v9081_v54 = vpack.c.bf16 %v1376_v55, %v1374_v17  ;;  %v10947_v30 = vpop.permute.xlu0 %1406  ;;  %v9082_v40 = vpack.c.bf16 %v1377_v24, %v1375_v62  ;;  %v9073_v0 = vpack.c.bf16 %v1372_v47, %v1370_v18  ;;  %v1303_v55 = vmul.f32 %v1290_v27, %v14312_v52  ;;  %v14323_v19 = vld [vmem:[#allocation60_spill] sm:$0xff] }
 0x1be   : > { %1925 = vrot.lane.b32.xlu1 %v10591_v29, %s14146_s18  ;;  %v1241_v24 = vmul.f32 %v1225_v35, %v14313_v23  ;;  %v1239_v60 = vmul.f32 %v1224_v20, %v14314_v46  ;;  %v1304_v28 = vmul.f32 %v1287_v48, %v14315_v38  ;;  %v1302_v31 = vmul.f32 %v1286_v53, %v14316_v39  ;;  %v14325_v53 = vld [vmem:[#allocation64_spill] sm:$0xff]  ;;  %v9348_v39 = vld [vmem:[%s9743_s20 + $0x78] sm:$0xff] }
 0x1bf   : > { %1923 = vrot.lane.b32.xlu0 %v10601_v3, %s14146_s18  ;;  %3691 = vmatprep.subr.bf16.mxu1 %v9082_v40  ;;  %v1219_v17 = vsel %vm633_vm6, %v10733_v1, %v10785_v21  ;;  %v1237_v62 = vmul.f32 %v1223_v22, %v14317_v16  ;;  %v9065_v13 = vpack.c.bf16 %v1308_v56, %v1306_v57  ;;  %v14320_v21 = vld [vmem:[#allocation58_spill] sm:$0xff]  ;;  %v14326_v56 = vld [vmem:[#allocation63_spill] sm:$0xff] }
 0x1c0   : > { %3692 = vmatpush2.bf16.msra.mxu1 %v9081_v54  ;;  %v1413_v44 = vpop.permute.xlu1 %1412  ;;  %v1218_v45 = vsel %vm633_vm6, %v10735_v8, %v10787_v9  ;;  %v1235_v40 = vmul.f32 %v1222_v59, %v14318_v14  ;;  %v1240_v12 = vmul.f32 %v1221_v37, %v14319_v41  ;;  %v9058_v1 = vpack.c.bf16 %v1305_v6, %v1303_v55  ;;  %v14321_v9 = vld [vmem:[#allocation59_spill] sm:$0xff]  ;;  %v9350_v16 = vld [vmem:[%s9743_s20 + $0x70] sm:$0xff] }
 0x1c1   : > { %3693 = vmatprep.subr.bf16.mxu1 %v9074_v4  ;;  %v1411_v7 = vpop.permute.xlu0 %1410  ;;  %v1238_v10 = vmul.f32 %v1220_v51, %v14320_v21  ;;  %v9057_v42 = vpack.c.bf16 %v1304_v28, %v1302_v31  ;;  %v9050_v50 = vpack.c.bf16 %v1241_v24, %v1239_v60  ;;  %v14322_v4 = vld [vmem:[#allocation61_spill] sm:$0xff]  ;;  %v14330_v24 = vld [vmem:[#allocation68_spill] sm:$0xff] }
 0x1c2   : > { %1929 = vrot.lane.b32.xlu1 %v10610_v58, %s14146_s18  ;;  %v9355_v21 = vld [vmem:[%s9743_s20 + $0x40] sm:$0xff] }
 0x1c3   : > { %1927 = vrot.lane.b32.xlu0 %v10616_v15, %s14146_s18  ;;  %v9049_v55 = vpack.c.bf16 %v1240_v12, %v1238_v10  ;;  %v11104_v12 = vld [vmem:[%s9743_s20 + $0xf0] sm:$0xff] }
 0x1c4   : > { %3694 = vmatpush2.bf16.msra.mxu1 %v9073_v0  ;;  %v1417_v32 = vpop.permute.xlu1 %1416 }
 0x1c5   : > { %3695 = vmatprep.subr.bf16.mxu1 %v9066_v26  ;;  %v1415_v36 = vpop.permute.xlu0 %1414  ;;  %v1427_v54 = vsel %vm840_vm7, %v1417_v32, %v1409_v5  ;;  %v1423_v8 = vsel %vm840_vm7, %v1409_v5, %v1417_v32  ;;  %v14329_v26 = vld [vmem:[#allocation67_spill] sm:$0xff] }
 0x1c6   : > { %1991 = vrot.lane.b32.xlu1 %v10601_v3, %s14144_s8  ;;  %v1426_v3 = vsel %vm840_vm7, %v1415_v36, %v10947_v30  ;;  %v1441_v18 = vmul.f32 %v1427_v54, %v14321_v9  ;;  %v1422_v20 = vsel %vm840_vm7, %v10947_v30, %v1415_v36  ;;  %v14328_v30 = vld [vmem:[#allocation66_spill] sm:$0xff]  ;;  %v1440_v23 = vmul.f32 %v1423_v8, %v14329_v26  ;;  %v11082_v36 = vld [vmem:[%s9743_s20 + $0xe0] sm:$0xff]  ;;  %v11130_v9 = vld [vmem:[%s9743_s20 + $0xc8] sm:$0xff] }
 0x1c7   : > { %1931 = vrot.lane.b32.xlu0 %v10630_v49, %s14146_s18  ;;  %v1234_v52 = vmul.f32 %v1218_v45, %v14328_v30  ;;  %v1438_v46 = vmul.f32 %v1422_v20, %v14330_v24  ;;  %v9353_v45 = vld [vmem:[%s9743_s20 + $0x48] sm:$0xff] }
 0x1c8   : > { %3696 = vmatpush2.bf16.msra.mxu1 %v9065_v13  ;;  %v1421_v47 = vpop.permute.xlu1 %1420 }
 0x1c9   : > { %v1425_v61 = vsel %vm840_vm7, %v1413_v44, %v1421_v47  ;;  %v1429_v25 = vsel %vm840_vm7, %v1421_v47, %v1413_v44  ;;  %3697 = vmatprep.subr.bf16.mxu1 %v9058_v1  ;;  %v1419_v34 = vpop.permute.xlu0 %1418  ;;  %v14324_v44 = vld [vmem:[#allocation62_spill] sm:$0xff]  ;;  %v9089_v51 = vpack.c.bf16 %v1440_v23, %v1438_v46  ;;  %v11203_v46 = vld [vmem:[#allocation7 + $0xd8] sm:$0xff] }
 0x1ca   : > { %v1444_v22 = vmul.f32 %v1425_v61, %v14322_v4  ;;  %v1445_v27 = vmul.f32 %v1429_v25, %v14323_v19  ;;  %v1424_v35 = vsel %vm840_vm7, %v1411_v7, %v1419_v34  ;;  %v1428_v5 = vsel %vm840_vm7, %v1419_v34, %v1411_v7  ;;  %1999 = vrot.lane.b32.xlu1 %v10630_v49, %s14144_s8  ;;  %v14327_v7 = vld [vmem:[#allocation65_spill] sm:$0xff]  ;;  %v9354_v1 = vld [vmem:[%s9743_s20 + $0x50] sm:$0xff]  ;;  %v14335_v4 = vld [vmem:[#allocation72_spill] sm:$0xff] }
 0x1cb   : > { %v1439_v48 = vmul.f32 %v1426_v3, %v14324_v44  ;;  %v1442_v59 = vmul.f32 %v1424_v35, %v14325_v53  ;;  %v1443_v57 = vmul.f32 %v1428_v5, %v14326_v56  ;;  %1993 = vrot.lane.b32.xlu0 %v10591_v29, %s14144_s8  ;;  %v1236_v37 = vmul.f32 %v1219_v17, %v14327_v7  ;;  %v11136_v25 = vld [vmem:[%s9743_s20 + $0xd0] sm:$0xff]  ;;  %v14334_v34 = vld [vmem:[#allocation73_spill] sm:$0xff] }
 0x1cc   : > { %3698 = vmatpush2.bf16.msra.mxu1 %v9057_v42  ;;  %v11059_v0 = vpop.permute.xlu1 %1485  ;;  %v9042_v29 = vpack.c.bf16 %v1237_v62, %v1235_v40  ;;  %v9351_v62 = vld [vmem:[%s9743_s20 + $0x60] sm:$0xff]  ;;  %v14331_v40 = vld [vmem:[#allocation70_spill] sm:$0xff]  ;;  %v9025_v10 = vpack.c.bf16 %v9354_v1, %v9355_v21  ;;  %v14332_v42 = vmov 0   ;;  %v14337_v44 = vld [vmem:[#allocation69_spill] sm:$0xff] }
 0x1cd   : > { %v9097_v33 = vpack.c.bf16 %v1444_v22, %v1442_v59  ;;  %3699 = vmatprep.subr.bf16.mxu1 %v9050_v50  ;;  %v11062_v49 = vpop.permute.xlu0 %1483  ;;  %v9098_v6 = vpack.c.bf16 %v1445_v27, %v1443_v57  ;;  %v9090_v60 = vpack.c.bf16 %v1441_v18, %v1439_v48  ;;  %v9041_v32 = vpack.c.bf16 %v1236_v37, %v1234_v52  ;;  %v11121_v50 = vld [vmem:[%s9743_s20 + $0xf8] sm:$0xff]  ;;  %v14336_v5 = vld [vmem:[#allocation74_spill] sm:$0xff] }
 0x1ce   : > { %1987 = vrot.lane.b32.xlu1 %v10579_v2, %s14144_s8  ;;  %v9349_v2 = vld [vmem:[%s9743_s20 + $0x68] sm:$0xff]  ;;  %v9033_v13 = vpack.c.bf16 %v9350_v16, %v9351_v62  ;;  %v14333_v18 = vld [vmem:[#allocation71_spill] sm:$0xff] }
 0x1cf   : > { %2001 = vrot.lane.b32.xlu0 %v10625_v11, %s14144_s8  ;;  %3740 = vmatprep.subr.bf16.mxu0 %v9098_v6  ;;  %v9034_v31 = vpack.c.bf16 %v9348_v39, %v9349_v2  ;;  %v11151_v27 = vld [vmem:[%s9743_s20 + $0xd8] sm:$0xff]  ;;  %v11217_v2 = vld [vmem:[#allocation7 + $0xc8] sm:$0xff] }
 0x1d0   : > { %3700 = vmatpush2.bf16.msra.mxu1 %v9049_v55  ;;  %3741 = vmatpush1.bf16.msra.mxu0 %v9097_v33  ;;  %v11071_v38 = vpop.permute.xlu1 %1489  ;;  %v11223_v16 = vld [vmem:[#allocation7 + $0xe8] sm:$0xff] }
 0x1d1   : > { %3701 = vmatprep.subr.bf16.mxu1 %v9042_v29  ;;  %v11073_v28 = vpop.permute.xlu0 %1487  ;;  %3742 = vmatprep.subr.bf16.mxu0 %v9090_v60  ;;  %v11213_v60 = vld [vmem:[#allocation7 + $0xf8] sm:$0xff] }
 0x1d2   : > { %1995 = vrot.lane.b32.xlu1 %v10616_v15, %s14144_s8  ;;  %v9352_v15 = vld [vmem:[%s9743_s20 + $0x58] sm:$0xff] }
 0x1d3   : > { %1989 = vrot.lane.b32.xlu0 %v10572_v63, %s14144_s8  ;;  %v9026_v14 = vpack.c.bf16 %v9352_v15, %v9353_v45  ;;  %v11097_v63 = vld [vmem:[%s9743_s20 + $0xe8] sm:$0xff] }
 0x1d4   : > { %3702 = vmatpush2.bf16.msra.mxu1 %v9041_v32  ;;  %3743 = vmatpush1.bf16.msra.mxu0 %v9089_v51  ;;  %v11084_v17 = vpop.permute.xlu1 %1493  ;;  %v11221_v51 = vld [vmem:[#allocation7 + $0xe0] sm:$0xff] }
 0x1d5   : > { %v11088_v54 = vpop.permute.xlu0 %1491  ;;  %3703 = vmatprep.subr.bf16.mxu1 %v9034_v31 }
 0x1d6   : > { %2272 = vrot.lane.b32.xlu1 %v11082_v36, %s9561_s19 }
 0x1d7   : > { %1997 = vrot.lane.b32.xlu0 %v10610_v58, %s14144_s8  ;;  %8305 = vmatmul.mubr.msk.bf16.vlgmr.msra.gmra.mxu0 %vm3562_vm8, %v14331_v40  ;;  %v11116_v58 = vld [vmem:[%s9743_s20 + $0xc0] sm:$0xff] }
 0x1d8   : > { %v11101_v41 = vpop.permute.xlu1 %1497  ;;  %3704 = vmatpush2.bf16.msra.mxu1 %v9033_v13  ;;  %3770 = vmatprep.mubr.bf16.mxu0 %v14332_v42 }
 0x1d9   : > { %v11109_v3 = vpop.permute.xlu0 %1495  ;;  %3705 = vmatprep.subr.bf16.mxu1 %v9026_v14 }
 0x1da   : > { %2280 = vrot.lane.b32.xlu1 %v11097_v63, %s9561_s19 }
 0x1db   : > { %2274 = vrot.lane.b32.xlu0 %v11104_v12, %s9561_s19 }
 0x1dc   : > { %v11118_v47 = vpop.permute.xlu1 %1553  ;;  %3706 = vmatpush2.bf16.msra.mxu1 %v9025_v10 }
 0x1dd   : > { %v11123_v8 = vpop.permute.xlu0 %1551 }
 0x1de   : > { %2268 = vrot.lane.b32.xlu1 %v11116_v58, %s9561_s19 }
 0x1df   : > { %2282 = vrot.lane.b32.xlu0 %v11121_v50, %s9561_s19  ;;  %3708 = vmatmul.mubr.bf16.vlgmr.msra.gmra.mxu1 %v14333_v18  ;;  %v11240_v18 = vld [vmem:[#allocation7 + $0xb8] sm:$0xff] }
 0x1e0   : > { %v11133_v61 = vpop.permute.xlu1 %1557  ;;  %3717 = vmatprep.mubr.bf16.mxu1 %v14334_v34  ;;  %8306 = vmatmul.mubr.msk.bf16.gmra.mxu0 %vm3562_vm8, %v14335_v4  ;;  %v11242_v34 = vld [vmem:[#allocation7 + $0xd0] sm:$0xff]  ;;  %v11244_v4 = vld [vmem:[#allocation7 + $0xc0] sm:$0xff] }
 0x1e1   : > { %v11141_v22 = vpop.permute.xlu0 %1555  ;;  %3866 = vmatprep.mubr.bf16.mxu0 %v14332_v42 }
 0x1e2   : > { %2276 = vrot.lane.b32.xlu1 %v11130_v9, %s9561_s19 }
 0x1e3   : > { %2270 = vrot.lane.b32.xlu0 %v11136_v25, %s9561_s19 }
 0x1e4   : > { %v11148_v19 = vpop.permute.xlu1 %1561 }
 0x1e5   : > { %v11153_v35 = vpop.permute.xlu0 %1559 }
 0x1e6   : > { %2204 = vrot.lane.b32.xlu1 %v11082_v36, %s9560_s17 }
 0x1e7   : > { %2278 = vrot.lane.b32.xlu0 %v11151_v27, %s9561_s19  ;;  %3718 = vmatmul.mubr.bf16.gmra.mxu1 %v14336_v5 }
 0x1e8   : > { %v11160_v20 = vpop.permute.xlu1 %1565  ;;  %3813 = vmatprep.mubr.bf16.mxu1 %v14337_v44 }
 0x1e9   : > { %v11163_v48 = vpop.permute.xlu0 %1563 }
 0x1ea   : > { %2212 = vrot.lane.b32.xlu1 %v11097_v63, %s9560_s17 }
 0x1eb   : > { %2206 = vrot.lane.b32.xlu0 %v11104_v12, %s9560_s17 }
 0x1ec   : > { %v11169_v53 = vpop.permute.xlu1 %1621 }
 0x1ed   : > { %v11171_v59 = vpop.permute.xlu0 %1619 }
 0x1ee   : > { %2200 = vrot.lane.b32.xlu1 %v11116_v58, %s9560_s17 }
 0x1ef   : > { %2214 = vrot.lane.b32.xlu0 %v11121_v50, %s9560_s17 }
 0x1f0   : > { %v1626_v56 = vpop.permute.xlu1 %1625 }
 0x1f1   : > { %v11177_v57 = vpop.permute.xlu0 %1623 }
 0x1f2   : > { %2208 = vrot.lane.b32.xlu1 %v11130_v9, %s9560_s17 }
 0x1f3   : > { %2202 = vrot.lane.b32.xlu0 %v11136_v25, %s9560_s17 }
 0x1f4   : > { %v11183_v7 = vpop.permute.xlu1 %1629 }
 0x1f5   : > { %v11185_v37 = vpop.permute.xlu0 %1627 }
 0x1f6   : > { %2136 = vrot.lane.b32.xlu1 %v11082_v36, %s9559_s29 }
 0x1f7   : > { %2210 = vrot.lane.b32.xlu0 %v11151_v27, %s9560_s17 }
 0x1f8   : > { %v1634_v33 = vpop.permute.xlu1 %1633 }
 0x1f9   : > { %v1632_v6 = vpop.permute.xlu0 %1631  ;;  %v1638_v39 = vsel %vm467_vm1, %v1626_v56, %v1634_v33 }
 0x1fa   : > { %2144 = vrot.lane.b32.xlu1 %v11097_v63, %s9559_s29 }
 0x1fb   : > { %2138 = vrot.lane.b32.xlu0 %v11104_v12, %s9559_s29 }
 0x1fc   : > { %v1690_v30 = vpop.permute.xlu1 %1689 }
 0x1fd   : > { %v1688_v52 = vpop.permute.xlu0 %1687 }
 0x1fe   : > { %1933 = vrot.lane.b32.xlu1 %v10625_v11, %s14146_s18  ;;  %v11211_v11 = vld [vmem:[#allocation7 + $0xf0] sm:$0xff] }
 0x1ff   : > { %2146 = vrot.lane.b32.xlu0 %v11121_v50, %s9559_s29 }
 0x200   : > { %v1694_v55 = vpop.permute.xlu1 %1693 }
 0x201   : > { %v1692_v26 = vpop.permute.xlu0 %1691 }
 0x202   : > { %2134 = vrot.lane.b32.xlu1 %v11136_v25, %s9559_s29 }
 0x203   : > { %2132 = vrot.lane.b32.xlu0 %v11116_v58, %s9559_s29 }
 0x204   : > { %v1698_v23 = vpop.permute.xlu1 %1697 }
 0x205   : > { %v1696_v24 = vpop.permute.xlu0 %1695  ;;  %v1704_v29 = vsel %vm536_vm0, %v1690_v30, %v1698_v23  ;;  %v1708_v62 = vsel %vm536_vm0, %v1698_v23, %v1690_v30  ;;  %v1637_v23 = vsel %vm467_vm1, %v11177_v57, %v1632_v6 }
 0x206   : > { %2142 = vrot.lane.b32.xlu1 %v11151_v27, %s9559_s29  ;;  %v1703_v31 = vsel %vm536_vm0, %v1688_v52, %v1696_v24  ;;  %v1722_v13 = vmul.f32 %v11203_v46, %v1704_v29  ;;  %v1707_v5 = vsel %vm536_vm0, %v1696_v24, %v1688_v52  ;;  %v1642_v24 = vsel %vm467_vm1, %v1634_v33, %v1626_v56  ;;  %v11279_v33 = vld [vmem:[#allocation7 + $0x98] sm:$0xff] }
 0x207   : > { %2140 = vrot.lane.b32.xlu0 %v11130_v9, %s9559_s29  ;;  %v1720_v44 = vmul.f32 %v11217_v2, %v1703_v31  ;;  %v1658_v31 = vmul.f32 %v11240_v18, %v1638_v39  ;;  %v1636_v39 = vsel %vm467_vm1, %v11169_v53, %v11183_v7 }
 0x208   : > { %v1702_v32 = vpop.permute.xlu1 %1701 }
 0x209   : > { %v1706_v15 = vsel %vm536_vm0, %v1694_v55, %v1702_v32  ;;  %v1710_v45 = vsel %vm536_vm0, %v1702_v32, %v1694_v55  ;;  %v1700_v14 = vpop.permute.xlu0 %1699  ;;  %v9012_v56 = vpack.c.bf16 %v1722_v13, %v1720_v44  ;;  %v1640_v13 = vsel %vm467_vm1, %v11183_v7, %v11169_v53 }
 0x20a   : > { %v1725_v40 = vmul.f32 %v11211_v11, %v1710_v45  ;;  %v1726_v1 = vmul.f32 %v11213_v60, %v1706_v15  ;;  %v1705_v21 = vsel %vm536_vm0, %v1692_v26, %v1700_v14  ;;  %v1709_v10 = vsel %vm536_vm0, %v1700_v14, %v1692_v26  ;;  %2070 = vrot.lane.b32.xlu1 %v11104_v12, %s14338_s13  ;;  %v11253_v26 = vld [vmem:[#allocation7 + $0xa8] sm:$0xff] }
 0x20b   : > { %v1723_v30 = vmul.f32 %v11221_v51, %v1709_v10  ;;  %v1724_v55 = vmul.f32 %v11223_v16, %v1705_v21  ;;  %2068 = vrot.lane.b32.xlu0 %v11082_v36, %s14338_s13  ;;  %v1721_v45 = vmul.f32 %v11242_v34, %v1708_v62  ;;  %v1719_v14 = vmul.f32 %v11244_v4, %v1707_v5  ;;  %v11269_v21 = vld [vmem:[#allocation7 + $0xb0] sm:$0xff]  ;;  %v11271_v10 = vld [vmem:[#allocation7 + $0xa0] sm:$0xff]  ;;  %v11285_v62 = vld [vmem:[#allocation7 + $0x88] sm:$0xff] }
 0x20c   : > { %v11258_v29 = vpop.permute.xlu1 %1785  ;;  %v1657_v44 = vmul.f32 %v11269_v21, %v1642_v24  ;;  %v11315_v24 = vld [vmem:[#allocation7 + $0x78] sm:$0xff] }
 0x20d   : > { %14339 = vst [vmem:[#allocation14_spill] sm:$0xff] %v11258_v29  ;;  %v9019_v32 = vpack.c.bf16 %v1725_v40, %v1723_v30  ;;  %v11260_v15 = vpop.permute.xlu0 %1783  ;;  %v9020_v52 = vpack.c.bf16 %v1726_v1, %v1724_v55  ;;  %v1641_v40 = vsel %vm467_vm1, %v1632_v6, %v11177_v57  ;;  %v1656_v1 = vmul.f32 %v11253_v26, %v1637_v23  ;;  %v11303_v23 = vld [vmem:[#allocation7 + $0x90] sm:$0xff] }
 0x20e   : > { %14340 = vst [vmem:[#allocation19_spill] sm:$0xff] %v11260_v15  ;;  %2078 = vrot.lane.b32.xlu1 %v11121_v50, %s14338_s13  ;;  %v1635_v57 = vsel %vm467_vm1, %v11171_v59, %v11185_v37  ;;  %v1655_v30 = vmul.f32 %v11271_v10, %v1641_v40  ;;  %v9011_v55 = vpack.c.bf16 %v1721_v45, %v1719_v14  ;;  %v11321_v14 = vld [vmem:[#allocation7 + $0x68] sm:$0xff]  ;;  %v11339_v15 = vld [vmem:[#allocation7 + $0x70] sm:$0xff] }
 0x20f   : > { %2076 = vrot.lane.b32.xlu0 %v11097_v63, %s14338_s13  ;;  %3781 = vmatprep.subr.bf16.mxu1 %v9020_v52  ;;  %v11306_v52 = vld [vmem:[#allocation7 + $0x80] sm:$0xff]  ;;  %v1652_v53 = vmul.f32 %v11285_v62, %v1635_v57  ;;  %v9004_v7 = vpack.c.bf16 %v1658_v31, %v1656_v1  ;;  %v1570_v45 = vsel %vm398_vm2, %v11133_v61, %v11160_v20 }
 0x210   : > { %3782 = vmatpush1.bf16.msra.mxu1 %v9019_v32  ;;  %v11291_v6 = vpop.permute.xlu1 %1789  ;;  %v1654_v32 = vmul.f32 %v11279_v33, %v1636_v39  ;;  %v1574_v31 = vsel %vm398_vm2, %v11160_v20, %v11133_v61  ;;  %v1653_v1 = vmul.f32 %v11303_v23, %v1640_v13  ;;  %v9003_v57 = vpack.c.bf16 %v1657_v44, %v1655_v30  ;;  %v11351_v13 = vld [vmem:[#allocation7 + $0x58] sm:$0xff]  ;;  %v11357_v30 = vld [vmem:[#allocation7 + $0x48] sm:$0xff] }
 0x211   : > { %14341 = vst [vmem:[#allocation17_spill] sm:$0xff] %v11291_v6  ;;  %3783 = vmatprep.subr.bf16.mxu1 %v9012_v56  ;;  %v11293_v5 = vpop.permute.xlu0 %1787  ;;  %v1639_v56 = vsel %vm467_vm1, %v11185_v37, %v11171_v59  ;;  %v1569_v59 = vsel %vm398_vm2, %v11141_v22, %v11163_v48  ;;  %14345 = vst [vmem:[#allocation20_spill] sm:$0xff] %v11351_v13  ;;  %v1568_v44 = vsel %vm398_vm2, %v11118_v47, %v11148_v19 }
 0x212   : > { %14342 = vst [vmem:[#allocation15_spill] sm:$0xff] %v11293_v5  ;;  %2066 = vrot.lane.b32.xlu1 %v11136_v25, %s14338_s13  ;;  %v1651_v39 = vmul.f32 %v11306_v52, %v1639_v56  ;;  %v1588_v61 = vmul.f32 %v11321_v14, %v1569_v59  ;;  %v8996_v20 = vpack.c.bf16 %v1654_v32, %v1652_v53  ;;  %14346 = vst [vmem:[#allocation21_spill] sm:$0xff] %v11357_v30  ;;  %v11375_v5 = vld [vmem:[#allocation7 + $0x50] sm:$0xff] }
 0x213   : > { %2064 = vrot.lane.b32.xlu0 %v11116_v58, %s14338_s13  ;;  %v1572_v32 = vsel %vm398_vm2, %v11148_v19, %v11118_v47  ;;  %v1589_v53 = vmul.f32 %v11339_v15, %v1574_v31  ;;  %14349 = vst [vmem:[#allocation24_spill] sm:$0xff] %v11375_v5  ;;  %v1502_v31 = vsel %vm329_vm3, %v11071_v38, %v11101_v41 }
 0x214   : > { %3784 = vmatpush1.bf16.msra.mxu1 %v9011_v55  ;;  %v11327_v37 = vpop.permute.xlu1 %1793  ;;  %v1590_v55 = vmul.f32 %v11315_v24, %v1570_v45  ;;  %v8995_v59 = vpack.c.bf16 %v1653_v1, %v1651_v39  ;;  %v1512_v1 = vld [vmem:[#allocation7 + $0x28] sm:$0xff]  ;;  %v1501_v39 = vsel %vm329_vm3, %v11073_v28, %v11109_v3 }
 0x215   : > { %14343 = vst [vmem:[#allocation18_spill] sm:$0xff] %v11327_v37  ;;  %3785 = vmatprep.subr.bf16.mxu1 %v9004_v7  ;;  %v11329_v40 = vpop.permute.xlu0 %1791  ;;  %v11342_v7 = vld [vmem:[#allocation7 + $0x60] sm:$0xff] }
 0x216   : > { %14344 = vst [vmem:[#allocation16_spill] sm:$0xff] %v11329_v40  ;;  %2074 = vrot.lane.b32.xlu1 %v11151_v27, %s14338_s13  ;;  %v1573_v40 = vsel %vm398_vm2, %v11163_v48, %v11141_v22  ;;  %v1567_v22 = vsel %vm398_vm2, %v11123_v8, %v11153_v35  ;;  %v8988_v19 = vpack.c.bf16 %v1590_v55, %v1588_v61 }
 0x217   : > { %2072 = vrot.lane.b32.xlu0 %v11130_v9, %s14338_s13  ;;  %v1587_v45 = vmul.f32 %v11342_v7, %v1573_v40  ;;  %v1584_v47 = vmul.f32 %v11357_v30, %v1567_v22  ;;  %v1514_v40 = vld [vmem:[#allocation7 + $0x38] sm:$0xff]  ;;  %v1506_v55 = vsel %vm329_vm3, %v11101_v41, %v11071_v38  ;;  %v1585_v61 = vmul.f32 %v11375_v5, %v1572_v32  ;;  %v1513_v30 = vld [vmem:[#allocation7 + $0x30] sm:$0xff]  ;;  %v1508_v32 = vld [vmem:[#allocation7 + $0x8] sm:$0xff] }
 0x218   : > { %3786 = vmatpush1.bf16.msra.mxu1 %v9003_v57  ;;  %v11363_v48 = vpop.permute.xlu1 %1797  ;;  %v1586_v57 = vmul.f32 %v11351_v13, %v1568_v44  ;;  %v1511_v13 = vld [vmem:[#allocation7 + $0x20] sm:$0xff]  ;;  %v1510_v41 = vld [vmem:[#allocation7 + $0x18] sm:$0xff] }
 0x219   : > { %14347 = vst [vmem:[#allocation22_spill] sm:$0xff] %v11363_v48  ;;  %3787 = vmatprep.subr.bf16.mxu1 %v8996_v20  ;;  %v11365_v56 = vpop.permute.xlu0 %1795  ;;  %v11378_v20 = vld [vmem:[#allocation7 + $0x40] sm:$0xff]  ;;  %v8987_v22 = vpack.c.bf16 %v1589_v53, %v1587_v45  ;;  %v1520_v48 = vmul.f32 %v1512_v1, %v1501_v39  ;;  %v1499_v53 = vsel %vm329_vm3, %v11062_v49, %v11088_v54 }
 0x21a   : > { %14348 = vst [vmem:[#allocation23_spill] sm:$0xff] %v11365_v56  ;;  %2506 = vrot.lane.b32.xlu1 %v11104_v12, %s14146_s18  ;;  %14350 = vst [vmem:[#allocation25_spill] sm:$0xff] %v11378_v20  ;;  %v1571_v56 = vsel %vm398_vm2, %v11153_v35, %v11123_v8  ;;  %v8980_v38 = vpack.c.bf16 %v1586_v57, %v1584_v47  ;;  %v1521_v57 = vmul.f32 %v1513_v30, %v1506_v55  ;;  %v1507_v39 = vld [vmem:[#allocation7] sm:$0xff] }
 0x21b   : > { %2504 = vrot.lane.b32.xlu0 %v11082_v36, %s14146_s18  ;;  %v1583_v44 = vmul.f32 %v11378_v20, %v1571_v56  ;;  %v1500_v56 = vsel %vm329_vm3, %v11059_v0, %v11084_v17 }
 0x21c   : > { %3788 = vmatpush1.bf16.msra.mxu1 %v8995_v59  ;;  %v11395_v8 = vpop.permute.xlu1 %1853  ;;  %v1522_v59 = vmul.f32 %v1514_v40, %v1502_v31  ;;  %v1509_v31 = vld [vmem:[#allocation7 + $0x10] sm:$0xff]  ;;  %v1518_v1 = vmul.f32 %v1510_v41, %v1500_v56 }
 0x21d   : > { %3789 = vmatprep.subr.bf16.mxu1 %v8988_v19  ;;  %v11397_v35 = vpop.permute.xlu0 %1851  ;;  %v1505_v19 = vsel %vm329_vm3, %v11109_v3, %v11073_v28  ;;  %v1504_v3 = vsel %vm329_vm3, %v11084_v17, %v11059_v0  ;;  %v8979_v40 = vpack.c.bf16 %v1585_v61, %v1583_v44 }
 0x21e   : > { %2514 = vrot.lane.b32.xlu1 %v11121_v50, %s14146_s18  ;;  %v1519_v47 = vmul.f32 %v1511_v13, %v1505_v19  ;;  %v8972_v20 = vpack.c.bf16 %v1522_v59, %v1520_v48  ;;  %v1517_v13 = vmul.f32 %v1509_v31, %v1504_v3 }
 0x21f   : > { %2512 = vrot.lane.b32.xlu0 %v11097_v63, %s14146_s18 }
 0x220   : > { %3790 = vmatpush1.bf16.msra.mxu1 %v8987_v22  ;;  %v11421_v45 = vpop.permute.xlu1 %1857  ;;  %v1503_v22 = vsel %vm329_vm3, %v11088_v54, %v11062_v49  ;;  %v8971_v55 = vpack.c.bf16 %v1521_v57, %v1519_v47  ;;  %v11485_v47 = vld [vmem:[#allocation7 + $0x220] sm:$0xff] }
 0x221   : > { %3791 = vmatprep.subr.bf16.mxu1 %v8980_v38  ;;  %v11423_v28 = vpop.permute.xlu0 %1855  ;;  %v1516_v38 = vmul.f32 %v1508_v32, %v1499_v53  ;;  %v1515_v30 = vmul.f32 %v1507_v39, %v1503_v22  ;;  %14351 = vst [vmem:[#allocation26_spill] sm:$0xff] %v11485_v47  ;;  %v11495_v22 = vld [vmem:[#allocation7 + $0x230] sm:$0xff] }
 0x222   : > { %2502 = vrot.lane.b32.xlu1 %v11136_v25, %s14146_s18  ;;  %14353 = vst [vmem:[#allocation28_spill] sm:$0xff] %v11495_v22 }
 0x223   : > { %2500 = vrot.lane.b32.xlu0 %v11116_v58, %s14146_s18  ;;  %v8964_v49 = vpack.c.bf16 %v1518_v1, %v1516_v38  ;;  %v8963_v61 = vpack.c.bf16 %v1517_v13, %v1515_v30  ;;  %v11497_v38 = vld [vmem:[#allocation7 + $0x238] sm:$0xff] }
 0x224   : > { %3792 = vmatpush1.bf16.msra.mxu1 %v8979_v40  ;;  %v11437_v0 = vpop.permute.xlu1 %1861  ;;  %v11489_v40 = vld [vmem:[#allocation7 + $0x228] sm:$0xff]  ;;  %14354 = vst [vmem:[#allocation29_spill] sm:$0xff] %v11497_v38 }
 0x225   : > { %3793 = vmatprep.subr.bf16.mxu1 %v8972_v20  ;;  %v11439_v17 = vpop.permute.xlu0 %1859  ;;  %14352 = vst [vmem:[#allocation27_spill] sm:$0xff] %v11489_v40 }
 0x226   : > { %2510 = vrot.lane.b32.xlu1 %v11151_v27, %s14146_s18 }
 0x227   : > { %2508 = vrot.lane.b32.xlu0 %v11130_v9, %s14146_s18 }
 0x228   : > { %3794 = vmatpush1.bf16.msra.mxu1 %v8971_v55  ;;  %v11445_v54 = vpop.permute.xlu1 %1865 }
 0x229   : > { %3795 = vmatprep.subr.bf16.mxu1 %v8964_v49  ;;  %v11447_v48 = vpop.permute.xlu0 %1863 }
 0x22a   : > { %2438 = vrot.lane.b32.xlu1 %v11104_v12, %s14148_s16 }
 0x22b   : > { %2436 = vrot.lane.b32.xlu0 %v11082_v36, %s14148_s16 }
 0x22c   : > { %3796 = vmatpush1.bf16.msra.mxu1 %v8963_v61  ;;  %v11453_v20 = vpop.permute.xlu1 %1921 }
 0x22d   : > { %v11455_v44 = vpop.permute.xlu0 %1919 }
 0x22e   : > { %2446 = vrot.lane.b32.xlu1 %v11121_v50, %s14148_s16 }
 0x22f   : > { %2444 = vrot.lane.b32.xlu0 %v11097_v63, %s14148_s16 }
 0x230   : > { %v11461_v59 = vpop.permute.xlu1 %1925 }
 0x231   : > { %v11463_v19 = vpop.permute.xlu0 %1923 }
 0x232   : > { %2434 = vrot.lane.b32.xlu1 %v11136_v25, %s14148_s16 }
 0x233   : > { %2432 = vrot.lane.b32.xlu0 %v11116_v58, %s14148_s16 }
 0x234   : > { %v11469_v41 = vpop.permute.xlu1 %1929 }
 0x235   : > { %v11471_v56 = vpop.permute.xlu0 %1927 }
 0x236   : > { %2442 = vrot.lane.b32.xlu1 %v11151_v27, %s14148_s16 }
 0x237   : > { %2440 = vrot.lane.b32.xlu0 %v11130_v9, %s14148_s16  ;;  %s14385_s16 = smov 111  }
 0x238   : > { %v1992_v32 = vpop.permute.xlu1 %1991 }
 0x239   : > { %v11477_v53 = vpop.permute.xlu0 %1931 }
 0x23a   : > { %2370 = vrot.lane.b32.xlu1 %v11104_v12, %s9562_s30 }
 0x23b   : > { %2368 = vrot.lane.b32.xlu0 %v11082_v36, %s9562_s30 }
 0x23c   : > { %v2000_v3 = vpop.permute.xlu1 %1999 }
 0x23d   : > { %v1994_v57 = vpop.permute.xlu0 %1993  ;;  %v2005_v31 = vsel %vm840_vm7, %v1992_v32, %v2000_v3  ;;  %v2009_v1 = vsel %vm840_vm7, %v2000_v3, %v1992_v32 }
 0x23e   : > { %2378 = vrot.lane.b32.xlu1 %v11121_v50, %s9562_s30  ;;  %v2023_v49 = vmul.f32 %v11485_v47, %v2005_v31  ;;  %v2024_v61 = vmul.f32 %v11489_v40, %v2009_v1  ;;  %v11517_v31 = vld [vmem:[#allocation7 + $0x208] sm:$0xff] }
 0x23f   : > { %2376 = vrot.lane.b32.xlu0 %v11097_v63, %s9562_s30 }
 0x240   : > { %v1988_v39 = vpop.permute.xlu1 %1987 }
 0x241   : > { %v2002_v13 = vpop.permute.xlu0 %2001 }
 0x242   : > { %v2006_v30 = vsel %vm840_vm7, %v1994_v57, %v2002_v13  ;;  %v2010_v55 = vsel %vm840_vm7, %v2002_v13, %v1994_v57  ;;  %2366 = vrot.lane.b32.xlu1 %v11136_v25, %s9562_s30  ;;  %v11513_v57 = vld [vmem:[#allocation7 + $0x200] sm:$0xff] }
 0x243   : > { %v2025_v32 = vmul.f32 %v11495_v22, %v2006_v30  ;;  %v2026_v3 = vmul.f32 %v11497_v38, %v2010_v55  ;;  %2364 = vrot.lane.b32.xlu0 %v11116_v58, %s9562_s30  ;;  %v11523_v55 = vld [vmem:[#allocation7 + $0x210] sm:$0xff] }
 0x244   : > { %v1996_v5 = vpop.permute.xlu1 %1995 }
 0x245   : > { %v9099_v6 = vpack.c.bf16 %v2025_v32, %v2023_v49  ;;  %v1990_v37 = vpop.permute.xlu0 %1989  ;;  %v9100_v29 = vpack.c.bf16 %v2026_v3, %v2024_v61  ;;  %v2003_v1 = vsel %vm840_vm7, %v1988_v39, %v1996_v5  ;;  %v2007_v13 = vsel %vm840_vm7, %v1996_v5, %v1988_v39  ;;  %v11525_v49 = vld [vmem:[#allocation7 + $0x218] sm:$0xff] }
 0x246   : > { %2374 = vrot.lane.b32.xlu1 %v11151_v27, %s9562_s30  ;;  %v2019_v3 = vmul.f32 %v11513_v57, %v2003_v1  ;;  %v2020_v5 = vmul.f32 %v11517_v31, %v2007_v13 }
 0x247   : > { %2372 = vrot.lane.b32.xlu0 %v11130_v9, %s9562_s30  ;;  %3846 = vmatprep.subr.bf16.mxu0 %v9100_v29 }
 0x248   : > { %3847 = vmatpush1.bf16.msra.mxu0 %v9099_v6  ;;  %v2273_v30 = vpop.permute.xlu1 %2272 }
 0x249   : > { %v1998_v61 = vpop.permute.xlu0 %1997 }
 0x24a   : > { %v2004_v32 = vsel %vm840_vm7, %v1990_v37, %v1998_v61  ;;  %v2008_v29 = vsel %vm840_vm7, %v1998_v61, %v1990_v37  ;;  %2574 = vrot.lane.b32.xlu1 %v11104_v12, %s14144_s8 }
 0x24b   : > { %v2021_v6 = vmul.f32 %v11523_v55, %v2004_v32  ;;  %v2022_v39 = vmul.f32 %v11525_v49, %v2008_v29  ;;  %2572 = vrot.lane.b32.xlu0 %v11082_v36, %s14144_s8 }
 0x24c   : > { %v2281_v40 = vpop.permute.xlu1 %2280 }
 0x24d   : > { %v9091_v47 = vpack.c.bf16 %v2021_v6, %v2019_v3  ;;  %v2275_v38 = vpop.permute.xlu0 %2274  ;;  %v9092_v22 = vpack.c.bf16 %v2022_v39, %v2020_v5  ;;  %v2290_v12 = vsel %vm536_vm0, %v2281_v40, %v2273_v30  ;;  %v2286_v37 = vsel %vm536_vm0, %v2273_v30, %v2281_v40 }
 0x24e   : > { %2582 = vrot.lane.b32.xlu1 %v11121_v50, %s14144_s8  ;;  %v2304_v13 = vmul.f32 %v2290_v12, %v11221_v51  ;;  %v11562_v51 = vld [vmem:[%s14050_s2 + $0x8] ss:$12 sps:$4 sm:$0xff]  }
 0x24f   : > { %2580 = vrot.lane.b32.xlu0 %v11097_v63, %s14144_s8  ;;  %3848 = vmatprep.subr.bf16.mxu0 %v9092_v22  ;;  %v2305_v63 = vmul.f32 %v2286_v37, %v11223_v16  ;;  %v2790_v12 = vld [vmem:[%s14051_s3 + $0x10] sm:$0xff] }
 0x250   : > { %3849 = vmatpush1.bf16.msra.mxu0 %v9091_v47  ;;  %v2269_v1 = vpop.permute.xlu1 %2268 }
 0x251   : > { %v2283_v36 = vpop.permute.xlu0 %2282 }
 0x252   : > { %v2287_v61 = vsel %vm536_vm0, %v2275_v38, %v2283_v36  ;;  %v2291_v50 = vsel %vm536_vm0, %v2283_v36, %v2275_v38  ;;  %2570 = vrot.lane.b32.xlu1 %v11136_v25, %s14144_s8 }
 0x253   : > { %v2306_v22 = vmul.f32 %v2291_v50, %v11211_v11  ;;  %v2307_v40 = vmul.f32 %v2287_v61, %v11213_v60  ;;  %2568 = vrot.lane.b32.xlu0 %v11116_v58, %s14144_s8  ;;  %8307 = vmatmul.mubr.msk.bf16.vlgmr.msra.gmra.mxu0 %vm3562_vm8, %v11562_v51  ;;  %v2789_v11 = vld [vmem:[%s14051_s3 + $0x8] sm:$0xff] }
 0x254   : > { %v2277_v47 = vpop.permute.xlu1 %2276  ;;  %3876 = vmatprep.mubr.bf16.mxu0 %v14332_v42 }
 0x255   : > { %v9021_v25 = vpack.c.bf16 %v2306_v22, %v2304_v13  ;;  %v2271_v16 = vpop.permute.xlu0 %2270  ;;  %v9022_v38 = vpack.c.bf16 %v2307_v40, %v2305_v63  ;;  %v2288_v58 = vsel %vm536_vm0, %v2277_v47, %v2269_v1  ;;  %v2284_v60 = vsel %vm536_vm0, %v2269_v1, %v2277_v47 }
 0x256   : > { %2578 = vrot.lane.b32.xlu1 %v11151_v27, %s14144_s8  ;;  %v2788_v27 = vld [vmem:[%s14051_s3] sm:$0xff]  ;;  %v2300_v29 = vmul.f32 %v2288_v58, %v11244_v4  ;;  %v2301_v5 = vmul.f32 %v2284_v60, %v11217_v2  ;;  %v2791_v2 = vld [vmem:[%s14051_s3 + $0x18] sm:$0xff] }
 0x257   : > { %2576 = vrot.lane.b32.xlu0 %v11130_v9, %s14144_s8  ;;  %3887 = vmatprep.subr.bf16.mxu0 %v9022_v38  ;;  %v11595_v4 = vld [vmem:[%s14050_s2 + $0x20] ss:$12 sps:$4 sm:$0xff]  }
 0x258   : > { %3888 = vmatpush1.bf16.msra.mxu0 %v9021_v25  ;;  %v2205_v30 = vpop.permute.xlu1 %2204 }
 0x259   : > { %v2279_v32 = vpop.permute.xlu0 %2278 }
 0x25a   : > { %v2285_v9 = vsel %vm536_vm0, %v2271_v16, %v2279_v32  ;;  %v2289_v3 = vsel %vm536_vm0, %v2279_v32, %v2271_v16  ;;  %2799 = vperm.xlu1 %9329, %v2789_v11  }
 0x25b   : > { %v2302_v6 = vmul.f32 %v2289_v3, %v11242_v34  ;;  %v2303_v39 = vmul.f32 %v2285_v9, %v11203_v46  ;;  %2794 = vperm.xlu0 %9328, %v2788_v27   ;;  %8308 = vmatmul.mubr.msk.bf16.gmra.mxu0 %vm3562_vm8, %v11595_v4  ;;  %v9358_v46 = vld [vmem:[%s14050_s2 + $0x4] ss:$12 sps:$4 sm:$0xff]  }
 0x25c   : > { %v2213_v37 = vpop.permute.xlu1 %2212  ;;  %3919 = vmatprep.mubr.bf16.mxu0 %v9358_v46 }
 0x25d   : > { %v9013_v34 = vpack.c.bf16 %v2302_v6, %v2300_v29  ;;  %v2207_v1 = vpop.permute.xlu0 %2206  ;;  %v9014_v36 = vpack.c.bf16 %v2303_v39, %v2301_v5  ;;  %v2218_v13 = vsel %vm467_vm1, %v2205_v30, %v2213_v37  ;;  %v2222_v61 = vsel %vm467_vm1, %v2213_v37, %v2205_v30  ;;  %v11629_v6 = vld [vmem:[#allocation7 + $0x1b8] sm:$0xff] }
 0x25e   : > { %2804 = vperm.xlu1 %9329, %v2790_v12   ;;  %v2236_v47 = vmul.f32 %v2222_v61, %v11271_v10  ;;  %v2237_v25 = vmul.f32 %v2218_v13, %v11253_v26  ;;  %v1874_v39 = vsel %vm702_vm5, %v11445_v54, %v11421_v45  ;;  %v11635_v12 = vld [vmem:[#allocation7 + $0x1d8] sm:$0xff]  ;;  %v11659_v13 = vld [vmem:[#allocation7 + $0x1e0] sm:$0xff]  ;;  %v11661_v61 = vld [vmem:[#allocation7 + $0x1e8] sm:$0xff] }
 0x25f   : > { %2809 = vperm.xlu0 %9328, %v2791_v2   ;;  %3889 = vmatprep.subr.bf16.mxu0 %v9014_v36  ;;  %v1870_v36 = vsel %vm702_vm5, %v11421_v45, %v11445_v54  ;;  %v1873_v45 = vsel %vm702_vm5, %v11447_v48, %v11423_v28  ;;  %v1936_v54 = vsel %vm771_vm4, %v11453_v20, %v11469_v41 }
 0x260   : > { %3890 = vmatpush1.bf16.msra.mxu0 %v9013_v34  ;;  %v2201_v50 = vpop.permute.xlu1 %2200 }
 0x261   : > { %v2215_v63 = vpop.permute.xlu0 %2214 }
 0x262   : > { %v2219_v22 = vsel %vm467_vm1, %v2207_v1, %v2215_v63  ;;  %v2223_v40 = vsel %vm467_vm1, %v2215_v63, %v2207_v1  ;;  %v1871_v1 = vsel %vm702_vm5, %v11439_v17, %v11397_v35  ;;  %v1941_v63 = vsel %vm771_vm4, %v11477_v53, %v11463_v19 }
 0x263   : > { %v2238_v16 = vmul.f32 %v2223_v40, %v11269_v21  ;;  %v2239_v38 = vmul.f32 %v2219_v22, %v11240_v18  ;;  %v11672_v22 = vmul.f32 %v11629_v6, %v1874_v39 }
 0x264   : > { %v2209_v58 = vpop.permute.xlu1 %2208 }
 0x265   : > { %v9005_v11 = vpack.c.bf16 %v2238_v16, %v2236_v47  ;;  %v2203_v60 = vpop.permute.xlu0 %2202  ;;  %v9006_v30 = vpack.c.bf16 %v2239_v38, %v2237_v25  ;;  %v2216_v27 = vsel %vm467_vm1, %v2201_v50, %v2209_v58  ;;  %v2220_v32 = vsel %vm467_vm1, %v2209_v58, %v2201_v50  ;;  %v11683_v47 = vld [vmem:[#allocation7 + $0x1f0] sm:$0xff]  ;;  %v11685_v25 = vld [vmem:[#allocation7 + $0x1f8] sm:$0xff]  ;;  %v11696_v38 = vld [vmem:[#allocation7 + $0x1a8] sm:$0xff] }
 0x266   : > { %v2232_v21 = vmul.f32 %v2220_v32, %v11306_v52  ;;  %v2233_v9 = vmul.f32 %v2216_v27, %v11285_v62  ;;  %v1940_v52 = vsel %vm771_vm4, %v11469_v41, %v11453_v20  ;;  %v11645_v62 = vld [vmem:[#allocation7 + $0x1c8] sm:$0xff]  ;;  %v1937_v50 = vsel %vm771_vm4, %v11463_v19, %v11477_v53  ;;  %v11708_v27 = vld [vmem:[#allocation7 + $0x1c0] sm:$0xff] }
 0x267   : > { %3891 = vmatprep.subr.bf16.mxu0 %v9006_v30  ;;  %v1954_v40 = vmul.f32 %v11635_v12, %v1940_v52  ;;  %v1935_v19 = vsel %vm771_vm4, %v11455_v44, %v11471_v56  ;;  %v1955_v58 = vmul.f32 %v11659_v13, %v1937_v50  ;;  %v11706_v30 = vld [vmem:[#allocation7 + $0x1d0] sm:$0xff]  ;;  %v1888_v39 = vmul.f32 %v11696_v38, %v1873_v45  ;;  %v14357_v45 = vld [vmem:[#allocation17_spill] sm:$0xff] }
 0x268   : > { %3892 = vmatpush1.bf16.msra.mxu0 %v9005_v11  ;;  %v2137_v29 = vpop.permute.xlu1 %2136  ;;  %v1956_v11 = vmul.f32 %v11661_v61, %v1941_v63  ;;  %v14355_v63 = vld [vmem:[#allocation14_spill] sm:$0xff] }
 0x269   : > { %v2211_v10 = vpop.permute.xlu0 %2210 }
 0x26a   : > { %v2217_v26 = vsel %vm467_vm1, %v2203_v60, %v2211_v10  ;;  %v2221_v18 = vsel %vm467_vm1, %v2211_v10, %v2203_v60 }
 0x26b   : > { %v2234_v3 = vmul.f32 %v2221_v18, %v11303_v23  ;;  %v2235_v5 = vmul.f32 %v2217_v26, %v11279_v33  ;;  %v1872_v33 = vsel %vm702_vm5, %v11437_v0, %v11395_v8  ;;  %v1939_v23 = vsel %vm771_vm4, %v11471_v56, %v11455_v44 }
 0x26c   : > { %v2145_v37 = vpop.permute.xlu1 %2144  ;;  %v1952_v53 = vmul.f32 %v11645_v62, %v1939_v23 }
 0x26d   : > { %v8997_v2 = vpack.c.bf16 %v2234_v3, %v2232_v21  ;;  %v2139_v46 = vpop.permute.xlu0 %2138  ;;  %v8998_v34 = vpack.c.bf16 %v2235_v5, %v2233_v9  ;;  %v2150_v16 = vsel %vm398_vm2, %v2137_v29, %v2145_v37  ;;  %v2154_v20 = vsel %vm398_vm2, %v2145_v37, %v2137_v29  ;;  %v11720_v3 = vld [vmem:[#allocation7 + $0x198] sm:$0xff] }
 0x26e   : > { %v2168_v18 = vmul.f32 %v2154_v20, %v11342_v7  ;;  %v2169_v21 = vmul.f32 %v2150_v16, %v11321_v14  ;;  %v1869_v5 = vsel %vm702_vm5, %v11423_v28, %v11447_v48  ;;  %v11729_v7 = vld [vmem:[#allocation7 + $0x1b0] sm:$0xff]  ;;  %v11731_v14 = vld [vmem:[#allocation7 + $0x1a0] sm:$0xff] }
 0x26f   : > { %3893 = vmatprep.subr.bf16.mxu0 %v8998_v34  ;;  %v14356_v28 = vld [vmem:[#allocation18_spill] sm:$0xff] }
 0x270   : > { %3894 = vmatpush1.bf16.msra.mxu0 %v8997_v2  ;;  %v1934_v41 = vpop.permute.xlu1 %1933  ;;  %v11727_v2 = vld [vmem:[#allocation7 + $0x188] sm:$0xff]  ;;  %v1804_v48 = vsel %vm633_vm6, %v14356_v28, %v14355_v63  ;;  %v14358_v16 = vld [vmem:[#allocation22_spill] sm:$0xff] }
 0x271   : > { %v1938_v44 = vsel %vm771_vm4, %v11461_v59, %v1934_v41  ;;  %v1942_v56 = vsel %vm771_vm4, %v1934_v41, %v11461_v59  ;;  %v2147_v60 = vpop.permute.xlu0 %2146  ;;  %v1806_v20 = vsel %vm633_vm6, %v14358_v16, %v14357_v45  ;;  %v14359_v41 = vld [vmem:[#allocation15_spill] sm:$0xff] }
 0x272   : > { %v1957_v32 = vmul.f32 %v11683_v47, %v1938_v44  ;;  %v1958_v29 = vmul.f32 %v11685_v25, %v1942_v56  ;;  %v2151_v10 = vsel %vm398_vm2, %v2139_v46, %v2147_v60  ;;  %v2155_v26 = vsel %vm398_vm2, %v2147_v60, %v2139_v46 }
 0x273   : > { %v2170_v59 = vmul.f32 %v2155_v26, %v11339_v15  ;;  %v2171_v9 = vmul.f32 %v2151_v10, %v11315_v24  ;;  %v1953_v15 = vmul.f32 %v11706_v30, %v1936_v54  ;;  %v1951_v24 = vmul.f32 %v11708_v27, %v1935_v19  ;;  %v11770_v10 = vld [vmem:[#allocation7 + $0x180] sm:$0xff] }
 0x274   : > { %v9083_v52 = vpack.c.bf16 %v1957_v32, %v1955_v58  ;;  %v2135_v37 = vpop.permute.xlu1 %2134  ;;  %v9084_v23 = vpack.c.bf16 %v1958_v29, %v1956_v11  ;;  %v14360_v58 = vld [vmem:[#allocation23_spill] sm:$0xff]  ;;  %v9076_v19 = vpack.c.bf16 %v1954_v40, %v1952_v53  ;;  %v1868_v11 = vsel %vm702_vm5, %v11395_v8, %v11437_v0  ;;  %v11761_v8 = vld [vmem:[#allocation7 + $0x168] sm:$0xff]  ;;  %v11763_v0 = vld [vmem:[#allocation7 + $0x190] sm:$0xff] }
 0x275   : > { %v8989_v46 = vpack.c.bf16 %v2170_v59, %v2168_v18  ;;  %v2133_v34 = vpop.permute.xlu0 %2132  ;;  %v8990_v50 = vpack.c.bf16 %v2171_v9, %v2169_v21  ;;  %v1805_v54 = vsel %vm633_vm6, %v14360_v58, %v14359_v41  ;;  %v1886_v44 = vmul.f32 %v11720_v3, %v1872_v33  ;;  %v11759_v29 = vld [vmem:[#allocation7 + $0x178] sm:$0xff]  ;;  %v14361_v26 = vld [vmem:[#allocation24_spill] sm:$0xff] }
 0x276   : > { %3797 = vmatprep.subr.bf16.mxu1 %v9084_v23  ;;  %v1867_v56 = vsel %vm702_vm5, %v11397_v35, %v11439_v17  ;;  %v1884_v60 = vmul.f32 %v11727_v2, %v1871_v1  ;;  %v1889_v32 = vmul.f32 %v11729_v7, %v1870_v36  ;;  %v1887_v40 = vmul.f32 %v11731_v14, %v1869_v5  ;;  %v14362_v21 = vld [vmem:[#allocation20_spill] sm:$0xff] }
 0x277   : > { %3895 = vmatprep.subr.bf16.mxu0 %v8990_v50  ;;  %3798 = vmatpush2.bf16.msra.mxu1 %v9083_v52  ;;  %v9075_v33 = vpack.c.bf16 %v1953_v15, %v1951_v24  ;;  %v9068_v36 = vpack.c.bf16 %v11672_v22, %v1888_v39  ;;  %v14363_v52 = vld [vmem:[#allocation19_spill] sm:$0xff]  ;;  %v14364_v23 = vld [vmem:[#allocation16_spill] sm:$0xff]  ;;  %v1802_v22 = vsel %vm633_vm6, %v14357_v45, %v14358_v16  ;;  %v14365_v39 = vld [vmem:[#allocation25_spill] sm:$0xff] }
 0x278   : > { %3896 = vmatpush1.bf16.msra.mxu0 %v8989_v46  ;;  %v2143_v53 = vpop.permute.xlu1 %2142  ;;  %3799 = vmatprep.subr.bf16.mxu1 %v9076_v19  ;;  %v14366_v24 = vld [vmem:[#allocation21_spill] sm:$0xff]  ;;  %v11788_v50 = vld [vmem:[#allocation7 + $0x158] sm:$0xff]  ;;  %v1822_v19 = vmul.f32 %v11759_v29, %v1806_v20  ;;  %v11799_v16 = vld [vmem:[#allocation7 + $0x170] sm:$0xff]  ;;  %v9067_v20 = vpack.c.bf16 %v1889_v32, %v1887_v40 }
 0x279   : > { %v2149_v35 = vsel %vm398_vm2, %v2135_v37, %v2143_v53  ;;  %v2153_v17 = vsel %vm398_vm2, %v2143_v53, %v2135_v37  ;;  %v2141_v1 = vpop.permute.xlu0 %2140  ;;  %v1803_v37 = vsel %vm633_vm6, %v14364_v23, %v14363_v52  ;;  %v1820_v53 = vmul.f32 %v11761_v8, %v1805_v54  ;;  %v11797_v45 = vld [vmem:[#allocation7 + $0x148] sm:$0xff] }
 0x27a   : > { %v2166_v18 = vmul.f32 %v2153_v17, %v14361_v26  ;;  %v2167_v59 = vmul.f32 %v2149_v35, %v14362_v21  ;;  %v2148_v9 = vsel %vm398_vm2, %v2133_v34, %v2141_v1  ;;  %v2152_v5 = vsel %vm398_vm2, %v2141_v1, %v2133_v34 }
 0x27b   : > { %v2164_v15 = vmul.f32 %v2152_v5, %v14365_v39  ;;  %v2165_v46 = vmul.f32 %v2148_v9, %v14366_v24  ;;  %3800 = vmatpush2.bf16.msra.mxu1 %v9075_v33  ;;  %v1801_v34 = vsel %vm633_vm6, %v14359_v41, %v14360_v58  ;;  %v1885_v35 = vmul.f32 %v11763_v0, %v1868_v11  ;;  %v11801_v33 = vld [vmem:[#allocation7 + $0x160] sm:$0xff]  ;;  %v2094_v11 = vld [vmem:[#allocation7 + $0x30] sm:$0xff] }
 0x27c   : > { %v2071_v17 = vpop.permute.xlu1 %2070  ;;  %3801 = vmatprep.subr.bf16.mxu1 %v9068_v36  ;;  %v1883_v1 = vmul.f32 %v11770_v10, %v1867_v56  ;;  %v9060_v5 = vpack.c.bf16 %v1886_v44, %v1884_v60  ;;  %v1800_v41 = vsel %vm633_vm6, %v14355_v63, %v14356_v28  ;;  %v1818_v58 = vmul.f32 %v11788_v50, %v1804_v48  ;;  %v2095_v56 = vld [vmem:[#allocation7 + $0x38] sm:$0xff]  ;;  %v2092_v63 = vld [vmem:[#allocation7 + $0x20] sm:$0xff]  ;;  %v2093_v28 = vld [vmem:[#allocation7 + $0x28] sm:$0xff] }
 0x27d   : > { %v8981_v26 = vpack.c.bf16 %v2166_v18, %v2164_v15  ;;  %v2069_v21 = vpop.permute.xlu0 %2068  ;;  %v8982_v9 = vpack.c.bf16 %v2167_v59, %v2165_v46  ;;  %v1799_v54 = vsel %vm633_vm6, %v14363_v52, %v14364_v23  ;;  %v1816_v32 = vmul.f32 %v11797_v45, %v1803_v37  ;;  %v11816_v48 = vld [vmem:[#allocation7 + $0x150] sm:$0xff]  ;;  %v11822_v37 = vld [vmem:[#allocation7 + $0x140] sm:$0xff] }
 0x27e   : > { %v1821_v44 = vmul.f32 %v11799_v16, %v1802_v22  ;;  %v1819_v60 = vmul.f32 %v11801_v33, %v1801_v34  ;;  %v9059_v36 = vpack.c.bf16 %v1885_v35, %v1883_v1  ;;  %v9052_v23 = vpack.c.bf16 %v1822_v19, %v1820_v53 }
 0x27f   : > { %3897 = vmatprep.subr.bf16.mxu0 %v8982_v9  ;;  %3802 = vmatpush2.bf16.msra.mxu1 %v9067_v20  ;;  %v1817_v35 = vmul.f32 %v11816_v48, %v1800_v41  ;;  %v1815_v19 = vmul.f32 %v11822_v37, %v1799_v54  ;;  %v9044_v9 = vpack.c.bf16 %v1818_v58, %v1816_v32  ;;  %v11830_v41 = vld [vmem:[#allocation7 + $0x8] sm:$0xff] }
 0x280   : > { %3898 = vmatpush1.bf16.msra.mxu0 %v8981_v26  ;;  %v2079_v40 = vpop.permute.xlu1 %2078  ;;  %3803 = vmatprep.subr.bf16.mxu1 %v9060_v5  ;;  %v9051_v53 = vpack.c.bf16 %v1821_v44, %v1819_v60  ;;  %v2090_v5 = vld [vmem:[#allocation7 + $0x10] sm:$0xff]  ;;  %v9360_v54 = vld [vmem:[%s9743_s20 + $0xa8] sm:$0xff] }
 0x281   : > { %v2083_v18 = vsel %vm329_vm3, %v2071_v17, %v2079_v40  ;;  %v2087_v59 = vsel %vm329_vm3, %v2079_v40, %v2071_v17  ;;  %v2077_v52 = vpop.permute.xlu0 %2076  ;;  %v9359_v40 = vld [vmem:[%s9743_s20 + $0xb8] sm:$0xff]  ;;  %v9043_v44 = vpack.c.bf16 %v1817_v35, %v1815_v19 }
 0x282   : > { %v2102_v22 = vmul.f32 %v2094_v11, %v2087_v59  ;;  %v2103_v39 = vmul.f32 %v2095_v56, %v2083_v18  ;;  %v2082_v15 = vsel %vm329_vm3, %v2069_v21, %v2077_v52  ;;  %v2086_v24 = vsel %vm329_vm3, %v2077_v52, %v2069_v21  ;;  %v2091_v21 = vld [vmem:[#allocation7 + $0x18] sm:$0xff]  ;;  %v2088_v56 = vld [vmem:[#allocation7] sm:$0xff] }
 0x283   : > { %v2100_v46 = vmul.f32 %v2092_v63, %v2086_v24  ;;  %v2101_v34 = vmul.f32 %v2093_v28, %v2082_v15  ;;  %3804 = vmatpush2.bf16.msra.mxu1 %v9059_v36  ;;  %v9036_v63 = vpack.c.bf16 %v9359_v40, %v9360_v54 }
 0x284   : > { %v2067_v1 = vpop.permute.xlu1 %2066  ;;  %3805 = vmatprep.subr.bf16.mxu1 %v9052_v23 }
 0x285   : > { %v8973_v17 = vpack.c.bf16 %v2102_v22, %v2100_v46  ;;  %v2065_v20 = vpop.permute.xlu0 %2064  ;;  %v8974_v26 = vpack.c.bf16 %v2103_v39, %v2101_v34  ;;  %v9361_v22 = vld [vmem:[%s9743_s20 + $0xb0] sm:$0xff]  ;;  %v9362_v39 = vld [vmem:[%s9743_s20 + $0xa0] sm:$0xff]  ;;  %v9363_v46 = vld [vmem:[%s9743_s20 + $0x98] sm:$0xff] }
 0x286   : > { %v9035_v15 = vpack.c.bf16 %v9361_v22, %v9362_v39  ;;  %v9364_v34 = vld [vmem:[%s9743_s20 + $0x88] sm:$0xff] }
 0x287   : > { %3899 = vmatprep.subr.bf16.mxu0 %v8974_v26  ;;  %3806 = vmatpush2.bf16.msra.mxu1 %v9051_v53  ;;  %v9028_v35 = vpack.c.bf16 %v9363_v46, %v9364_v34 }
 0x288   : > { %3900 = vmatpush1.bf16.msra.mxu0 %v8973_v17  ;;  %v2075_v11 = vpop.permute.xlu1 %2074  ;;  %3807 = vmatprep.subr.bf16.mxu1 %v9044_v9  ;;  %v9365_v17 = vld [vmem:[%s9743_s20 + $0x90] sm:$0xff] }
 0x289   : > { %v2081_v58 = vsel %vm329_vm3, %v2067_v1, %v2075_v11  ;;  %v2085_v32 = vsel %vm329_vm3, %v2075_v11, %v2067_v1  ;;  %v2073_v60 = vpop.permute.xlu0 %2072 }
 0x28a   : > { %v2098_v28 = vmul.f32 %v2090_v5, %v2085_v32  ;;  %v2099_v36 = vmul.f32 %v2091_v21, %v2081_v58  ;;  %v2080_v18 = vsel %vm329_vm3, %v2065_v20, %v2073_v60  ;;  %v2084_v59 = vsel %vm329_vm3, %v2073_v60, %v2065_v20  ;;  %v9366_v20 = vld [vmem:[%s9743_s20 + $0x80] sm:$0xff] }
 0x28b   : > { %v2096_v52 = vmul.f32 %v2088_v56, %v2084_v59  ;;  %v2097_v23 = vmul.f32 %v11830_v41, %v2080_v18  ;;  %3808 = vmatpush2.bf16.msra.mxu1 %v9043_v44  ;;  %v9027_v26 = vpack.c.bf16 %v9365_v17, %v9366_v20 }
 0x28c   : > { %v2507_v24 = vpop.permute.xlu1 %2506  ;;  %3809 = vmatprep.subr.bf16.mxu1 %v9036_v63 }
 0x28d   : > { %v8965_v1 = vpack.c.bf16 %v2098_v28, %v2096_v52  ;;  %v2505_v19 = vpop.permute.xlu0 %2504  ;;  %v8966_v53 = vpack.c.bf16 %v2099_v36, %v2097_v23 }
 0x28f   : > { %3901 = vmatprep.subr.bf16.mxu0 %v8966_v53  ;;  %3810 = vmatpush2.bf16.msra.mxu1 %v9035_v15 }
 0x290   : > { %3902 = vmatpush1.bf16.msra.mxu0 %v8965_v1  ;;  %v2515_v9 = vpop.permute.xlu1 %2514  ;;  %3811 = vmatprep.subr.bf16.mxu1 %v9028_v35 }
 0x291   : > { %v2519_v5 = vsel %vm771_vm4, %v2507_v24, %v2515_v9  ;;  %v2523_v21 = vsel %vm771_vm4, %v2515_v9, %v2507_v24  ;;  %v2513_v11 = vpop.permute.xlu0 %2512 }
 0x292   : > { %v2538_v56 = vmul.f32 %v2519_v5, %v11683_v47  ;;  %v2539_v40 = vmul.f32 %v2523_v21, %v11685_v25  ;;  %v2518_v54 = vsel %vm771_vm4, %v2505_v19, %v2513_v11  ;;  %v2522_v63 = vsel %vm771_vm4, %v2513_v11, %v2505_v19  ;;  %v11864_v47 = vld [vmem:[%s14050_s2] ss:$12 sps:$4 sm:$0xff]   ;;  %v11870_v25 = vld [vmem:[%s14050_s2 + $0x1c] ss:$12 sps:$4 sm:$0xff]  }
 0x293   : > { %v2536_v44 = vmul.f32 %v2518_v54, %v11659_v13  ;;  %v2537_v58 = vmul.f32 %v2522_v63, %v11661_v61  ;;  %3812 = vmatpush2.bf16.msra.mxu1 %v9027_v26 }
 0x294   : > { %v2503_v32 = vpop.permute.xlu1 %2502 }
 0x295   : > { %v9085_v60 = vpack.c.bf16 %v2538_v56, %v2536_v44  ;;  %v2501_v28 = vpop.permute.xlu0 %2500  ;;  %v9086_v36 = vpack.c.bf16 %v2539_v40, %v2537_v58 }
 0x296   : > { %3814 = vmatmul.mubr.bf16.vlgmr.msra.gmra.mxu1 %v11864_v47 }
 0x297   : > { %3903 = vmatprep.subr.bf16.mxu0 %v9086_v36  ;;  %3823 = vmatprep.mubr.bf16.mxu1 %v11870_v25 }
 0x298   : > { %3904 = vmatpush2.bf16.msra.mxu0 %v9085_v60  ;;  %v2511_v13 = vpop.permute.xlu1 %2510 }
 0x299   : > { %v2517_v61 = vsel %vm771_vm4, %v2503_v32, %v2511_v13  ;;  %v2521_v18 = vsel %vm771_vm4, %v2511_v13, %v2503_v32  ;;  %v2509_v59 = vpop.permute.xlu0 %2508 }
 0x29a   : > { %v2534_v52 = vmul.f32 %v2517_v61, %v11706_v30  ;;  %v2535_v23 = vmul.f32 %v2521_v18, %v11635_v12  ;;  %v2516_v22 = vsel %vm771_vm4, %v2501_v28, %v2509_v59  ;;  %v2520_v39 = vsel %vm771_vm4, %v2509_v59, %v2501_v28  ;;  %v11888_v30 = vld [vmem:[%s14050_s2 + $0x18] ss:$12 sps:$4 sm:$0xff]  }
 0x29b   : > { %v2532_v15 = vmul.f32 %v2516_v22, %v11708_v27  ;;  %v2533_v24 = vmul.f32 %v2520_v39, %v11645_v62 }
 0x29c   : > { %v2439_v46 = vpop.permute.xlu1 %2438 }
 0x29d   : > { %v9077_v34 = vpack.c.bf16 %v2534_v52, %v2532_v15  ;;  %v2437_v35 = vpop.permute.xlu0 %2436  ;;  %v9078_v1 = vpack.c.bf16 %v2535_v23, %v2533_v24 }
 0x29e   : > { %3824 = vmatmul.mubr.bf16.gmra.mxu1 %v11888_v30 }
 0x29f   : > { %3905 = vmatprep.subr.bf16.mxu0 %v9078_v1  ;;  %3972 = vmatprep.mubr.bf16.mxu1 %v14332_v42 }
 0x2a0   : > { %3906 = vmatpush2.bf16.msra.mxu0 %v9077_v34  ;;  %v2447_v12 = vpop.permute.xlu1 %2446 }
 0x2a1   : > { %v2451_v27 = vsel %vm702_vm5, %v2439_v46, %v2447_v12  ;;  %v2455_v62 = vsel %vm702_vm5, %v2447_v12, %v2439_v46  ;;  %v2445_v19 = vpop.permute.xlu0 %2444 }
 0x2a2   : > { %v2470_v53 = vmul.f32 %v2451_v27, %v11729_v7  ;;  %v2471_v17 = vmul.f32 %v2455_v62, %v11629_v6  ;;  %v2450_v20 = vsel %vm702_vm5, %v2437_v35, %v2445_v19  ;;  %v2454_v26 = vsel %vm702_vm5, %v2445_v19, %v2437_v35 }
 0x2a3   : > { %v2468_v9 = vmul.f32 %v2450_v20, %v11731_v14  ;;  %v2469_v5 = vmul.f32 %v2454_v26, %v11696_v38  ;;  %v9370_v26 = vld [vmem:[%s9743_s20 + $0xe8] sm:$0xff] }
 0x2a4   : > { %v2435_v21 = vpop.permute.xlu1 %2434 }
 0x2a5   : > { %v9069_v11 = vpack.c.bf16 %v2470_v53, %v2468_v9  ;;  %v2433_v56 = vpop.permute.xlu0 %2432  ;;  %v9070_v40 = vpack.c.bf16 %v2471_v17, %v2469_v5  ;;  %v9371_v9 = vld [vmem:[%s9743_s20 + $0xf8] sm:$0xff] }
 0x2a7   : > { %3907 = vmatprep.subr.bf16.mxu0 %v9070_v40 }
 0x2a8   : > { %3908 = vmatpush2.bf16.msra.mxu0 %v9069_v11  ;;  %v2443_v54 = vpop.permute.xlu1 %2442  ;;  %v9373_v11 = vld [vmem:[%s9743_s20 + $0xf0] sm:$0xff] }
 0x2a9   : > { %v2449_v6 = vsel %vm702_vm5, %v2435_v21, %v2443_v54  ;;  %v2453_v7 = vsel %vm702_vm5, %v2443_v54, %v2435_v21  ;;  %v2441_v63 = vpop.permute.xlu0 %2440  ;;  %v9372_v21 = vld [vmem:[%s9743_s20 + $0xe0] sm:$0xff]  ;;  %v9374_v54 = vld [vmem:[%s9743_s20 + $0xc8] sm:$0xff] }
 0x2aa   : > { %v2466_v44 = vmul.f32 %v2449_v6, %v11763_v0  ;;  %v2467_v14 = vmul.f32 %v2453_v7, %v11720_v3  ;;  %v2448_v38 = vsel %vm702_vm5, %v2433_v56, %v2441_v63  ;;  %v2452_v58 = vsel %vm702_vm5, %v2441_v63, %v2433_v56  ;;  %v9375_v6 = vld [vmem:[%s9743_s20 + $0xd8] sm:$0xff]  ;;  %v14367_v63 = vld [vmem:[#allocation28_spill] sm:$0xff] }
 0x2ab   : > { %v2464_v32 = vmul.f32 %v2448_v38, %v11770_v10  ;;  %v2465_v60 = vmul.f32 %v2452_v58, %v11727_v2  ;;  %v9037_v56 = vpack.c.bf16 %v9373_v11, %v9372_v21  ;;  %v9030_v7 = vpack.c.bf16 %v9375_v6, %v9374_v54 }
 0x2ac   : > { %v2371_v28 = vpop.permute.xlu1 %2370 }
 0x2ad   : > { %v9061_v36 = vpack.c.bf16 %v2466_v44, %v2464_v32  ;;  %v2369_v13 = vpop.permute.xlu0 %2368  ;;  %v9062_v61 = vpack.c.bf16 %v2467_v14, %v2465_v60  ;;  %v14368_v14 = vld [vmem:[#allocation29_spill] sm:$0xff]  ;;  %v14369_v60 = vld [vmem:[#allocation26_spill] sm:$0xff] }
 0x2af   : > { %3909 = vmatprep.subr.bf16.mxu0 %v9062_v61  ;;  %v3603_v61 = vpop.f32.mrf.mxu0 }
 0x2b0   : > { %3910 = vmatpush2.bf16.msra.mxu0 %v9061_v36  ;;  %v2379_v18 = vpop.permute.xlu1 %2378  ;;  %v14370_v36 = vld [vmem:[#allocation27_spill] sm:$0xff] }
 0x2b1   : > { %v2383_v3 = vsel %vm633_vm6, %v2371_v28, %v2379_v18  ;;  %v2387_v0 = vsel %vm633_vm6, %v2379_v18, %v2371_v28  ;;  %v2377_v59 = vpop.permute.xlu0 %2376 }
 0x2b2   : > { %v2402_v52 = vmul.f32 %v2383_v3, %v11799_v16  ;;  %v2403_v10 = vmul.f32 %v2387_v0, %v11759_v29  ;;  %v2382_v2 = vsel %vm633_vm6, %v2369_v13, %v2377_v59  ;;  %v2386_v23 = vsel %vm633_vm6, %v2377_v59, %v2369_v13  ;;  %v9376_v3 = vld [vmem:[%s9743_s20 + $0xc0] sm:$0xff]  ;;  %v9377_v0 = vld [vmem:[%s9743_s20 + $0xd0] sm:$0xff] }
 0x2b3   : > { %v2400_v22 = vmul.f32 %v2382_v2, %v11801_v33  ;;  %v2401_v39 = vmul.f32 %v2386_v23, %v11761_v8  ;;  %v9029_v59 = vpack.c.bf16 %v9377_v0, %v9376_v3  ;;  %v3656_v23 = vpop.f32.mrf.mxu1 }
 0x2b4   : > { %v2367_v15 = vpop.permute.xlu1 %2366 }
 0x2b5   : > { %v9053_v24 = vpack.c.bf16 %v2402_v52, %v2400_v22  ;;  %v2365_v46 = vpop.permute.xlu0 %2364  ;;  %v9054_v34 = vpack.c.bf16 %v2403_v10, %v2401_v39  ;;  %v3605_v22 = vpop.f32.mrf.mxu0 }
 0x2b7   : > { %3911 = vmatprep.subr.bf16.mxu0 %v9054_v34  ;;  %v3658_v34 = vpop.f32.mrf.mxu1 }
 0x2b8   : > { %3912 = vmatpush2.bf16.msra.mxu0 %v9053_v24  ;;  %v2375_v16 = vpop.permute.xlu1 %2374 }
 0x2b9   : > { %v2381_v29 = vsel %vm633_vm6, %v2367_v15, %v2375_v16  ;;  %v2385_v35 = vsel %vm633_vm6, %v2375_v16, %v2367_v15  ;;  %v2373_v1 = vpop.permute.xlu0 %2372 }
 0x2ba   : > { %v2398_v33 = vmul.f32 %v2381_v29, %v11816_v48  ;;  %v2399_v8 = vmul.f32 %v2385_v35, %v11788_v50  ;;  %v2380_v12 = vsel %vm633_vm6, %v2365_v46, %v2373_v1  ;;  %v2384_v27 = vsel %vm633_vm6, %v2373_v1, %v2365_v46 }
 0x2bb   : > { %v2396_v62 = vmul.f32 %v2380_v12, %v11822_v37  ;;  %v2397_v19 = vmul.f32 %v2384_v27, %v11797_v45  ;;  %v9038_v50 = vpack.c.bf16 %v9371_v9, %v9370_v26  ;;  %v3607_v12 = vpop.f32.mrf.mxu0 }
 0x2bc   : > { %v2575_v53 = vpop.permute.xlu1 %2574 }
 0x2bd   : > { %v9045_v17 = vpack.c.bf16 %v2398_v33, %v2396_v62  ;;  %v2573_v20 = vpop.permute.xlu0 %2572  ;;  %v9046_v48 = vpack.c.bf16 %v2399_v8, %v2397_v19 }
 0x2bf   : > { %3913 = vmatprep.subr.bf16.mxu0 %v9046_v48 }
 0x2c0   : > { %3914 = vmatpush2.bf16.msra.mxu0 %v9045_v17  ;;  %v2583_v5 = vpop.permute.xlu1 %2582 }
 0x2c1   : > { %v2587_v37 = vsel %vm840_vm7, %v2575_v53, %v2583_v5  ;;  %v2591_v45 = vsel %vm840_vm7, %v2583_v5, %v2575_v53  ;;  %v2581_v40 = vpop.permute.xlu0 %2580  ;;  %3915 = vmatprep.subr.bf16.mxu0 %v9038_v50 }
 0x2c2   : > { %v2606_v44 = vmul.f32 %v2587_v37, %v14367_v63  ;;  %v2607_v38 = vmul.f32 %v2591_v45, %v14368_v14  ;;  %v2586_v58 = vsel %vm840_vm7, %v2573_v20, %v2581_v40  ;;  %v2590_v32 = vsel %vm840_vm7, %v2581_v40, %v2573_v20 }
 0x2c3   : > { %v2604_v28 = vmul.f32 %v2586_v58, %v14369_v60  ;;  %v2605_v13 = vmul.f32 %v2590_v32, %v14370_v36 }
 0x2c4   : > { %3916 = vmatpush2.bf16.msra.mxu0 %v9037_v56  ;;  %v2571_v18 = vpop.permute.xlu1 %2570 }
 0x2c5   : > { %v9101_v52 = vpack.c.bf16 %v2606_v44, %v2604_v28  ;;  %v2569_v10 = vpop.permute.xlu0 %2568  ;;  %3917 = vmatprep.subr.bf16.mxu0 %v9030_v7  ;;  %v9102_v2 = vpack.c.bf16 %v2607_v38, %v2605_v13 }
 0x2c7   : > { %3952 = vmatprep.subr.bf16.mxu1 %v9102_v2 }
 0x2c8   : > { %3918 = vmatpush2.bf16.msra.mxu0 %v9029_v59  ;;  %3953 = vmatpush1.bf16.msra.mxu1 %v9101_v52  ;;  %v2579_v39 = vpop.permute.xlu1 %2578 }
 0x2c9   : > { %v2585_v15 = vsel %vm840_vm7, %v2571_v18, %v2579_v39  ;;  %v2589_v24 = vsel %vm840_vm7, %v2579_v39, %v2571_v18  ;;  %v2577_v46 = vpop.permute.xlu0 %2576 }
 0x2ca   : > { %v2602_v16 = vmul.f32 %v2585_v15, %v11523_v55  ;;  %v2603_v29 = vmul.f32 %v2589_v24, %v11525_v49  ;;  %v2584_v35 = vsel %vm840_vm7, %v2569_v10, %v2577_v46  ;;  %v2588_v1 = vsel %vm840_vm7, %v2577_v46, %v2569_v10  ;;  %v3660_v55 = vpop.f32.mrf.mxu1  ;;  %v3609_v49 = vpop.f32.mrf.mxu0 }
 0x2cb   : > { %v2600_v33 = vmul.f32 %v2584_v35, %v11513_v57  ;;  %v2601_v8 = vmul.f32 %v2588_v1, %v11517_v31  ;;  %3920 = vmatmul.mubr.bf16.vlgmr.msra.gmra.mxu0 %v11864_v47 }
 0x2cc   : > { %3929 = vmatprep.mubr.bf16.mxu0 %v11870_v25  ;;  %v3662_v19 = vpop.f32.mrf.mxu1  ;;  %v3613_v57 = vpop.f32.mrf.mxu0 }
 0x2cd   : > { %v9093_v27 = vpack.c.bf16 %v2602_v16, %v2600_v33  ;;  %v9094_v62 = vpack.c.bf16 %v2603_v29, %v2601_v8 }
 0x2ce   : > { %v3666_v47 = vpop.f32.mrf.mxu1  ;;  %v3615_v20 = vpop.f32.mrf.mxu0 }
 0x2cf   : > { %3954 = vmatprep.subr.bf16.mxu1 %v9094_v62 }
 0x2d0   : > { %3955 = vmatpush1.bf16.msra.mxu1 %v9093_v27  ;;  %v3617_v21 = vpop.f32.mrf.mxu0 }
 0x2d2   : > { %v3619_v7 = vpop.f32.mrf.mxu0 }
 0x2d3   : > { %3930 = vmatmul.mubr.bf16.gmra.mxu0 %v11888_v30  ;;  %8309 = vmatmul.mubr.msk.bf16.vlgmr.msra.gmra.mxu1 %vm3562_vm8, %v11562_v51  ;;  %v3668_v51 = vpop.f32.mrf.mxu1 }
 0x2d4   : > { %3982 = vmatprep.mubr.bf16.mxu1 %v14332_v42  ;;  %7394 = vmatprep.mubr.bf16.mxu0 %v14332_v42  ;;  %v3762_v59 = vpop.f32.mrf.mxu0 }
 0x2d5   : > { %v11979_v31 = vpop.permute.xlu1 %2799  ;;  %v3670_v40 = vpop.f32.mrf.mxu1 }
 0x2d6   : > { %14371 = vst [vmem:[#allocation30_spill] sm:$0xff] %v11979_v31  ;;  %v3608_v25 = vadd.f32 %v3607_v12, %v11979_v31  ;;  %v11982_v53 = vpop.permute.xlu0 %2794  ;;  %v3610_v37 = vadd.f32 %v3609_v49, %v11979_v31  ;;  %v3764_v10 = vpop.f32.mrf.mxu0 }
 0x2d7   : > { %14372 = vst [vmem:[#allocation31_spill] sm:$0xff] %v11982_v53  ;;  %v3604_v17 = vadd.f32 %v3603_v61, %v11982_v53  ;;  %v3606_v11 = vadd.f32 %v3605_v22, %v11982_v53  ;;  %v3672_v32 = vpop.f32.mrf.mxu1 }
 0x2d8   : > { %v3661_v48 = vadd.f32 %v3660_v55, %v3608_v25  ;;  %v3663_v14 = vadd.f32 %v3662_v19, %v3610_v37 }
 0x2d9   : > { %v3657_v30 = vadd.f32 %v3656_v23, %v3604_v17  ;;  %v11985_v26 = vpop.permute.xlu1 %2804  ;;  %v3709_v3 = vpop.f32.mrf.mxu1 }
 0x2da   : > { %14373 = vst [vmem:[#allocation32_spill] sm:$0xff] %v11985_v26  ;;  %v11987_v9 = vmax.f32 %v3661_v48, 0.0  ;;  %v11989_v50 = vpop.permute.xlu0 %2809  ;;  %v3614_v56 = vadd.f32 %v3613_v57, %v11985_v26  ;;  %v3616_v63 = vadd.f32 %v3615_v20, %v11985_v26  ;;  %v12015_v36 = vmax.f32 %v3663_v14, 0.0  ;;  %v3766_v23 = vpop.f32.mrf.mxu0 }
 0x2db   : > { %14375 = vst [vmem:[#allocation34_spill] sm:$0xff] %v11989_v50  ;;  %v11991_v5 = vmax.f32 %v3657_v30, 0.0  ;;  %8310 = vmatmul.mubr.msk.bf16.gmra.mxu1 %vm3562_vm8, %v11595_v4  ;;  %v3618_v45 = vadd.f32 %v3617_v21, %v11989_v50  ;;  %v3659_v4 = vadd.f32 %v3658_v34, %v3606_v11  ;;  %v3620_v38 = vadd.f32 %v3619_v7, %v11989_v50  ;;  %v3711_v0 = vpop.f32.mrf.mxu1 }
 0x2dc   : > { %14374 = vst [vmem:[#allocation33_spill] sm:$0xff] %v11987_v9  ;;  %4067 = vrot.lane.b32.xlu0 %v11987_v9, %s14338_s13  ;;  %v3667_v54 = vadd.f32 %v3666_v47, %v3614_v56  ;;  %v3669_v28 = vadd.f32 %v3668_v51, %v3616_v63  ;;  %14380 = vst [vmem:[#allocation39_spill] sm:$0xff] %v12015_v36  ;;  %v3768_v39 = vpop.f32.mrf.mxu0  ;;  %v3710_v62 = vadd.f32 %v3709_v3, %v11982_v53 }
 0x2dd   : > { %14376 = vst [vmem:[#allocation35_spill] sm:$0xff] %v11991_v5  ;;  %4065 = vrot.lane.b32.xlu1 %v11991_v5, %s14338_s13  ;;  %v3671_v6 = vadd.f32 %v3670_v40, %v3618_v45  ;;  %v12013_v60 = vmax.f32 %v3659_v4, 0.0  ;;  %v3673_v13 = vadd.f32 %v3672_v32, %v3620_v38  ;;  %v3713_v52 = vpop.f32.mrf.mxu1  ;;  %v3712_v48 = vadd.f32 %v3711_v0, %v11982_v53 }
 0x2de   : > { %v12004_v44 = vmax.f32 %v3667_v54, 0.0  ;;  %v12021_v61 = vmax.f32 %v3669_v28, 0.0  ;;  %v3772_v24 = vpop.f32.mrf.mxu0  ;;  %v3714_v25 = vadd.f32 %v3713_v52, %v11979_v31  ;;  %v3763_v30 = vadd.f32 %v3762_v59, %v3710_v62  ;;  %v12251_v62 = vld [vmem:[#allocation7 + $0xd8] sm:$0xff] }
 0x2df   : > { %v12007_v58 = vmax.f32 %v3671_v6, 0.0  ;;  %14379 = vst [vmem:[#allocation38_spill] sm:$0xff] %v12013_v60  ;;  %v12023_v18 = vmax.f32 %v3673_v13, 0.0  ;;  %v3715_v2 = vpop.f32.mrf.mxu1  ;;  %v3765_v45 = vadd.f32 %v3764_v10, %v3712_v48 }
 0x2e0   : > { %14377 = vst [vmem:[#allocation36_spill] sm:$0xff] %v12004_v44  ;;  %14381 = vst [vmem:[#allocation41_spill] sm:$0xff] %v12021_v61  ;;  %v3774_v34 = vpop.f32.mrf.mxu0  ;;  %v3716_v21 = vadd.f32 %v3715_v2, %v11979_v31  ;;  %v3767_v11 = vadd.f32 %v3766_v23, %v3714_v25  ;;  %v12155_v40 = vmax.f32 %v3763_v30, 0.0  ;;  %v12265_v30 = vld [vmem:[#allocation7 + $0xf0] sm:$0xff] }
 0x2e1   : > { %14378 = vst [vmem:[#allocation37_spill] sm:$0xff] %v12007_v58  ;;  %4069 = vrot.lane.b32.xlu1 %v12004_v44, %s14338_s13  ;;  %4071 = vrot.lane.b32.xlu0 %v12007_v58, %s14338_s13  ;;  %14382 = vst [vmem:[#allocation42_spill] sm:$0xff] %v12023_v18  ;;  %v3719_v22 = vpop.f32.mrf.mxu1  ;;  %v12167_v63 = vmax.f32 %v3765_v45, 0.0 }
 0x2e2   : > { %v3720_v16 = vadd.f32 %v3719_v22, %v11985_v26  ;;  %v3776_v8 = vpop.f32.mrf.mxu0  ;;  %14390 = vst [vmem:[#allocation45_spill] sm:$0xff] %v12155_v40  ;;  %v3769_v6 = vadd.f32 %v3768_v39, %v3716_v21  ;;  %v12163_v7 = vmax.f32 %v3767_v11, 0.0  ;;  %v12267_v21 = vld [vmem:[#allocation7 + $0xf8] sm:$0xff] }
 0x2e3   : > { %v3721_v15 = vpop.f32.mrf.mxu1  ;;  %14392 = vst [vmem:[#allocation48_spill] sm:$0xff] %v12167_v63 }
 0x2e4   : > { %v3722_v35 = vadd.f32 %v3721_v15, %v11985_v26  ;;  %v3773_v1 = vadd.f32 %v3772_v24, %v3720_v16  ;;  %v3778_v19 = vpop.f32.mrf.mxu0  ;;  %14391 = vst [vmem:[#allocation46_spill] sm:$0xff] %v12163_v7  ;;  %v12175_v38 = vmax.f32 %v3769_v6, 0.0  ;;  %v12315_v26 = vld [vmem:[#allocation7 + $0xb0] sm:$0xff] }
 0x2e5   : > { %4073 = vrot.lane.b32.xlu1 %v12013_v60, %s14338_s13  ;;  %4075 = vrot.lane.b32.xlu0 %v12015_v36, %s14338_s13  ;;  %v3723_v46 = vpop.f32.mrf.mxu1 }
 0x2e6   : > { %v3724_v29 = vadd.f32 %v3723_v46, %v11989_v50  ;;  %v3775_v55 = vadd.f32 %v3774_v34, %v3722_v35  ;;  %v12130_v49 = vmax.f32 %v3773_v1, 0.0  ;;  %14393 = vst [vmem:[#allocation49_spill] sm:$0xff] %v12175_v38 }
 0x2e7   : > { %v3725_v33 = vpop.f32.mrf.mxu1 }
 0x2e8   : > { %v3777_v12 = vadd.f32 %v3776_v8, %v3724_v29  ;;  %v3726_v27 = vadd.f32 %v3725_v33, %v11989_v50  ;;  %14386 = vst [vmem:[#allocation40_spill] sm:$0xff] %v12130_v49  ;;  %v12144_v51 = vmax.f32 %v3775_v55, 0.0  ;;  %v12255_v55 = vld [vmem:[#allocation7 + $0xe0] sm:$0xff] }
 0x2e9   : > { %4077 = vrot.lane.b32.xlu1 %v12021_v61, %s14338_s13  ;;  %4079 = vrot.lane.b32.xlu0 %v12023_v18, %s14338_s13 }
 0x2ea   : > { %v12141_v17 = vmax.f32 %v3777_v12, 0.0  ;;  %v3779_v20 = vadd.f32 %v3778_v19, %v3726_v27  ;;  %14388 = vst [vmem:[#allocation44_spill] sm:$0xff] %v12144_v51  ;;  %v12257_v19 = vld [vmem:[#allocation7 + $0xe8] sm:$0xff] }
 0x2ec   : > { %14387 = vst [vmem:[#allocation43_spill] sm:$0xff] %v12141_v17  ;;  %v12151_v56 = vmax.f32 %v3779_v20, 0.0  ;;  %v12261_v20 = vld [vmem:[#allocation7 + $0xc8] sm:$0xff] }
 0x2ed   : > { %4133 = vrot.lane.b32.xlu1 %v11991_v5, %s9559_s29  ;;  %4135 = vrot.lane.b32.xlu0 %v11987_v9, %s9559_s29 }
 0x2ee   : > { %14389 = vst [vmem:[#allocation47_spill] sm:$0xff] %v12151_v56 }
 0x2f1   : > { %4137 = vrot.lane.b32.xlu1 %v12004_v44, %s9559_s29  ;;  %4139 = vrot.lane.b32.xlu0 %v12007_v58, %s9559_s29 }
 0x2f5   : > { %4141 = vrot.lane.b32.xlu1 %v12013_v60, %s9559_s29  ;;  %4143 = vrot.lane.b32.xlu0 %v12015_v36, %s9559_s29 }
 0x2f9   : > { %4145 = vrot.lane.b32.xlu1 %v12021_v61, %s9559_s29  ;;  %4147 = vrot.lane.b32.xlu0 %v12023_v18, %s9559_s29 }
 0x2fd   : > { %4201 = vrot.lane.b32.xlu1 %v11991_v5, %s9560_s17  ;;  %4203 = vrot.lane.b32.xlu0 %v11987_v9, %s9560_s17 }
 0x301   : > { %4205 = vrot.lane.b32.xlu1 %v12004_v44, %s9560_s17  ;;  %4207 = vrot.lane.b32.xlu0 %v12007_v58, %s9560_s17 }
 0x305   : > { %4209 = vrot.lane.b32.xlu1 %v12013_v60, %s9560_s17  ;;  %4211 = vrot.lane.b32.xlu0 %v12015_v36, %s9560_s17 }
 0x309   : > { %4213 = vrot.lane.b32.xlu1 %v12021_v61, %s9560_s17  ;;  %4215 = vrot.lane.b32.xlu0 %v12023_v18, %s9560_s17 }
 0x30d   : > { %4269 = vrot.lane.b32.xlu1 %v11991_v5, %s9561_s19  ;;  %4271 = vrot.lane.b32.xlu0 %v11987_v9, %s9561_s19 }
 0x311   : > { %4273 = vrot.lane.b32.xlu1 %v12004_v44, %s9561_s19  ;;  %4275 = vrot.lane.b32.xlu0 %v12007_v58, %s9561_s19 }
 0x315   : > { %4277 = vrot.lane.b32.xlu1 %v12013_v60, %s9561_s19  ;;  %4279 = vrot.lane.b32.xlu0 %v12015_v36, %s9561_s19 }
 0x319   : > { %4281 = vrot.lane.b32.xlu1 %v12021_v61, %s9561_s19  ;;  %4283 = vrot.lane.b32.xlu0 %v12023_v18, %s9561_s19 }
 0x31d   : > { %4365 = vrot.lane.b32.xlu1 %v11991_v5, %s9562_s30  ;;  %4367 = vrot.lane.b32.xlu0 %v11987_v9, %s9562_s30 }
 0x321   : > { %4369 = vrot.lane.b32.xlu1 %v12004_v44, %s9562_s30  ;;  %4371 = vrot.lane.b32.xlu0 %v12007_v58, %s9562_s30 }
 0x325   : > { %4373 = vrot.lane.b32.xlu1 %v12013_v60, %s9562_s30  ;;  %4375 = vrot.lane.b32.xlu0 %v12015_v36, %s9562_s30 }
 0x329   : > { %4377 = vrot.lane.b32.xlu1 %v12021_v61, %s9562_s30  ;;  %4379 = vrot.lane.b32.xlu0 %v12023_v18, %s9562_s30 }
 0x32d   : > { %4433 = vrot.lane.b32.xlu1 %v11991_v5, %s14383_s7  ;;  %4435 = vrot.lane.b32.xlu0 %v11987_v9, %s14383_s7 }
 0x331   : > { %4437 = vrot.lane.b32.xlu1 %v12004_v44, %s14383_s7  ;;  %4439 = vrot.lane.b32.xlu0 %v12007_v58, %s14383_s7 }
 0x335   : > { %4441 = vrot.lane.b32.xlu1 %v12013_v60, %s14383_s7  ;;  %4443 = vrot.lane.b32.xlu0 %v12015_v36, %s14383_s7 }
 0x339   : > { %4445 = vrot.lane.b32.xlu1 %v12021_v61, %s14383_s7  ;;  %4447 = vrot.lane.b32.xlu0 %v12023_v18, %s14383_s7 }
 0x33d   : > { %4501 = vrot.lane.b32.xlu1 %v11991_v5, %s14384_s27  ;;  %4573 = vrot.lane.b32.xlu0 %v12004_v44, %s14385_s16 }
 0x341   : > { %4575 = vrot.lane.b32.xlu1 %v12007_v58, %s14385_s16  ;;  %4581 = vrot.lane.b32.xlu0 %v12021_v61, %s14385_s16 }
 0x345   : > { %4583 = vrot.lane.b32.xlu1 %v12023_v18, %s14385_s16  ;;  %4569 = vrot.lane.b32.xlu0 %v11991_v5, %s14385_s16 }
 0x349   : > { %4571 = vrot.lane.b32.xlu1 %v11987_v9, %s14385_s16  ;;  %4577 = vrot.lane.b32.xlu0 %v12013_v60, %s14385_s16 }
 0x34d   : > { %4579 = vrot.lane.b32.xlu1 %v12015_v36, %s14385_s16  ;;  %4853 = vrot.lane.b32.xlu0 %v12130_v49, %s9561_s19 }
 0x34e   : > { %v12136_v57 = vpop.permute.xlu0 %4067 }
 0x34f   : > { %v12138_v47 = vpop.permute.xlu1 %4065 }
 0x351   : > { %4855 = vrot.lane.b32.xlu1 %v12141_v17, %s9561_s19  ;;  %4861 = vrot.lane.b32.xlu0 %v12144_v51, %s9561_s19 }
 0x353   : > { %v12153_v37 = vpop.permute.xlu1 %4069  ;;  %v12157_v54 = vpop.permute.xlu0 %4071 }
 0x355   : > { %4863 = vrot.lane.b32.xlu1 %v12151_v56, %s9561_s19  ;;  %4849 = vrot.lane.b32.xlu0 %v12155_v40, %s9561_s19 }
 0x357   : > { %v12165_v4 = vpop.permute.xlu1 %4073  ;;  %v12169_v14 = vpop.permute.xlu0 %4075 }
 0x359   : > { %4851 = vrot.lane.b32.xlu1 %v12163_v7, %s9561_s19  ;;  %4857 = vrot.lane.b32.xlu0 %v12167_v63, %s9561_s19 }
 0x35b   : > { %v12177_v32 = vpop.permute.xlu1 %4077  ;;  %v12179_v28 = vpop.permute.xlu0 %4079 }
 0x35d   : > { %4859 = vrot.lane.b32.xlu1 %v12175_v38, %s9561_s19  ;;  %4785 = vrot.lane.b32.xlu0 %v12130_v49, %s9560_s17 }
 0x35f   : > { %v12185_v13 = vpop.permute.xlu1 %4133  ;;  %v12187_v3 = vpop.permute.xlu0 %4135 }
 0x361   : > { %4787 = vrot.lane.b32.xlu1 %v12141_v17, %s9560_s17  ;;  %4793 = vrot.lane.b32.xlu0 %v12144_v51, %s9560_s17 }
 0x363   : > { %v12193_v0 = vpop.permute.xlu1 %4137  ;;  %v12195_v59 = vpop.permute.xlu0 %4139 }
 0x365   : > { %4795 = vrot.lane.b32.xlu1 %v12151_v56, %s9560_s17  ;;  %4781 = vrot.lane.b32.xlu0 %v12155_v40, %s9560_s17 }
 0x367   : > { %v12201_v52 = vpop.permute.xlu1 %4141  ;;  %v12203_v10 = vpop.permute.xlu0 %4143 }
 0x369   : > { %4783 = vrot.lane.b32.xlu1 %v12163_v7, %s9560_s17  ;;  %4789 = vrot.lane.b32.xlu0 %v12167_v63, %s9560_s17 }
 0x36b   : > { %v12209_v2 = vpop.permute.xlu1 %4145  ;;  %v12211_v23 = vpop.permute.xlu0 %4147 }
 0x36d   : > { %4791 = vrot.lane.b32.xlu1 %v12175_v38, %s9560_s17  ;;  %4717 = vrot.lane.b32.xlu0 %v12130_v49, %s9559_s29 }
 0x36f   : > { %v12217_v22 = vpop.permute.xlu1 %4201  ;;  %v12219_v39 = vpop.permute.xlu0 %4203 }
 0x371   : > { %4719 = vrot.lane.b32.xlu1 %v12141_v17, %s9559_s29  ;;  %4725 = vrot.lane.b32.xlu0 %v12144_v51, %s9559_s29 }
 0x373   : > { %v4206_v15 = vpop.permute.xlu1 %4205  ;;  %v4208_v24 = vpop.permute.xlu0 %4207 }
 0x375   : > { %4727 = vrot.lane.b32.xlu1 %v12151_v56, %s9559_s29  ;;  %4505 = vrot.lane.b32.xlu0 %v12004_v44, %s14384_s27 }
 0x377   : > { %v12229_v46 = vpop.permute.xlu1 %4209  ;;  %v12231_v34 = vpop.permute.xlu0 %4211 }
 0x379   : > { %4507 = vrot.lane.b32.xlu1 %v12007_v58, %s14384_s27  ;;  %4513 = vrot.lane.b32.xlu0 %v12021_v61, %s14384_s27 }
 0x37b   : > { %v4214_v16 = vpop.permute.xlu1 %4213  ;;  %v4216_v29 = vpop.permute.xlu0 %4215 }
 0x37c   : > { %v4223_v31 = vsel %vm467_vm1, %v4214_v16, %v4206_v15 }
 0x37d   : > { %4515 = vrot.lane.b32.xlu1 %v12023_v18, %s14384_s27  ;;  %4713 = vrot.lane.b32.xlu0 %v12155_v40, %s9559_s29 }
 0x37f   : > { %v4270_v35 = vpop.permute.xlu1 %4269  ;;  %v4272_v1 = vpop.permute.xlu0 %4271 }
 0x381   : > { %4715 = vrot.lane.b32.xlu1 %v12163_v7, %s9559_s29  ;;  %4721 = vrot.lane.b32.xlu0 %v12167_v63, %s9559_s29 }
 0x383   : > { %v4274_v33 = vpop.permute.xlu1 %4273  ;;  %v4276_v8 = vpop.permute.xlu0 %4275 }
 0x385   : > { %4723 = vrot.lane.b32.xlu1 %v12175_v38, %s9559_s29  ;;  %4503 = vrot.lane.b32.xlu0 %v11987_v9, %s14384_s27 }
 0x387   : > { %v4278_v12 = vpop.permute.xlu1 %4277  ;;  %v4280_v27 = vpop.permute.xlu0 %4279 }
 0x388   : > { %v4286_v25 = vsel %vm536_vm0, %v4272_v1, %v4280_v27  ;;  %v4285_v48 = vsel %vm536_vm0, %v4270_v35, %v4278_v12  ;;  %v4290_v45 = vsel %vm536_vm0, %v4280_v27, %v4272_v1  ;;  %v4289_v6 = vsel %vm536_vm0, %v4278_v12, %v4270_v35  ;;  %v12285_v35 = vld [vmem:[#allocation7 + $0xd0] sm:$0xff]  ;;  %v12288_v27 = vld [vmem:[#allocation7 + $0xc0] sm:$0xff] }
 0x389   : > { %4509 = vrot.lane.b32.xlu1 %v12013_v60, %s14384_s27  ;;  %4511 = vrot.lane.b32.xlu0 %v12015_v36, %s14384_s27  ;;  %v4304_v12 = vmul.f32 %v12251_v62, %v4286_v25  ;;  %v4303_v53 = vmul.f32 %v12285_v35, %v4290_v45  ;;  %v4301_v50 = vmul.f32 %v12288_v27, %v4289_v6 }
 0x38a   : > { %v4217_v45 = vsel %vm467_vm1, %v12217_v22, %v12229_v46 }
 0x38b   : > { %v4282_v11 = vpop.permute.xlu1 %4281  ;;  %v4284_v9 = vpop.permute.xlu0 %4283 }
 0x38c   : > { %v4287_v5 = vsel %vm536_vm0, %v4274_v33, %v4282_v11  ;;  %v4291_v36 = vsel %vm536_vm0, %v4282_v11, %v4274_v33  ;;  %v4288_v60 = vsel %vm536_vm0, %v4276_v8, %v4284_v9  ;;  %v4292_v58 = vsel %vm536_vm0, %v4284_v9, %v4276_v8  ;;  %v12295_v9 = vld [vmem:[#allocation7 + $0xb8] sm:$0xff] }
 0x38d   : > { %v4305_v44 = vmul.f32 %v12255_v55, %v4291_v36  ;;  %v4306_v1 = vmul.f32 %v12257_v19, %v4287_v5  ;;  %4649 = vrot.lane.b32.xlu1 %v12130_v49, %s14338_s13  ;;  %v4302_v33 = vmul.f32 %v12261_v20, %v4285_v48  ;;  %v4307_v11 = vmul.f32 %v12265_v30, %v4292_v58  ;;  %v12299_v36 = vld [vmem:[#allocation7 + $0xa8] sm:$0xff] }
 0x38e   : > { %v4308_v18 = vmul.f32 %v12267_v21, %v4288_v60  ;;  %4651 = vrot.lane.b32.xlu0 %v12141_v17, %s14338_s13  ;;  %v4220_v5 = vsel %vm467_vm1, %v4208_v24, %v4216_v29  ;;  %v4219_v8 = vsel %vm467_vm1, %v4206_v15, %v4214_v16  ;;  %v4224_v60 = vsel %vm467_vm1, %v4216_v29, %v4208_v24  ;;  %v12323_v24 = vld [vmem:[#allocation7 + $0x98] sm:$0xff]  ;;  %v12329_v29 = vld [vmem:[#allocation7 + $0x88] sm:$0xff] }
 0x38f   : > { %v12303_v25 = vpop.permute.xlu1 %4365  ;;  %v9159_v48 = vpack.c.bf16 %v4307_v11, %v4305_v44  ;;  %v12305_v61 = vpop.permute.xlu0 %4367  ;;  %v4240_v44 = vmul.f32 %v12295_v9, %v4220_v5  ;;  %v12318_v11 = vld [vmem:[#allocation7 + $0xa0] sm:$0xff]  ;;  %v9152_v15 = vpack.c.bf16 %v4304_v12, %v4302_v33  ;;  %v4218_v16 = vsel %vm467_vm1, %v12219_v39, %v12231_v34 }
 0x390   : > { %14394 = vst [vmem:[#allocation50_spill] sm:$0xff] %v12303_v25  ;;  %14395 = vst [vmem:[#allocation51_spill] sm:$0xff] %v12305_v61  ;;  %v9160_v58 = vpack.c.bf16 %v4308_v18, %v4306_v1  ;;  %v4238_v18 = vmul.f32 %v12299_v36, %v4219_v8  ;;  %v4221_v12 = vsel %vm467_vm1, %v12229_v46, %v12217_v22  ;;  %v12354_v61 = vld [vmem:[#allocation7 + $0x80] sm:$0xff]  ;;  %v12365_v46 = vld [vmem:[#allocation7 + $0x68] sm:$0xff] }
 0x391   : > { %4657 = vrot.lane.b32.xlu1 %v12144_v51, %s14338_s13  ;;  %v4239_v33 = vmul.f32 %v12315_v26, %v4224_v60  ;;  %v4237_v5 = vmul.f32 %v12318_v11, %v4223_v31  ;;  %v9151_v8 = vpack.c.bf16 %v4303_v53, %v4301_v50  ;;  %v4234_v22 = vmul.f32 %v12329_v29, %v4217_v45  ;;  %v12359_v53 = vld [vmem:[#allocation7 + $0x78] sm:$0xff]  ;;  %v12419_v25 = vld [vmem:[#allocation7 + $0x50] sm:$0xff] }
 0x392   : > { %4659 = vrot.lane.b32.xlu0 %v12151_v56, %s14338_s13  ;;  %7309 = vmatprep.subr.bf16.mxu1 %v9160_v58  ;;  %v12347_v58 = vld [vmem:[#allocation7 + $0x90] sm:$0xff]  ;;  %v9144_v31 = vpack.c.bf16 %v4240_v44, %v4238_v18  ;;  %v4152_v50 = vsel %vm398_vm2, %v12195_v59, %v12211_v23  ;;  %v4155_v44 = vsel %vm398_vm2, %v12209_v2, %v12193_v0 }
 0x393   : > { %7310 = vmatpush1.bf16.msra.mxu1 %v9159_v48  ;;  %v12335_v6 = vpop.permute.xlu1 %4369  ;;  %v12337_v1 = vpop.permute.xlu0 %4371  ;;  %v4222_v48 = vsel %vm467_vm1, %v12231_v34, %v12219_v39  ;;  %v4151_v39 = vsel %vm398_vm2, %v12193_v0, %v12209_v2  ;;  %v9143_v45 = vpack.c.bf16 %v4239_v33, %v4237_v5  ;;  %v4150_v33 = vsel %vm398_vm2, %v12187_v3, %v12203_v10  ;;  %v12401_v5 = vld [vmem:[#allocation7 + $0x48] sm:$0xff] }
 0x394   : > { %14396 = vst [vmem:[#allocation52_spill] sm:$0xff] %v12335_v6  ;;  %14397 = vst [vmem:[#allocation53_spill] sm:$0xff] %v12337_v1  ;;  %7311 = vmatprep.subr.bf16.mxu1 %v9152_v15  ;;  %v4236_v15 = vmul.f32 %v12323_v24, %v4218_v16  ;;  %v4235_v18 = vmul.f32 %v12347_v58, %v4222_v48  ;;  %v4233_v16 = vmul.f32 %v12354_v61, %v4221_v12  ;;  %v12383_v6 = vld [vmem:[#allocation7 + $0x70] sm:$0xff]  ;;  %v12395_v12 = vld [vmem:[#allocation7 + $0x58] sm:$0xff] }
 0x395   : > { %4645 = vrot.lane.b32.xlu1 %v12155_v40, %s14338_s13  ;;  %v4170_v0 = vmul.f32 %v12365_v46, %v4151_v39 }
 0x396   : > { %4647 = vrot.lane.b32.xlu0 %v12163_v7, %s14338_s13  ;;  %v9136_v2 = vpack.c.bf16 %v4236_v15, %v4234_v22  ;;  %v4153_v15 = vsel %vm398_vm2, %v12201_v52, %v12185_v13  ;;  %v9135_v39 = vpack.c.bf16 %v4235_v18, %v4233_v16  ;;  %v4087_v16 = vsel %vm329_vm3, %v12177_v32, %v12153_v37 }
 0x397   : > { %7312 = vmatpush1.bf16.msra.mxu1 %v9151_v8  ;;  %v12371_v34 = vpop.permute.xlu1 %4373  ;;  %v12373_v60 = vpop.permute.xlu0 %4375  ;;  %v4156_v8 = vsel %vm398_vm2, %v12211_v23, %v12195_v59  ;;  %v4149_v59 = vsel %vm398_vm2, %v12185_v13, %v12201_v52 }
 0x398   : > { %14398 = vst [vmem:[#allocation54_spill] sm:$0xff] %v12371_v34  ;;  %14399 = vst [vmem:[#allocation55_spill] sm:$0xff] %v12373_v60  ;;  %7313 = vmatprep.subr.bf16.mxu1 %v9144_v31  ;;  %v4172_v31 = vmul.f32 %v12359_v53, %v4152_v50  ;;  %v12390_v60 = vld [vmem:[#allocation7 + $0x60] sm:$0xff]  ;;  %v4171_v22 = vmul.f32 %v12383_v6, %v4156_v8  ;;  %v4166_v13 = vmul.f32 %v12401_v5, %v4149_v59  ;;  %v9378_v59 = vld [vmem:[#allocation7 + $0x38] sm:$0xff] }
 0x399   : > { %4653 = vrot.lane.b32.xlu1 %v12167_v63, %s14338_s13  ;;  %v4169_v50 = vmul.f32 %v12390_v60, %v4155_v44  ;;  %v4084_v44 = vsel %vm329_vm3, %v12157_v54, %v12179_v28 }
 0x39a   : > { %4655 = vrot.lane.b32.xlu0 %v12175_v38, %s14338_s13  ;;  %v9128_v52 = vpack.c.bf16 %v4172_v31, %v4170_v0 }
 0x39b   : > { %7314 = vmatpush1.bf16.msra.mxu1 %v9143_v45  ;;  %v12407_v23 = vpop.permute.xlu1 %4377  ;;  %v12409_v48 = vpop.permute.xlu0 %4379  ;;  %v4154_v45 = vsel %vm398_vm2, %v12203_v10, %v12187_v3  ;;  %v4083_v3 = vsel %vm329_vm3, %v12153_v37, %v12177_v32  ;;  %v9127_v0 = vpack.c.bf16 %v4171_v22, %v4169_v50  ;;  %v4082_v32 = vsel %vm329_vm3, %v12136_v57, %v12169_v14  ;;  %v9380_v50 = vld [vmem:[#allocation7 + $0x30] sm:$0xff] }
 0x39c   : > { %14400 = vst [vmem:[#allocation56_spill] sm:$0xff] %v12407_v23  ;;  %14401 = vst [vmem:[#allocation57_spill] sm:$0xff] %v12409_v48  ;;  %7315 = vmatprep.subr.bf16.mxu1 %v9136_v2  ;;  %v4168_v2 = vmul.f32 %v12395_v12, %v4150_v33  ;;  %v12426_v23 = vld [vmem:[#allocation7 + $0x40] sm:$0xff]  ;;  %v4167_v8 = vmul.f32 %v12419_v25, %v4154_v45  ;;  %v4088_v33 = vsel %vm329_vm3, %v12179_v28, %v12157_v54 }
 0x39d   : > { %5085 = vrot.lane.b32.xlu1 %v12130_v49, %s14384_s27  ;;  %v4165_v31 = vmul.f32 %v12426_v23, %v4153_v15  ;;  %v4081_v15 = vsel %vm329_vm3, %v12138_v47, %v12165_v4  ;;  %v4085_v22 = vsel %vm329_vm3, %v12165_v4, %v12138_v47  ;;  %v4103_v45 = vmul.f32 %v9380_v50, %v4088_v33  ;;  %v9384_v33 = vld [vmem:[#allocation7] sm:$0xff] }
 0x39e   : > { %5087 = vrot.lane.b32.xlu0 %v12141_v17, %s14384_s27  ;;  %v9120_v37 = vpack.c.bf16 %v4168_v2, %v4166_v13  ;;  %v9381_v2 = vld [vmem:[#allocation7 + $0x20] sm:$0xff] }
 0x39f   : > { %7316 = vmatpush1.bf16.msra.mxu1 %v9135_v39  ;;  %v12439_v10 = vpop.permute.xlu1 %4433  ;;  %v12441_v18 = vpop.permute.xlu0 %4435  ;;  %v4104_v39 = vmul.f32 %v9378_v59, %v4084_v44  ;;  %v4101_v13 = vmul.f32 %v9381_v2, %v4087_v16  ;;  %v9119_v44 = vpack.c.bf16 %v4167_v8, %v4165_v31  ;;  %v9383_v8 = vld [vmem:[#allocation7 + $0x10] sm:$0xff]  ;;  %v4598_v2 = vld [vmem:[#allocation7 + $0x228] sm:$0xff] }
 0x3a0   : > { %14402 = vst [vmem:[#allocation58_spill] sm:$0xff] %v12439_v10  ;;  %14403 = vst [vmem:[#allocation59_spill] sm:$0xff] %v12441_v18  ;;  %7317 = vmatprep.subr.bf16.mxu1 %v9128_v52  ;;  %v9379_v52 = vld [vmem:[#allocation7 + $0x28] sm:$0xff] }
 0x3a1   : > { %5093 = vrot.lane.b32.xlu1 %v12144_v51, %s14384_s27  ;;  %v4102_v34 = vmul.f32 %v9379_v52, %v4083_v3  ;;  %v4086_v3 = vsel %vm329_vm3, %v12169_v14, %v12136_v57  ;;  %v4098_v52 = vmul.f32 %v4081_v15, %v11830_v41  ;;  %v9111_v50 = vpack.c.bf16 %v4103_v45, %v4101_v13  ;;  %v4597_v45 = vld [vmem:[#allocation7 + $0x220] sm:$0xff] }
 0x3a2   : > { %5095 = vrot.lane.b32.xlu0 %v12151_v56, %s14384_s27  ;;  %v4099_v31 = vmul.f32 %v9383_v8, %v4086_v3  ;;  %v4599_v3 = vld [vmem:[#allocation7 + $0x230] sm:$0xff] }
 0x3a3   : > { %7318 = vmatpush1.bf16.msra.mxu1 %v9127_v0  ;;  %v12465_v54 = vpop.permute.xlu1 %4437  ;;  %v12467_v28 = vpop.permute.xlu0 %4439  ;;  %v9382_v0 = vld [vmem:[#allocation7 + $0x18] sm:$0xff]  ;;  %v9112_v47 = vpack.c.bf16 %v4104_v39, %v4102_v34 }
 0x3a4   : > { %7319 = vmatprep.subr.bf16.mxu1 %v9120_v37  ;;  %v4100_v59 = vmul.f32 %v9382_v0, %v4082_v32  ;;  %v4097_v37 = vmul.f32 %v9384_v33, %v4085_v22  ;;  %v4600_v0 = vld [vmem:[#allocation7 + $0x238] sm:$0xff] }
 0x3a5   : > { %5081 = vrot.lane.b32.xlu1 %v12155_v40, %s14384_s27 }
 0x3a6   : > { %5083 = vrot.lane.b32.xlu0 %v12163_v7, %s14384_s27  ;;  %v9104_v41 = vpack.c.bf16 %v4100_v59, %v4098_v52  ;;  %v9103_v34 = vpack.c.bf16 %v4099_v31, %v4097_v37  ;;  %v12516_v31 = vpop.f32.mrf.mxu1 }
 0x3a7   : > { %7320 = vmatpush1.bf16.msra.mxu1 %v9119_v44  ;;  %v12482_v4 = vpop.permute.xlu1 %4441  ;;  %v12484_v16 = vpop.permute.xlu0 %4443 }
 0x3a8   : > { %14404 = vst [vmem:[#allocation61_spill] sm:$0xff] %v12482_v4  ;;  %14405 = vst [vmem:[#allocation60_spill] sm:$0xff] %v12484_v16  ;;  %7321 = vmatprep.subr.bf16.mxu1 %v9112_v47  ;;  %v12522_v4 = vpop.f32.mrf.mxu1  ;;  %v12524_v16 = vpop.f32.mrf.mxu0 }
 0x3a9   : > { %5089 = vrot.lane.b32.xlu1 %v12167_v63, %s14384_s27 }
 0x3aa   : > { %5091 = vrot.lane.b32.xlu0 %v12175_v38, %s14384_s27 }
 0x3ab   : > { %7322 = vmatpush1.bf16.msra.mxu1 %v9111_v50  ;;  %v12490_v57 = vpop.permute.xlu1 %4445  ;;  %v12492_v14 = vpop.permute.xlu0 %4447 }
 0x3ac   : > { %7323 = vmatprep.subr.bf16.mxu1 %v9104_v41 }
 0x3ad   : > { %5017 = vrot.lane.b32.xlu1 %v12130_v49, %s14383_s7 }
 0x3ae   : > { %5019 = vrot.lane.b32.xlu0 %v12141_v17, %s14383_s7 }
 0x3af   : > { %7324 = vmatpush1.bf16.msra.mxu1 %v9103_v34  ;;  %v12498_v39 = vpop.permute.xlu1 %4501  ;;  %v4574_v32 = vpop.permute.xlu0 %4573 }
 0x3b1   : > { %5025 = vrot.lane.b32.xlu1 %v12144_v51, %s14383_s7 }
 0x3b2   : > { %5027 = vrot.lane.b32.xlu0 %v12151_v56, %s14383_s7 }
 0x3b3   : > { %v4576_v15 = vpop.permute.xlu1 %4575  ;;  %v4582_v22 = vpop.permute.xlu0 %4581 }
 0x3b4   : > { %v4587_v13 = vsel %vm840_vm7, %v4574_v32, %v4582_v22  ;;  %v4591_v44 = vsel %vm840_vm7, %v4582_v22, %v4574_v32 }
 0x3b5   : > { %5013 = vrot.lane.b32.xlu1 %v12155_v40, %s14383_s7  ;;  %v4605_v33 = vmul.f32 %v4597_v45, %v4587_v13  ;;  %v4606_v37 = vmul.f32 %v4598_v2, %v4591_v44  ;;  %v4594_v45 = vld [vmem:[#allocation7 + $0x208] sm:$0xff]  ;;  %v4595_v44 = vld [vmem:[#allocation7 + $0x210] sm:$0xff] }
 0x3b6   : > { %5015 = vrot.lane.b32.xlu0 %v12163_v7, %s14383_s7 }
 0x3b7   : > { %v4584_v59 = vpop.permute.xlu1 %4583  ;;  %v4570_v52 = vpop.permute.xlu0 %4569 }
 0x3b8   : > { %v4588_v47 = vsel %vm840_vm7, %v4576_v15, %v4584_v59  ;;  %v4592_v8 = vsel %vm840_vm7, %v4584_v59, %v4576_v15  ;;  %v4593_v15 = vld [vmem:[#allocation7 + $0x200] sm:$0xff] }
 0x3b9   : > { %v4607_v50 = vmul.f32 %v4599_v3, %v4588_v47  ;;  %v4608_v41 = vmul.f32 %v4600_v0, %v4592_v8  ;;  %5021 = vrot.lane.b32.xlu1 %v12167_v63, %s14383_s7  ;;  %v4596_v3 = vld [vmem:[#allocation7 + $0x218] sm:$0xff] }
 0x3ba   : > { %5023 = vrot.lane.b32.xlu0 %v12175_v38, %s14383_s7 }
 0x3bb   : > { %v9239_v34 = vpack.c.bf16 %v4607_v50, %v4605_v33  ;;  %v4572_v32 = vpop.permute.xlu1 %4571  ;;  %v9240_v22 = vpack.c.bf16 %v4608_v41, %v4606_v37  ;;  %v4578_v10 = vpop.permute.xlu0 %4577 }
 0x3bc   : > { %v4585_v2 = vsel %vm840_vm7, %v4570_v52, %v4578_v10  ;;  %v4589_v13 = vsel %vm840_vm7, %v4578_v10, %v4570_v52  ;;  %v12538_v33 = vpop.f32.mrf.mxu1  ;;  %v12540_v37 = vpop.f32.mrf.mxu0 }
 0x3bd   : > { %4949 = vrot.lane.b32.xlu1 %v12130_v49, %s9562_s30  ;;  %7374 = vmatprep.subr.bf16.mxu0 %v9240_v22  ;;  %v4601_v50 = vmul.f32 %v4593_v15, %v4585_v2  ;;  %v4602_v10 = vmul.f32 %v4594_v45, %v4589_v13  ;;  %v9338_v45 = vld [vmem:[#allocation9 + $0x8] ss:$12 sps:$4 sm:$0xff]  }
 0x3be   : > { %4951 = vrot.lane.b32.xlu0 %v12141_v17, %s9562_s30  ;;  %7375 = vmatpush1.bf16.msra.mxu0 %v9239_v34  ;;  %v12546_v1 = vpop.f32.mrf.mxu1 }
 0x3bf   : > { %v4580_v0 = vpop.permute.xlu1 %4579  ;;  %v4854_v59 = vpop.permute.xlu0 %4853 }
 0x3c0   : > { %v4586_v47 = vsel %vm840_vm7, %v4572_v32, %v4580_v0  ;;  %v4590_v8 = vsel %vm840_vm7, %v4580_v0, %v4572_v32  ;;  %v12548_v32 = vpop.f32.mrf.mxu0 }
 0x3c1   : > { %v4603_v52 = vmul.f32 %v4595_v44, %v4586_v47  ;;  %v4604_v41 = vmul.f32 %v4596_v3, %v4590_v8  ;;  %4957 = vrot.lane.b32.xlu1 %v12144_v51, %s9562_s30  ;;  %v12563_v8 = vld [vmem:[#allocation9 + $0x4] ss:$12 sps:$4 sm:$0xff]  }
 0x3c2   : > { %4959 = vrot.lane.b32.xlu0 %v12151_v56, %s9562_s30  ;;  %7341 = vmatprep.mubr.bf16.mxu1 %v12563_v8 }
 0x3c3   : > { %v9231_v34 = vpack.c.bf16 %v4603_v52, %v4601_v50  ;;  %v4856_v22 = vpop.permute.xlu1 %4855  ;;  %v9232_v18 = vpack.c.bf16 %v4604_v41, %v4602_v10  ;;  %v4862_v48 = vpop.permute.xlu0 %4861 }
 0x3c4   : > { %v4871_v15 = vsel %vm536_vm0, %v4862_v48, %v4854_v59  ;;  %v4867_v2 = vsel %vm536_vm0, %v4854_v59, %v4862_v48  ;;  %v12565_v50 = vpop.f32.mrf.mxu0 }
 0x3c5   : > { %4945 = vrot.lane.b32.xlu1 %v12155_v40, %s9562_s30  ;;  %7376 = vmatprep.subr.bf16.mxu0 %v9232_v18  ;;  %v4885_v44 = vmul.f32 %v4871_v15, %v12255_v55  ;;  %v3825_v18 = vpop.f32.mrf.mxu1  ;;  %v4886_v48 = vmul.f32 %v4867_v2, %v12257_v19 }
 0x3c6   : > { %4947 = vrot.lane.b32.xlu0 %v12163_v7, %s9562_s30  ;;  %7377 = vmatpush1.bf16.msra.mxu0 %v9231_v34 }
 0x3c7   : > { %v4864_v13 = vpop.permute.xlu1 %4863  ;;  %v4850_v3 = vpop.permute.xlu0 %4849 }
 0x3c8   : > { %v4868_v0 = vsel %vm536_vm0, %v4856_v22, %v4864_v13  ;;  %v4872_v47 = vsel %vm536_vm0, %v4864_v13, %v4856_v22  ;;  %v3827_v34 = vpop.f32.mrf.mxu1 }
 0x3c9   : > { %v4887_v59 = vmul.f32 %v4872_v47, %v12265_v30  ;;  %v4888_v10 = vmul.f32 %v4868_v0, %v12267_v21  ;;  %4953 = vrot.lane.b32.xlu1 %v12167_v63, %s9562_s30  ;;  %8605 = vmatmul.mubr.msk.bf16.vlgmr.msra.gmra.mxu0 %vm3562_vm8, %v9338_v45  ;;  %v3878_v30 = vpop.f32.mrf.mxu0 }
 0x3ca   : > { %4955 = vrot.lane.b32.xlu0 %v12175_v38, %s9562_s30  ;;  %7404 = vmatprep.mubr.bf16.mxu0 %v14332_v42 }
 0x3cb   : > { %v9161_v55 = vpack.c.bf16 %v4887_v59, %v4885_v44  ;;  %v4852_v52 = vpop.permute.xlu1 %4851  ;;  %v9162_v41 = vpack.c.bf16 %v4888_v10, %v4886_v48  ;;  %v4858_v19 = vpop.permute.xlu0 %4857  ;;  %v14406_v10 = vld [vmem:[#allocation32_spill] sm:$0xff] }
 0x3cc   : > { %v4865_v21 = vsel %vm536_vm0, %v4850_v3, %v4858_v19  ;;  %v4869_v22 = vsel %vm536_vm0, %v4858_v19, %v4850_v3  ;;  %v3829_v44 = vpop.f32.mrf.mxu1  ;;  %v3880_v0 = vpop.f32.mrf.mxu0 }
 0x3cd   : > { %5153 = vrot.lane.b32.xlu1 %v12130_v49, %s14385_s16  ;;  %7415 = vmatprep.subr.bf16.mxu0 %v9162_v41  ;;  %v4881_v47 = vmul.f32 %v4869_v22, %v12288_v27  ;;  %v4882_v48 = vmul.f32 %v4865_v21, %v12261_v20  ;;  %v12842_v49 = vld [vmem:[#allocation7 + $0x180] sm:$0xff] }
 0x3ce   : > { %5155 = vrot.lane.b32.xlu0 %v12141_v17, %s14385_s16  ;;  %7416 = vmatpush1.bf16.msra.mxu0 %v9161_v55  ;;  %v3826_v55 = vadd.f32 %v3825_v18, %v14406_v10  ;;  %v3831_v22 = vpop.f32.mrf.mxu1  ;;  %v3882_v20 = vpop.f32.mrf.mxu0  ;;  %v3828_v18 = vadd.f32 %v3827_v34, %v14406_v10  ;;  %14430 = vst [vmem:[#allocation18_spill] sm:$0xff] %v12842_v49 }
 0x3cf   : > { %v4860_v15 = vpop.permute.xlu1 %4859  ;;  %v4786_v45 = vpop.permute.xlu0 %4785 }
 0x3d0   : > { %v4866_v2 = vsel %vm536_vm0, %v4852_v52, %v4860_v15  ;;  %v4870_v13 = vsel %vm536_vm0, %v4860_v15, %v4852_v52  ;;  %v14407_v15 = vld [vmem:[#allocation34_spill] sm:$0xff]  ;;  %v3879_v21 = vadd.f32 %v3878_v30, %v3826_v55 }
 0x3d1   : > { %v4883_v3 = vmul.f32 %v4870_v13, %v12285_v35  ;;  %v4884_v59 = vmul.f32 %v4866_v2, %v12251_v62  ;;  %5161 = vrot.lane.b32.xlu1 %v12144_v51, %s14385_s16  ;;  %v3830_v17 = vadd.f32 %v3829_v44, %v14407_v15  ;;  %v3832_v13 = vadd.f32 %v3831_v22, %v14407_v15 }
 0x3d2   : > { %5163 = vrot.lane.b32.xlu0 %v12151_v56, %s14385_s16  ;;  %v12623_v55 = vmax.f32 %v3879_v21, 0.0 }
 0x3d3   : > { %v9153_v41 = vpack.c.bf16 %v4883_v3, %v4881_v47  ;;  %v4788_v52 = vpop.permute.xlu1 %4787  ;;  %v9154_v19 = vpack.c.bf16 %v4884_v59, %v4882_v48  ;;  %v4794_v27 = vpop.permute.xlu0 %4793  ;;  %v3883_v44 = vadd.f32 %v3882_v20, %v3830_v17  ;;  %v14408_v17 = vld [vmem:[#allocation31_spill] sm:$0xff] }
 0x3d4   : > { %v4799_v62 = vsel %vm467_vm1, %v4786_v45, %v4794_v27  ;;  %v4803_v35 = vsel %vm467_vm1, %v4794_v27, %v4786_v45  ;;  %v3884_v59 = vpop.f32.mrf.mxu0  ;;  %v3816_v30 = vadd.f32 %v12516_v31, %v14408_v17 }
 0x3d5   : > { %5149 = vrot.lane.b32.xlu1 %v12155_v40, %s14385_s16  ;;  %7417 = vmatprep.subr.bf16.mxu0 %v9154_v19  ;;  %v4817_v45 = vmul.f32 %v4803_v35, %v12318_v11  ;;  %v4818_v19 = vmul.f32 %v4799_v62, %v12299_v36  ;;  %v14409_v36 = vld [vmem:[#allocation30_spill] sm:$0xff]  ;;  %v12627_v20 = vmax.f32 %v3883_v44, 0.0 }
 0x3d6   : > { %5151 = vrot.lane.b32.xlu0 %v12163_v7, %s14385_s16  ;;  %7418 = vmatpush1.bf16.msra.mxu0 %v9153_v41  ;;  %v3869_v35 = vadd.f32 %v12524_v16, %v3816_v30  ;;  %v12830_v7 = vld [vmem:[#allocation7 + $0x188] sm:$0xff] }
 0x3d7   : > { %v4796_v2 = vpop.permute.xlu1 %4795  ;;  %v4782_v47 = vpop.permute.xlu0 %4781  ;;  %14426 = vst [vmem:[#allocation69_spill] sm:$0xff] %v12830_v7 }
 0x3d8   : > { %v4800_v48 = vsel %vm467_vm1, %v4788_v52, %v4796_v2  ;;  %v4804_v3 = vsel %vm467_vm1, %v4796_v2, %v4788_v52  ;;  %v3881_v52 = vadd.f32 %v3880_v0, %v3828_v18  ;;  %v3822_v18 = vadd.f32 %v12546_v1, %v14409_v36  ;;  %v12644_v2 = vpop.f32.mrf.mxu0 }
 0x3d9   : > { %v4819_v41 = vmul.f32 %v4804_v3, %v12315_v26  ;;  %v4820_v34 = vmul.f32 %v4800_v48, %v12295_v9  ;;  %5157 = vrot.lane.b32.xlu1 %v12167_v63, %s14385_s16  ;;  %v3820_v26 = vadd.f32 %v12538_v33, %v14409_v36  ;;  %v3885_v9 = vadd.f32 %v3884_v59, %v3832_v13  ;;  %v12840_v63 = vld [vmem:[#allocation7 + $0x178] sm:$0xff] }
 0x3da   : > { %5159 = vrot.lane.b32.xlu0 %v12175_v38, %s14385_s16  ;;  %v3818_v33 = vadd.f32 %v12522_v4, %v14408_v17  ;;  %v12642_v21 = vmax.f32 %v3881_v52, 0.0  ;;  %14429 = vst [vmem:[#allocation14_spill] sm:$0xff] %v12840_v63 }
 0x3db   : > { %v9145_v27 = vpack.c.bf16 %v4819_v41, %v4817_v45  ;;  %v4784_v11 = vpop.permute.xlu1 %4783  ;;  %v9146_v22 = vpack.c.bf16 %v4820_v34, %v4818_v19  ;;  %v4790_v62 = vpop.permute.xlu0 %4789  ;;  %v3873_v44 = vadd.f32 %v12548_v32, %v3820_v26  ;;  %v12661_v32 = vld [vmem:[#allocation9 + $0x20] ss:$12 sps:$4 sm:$0xff]   ;;  %v12663_v19 = vmax.f32 %v3869_v35, 0.0 }
 0x3dc   : > { %v4797_v31 = vsel %vm467_vm1, %v4782_v47, %v4790_v62  ;;  %v4801_v0 = vsel %vm467_vm1, %v4790_v62, %v4782_v47  ;;  %v12647_v47 = vmax.f32 %v3885_v9, 0.0  ;;  %14410 = vst [vmem:[#allocation62_spill] sm:$0xff] %v12661_v32  ;;  %v3871_v41 = vadd.f32 %v12540_v37, %v3818_v33  ;;  %v12666_v34 = vpop.f32.mrf.mxu0  ;;  %8606 = vmatmul.mubr.msk.bf16.gmra.mxu0 %vm3562_vm8, %v12661_v32  ;;  %v14422_v32 = vld [vmem:[#allocation57_spill] sm:$0xff] }
 0x3dd   : > { %5433 = vrot.lane.b32.xlu1 %v12623_v55, %s9561_s19  ;;  %7419 = vmatprep.subr.bf16.mxu0 %v9146_v22  ;;  %v4813_v16 = vmul.f32 %v4801_v0, %v12354_v61  ;;  %v4814_v1 = vmul.f32 %v4797_v31, %v12329_v29 }
 0x3de   : > { %5435 = vrot.lane.b32.xlu0 %v12627_v20, %s9561_s19  ;;  %7420 = vmatpush1.bf16.msra.mxu0 %v9145_v27 }
 0x3df   : > { %v4792_v13 = vpop.permute.xlu1 %4791  ;;  %v4718_v48 = vpop.permute.xlu0 %4717  ;;  %7447 = vmatprep.mubr.bf16.mxu0 %v12563_v8 }
 0x3e0   : > { %v4798_v3 = vsel %vm467_vm1, %v4784_v11, %v4792_v13  ;;  %v4802_v4 = vsel %vm467_vm1, %v4792_v13, %v4784_v11  ;;  %v12681_v11 = vmax.f32 %v3871_v41, 0.0 }
 0x3e1   : > { %v4815_v59 = vmul.f32 %v4802_v4, %v12347_v58  ;;  %v4816_v45 = vmul.f32 %v4798_v3, %v12323_v24  ;;  %5441 = vrot.lane.b32.xlu1 %v12642_v21, %s9561_s19  ;;  %v12668_v58 = vmax.f32 %v3873_v44, 0.0  ;;  %v3875_v24 = vadd.f32 %v12565_v50, %v3822_v18  ;;  %v12683_v50 = vpop.f32.mrf.mxu0  ;;  %v12702_v4 = vpop.f32.mrf.mxu1 }
 0x3e2   : > { %5443 = vrot.lane.b32.xlu0 %v12647_v47, %s9561_s19 }
 0x3e3   : > { %v9137_v61 = vpack.c.bf16 %v4815_v59, %v4813_v16  ;;  %v4720_v29 = vpop.permute.xlu1 %4719  ;;  %v9138_v30 = vpack.c.bf16 %v4816_v45, %v4814_v1  ;;  %v4726_v52 = vpop.permute.xlu0 %4725  ;;  %v12686_v26 = vmax.f32 %v3875_v24, 0.0  ;;  %v12716_v16 = vld [vmem:[#allocation7 + $0x1f0] sm:$0xff]  ;;  %v12718_v1 = vld [vmem:[#allocation7 + $0x1f8] sm:$0xff] }
 0x3e4   : > { %v4731_v37 = vsel %vm398_vm2, %v4718_v48, %v4726_v52  ;;  %v4735_v27 = vsel %vm398_vm2, %v4726_v52, %v4718_v48  ;;  %v12700_v8 = vpop.f32.mrf.mxu0 }
 0x3e5   : > { %5429 = vrot.lane.b32.xlu1 %v12663_v19, %s9561_s19  ;;  %7421 = vmatprep.subr.bf16.mxu0 %v9138_v30  ;;  %v4749_v0 = vmul.f32 %v4735_v27, %v12390_v60  ;;  %v4750_v33 = vmul.f32 %v4731_v37, %v12365_v46  ;;  %v12704_v60 = vld [vmem:[#allocation7 + $0x1e0] sm:$0xff]  ;;  %v12724_v30 = vpop.f32.mrf.mxu1 }
 0x3e6   : > { %5431 = vrot.lane.b32.xlu0 %v12668_v58, %s9561_s19  ;;  %7422 = vmatpush1.bf16.msra.mxu0 %v9137_v61  ;;  %v3931_v59 = vpop.f32.mrf.mxu0  ;;  %14411 = vst [vmem:[#allocation64_spill] sm:$0xff] %v12724_v30  ;;  %v14438_v30 = vld [vmem:[#allocation55_spill] sm:$0xff] }
 0x3e7   : > { %v4728_v22 = vpop.permute.xlu1 %4727  ;;  %v4506_v9 = vpop.permute.xlu0 %4505 }
 0x3e8   : > { %v4732_v62 = vsel %vm398_vm2, %v4720_v29, %v4728_v22  ;;  %v4736_v31 = vsel %vm398_vm2, %v4728_v22, %v4720_v29  ;;  %v12734_v22 = vpop.f32.mrf.mxu0 }
 0x3e9   : > { %v4751_v35 = vmul.f32 %v4736_v31, %v12383_v6  ;;  %v4752_v18 = vmul.f32 %v4732_v62, %v12359_v53  ;;  %5437 = vrot.lane.b32.xlu1 %v12681_v11, %s9561_s19  ;;  %v12708_v6 = vld [vmem:[#allocation7 + $0x1e8] sm:$0xff] }
 0x3ea   : > { %5439 = vrot.lane.b32.xlu0 %v12686_v26, %s9561_s19 }
 0x3eb   : > { %v9129_v13 = vpack.c.bf16 %v4751_v35, %v4749_v0  ;;  %v4508_v44 = vpop.permute.xlu1 %4507  ;;  %v9130_v48 = vpack.c.bf16 %v4752_v18, %v4750_v33  ;;  %v4514_v3 = vpop.permute.xlu0 %4513 }
 0x3ec   : > { %v4519_v53 = vsel %vm771_vm4, %v4506_v9, %v4514_v3  ;;  %v4523_v46 = vsel %vm771_vm4, %v4514_v3, %v4506_v9  ;;  %v12736_v33 = vpop.f32.mrf.mxu1 }
 0x3ed   : > { %5733 = vrot.lane.b32.xlu1 %v12623_v55, %s14385_s16  ;;  %7423 = vmatprep.subr.bf16.mxu0 %v9130_v48  ;;  %v4537_v24 = vmul.f32 %v12704_v60, %v4519_v53  ;;  %v4538_v52 = vmul.f32 %v12708_v6, %v4523_v46  ;;  %v4455_v48 = vsel %vm702_vm5, %v12490_v57, %v12465_v54 }
 0x3ee   : > { %5735 = vrot.lane.b32.xlu0 %v12627_v20, %s14385_s16  ;;  %7424 = vmatpush1.bf16.msra.mxu0 %v9129_v13  ;;  %v3935_v13 = vpop.f32.mrf.mxu0 }
 0x3ef   : > { %v4516_v45 = vpop.permute.xlu1 %4515  ;;  %v4714_v41 = vpop.permute.xlu0 %4713 }
 0x3f0   : > { %v4520_v61 = vsel %vm771_vm4, %v4508_v44, %v4516_v45  ;;  %v4524_v29 = vsel %vm771_vm4, %v4516_v45, %v4508_v44  ;;  %v12754_v45 = vpop.f32.mrf.mxu1 }
 0x3f1   : > { %v4539_v37 = vmul.f32 %v12716_v16, %v4520_v61  ;;  %v4540_v27 = vmul.f32 %v12718_v1, %v4524_v29  ;;  %5741 = vrot.lane.b32.xlu1 %v12642_v21, %s14385_s16  ;;  %14412 = vst [vmem:[#allocation63_spill] sm:$0xff] %v12754_v45  ;;  %v14437_v45 = vld [vmem:[#allocation51_spill] sm:$0xff] }
 0x3f2   : > { %5743 = vrot.lane.b32.xlu0 %v12647_v47, %s14385_s16 }
 0x3f3   : > { %v9223_v9 = vpack.c.bf16 %v4539_v37, %v4537_v24  ;;  %v4716_v62 = vpop.permute.xlu1 %4715  ;;  %v9224_v31 = vpack.c.bf16 %v4540_v27, %v4538_v52  ;;  %v4722_v0 = vpop.permute.xlu0 %4721  ;;  %v12765_v37 = vadd.f32 %v3931_v59, %v14406_v10  ;;  %v12768_v27 = vadd.f32 %v3935_v13, %v14407_v15 }
 0x3f4   : > { %v4729_v35 = vsel %vm398_vm2, %v4714_v41, %v4722_v0  ;;  %v4733_v18 = vsel %vm398_vm2, %v4722_v0, %v4714_v41  ;;  %v12756_v41 = vld [vmem:[#allocation7 + $0x1a8] sm:$0xff] }
 0x3f5   : > { %5365 = vrot.lane.b32.xlu1 %v12623_v55, %s9560_s17  ;;  %7325 = vmatprep.subr.bf16.mxu1 %v9224_v31  ;;  %14413 = vst [vmem:[#allocation65_spill] sm:$0xff] %v12756_v41  ;;  %v4745_v61 = vmul.f32 %v4733_v18, %v12426_v23  ;;  %v4746_v29 = vmul.f32 %v4729_v35, %v12401_v5  ;;  %v12774_v23 = vld [vmem:[#allocation7 + $0x1c8] sm:$0xff]  ;;  %v12776_v5 = vld [vmem:[#allocation7 + $0x1b8] sm:$0xff] }
 0x3f6   : > { %5367 = vrot.lane.b32.xlu0 %v12627_v20, %s9560_s17  ;;  %7326 = vmatpush2.bf16.msra.mxu1 %v9223_v9  ;;  %v12772_v9 = vld [vmem:[#allocation7 + $0x1c0] sm:$0xff]  ;;  %14415 = vst [vmem:[#allocation67_spill] sm:$0xff] %v12774_v23  ;;  %14416 = vst [vmem:[#allocation68_spill] sm:$0xff] %v12776_v5  ;;  %v12788_v31 = vld [vmem:[#allocation7 + $0x1d8] sm:$0xff]  ;;  %v4452_v18 = vsel %vm702_vm5, %v12467_v28, %v12492_v14  ;;  %v4470_v13 = vmul.f32 %v12756_v41, %v4455_v48 }
 0x3f7   : > { %v4724_v44 = vpop.permute.xlu1 %4723  ;;  %v4504_v3 = vpop.permute.xlu0 %4503  ;;  %14414 = vst [vmem:[#allocation66_spill] sm:$0xff] %v12772_v9  ;;  %14418 = vst [vmem:[#allocation71_spill] sm:$0xff] %v12788_v31 }
 0x3f8   : > { %v4730_v53 = vsel %vm398_vm2, %v4716_v62, %v4724_v44  ;;  %v4734_v46 = vsel %vm398_vm2, %v4724_v44, %v4716_v62  ;;  %v12786_v62 = vld [vmem:[#allocation7 + $0x1d0] sm:$0xff] }
 0x3f9   : > { %v4747_v24 = vmul.f32 %v4734_v46, %v12419_v25  ;;  %v4748_v52 = vmul.f32 %v4730_v53, %v12395_v12  ;;  %5373 = vrot.lane.b32.xlu1 %v12642_v21, %s9560_s17  ;;  %v4456_v25 = vsel %vm702_vm5, %v12492_v14, %v12467_v28  ;;  %v4451_v12 = vsel %vm702_vm5, %v12465_v54, %v12490_v57  ;;  %v12801_v57 = vpop.f32.mrf.mxu1  ;;  %v12803_v46 = vld [vmem:[#allocation7 + $0x1b0] sm:$0xff] }
 0x3fa   : > { %5375 = vrot.lane.b32.xlu0 %v12647_v47, %s9560_s17  ;;  %14417 = vst [vmem:[#allocation70_spill] sm:$0xff] %v12786_v62  ;;  %14419 = vst [vmem:[#allocation73_spill] sm:$0xff] %v12803_v46  ;;  %v4471_v56 = vmul.f32 %v12803_v46, %v4452_v18 }
 0x3fb   : > { %v9121_v59 = vpack.c.bf16 %v4747_v24, %v4745_v61  ;;  %v4510_v0 = vpop.permute.xlu1 %4509  ;;  %v9122_v35 = vpack.c.bf16 %v4748_v52, %v4746_v29  ;;  %v4512_v44 = vpop.permute.xlu0 %4511  ;;  %v12805_v61 = vld [vmem:[#allocation7 + $0x1a0] sm:$0xff] }
 0x3fc   : > { %v4517_v53 = vsel %vm771_vm4, %v12498_v39, %v4510_v0  ;;  %v4521_v54 = vsel %vm771_vm4, %v4510_v0, %v12498_v39  ;;  %14420 = vst [vmem:[#allocation72_spill] sm:$0xff] %v12805_v61  ;;  %v4518_v28 = vsel %vm771_vm4, %v4504_v3, %v4512_v44  ;;  %v4522_v14 = vsel %vm771_vm4, %v4512_v44, %v4504_v3  ;;  %v14421_v0 = vld [vmem:[#allocation53_spill] sm:$0xff]  ;;  %v12824_v44 = vld [vmem:[#allocation7 + $0x198] sm:$0xff]  ;;  %v12858_v46 = vpop.f32.mrf.mxu1 }
 0x3fd   : > { %v4533_v48 = vmul.f32 %v12772_v9, %v4517_v53  ;;  %v4534_v29 = vmul.f32 %v12774_v23, %v4521_v54  ;;  %5729 = vrot.lane.b32.xlu1 %v12663_v19, %s14385_s16  ;;  %v4472_v39 = vmul.f32 %v12776_v5, %v4456_v25  ;;  %v4535_v24 = vmul.f32 %v12786_v62, %v4518_v28  ;;  %v14424_v53 = vld [vmem:[#allocation59_spill] sm:$0xff]  ;;  %v14425_v54 = vld [vmem:[#allocation60_spill] sm:$0xff]  ;;  %v14427_v28 = vld [vmem:[#allocation61_spill] sm:$0xff] }
 0x3fe   : > { %v4536_v52 = vmul.f32 %v12788_v31, %v4522_v14  ;;  %5731 = vrot.lane.b32.xlu0 %v12668_v58, %s14385_s16  ;;  %7425 = vmatprep.subr.bf16.mxu0 %v9122_v35  ;;  %v4388_v3 = vsel %vm633_vm6, %v14422_v32, %v14421_v0  ;;  %14423 = vst [vmem:[#allocation74_spill] sm:$0xff] %v12824_v44  ;;  %v14428_v14 = vld [vmem:[#allocation58_spill] sm:$0xff] }
 0x3ff   : > { %v4454_v25 = vsel %vm702_vm5, %v14425_v54, %v14424_v53  ;;  %v4449_v40 = vsel %vm702_vm5, %v14428_v14, %v14427_v28  ;;  %v4453_v35 = vsel %vm702_vm5, %v14427_v28, %v14428_v14  ;;  %7426 = vmatpush1.bf16.msra.mxu0 %v9121_v59  ;;  %v4650_v38 = vpop.permute.xlu1 %4649  ;;  %v4469_v51 = vmul.f32 %v12805_v61, %v4451_v12  ;;  %v14431_v31 = vld [vmem:[#allocation54_spill] sm:$0xff]  ;;  %v14433_v28 = vld [vmem:[#allocation56_spill] sm:$0xff] }
 0x400   : > { %v9215_v42 = vpack.c.bf16 %v4535_v24, %v4533_v48  ;;  %v4652_v5 = vpop.permute.xlu0 %4651  ;;  %v9216_v41 = vpack.c.bf16 %v4536_v52, %v4534_v29  ;;  %v14432_v62 = vld [vmem:[#allocation50_spill] sm:$0xff]  ;;  %v14434_v14 = vld [vmem:[#allocation52_spill] sm:$0xff]  ;;  %v4450_v48 = vsel %vm702_vm5, %v14424_v53, %v14425_v54  ;;  %v4468_v29 = vmul.f32 %v12824_v44, %v4454_v25  ;;  %v4674_v52 = vld [vmem:[#allocation7 + $0x28] sm:$0xff] }
 0x401   : > { %v4381_v23 = vsel %vm633_vm6, %v14432_v62, %v14431_v31  ;;  %v4385_v59 = vsel %vm633_vm6, %v14431_v31, %v14432_v62  ;;  %v4383_v18 = vsel %vm633_vm6, %v14434_v14, %v14433_v28  ;;  %v12860_v12 = vld [vmem:[#allocation7 + $0x190] sm:$0xff]  ;;  %5737 = vrot.lane.b32.xlu1 %v12681_v11, %s14385_s16  ;;  %v4466_v62 = vmul.f32 %v12830_v7, %v4453_v35  ;;  %v4673_v24 = vld [vmem:[#allocation7 + $0x20] sm:$0xff]  ;;  %v12879_v54 = vld [vmem:[#allocation7 + $0x168] sm:$0xff] }
 0x402   : > { %14435 = vst [vmem:[#allocation17_spill] sm:$0xff] %v12860_v12  ;;  %5739 = vrot.lane.b32.xlu0 %v12686_v26, %s14385_s16  ;;  %7327 = vmatprep.subr.bf16.mxu1 %v9216_v41  ;;  %v9208_v31 = vpack.c.bf16 %v4472_v39, %v4470_v13  ;;  %v4384_v61 = vsel %vm633_vm6, %v14421_v0, %v14422_v32  ;;  %v4675_v13 = vld [vmem:[#allocation7 + $0x30] sm:$0xff]  ;;  %v4676_v39 = vld [vmem:[#allocation7 + $0x38] sm:$0xff]  ;;  %v12888_v7 = vld [vmem:[#allocation7 + $0x160] sm:$0xff] }
 0x403   : > { %v12877_v53 = vmul.f32 %v12840_v63, %v4388_v3  ;;  %v4387_v25 = vsel %vm633_vm6, %v14433_v28, %v14434_v14  ;;  %v4465_v41 = vmul.f32 %v12842_v49, %v4449_v40  ;;  %7328 = vmatpush2.bf16.msra.mxu1 %v9215_v42  ;;  %v4658_v35 = vpop.permute.xlu1 %4657  ;;  %v12886_v44 = vld [vmem:[#allocation7 + $0x170] sm:$0xff]  ;;  %v4467_v32 = vmul.f32 %v12860_v12, %v4450_v48  ;;  %v3988_v40 = vpop.f32.mrf.mxu1 }
 0x404   : > { %14436 = vst [vmem:[#allocation22_spill] sm:$0xff] %v12886_v44  ;;  %v9207_v0 = vpack.c.bf16 %v4471_v56, %v4469_v51  ;;  %v4660_v3 = vpop.permute.xlu0 %4659  ;;  %7329 = vmatprep.subr.bf16.mxu1 %v9208_v31  ;;  %v4663_v63 = vsel %vm329_vm3, %v4650_v38, %v4658_v35  ;;  %v4667_v28 = vsel %vm329_vm3, %v4658_v35, %v4650_v38  ;;  %v4389_v51 = vld [vmem:[#allocation7 + $0x140] sm:$0xff]  ;;  %v4390_v56 = vld [vmem:[#allocation7 + $0x148] sm:$0xff]  ;;  %v4392_v35 = vld [vmem:[#allocation7 + $0x158] sm:$0xff] }
 0x405   : > { %v4664_v42 = vsel %vm329_vm3, %v4652_v5, %v4660_v3  ;;  %v4668_v14 = vsel %vm329_vm3, %v4660_v3, %v4652_v5  ;;  %v4681_v49 = vmul.f32 %v4673_v24, %v4667_v28  ;;  %v4682_v9 = vmul.f32 %v4674_v52, %v4663_v63  ;;  %5361 = vrot.lane.b32.xlu1 %v12663_v19, %s9560_s17  ;;  %v3937_v63 = vpop.f32.mrf.mxu0 }
 0x406   : > { %v4402_v48 = vmul.f32 %v12879_v54, %v4387_v25  ;;  %v4683_v31 = vmul.f32 %v4675_v13, %v4668_v14  ;;  %v4684_v12 = vmul.f32 %v4676_v39, %v4664_v42  ;;  %5363 = vrot.lane.b32.xlu0 %v12668_v58, %s9560_s17  ;;  %v9200_v38 = vpack.c.bf16 %v4468_v29, %v4466_v62  ;;  %v4391_v39 = vld [vmem:[#allocation7 + $0x150] sm:$0xff] }
 0x407   : > { %v4386_v5 = vsel %vm633_vm6, %v14438_v30, %v14437_v45  ;;  %v3985_v24 = vadd.f32 %v12801_v57, %v12765_v37  ;;  %v4403_v52 = vmul.f32 %v12886_v44, %v4384_v61  ;;  %v4401_v25 = vmul.f32 %v12888_v7, %v4383_v18  ;;  %7330 = vmatpush2.bf16.msra.mxu1 %v9207_v0  ;;  %v4646_v13 = vpop.permute.xlu1 %4645  ;;  %v3990_v18 = vpop.f32.mrf.mxu1 }
 0x408   : > { %v4382_v29 = vsel %vm633_vm6, %v14437_v45, %v14438_v30  ;;  %v3989_v62 = vadd.f32 %v3988_v40, %v12768_v27  ;;  %v9113_v3 = vpack.c.bf16 %v4683_v31, %v4681_v49  ;;  %v4648_v28 = vpop.permute.xlu0 %4647  ;;  %7331 = vmatprep.subr.bf16.mxu1 %v9200_v38  ;;  %v9114_v42 = vpack.c.bf16 %v4684_v12, %v4682_v9  ;;  %v4669_v30 = vld [vmem:[#allocation7] sm:$0xff]  ;;  %v4670_v45 = vld [vmem:[#allocation7 + $0x8] sm:$0xff] }
 0x409   : > { %v3934_v37 = vadd.f32 %v12734_v22, %v14406_v10  ;;  %v4397_v57 = vmul.f32 %v4389_v51, %v4381_v23  ;;  %v4398_v61 = vmul.f32 %v4390_v56, %v4385_v59  ;;  %v9199_v0 = vpack.c.bf16 %v4467_v32, %v4465_v41  ;;  %5369 = vrot.lane.b32.xlu1 %v12681_v11, %s9560_s17  ;;  %v4671_v23 = vld [vmem:[#allocation7 + $0x10] sm:$0xff]  ;;  %v4672_v59 = vld [vmem:[#allocation7 + $0x18] sm:$0xff] }
 0x40a   : > { %v4400_v14 = vmul.f32 %v4392_v35, %v4386_v5  ;;  %v3938_v44 = vadd.f32 %v3937_v63, %v14407_v15  ;;  %5371 = vrot.lane.b32.xlu0 %v12686_v26, %s9560_s17  ;;  %7427 = vmatprep.subr.bf16.mxu0 %v9114_v42  ;;  %v9192_v49 = vpack.c.bf16 %v12877_v53, %v4402_v48  ;;  %v12925_v10 = vmax.f32 %v3985_v24, 0.0 }
 0x40b   : > { %v4399_v27 = vmul.f32 %v4391_v39, %v4382_v29  ;;  %v9191_v22 = vpack.c.bf16 %v4403_v52, %v4401_v25  ;;  %v3987_v9 = vadd.f32 %v12858_v46, %v3934_v37  ;;  %7332 = vmatpush2.bf16.msra.mxu1 %v9199_v0  ;;  %7428 = vmatpush1.bf16.msra.mxu0 %v9113_v3  ;;  %v4654_v12 = vpop.permute.xlu1 %4653  ;;  %v12928_v15 = vmax.f32 %v3989_v62, 0.0  ;;  %v14439_v39 = vld [vmem:[#allocation41_spill] sm:$0xff]  ;;  %v14440_v29 = vld [vmem:[#allocation42_spill] sm:$0xff] }
 0x40c   : > { %v3991_v41 = vadd.f32 %v3990_v18, %v3938_v44  ;;  %v4656_v32 = vpop.permute.xlu0 %4655  ;;  %7333 = vmatprep.subr.bf16.mxu1 %v9192_v49  ;;  %v4661_v53 = vsel %vm329_vm3, %v4646_v13, %v4654_v12  ;;  %v4665_v40 = vsel %vm329_vm3, %v4654_v12, %v4646_v13  ;;  %v9184_v38 = vpack.c.bf16 %v4400_v14, %v4398_v61  ;;  %v14441_v61 = vld [vmem:[#allocation36_spill] sm:$0xff]  ;;  %v14442_v18 = vld [vmem:[#allocation37_spill] sm:$0xff] }
 0x40d   : > { %v4662_v51 = vsel %vm329_vm3, %v4648_v28, %v4656_v32  ;;  %v4666_v46 = vsel %vm329_vm3, %v4656_v32, %v4648_v28  ;;  %v4677_v56 = vmul.f32 %v4669_v30, %v4665_v40  ;;  %v4678_v48 = vmul.f32 %v4670_v45, %v4661_v53  ;;  %6013 = vrot.lane.b32.xlu1 %v12925_v10, %s9561_s19  ;;  %v14446_v53 = vld [vmem:[#allocation33_spill] sm:$0xff] }
 0x40e   : > { %v4679_v44 = vmul.f32 %v4671_v23, %v4666_v46  ;;  %v4680_v31 = vmul.f32 %v4672_v59, %v4662_v51  ;;  %6015 = vrot.lane.b32.xlu0 %v12928_v15, %s9561_s19  ;;  %v12942_v35 = vmax.f32 %v3987_v9, 0.0  ;;  %v12944_v63 = vmax.f32 %v3991_v41, 0.0  ;;  %v14443_v9 = vld [vmem:[#allocation38_spill] sm:$0xff]  ;;  %v14444_v23 = vld [vmem:[#allocation39_spill] sm:$0xff]  ;;  %v14447_v46 = vld [vmem:[#allocation64_spill] sm:$0xff] }
 0x40f   : > { %7334 = vmatpush2.bf16.msra.mxu1 %v9191_v22  ;;  %v5086_v5 = vpop.permute.xlu1 %5085  ;;  %v9183_v13 = vpack.c.bf16 %v4399_v27, %v4397_v57  ;;  %v9176_v62 = vpack.c.bf16 %v14440_v29, %v14439_v39  ;;  %v3922_v28 = vadd.f32 %v12644_v2, %v14408_v17  ;;  %v9175_v0 = vpack.c.bf16 %v14442_v18, %v14441_v61  ;;  %v14451_v29 = vld [vmem:[#allocation70_spill] sm:$0xff] }
 0x410   : > { %v9105_v24 = vpack.c.bf16 %v4679_v44, %v4677_v56  ;;  %v5088_v52 = vpop.permute.xlu0 %5087  ;;  %7335 = vmatprep.subr.bf16.mxu1 %v9184_v38  ;;  %v9106_v25 = vpack.c.bf16 %v4680_v31, %v4678_v48  ;;  %v3926_v45 = vadd.f32 %v12683_v50, %v14409_v36  ;;  %v9168_v59 = vpack.c.bf16 %v14444_v23, %v14443_v9  ;;  %v14448_v44 = vld [vmem:[#allocation63_spill] sm:$0xff]  ;;  %v14453_v9 = vld [vmem:[#allocation72_spill] sm:$0xff] }
 0x411   : > { %6021 = vrot.lane.b32.xlu1 %v12942_v35, %s9561_s19 }
 0x412   : > { %6023 = vrot.lane.b32.xlu0 %v12944_v63, %s9561_s19  ;;  %7429 = vmatprep.subr.bf16.mxu0 %v9106_v25  ;;  %v3979_v12 = vadd.f32 %v12736_v33, %v3926_v45  ;;  %v12988_v33 = vld [vmem:[#allocation9] ss:$12 sps:$4 sm:$0xff]  }
 0x413   : > { %7336 = vmatpush2.bf16.msra.mxu1 %v9183_v13  ;;  %7430 = vmatpush1.bf16.msra.mxu0 %v9105_v24  ;;  %v5094_v3 = vpop.permute.xlu1 %5093  ;;  %v14450_v13 = vld [vmem:[#allocation67_spill] sm:$0xff] }
 0x414   : > { %v5096_v42 = vpop.permute.xlu0 %5095  ;;  %7337 = vmatprep.subr.bf16.mxu1 %v9176_v62  ;;  %v5099_v37 = vsel %vm771_vm4, %v5086_v5, %v5094_v3  ;;  %v5103_v57 = vsel %vm771_vm4, %v5094_v3, %v5086_v5  ;;  %v12995_v48 = vmax.f32 %v3979_v12, 0.0  ;;  %v14452_v3 = vld [vmem:[#allocation71_spill] sm:$0xff] }
 0x415   : > { %v5100_v14 = vsel %vm771_vm4, %v5088_v52, %v5096_v42  ;;  %v5104_v49 = vsel %vm771_vm4, %v5096_v42, %v5088_v52  ;;  %v5117_v30 = vmul.f32 %v5099_v37, %v12704_v60  ;;  %v5118_v2 = vmul.f32 %v5103_v57, %v12708_v6  ;;  %5297 = vrot.lane.b32.xlu1 %v12623_v55, %s9559_s29  ;;  %v14449_v52 = vld [vmem:[#allocation66_spill] sm:$0xff] }
 0x416   : > { %v5119_v27 = vmul.f32 %v5100_v14, %v12716_v16  ;;  %v5120_v22 = vmul.f32 %v5104_v49, %v12718_v1  ;;  %5299 = vrot.lane.b32.xlu0 %v12627_v20, %s9559_s29  ;;  %v3975_v60 = vadd.f32 %v12702_v4, %v3922_v28  ;;  %v3924_v16 = vadd.f32 %v12666_v34, %v14408_v17  ;;  %v14445_v1 = vld [vmem:[#allocation35_spill] sm:$0xff] }
 0x417   : > { %7338 = vmatpush2.bf16.msra.mxu1 %v9175_v0  ;;  %v5082_v6 = vpop.permute.xlu1 %5081  ;;  %v9167_v40 = vpack.c.bf16 %v14446_v53, %v14445_v1  ;;  %v3928_v4 = vadd.f32 %v12700_v8, %v14409_v36  ;;  %v12993_v34 = vld [vmem:[#allocation9 + $0x1c] ss:$12 sps:$4 sm:$0xff]   ;;  %v13024_v14 = vld [vmem:[#allocation9 + $0x18] ss:$12 sps:$4 sm:$0xff]  }
 0x418   : > { %v9225_v41 = vpack.c.bf16 %v5119_v27, %v5117_v30  ;;  %v5084_v32 = vpop.permute.xlu0 %5083  ;;  %7339 = vmatprep.subr.bf16.mxu1 %v9168_v59  ;;  %v9226_v50 = vpack.c.bf16 %v5120_v22, %v5118_v2  ;;  %v12990_v51 = vmax.f32 %v3975_v60, 0.0  ;;  %v3977_v56 = vadd.f32 %v14447_v46, %v3924_v16  ;;  %v14454_v59 = vld [vmem:[#allocation65_spill] sm:$0xff] }
 0x419   : > { %5305 = vrot.lane.b32.xlu1 %v12642_v21, %s9559_s29  ;;  %v3981_v31 = vadd.f32 %v14448_v44, %v3928_v4  ;;  %v14457_v16 = vmov 0  }
 0x41a   : > { %5307 = vrot.lane.b32.xlu0 %v12647_v47, %s9559_s29  ;;  %7431 = vmatprep.subr.bf16.mxu0 %v9226_v50  ;;  %v13015_v42 = vmax.f32 %v3977_v56, 0.0 }
 0x41b   : > { %7340 = vmatpush2.bf16.msra.mxu1 %v9167_v40  ;;  %7432 = vmatpush2.bf16.msra.mxu0 %v9225_v41  ;;  %v5090_v17 = vpop.permute.xlu1 %5089  ;;  %v13018_v57 = vmax.f32 %v3981_v31, 0.0  ;;  %v14456_v41 = vld [vmem:[#allocation68_spill] sm:$0xff] }
 0x41c   : > { %v5092_v36 = vpop.permute.xlu0 %5091  ;;  %v5097_v8 = vsel %vm771_vm4, %v5082_v6, %v5090_v17  ;;  %v5101_v38 = vsel %vm771_vm4, %v5090_v17, %v5082_v6  ;;  %v14455_v6 = vld [vmem:[#allocation73_spill] sm:$0xff] }
 0x41d   : > { %v5098_v5 = vsel %vm771_vm4, %v5084_v32, %v5092_v36  ;;  %v5102_v24 = vsel %vm771_vm4, %v5092_v36, %v5084_v32  ;;  %v5113_v25 = vmul.f32 %v5097_v8, %v14449_v52  ;;  %v5114_v39 = vmul.f32 %v5101_v38, %v14450_v13  ;;  %6009 = vrot.lane.b32.xlu1 %v12990_v51, %s9561_s19  ;;  %v14458_v36 = vld [vmem:[#allocation18_spill] sm:$0xff]  ;;  %v14459_v38 = vld [vmem:[#allocation69_spill] sm:$0xff] }
 0x41e   : > { %v5115_v62 = vmul.f32 %v5098_v5, %v14451_v29  ;;  %v5116_v28 = vmul.f32 %v5102_v24, %v14452_v3  ;;  %6011 = vrot.lane.b32.xlu0 %v12995_v48, %s9561_s19  ;;  %7342 = vmatmul.mubr.bf16.vlgmr.msra.gmra.mxu1 %v12988_v33  ;;  %v14460_v24 = vld [vmem:[#allocation17_spill] sm:$0xff] }
 0x41f   : > { %v5018_v37 = vpop.permute.xlu1 %5017  ;;  %7351 = vmatprep.mubr.bf16.mxu1 %v12993_v34 }
 0x420   : > { %v9217_v61 = vpack.c.bf16 %v5115_v62, %v5113_v25  ;;  %v5020_v18 = vpop.permute.xlu0 %5019  ;;  %v9218_v0 = vpack.c.bf16 %v5116_v28, %v5114_v39  ;;  %v14461_v25 = vld [vmem:[#allocation74_spill] sm:$0xff] }
 0x421   : > { %6017 = vrot.lane.b32.xlu1 %v13015_v42, %s9561_s19 }
 0x422   : > { %6019 = vrot.lane.b32.xlu0 %v13018_v57, %s9561_s19  ;;  %7433 = vmatprep.subr.bf16.mxu0 %v9218_v0 }
 0x423   : > { %7434 = vmatpush2.bf16.msra.mxu0 %v9217_v61  ;;  %v5026_v49 = vpop.permute.xlu1 %5025 }
 0x424   : > { %v5028_v30 = vpop.permute.xlu0 %5027  ;;  %v5031_v2 = vsel %vm702_vm5, %v5018_v37, %v5026_v49  ;;  %v5035_v45 = vsel %vm702_vm5, %v5026_v49, %v5018_v37 }
 0x425   : > { %v5032_v27 = vsel %vm702_vm5, %v5020_v18, %v5028_v30  ;;  %v5036_v22 = vsel %vm702_vm5, %v5028_v30, %v5020_v18  ;;  %v5049_v23 = vmul.f32 %v5031_v2, %v14453_v9  ;;  %v5050_v60 = vmul.f32 %v5035_v45, %v14454_v59  ;;  %5293 = vrot.lane.b32.xlu1 %v12663_v19, %s9559_s29  ;;  %v14462_v45 = vld [vmem:[#allocation22_spill] sm:$0xff] }
 0x426   : > { %v5051_v12 = vmul.f32 %v5032_v27, %v14455_v6  ;;  %v5052_v32 = vmul.f32 %v5036_v22, %v14456_v41  ;;  %5295 = vrot.lane.b32.xlu0 %v12668_v58, %s9559_s29  ;;  %7352 = vmatmul.mubr.bf16.gmra.mxu1 %v13024_v14  ;;  %v14463_v22 = vld [vmem:[#allocation14_spill] sm:$0xff]  ;;  %v4972_v41 = vld [vmem:[#allocation7 + $0x158] sm:$0xff] }
 0x427   : > { %v5014_v50 = vpop.permute.xlu1 %5013  ;;  %7500 = vmatprep.mubr.bf16.mxu1 %v14457_v16 }
 0x428   : > { %v9209_v1 = vpack.c.bf16 %v5051_v12, %v5049_v23  ;;  %v5016_v53 = vpop.permute.xlu0 %5015  ;;  %v9210_v40 = vpack.c.bf16 %v5052_v32, %v5050_v60  ;;  %v4971_v12 = vld [vmem:[#allocation7 + $0x150] sm:$0xff] }
 0x429   : > { %5301 = vrot.lane.b32.xlu1 %v12681_v11, %s9559_s29 }
 0x42a   : > { %5303 = vrot.lane.b32.xlu0 %v12686_v26, %s9559_s29  ;;  %7435 = vmatprep.subr.bf16.mxu0 %v9210_v40 }
 0x42b   : > { %7436 = vmatpush2.bf16.msra.mxu0 %v9209_v1  ;;  %v5022_v4 = vpop.permute.xlu1 %5021 }
 0x42c   : > { %v5024_v46 = vpop.permute.xlu0 %5023  ;;  %v5029_v56 = vsel %vm702_vm5, %v5014_v50, %v5022_v4  ;;  %v5033_v17 = vsel %vm702_vm5, %v5022_v4, %v5014_v50 }
 0x42d   : > { %v5030_v44 = vsel %vm702_vm5, %v5016_v53, %v5024_v46  ;;  %v5034_v31 = vsel %vm702_vm5, %v5024_v46, %v5016_v53  ;;  %v5045_v8 = vmul.f32 %v5029_v56, %v14458_v36  ;;  %v5046_v5 = vmul.f32 %v5033_v17, %v14459_v38  ;;  %5945 = vrot.lane.b32.xlu1 %v12925_v10, %s9560_s17 }
 0x42e   : > { %v5047_v52 = vmul.f32 %v5030_v44, %v14460_v24  ;;  %v5048_v13 = vmul.f32 %v5034_v31, %v14461_v25  ;;  %5947 = vrot.lane.b32.xlu0 %v12928_v15, %s9560_s17  ;;  %v14465_v24 = vld [vmem:[#allocation47_spill] sm:$0xff] }
 0x42f   : > { %v4950_v39 = vpop.permute.xlu1 %4949 }
 0x430   : > { %v9201_v29 = vpack.c.bf16 %v5047_v52, %v5045_v8  ;;  %v4952_v62 = vpop.permute.xlu0 %4951  ;;  %v9202_v3 = vpack.c.bf16 %v5048_v13, %v5046_v5  ;;  %v14464_v5 = vld [vmem:[#allocation44_spill] sm:$0xff] }
 0x431   : > { %5953 = vrot.lane.b32.xlu1 %v12942_v35, %s9560_s17  ;;  %v9178_v52 = vpack.c.bf16 %v14465_v24, %v14464_v5 }
 0x432   : > { %5955 = vrot.lane.b32.xlu0 %v12944_v63, %s9560_s17  ;;  %7437 = vmatprep.subr.bf16.mxu0 %v9202_v3  ;;  %v14467_v3 = vld [vmem:[#allocation43_spill] sm:$0xff] }
 0x433   : > { %7438 = vmatpush2.bf16.msra.mxu0 %v9201_v29  ;;  %v4958_v28 = vpop.permute.xlu1 %4957 }
 0x434   : > { %v4960_v37 = vpop.permute.xlu0 %4959  ;;  %v4963_v61 = vsel %vm633_vm6, %v4950_v39, %v4958_v28  ;;  %v4967_v18 = vsel %vm633_vm6, %v4958_v28, %v4950_v39 }
 0x435   : > { %v4964_v0 = vsel %vm633_vm6, %v4952_v62, %v4960_v37  ;;  %v4968_v49 = vsel %vm633_vm6, %v4960_v37, %v4952_v62  ;;  %v4981_v30 = vmul.f32 %v4963_v61, %v12888_v7  ;;  %v4982_v2 = vmul.f32 %v4967_v18, %v12879_v54  ;;  %5229 = vrot.lane.b32.xlu1 %v12623_v55, %s14338_s13  ;;  %v4969_v7 = vld [vmem:[#allocation7 + $0x140] sm:$0xff]  ;;  %v4970_v54 = vld [vmem:[#allocation7 + $0x148] sm:$0xff] }
 0x436   : > { %v4983_v27 = vmul.f32 %v4964_v0, %v14462_v45  ;;  %v4984_v9 = vmul.f32 %v4968_v49, %v14463_v22  ;;  %5231 = vrot.lane.b32.xlu0 %v12627_v20, %s14338_s13  ;;  %v14466_v62 = vld [vmem:[#allocation40_spill] sm:$0xff]  ;;  %v9386_v49 = vld [vmem:[#allocation7 + $0x228] sm:$0xff] }
 0x437   : > { %v4946_v23 = vpop.permute.xlu1 %4945  ;;  %v9177_v28 = vpack.c.bf16 %v14467_v3, %v14466_v62  ;;  %v9385_v18 = vld [vmem:[#allocation7 + $0x220] sm:$0xff]  ;;  %v13150_v62 = vld [vmem:[#allocation7 + $0xf0] sm:$0xff] }
 0x438   : > { %v9193_v59 = vpack.c.bf16 %v4983_v27, %v4981_v30  ;;  %v4948_v60 = vpop.permute.xlu0 %4947  ;;  %v9194_v6 = vpack.c.bf16 %v4984_v9, %v4982_v2  ;;  %v9387_v2 = vld [vmem:[#allocation7 + $0x230] sm:$0xff]  ;;  %v9388_v27 = vld [vmem:[#allocation7 + $0x238] sm:$0xff]  ;;  %v14468_v9 = vld [vmem:[#allocation48_spill] sm:$0xff] }
 0x439   : > { %5237 = vrot.lane.b32.xlu1 %v12642_v21, %s14338_s13 }
 0x43a   : > { %5239 = vrot.lane.b32.xlu0 %v12647_v47, %s14338_s13  ;;  %7439 = vmatprep.subr.bf16.mxu0 %v9194_v6 }
 0x43b   : > { %7440 = vmatpush2.bf16.msra.mxu0 %v9193_v59  ;;  %v4954_v32 = vpop.permute.xlu1 %4953 }
 0x43c   : > { %v4956_v50 = vpop.permute.xlu0 %4955  ;;  %v4961_v1 = vsel %vm633_vm6, %v4946_v23, %v4954_v32  ;;  %v4965_v53 = vsel %vm633_vm6, %v4954_v32, %v4946_v23  ;;  %v14469_v23 = vld [vmem:[#allocation49_spill] sm:$0xff] }
 0x43d   : > { %v4962_v40 = vsel %vm633_vm6, %v4948_v60, %v4956_v50  ;;  %v4966_v4 = vsel %vm633_vm6, %v4956_v50, %v4948_v60  ;;  %v4977_v46 = vmul.f32 %v4969_v7, %v4961_v1  ;;  %v4978_v56 = vmul.f32 %v4970_v54, %v4965_v53  ;;  %5941 = vrot.lane.b32.xlu1 %v12990_v51, %s9560_s17 }
 0x43e   : > { %v4979_v17 = vmul.f32 %v4971_v12, %v4962_v40  ;;  %v4980_v44 = vmul.f32 %v4972_v41, %v4966_v4  ;;  %5943 = vrot.lane.b32.xlu0 %v12995_v48, %s9560_s17  ;;  %v9170_v59 = vpack.c.bf16 %v14469_v23, %v14468_v9  ;;  %v14470_v12 = vld [vmem:[#allocation45_spill] sm:$0xff]  ;;  %v14471_v41 = vld [vmem:[#allocation46_spill] sm:$0xff] }
 0x43f   : > { %v5154_v31 = vpop.permute.xlu1 %5153  ;;  %v9169_v32 = vpack.c.bf16 %v14471_v41, %v14470_v12 }
 0x440   : > { %v9185_v36 = vpack.c.bf16 %v4979_v17, %v4977_v46  ;;  %v5156_v8 = vpop.permute.xlu0 %5155  ;;  %v9186_v38 = vpack.c.bf16 %v4980_v44, %v4978_v56  ;;  %v9389_v56 = vld [vmem:[#allocation7 + $0x200] sm:$0xff]  ;;  %v9390_v44 = vld [vmem:[#allocation7 + $0x208] sm:$0xff] }
 0x441   : > { %5949 = vrot.lane.b32.xlu1 %v13015_v42, %s9560_s17 }
 0x442   : > { %5951 = vrot.lane.b32.xlu0 %v13018_v57, %s9560_s17  ;;  %7441 = vmatprep.subr.bf16.mxu0 %v9186_v38  ;;  %v9392_v38 = vld [vmem:[#allocation7 + $0x218] sm:$0xff] }
 0x443   : > { %7442 = vmatpush2.bf16.msra.mxu0 %v9185_v36  ;;  %v5162_v25 = vpop.permute.xlu1 %5161  ;;  %v9391_v36 = vld [vmem:[#allocation7 + $0x210] sm:$0xff] }
 0x444   : > { %v5164_v13 = vpop.permute.xlu0 %5163  ;;  %7443 = vmatprep.subr.bf16.mxu0 %v9178_v52  ;;  %v5167_v39 = vsel %vm840_vm7, %v5154_v31, %v5162_v25  ;;  %v5171_v29 = vsel %vm840_vm7, %v5162_v25, %v5154_v31 }
 0x445   : > { %v5168_v37 = vsel %vm840_vm7, %v5156_v8, %v5164_v13  ;;  %v5172_v61 = vsel %vm840_vm7, %v5164_v13, %v5156_v8  ;;  %v5185_v0 = vmul.f32 %v9385_v18, %v5167_v39  ;;  %v5186_v30 = vmul.f32 %v9386_v49, %v5171_v29  ;;  %5225 = vrot.lane.b32.xlu1 %v12663_v19, %s14338_s13  ;;  %v13146_v39 = vld [vmem:[#allocation7 + $0xe0] sm:$0xff]  ;;  %v13148_v29 = vld [vmem:[#allocation7 + $0xe8] sm:$0xff] }
 0x446   : > { %v5187_v45 = vmul.f32 %v9387_v2, %v5168_v37  ;;  %v5188_v22 = vmul.f32 %v9388_v27, %v5172_v61  ;;  %5227 = vrot.lane.b32.xlu0 %v12668_v58, %s14338_s13 }
 0x447   : > { %7444 = vmatpush2.bf16.msra.mxu0 %v9177_v28  ;;  %v5150_v60 = vpop.permute.xlu1 %5149 }
 0x448   : > { %v9241_v6 = vpack.c.bf16 %v5187_v45, %v5185_v0  ;;  %v5152_v7 = vpop.permute.xlu0 %5151  ;;  %7445 = vmatprep.subr.bf16.mxu0 %v9170_v59  ;;  %v9242_v54 = vpack.c.bf16 %v5188_v22, %v5186_v30  ;;  %v13170_v45 = vld [vmem:[#allocation9 + $0x8] ss:$12 sps:$4 sm:$0xff]   ;;  %v13181_v59 = vld [vmem:[#allocation7 + $0xc0] sm:$0xff] }
 0x449   : > { %5233 = vrot.lane.b32.xlu1 %v12681_v11, %s14338_s13 }
 0x44a   : > { %5235 = vrot.lane.b32.xlu0 %v12686_v26, %s14338_s13  ;;  %7480 = vmatprep.subr.bf16.mxu1 %v9242_v54 }
 0x44b   : > { %7446 = vmatpush2.bf16.msra.mxu0 %v9169_v32  ;;  %7481 = vmatpush1.bf16.msra.mxu1 %v9241_v6  ;;  %v5158_v50 = vpop.permute.xlu1 %5157  ;;  %v13187_v6 = vld [vmem:[#allocation7 + $0xd8] sm:$0xff] }
 0x44c   : > { %v5160_v1 = vpop.permute.xlu0 %5159  ;;  %v5165_v53 = vsel %vm840_vm7, %v5150_v60, %v5158_v50  ;;  %v5169_v40 = vsel %vm840_vm7, %v5158_v50, %v5150_v60  ;;  %v13183_v60 = vld [vmem:[#allocation7 + $0xc8] sm:$0xff] }
 0x44d   : > { %v5166_v4 = vsel %vm840_vm7, %v5152_v7, %v5160_v1  ;;  %v5170_v46 = vsel %vm840_vm7, %v5160_v1, %v5152_v7  ;;  %v5181_v17 = vmul.f32 %v9389_v56, %v5165_v53  ;;  %v5182_v31 = vmul.f32 %v9390_v44, %v5169_v40  ;;  %5877 = vrot.lane.b32.xlu1 %v12925_v10, %s9559_s29 }
 0x44e   : > { %v5183_v8 = vmul.f32 %v9391_v36, %v5166_v4  ;;  %v5184_v5 = vmul.f32 %v9392_v38, %v5170_v46  ;;  %5879 = vrot.lane.b32.xlu0 %v12928_v15, %s9559_s29  ;;  %7448 = vmatmul.mubr.bf16.vlgmr.msra.gmra.mxu0 %v12988_v33  ;;  %v13152_v33 = vld [vmem:[#allocation7 + $0xf8] sm:$0xff]  ;;  %v14472_v46 = vld [vmem:[#allocation62_spill] sm:$0xff]  ;;  %v5758_v38 = vld [vmem:[#allocation7 + $0x228] sm:$0xff] }
 0x44f   : > { %v5434_v24 = vpop.permute.xlu1 %5433  ;;  %7457 = vmatprep.mubr.bf16.mxu0 %v12993_v34 }
 0x450   : > { %v9233_v52 = vpack.c.bf16 %v5183_v8, %v5181_v17  ;;  %v5436_v25 = vpop.permute.xlu0 %5435  ;;  %v9234_v13 = vpack.c.bf16 %v5184_v5, %v5182_v31  ;;  %v13207_v17 = vld [vmem:[#allocation9 + $0x4] ss:$12 sps:$4 sm:$0xff]  }
 0x451   : > { %5885 = vrot.lane.b32.xlu1 %v12942_v35, %s9559_s29  ;;  %v5757_v8 = vld [vmem:[#allocation7 + $0x220] sm:$0xff]  ;;  %v5759_v5 = vld [vmem:[#allocation7 + $0x230] sm:$0xff] }
 0x452   : > { %5887 = vrot.lane.b32.xlu0 %v12944_v63, %s9559_s29  ;;  %7482 = vmatprep.subr.bf16.mxu1 %v9234_v13 }
 0x453   : > { %7483 = vmatpush1.bf16.msra.mxu1 %v9233_v52  ;;  %v5442_v34 = vpop.permute.xlu1 %5441 }
 0x454   : > { %v5444_v3 = vpop.permute.xlu0 %5443  ;;  %v5447_v28 = vsel %vm536_vm0, %v5434_v24, %v5442_v34  ;;  %v5451_v37 = vsel %vm536_vm0, %v5442_v34, %v5434_v24  ;;  %v5760_v24 = vld [vmem:[#allocation7 + $0x238] sm:$0xff] }
 0x455   : > { %v5448_v61 = vsel %vm536_vm0, %v5436_v25, %v5444_v3  ;;  %v5452_v18 = vsel %vm536_vm0, %v5444_v3, %v5436_v25  ;;  %v5465_v0 = vmul.f32 %v13146_v39, %v5451_v37  ;;  %v5466_v49 = vmul.f32 %v13148_v29, %v5447_v28  ;;  %5665 = vrot.lane.b32.xlu1 %v12623_v55, %s14384_s27 }
 0x456   : > { %v5467_v30 = vmul.f32 %v13150_v62, %v5452_v18  ;;  %v5468_v2 = vmul.f32 %v13152_v33, %v5448_v61  ;;  %5667 = vrot.lane.b32.xlu0 %v12627_v20, %s14384_s27  ;;  %8607 = vmatmul.mubr.msk.bf16.vlgmr.msra.gmra.mxu1 %vm3562_vm8, %v13170_v45 }
 0x457   : > { %v5430_v27 = vpop.permute.xlu1 %5429  ;;  %7458 = vmatmul.mubr.bf16.gmra.mxu0 %v13024_v14  ;;  %7510 = vmatprep.mubr.bf16.mxu1 %v14457_v16  ;;  %v13185_v14 = vld [vmem:[#allocation7 + $0xd0] sm:$0xff] }
 0x458   : > { %v9163_v22 = vpack.c.bf16 %v5467_v30, %v5465_v0  ;;  %v5432_v9 = vpop.permute.xlu0 %5431  ;;  %v9164_v23 = vpack.c.bf16 %v5468_v2, %v5466_v49  ;;  %7606 = vmatprep.mubr.bf16.mxu0 %v14457_v16 }
 0x459   : > { %5673 = vrot.lane.b32.xlu1 %v12642_v21, %s14384_s27 }
 0x45a   : > { %5675 = vrot.lane.b32.xlu0 %v12647_v47, %s14384_s27  ;;  %7521 = vmatprep.subr.bf16.mxu1 %v9164_v23  ;;  %v13234_v23 = vld [vmem:[#allocation7 + $0xb0] sm:$0xff] }
 0x45b   : > { %7522 = vmatpush1.bf16.msra.mxu1 %v9163_v22  ;;  %v5438_v7 = vpop.permute.xlu1 %5437  ;;  %v13230_v22 = vld [vmem:[#allocation7 + $0xa0] sm:$0xff] }
 0x45c   : > { %v5440_v54 = vpop.permute.xlu0 %5439  ;;  %v5445_v12 = vsel %vm536_vm0, %v5430_v27, %v5438_v7  ;;  %v5449_v41 = vsel %vm536_vm0, %v5438_v7, %v5430_v27  ;;  %v13236_v7 = vld [vmem:[#allocation7 + $0xb8] sm:$0xff] }
 0x45d   : > { %v5446_v32 = vsel %vm536_vm0, %v5432_v9, %v5440_v54  ;;  %v5450_v50 = vsel %vm536_vm0, %v5440_v54, %v5432_v9  ;;  %v5461_v1 = vmul.f32 %v13181_v59, %v5449_v41  ;;  %v5462_v53 = vmul.f32 %v13183_v60, %v5445_v12  ;;  %5873 = vrot.lane.b32.xlu1 %v12990_v51, %s9559_s29  ;;  %v13232_v9 = vld [vmem:[#allocation7 + $0xa8] sm:$0xff] }
 0x45e   : > { %v5463_v40 = vmul.f32 %v13185_v14, %v5450_v50  ;;  %v5464_v4 = vmul.f32 %v13187_v6, %v5446_v32  ;;  %5875 = vrot.lane.b32.xlu0 %v12995_v48, %s9559_s29  ;;  %8608 = vmatmul.mubr.msk.bf16.gmra.mxu1 %vm3562_vm8, %v14472_v46 }
 0x45f   : > { %v5734_v56 = vpop.permute.xlu1 %5733  ;;  %7553 = vmatprep.mubr.bf16.mxu1 %v13207_v17 }
 0x460   : > { %v9155_v44 = vpack.c.bf16 %v5463_v40, %v5461_v1  ;;  %v5736_v31 = vpop.permute.xlu0 %5735  ;;  %v9156_v36 = vpack.c.bf16 %v5464_v4, %v5462_v53 }
 0x461   : > { %5881 = vrot.lane.b32.xlu1 %v13015_v42, %s9559_s29 }
 0x462   : > { %5883 = vrot.lane.b32.xlu0 %v13018_v57, %s9559_s29  ;;  %7523 = vmatprep.subr.bf16.mxu1 %v9156_v36 }
 0x463   : > { %7524 = vmatpush1.bf16.msra.mxu1 %v9155_v44  ;;  %v5742_v52 = vpop.permute.xlu1 %5741 }
 0x464   : > { %v5744_v25 = vpop.permute.xlu0 %5743  ;;  %v5747_v13 = vsel %vm840_vm7, %v5734_v56, %v5742_v52  ;;  %v5751_v34 = vsel %vm840_vm7, %v5742_v52, %v5734_v56 }
 0x465   : > { %v5748_v3 = vsel %vm840_vm7, %v5736_v31, %v5744_v25  ;;  %v5752_v28 = vsel %vm840_vm7, %v5744_v25, %v5736_v31  ;;  %v5765_v37 = vmul.f32 %v5757_v8, %v5747_v13  ;;  %v5766_v61 = vmul.f32 %v5758_v38, %v5751_v34  ;;  %5661 = vrot.lane.b32.xlu1 %v12663_v19, %s14384_s27  ;;  %v5753_v8 = vld [vmem:[#allocation7 + $0x200] sm:$0xff]  ;;  %v5754_v38 = vld [vmem:[#allocation7 + $0x208] sm:$0xff] }
 0x466   : > { %v5767_v18 = vmul.f32 %v5759_v5, %v5748_v3  ;;  %v5768_v0 = vmul.f32 %v5760_v24, %v5752_v28  ;;  %5663 = vrot.lane.b32.xlu0 %v12668_v58, %s14384_s27  ;;  %v5755_v5 = vld [vmem:[#allocation7 + $0x210] sm:$0xff]  ;;  %v5756_v24 = vld [vmem:[#allocation7 + $0x218] sm:$0xff] }
 0x467   : > { %v5366_v49 = vpop.permute.xlu1 %5365 }
 0x468   : > { %v9243_v30 = vpack.c.bf16 %v5767_v18, %v5765_v37  ;;  %v5368_v2 = vpop.permute.xlu0 %5367  ;;  %v9244_v27 = vpack.c.bf16 %v5768_v0, %v5766_v61 }
 0x469   : > { %5669 = vrot.lane.b32.xlu1 %v12681_v11, %s14384_s27 }
 0x46a   : > { %5671 = vrot.lane.b32.xlu0 %v12686_v26, %s14384_s27  ;;  %7586 = vmatprep.subr.bf16.mxu0 %v9244_v27 }
 0x46b   : > { %7587 = vmatpush1.bf16.msra.mxu0 %v9243_v30  ;;  %v5374_v54 = vpop.permute.xlu1 %5373 }
 0x46c   : > { %v5376_v12 = vpop.permute.xlu0 %5375  ;;  %v5379_v41 = vsel %vm467_vm1, %v5366_v49, %v5374_v54  ;;  %v5383_v32 = vsel %vm467_vm1, %v5374_v54, %v5366_v49  ;;  %v13274_v54 = vld [vmem:[#allocation7 + $0x80] sm:$0xff] }
 0x46d   : > { %v5380_v50 = vsel %vm467_vm1, %v5368_v2, %v5376_v12  ;;  %v5384_v1 = vsel %vm467_vm1, %v5376_v12, %v5368_v2  ;;  %v5397_v53 = vmul.f32 %v13230_v22, %v5383_v32  ;;  %v5398_v40 = vmul.f32 %v13232_v9, %v5379_v41  ;;  %5809 = vrot.lane.b32.xlu1 %v12925_v10, %s14338_s13  ;;  %v13276_v12 = vld [vmem:[#allocation7 + $0x88] sm:$0xff]  ;;  %v13278_v41 = vld [vmem:[#allocation7 + $0x90] sm:$0xff]  ;;  %v13280_v32 = vld [vmem:[#allocation7 + $0x98] sm:$0xff] }
 0x46e   : > { %v5399_v4 = vmul.f32 %v13234_v23, %v5384_v1  ;;  %v5400_v46 = vmul.f32 %v13236_v7, %v5380_v50  ;;  %5811 = vrot.lane.b32.xlu0 %v12928_v15, %s14338_s13 }
 0x46f   : > { %v5730_v56 = vpop.permute.xlu1 %5729 }
 0x470   : > { %v9147_v44 = vpack.c.bf16 %v5399_v4, %v5397_v53  ;;  %v5732_v31 = vpop.permute.xlu0 %5731  ;;  %v9148_v36 = vpack.c.bf16 %v5400_v46, %v5398_v40 }
 0x471   : > { %5817 = vrot.lane.b32.xlu1 %v12942_v35, %s14338_s13 }
 0x472   : > { %5819 = vrot.lane.b32.xlu0 %v12944_v63, %s14338_s13  ;;  %7525 = vmatprep.subr.bf16.mxu1 %v9148_v36 }
 0x473   : > { %7526 = vmatpush1.bf16.msra.mxu1 %v9147_v44  ;;  %v5738_v52 = vpop.permute.xlu1 %5737 }
 0x474   : > { %v5740_v25 = vpop.permute.xlu0 %5739  ;;  %v5745_v13 = vsel %vm840_vm7, %v5730_v56, %v5738_v52  ;;  %v5749_v34 = vsel %vm840_vm7, %v5738_v52, %v5730_v56 }
 0x475   : > { %v5746_v3 = vsel %vm840_vm7, %v5732_v31, %v5740_v25  ;;  %v5750_v28 = vsel %vm840_vm7, %v5740_v25, %v5732_v31  ;;  %v5761_v37 = vmul.f32 %v5753_v8, %v5745_v13  ;;  %v5762_v61 = vmul.f32 %v5754_v38, %v5749_v34  ;;  %5597 = vrot.lane.b32.xlu1 %v12623_v55, %s14383_s7 }
 0x476   : > { %v5763_v18 = vmul.f32 %v5755_v5, %v5746_v3  ;;  %v5764_v0 = vmul.f32 %v5756_v24, %v5750_v28  ;;  %5599 = vrot.lane.b32.xlu0 %v12627_v20, %s14383_s7 }
 0x477   : > { %v5362_v49 = vpop.permute.xlu1 %5361 }
 0x478   : > { %v9235_v30 = vpack.c.bf16 %v5763_v18, %v5761_v37  ;;  %v5364_v2 = vpop.permute.xlu0 %5363  ;;  %v9236_v27 = vpack.c.bf16 %v5764_v0, %v5762_v61  ;;  %v9395_v0 = vld [vmem:[#allocation9 + $0x20] ss:$12 sps:$4 sm:$0xff]  }
 0x479   : > { %5605 = vrot.lane.b32.xlu1 %v12642_v21, %s14383_s7 }
 0x47a   : > { %5607 = vrot.lane.b32.xlu0 %v12647_v47, %s14383_s7  ;;  %7588 = vmatprep.subr.bf16.mxu0 %v9236_v27  ;;  %v13333_v27 = vld [vmem:[#allocation7 + $0x78] sm:$0xff] }
 0x47b   : > { %7589 = vmatpush1.bf16.msra.mxu0 %v9235_v30  ;;  %v5370_v50 = vpop.permute.xlu1 %5369 }
 0x47c   : > { %v5372_v1 = vpop.permute.xlu0 %5371  ;;  %v5377_v53 = vsel %vm467_vm1, %v5362_v49, %v5370_v50  ;;  %v5381_v40 = vsel %vm467_vm1, %v5370_v50, %v5362_v49 }
 0x47d   : > { %v5378_v4 = vsel %vm467_vm1, %v5364_v2, %v5372_v1  ;;  %v5382_v46 = vsel %vm467_vm1, %v5372_v1, %v5364_v2  ;;  %v5393_v56 = vmul.f32 %v13274_v54, %v5381_v40  ;;  %v5394_v44 = vmul.f32 %v13276_v12, %v5377_v53  ;;  %5805 = vrot.lane.b32.xlu1 %v12990_v51, %s14338_s13 }
 0x47e   : > { %v5395_v31 = vmul.f32 %v13278_v41, %v5382_v46  ;;  %v5396_v36 = vmul.f32 %v13280_v32, %v5378_v4  ;;  %5807 = vrot.lane.b32.xlu0 %v12995_v48, %s14338_s13  ;;  %8609 = vmatmul.mubr.msk.bf16.vlgmr.msra.gmra.mxu0 %vm3562_vm8, %v13170_v45 }
 0x47f   : > { %v6014_v8 = vpop.permute.xlu1 %6013  ;;  %7616 = vmatprep.mubr.bf16.mxu0 %v14457_v16 }
 0x480   : > { %v9139_v38 = vpack.c.bf16 %v5395_v31, %v5393_v56  ;;  %v6016_v5 = vpop.permute.xlu0 %6015  ;;  %v9140_v24 = vpack.c.bf16 %v5396_v36, %v5394_v44 }
 0x481   : > { %5813 = vrot.lane.b32.xlu1 %v13015_v42, %s14338_s13 }
 0x482   : > { %5815 = vrot.lane.b32.xlu0 %v13018_v57, %s14338_s13  ;;  %7527 = vmatprep.subr.bf16.mxu1 %v9140_v24  ;;  %s7865_s13 = scalar_lea.sflag [#allocation6], %s9737_s12 }
 0x483   : > { %7528 = vmatpush1.bf16.msra.mxu1 %v9139_v38  ;;  %v6022_v52 = vpop.permute.xlu1 %6021 }
 0x484   : > { %v6024_v25 = vpop.permute.xlu0 %6023  ;;  %v6027_v13 = vsel %vm536_vm0, %v6014_v8, %v6022_v52  ;;  %v6031_v45 = vsel %vm536_vm0, %v6022_v52, %v6014_v8 }
 0x485   : > { %v6028_v34 = vsel %vm536_vm0, %v6016_v5, %v6024_v25  ;;  %v6032_v3 = vsel %vm536_vm0, %v6024_v25, %v6016_v5  ;;  %v6045_v28 = vmul.f32 %v6031_v45, %v13146_v39  ;;  %v6046_v37 = vmul.f32 %v6027_v13, %v13148_v29  ;;  %5593 = vrot.lane.b32.xlu1 %v12663_v19, %s14383_s7  ;;  %v13327_v29 = vld [vmem:[#allocation7 + $0x60] sm:$0xff] }
 0x486   : > { %v6047_v61 = vmul.f32 %v6032_v3, %v13150_v62  ;;  %v6048_v18 = vmul.f32 %v6028_v34, %v13152_v33  ;;  %5595 = vrot.lane.b32.xlu0 %v12668_v58, %s14383_s7  ;;  %8610 = vmatmul.mubr.msk.bf16.gmra.mxu0 %vm3562_vm8, %v9395_v0  ;;  %v13329_v62 = vld [vmem:[#allocation7 + $0x68] sm:$0xff]  ;;  %v13331_v33 = vld [vmem:[#allocation7 + $0x70] sm:$0xff] }
 0x487   : > { %v5298_v49 = vpop.permute.xlu1 %5297  ;;  %7659 = vmatprep.mubr.bf16.mxu0 %v13207_v17 }
 0x488   : > { %v9165_v30 = vpack.c.bf16 %v6047_v61, %v6045_v28  ;;  %v5300_v39 = vpop.permute.xlu0 %5299  ;;  %v9166_v2 = vpack.c.bf16 %v6048_v18, %v6046_v37 }
 0x489   : > { %5601 = vrot.lane.b32.xlu1 %v12681_v11, %s14383_s7 }
 0x48a   : > { %5603 = vrot.lane.b32.xlu0 %v12686_v26, %s14383_s7  ;;  %7627 = vmatprep.subr.bf16.mxu0 %v9166_v2 }
 0x48b   : > { %7628 = vmatpush1.bf16.msra.mxu0 %v9165_v30  ;;  %v5306_v17 = vpop.permute.xlu1 %5305 }
 0x48c   : > { %v5308_v50 = vpop.permute.xlu0 %5307  ;;  %v5311_v1 = vsel %vm398_vm2, %v5298_v49, %v5306_v17  ;;  %v5315_v53 = vsel %vm398_vm2, %v5306_v17, %v5298_v49 }
 0x48d   : > { %v5312_v40 = vsel %vm398_vm2, %v5300_v39, %v5308_v50  ;;  %v5316_v4 = vsel %vm398_vm2, %v5308_v50, %v5300_v39  ;;  %v5329_v46 = vmul.f32 %v13327_v29, %v5315_v53  ;;  %v5330_v56 = vmul.f32 %v13329_v62, %v5311_v1  ;;  %6245 = vrot.lane.b32.xlu1 %v12925_v10, %s14384_s27 }
 0x48e   : > { %v5331_v44 = vmul.f32 %v13331_v33, %v5316_v4  ;;  %v5332_v31 = vmul.f32 %v13333_v27, %v5312_v40  ;;  %6247 = vrot.lane.b32.xlu0 %v12928_v15, %s14384_s27 }
 0x48f   : > { %v6010_v36 = vpop.permute.xlu1 %6009 }
 0x490   : > { %v9131_v8 = vpack.c.bf16 %v5331_v44, %v5329_v46  ;;  %v6012_v38 = vpop.permute.xlu0 %6011  ;;  %v9132_v5 = vpack.c.bf16 %v5332_v31, %v5330_v56 }
 0x491   : > { %6253 = vrot.lane.b32.xlu1 %v12942_v35, %s14384_s27 }
 0x492   : > { %6255 = vrot.lane.b32.xlu0 %v12944_v63, %s14384_s27  ;;  %7529 = vmatprep.subr.bf16.mxu1 %v9132_v5 }
 0x493   : > { %7530 = vmatpush1.bf16.msra.mxu1 %v9131_v8  ;;  %v6018_v24 = vpop.permute.xlu1 %6017 }
 0x494   : > { %v6020_v52 = vpop.permute.xlu0 %6019  ;;  %v6025_v25 = vsel %vm536_vm0, %v6010_v36, %v6018_v24  ;;  %v6029_v13 = vsel %vm536_vm0, %v6018_v24, %v6010_v36 }
 0x495   : > { %v6026_v45 = vsel %vm536_vm0, %v6012_v38, %v6020_v52  ;;  %v6030_v34 = vsel %vm536_vm0, %v6020_v52, %v6012_v38  ;;  %v6041_v3 = vmul.f32 %v6029_v13, %v13181_v59  ;;  %v6042_v28 = vmul.f32 %v6025_v25, %v13183_v60  ;;  %5529 = vrot.lane.b32.xlu1 %v12623_v55, %s9562_s30  ;;  %v13375_v59 = vld [vmem:[#allocation7 + $0x40] sm:$0xff]  ;;  %v13377_v60 = vld [vmem:[#allocation7 + $0x48] sm:$0xff] }
 0x496   : > { %v6043_v37 = vmul.f32 %v6030_v34, %v13185_v14  ;;  %v6044_v61 = vmul.f32 %v6026_v45, %v13187_v6  ;;  %5531 = vrot.lane.b32.xlu0 %v12627_v20, %s9562_s30  ;;  %v13379_v14 = vld [vmem:[#allocation7 + $0x50] sm:$0xff]  ;;  %v13381_v6 = vld [vmem:[#allocation7 + $0x58] sm:$0xff] }
 0x497   : > { %v5294_v18 = vpop.permute.xlu1 %5293 }
 0x498   : > { %v9157_v0 = vpack.c.bf16 %v6043_v37, %v6041_v3  ;;  %v5296_v49 = vpop.permute.xlu0 %5295  ;;  %v9158_v30 = vpack.c.bf16 %v6044_v61, %v6042_v28 }
 0x499   : > { %5537 = vrot.lane.b32.xlu1 %v12642_v21, %s9562_s30 }
 0x49a   : > { %5539 = vrot.lane.b32.xlu0 %v12647_v47, %s9562_s30  ;;  %7629 = vmatprep.subr.bf16.mxu0 %v9158_v30 }
 0x49b   : > { %7630 = vmatpush1.bf16.msra.mxu0 %v9157_v0  ;;  %v5302_v39 = vpop.permute.xlu1 %5301 }
 0x49c   : > { %v5304_v2 = vpop.permute.xlu0 %5303  ;;  %v5309_v17 = vsel %vm398_vm2, %v5294_v18, %v5302_v39  ;;  %v5313_v50 = vsel %vm398_vm2, %v5302_v39, %v5294_v18 }
 0x49d   : > { %v5310_v1 = vsel %vm398_vm2, %v5296_v49, %v5304_v2  ;;  %v5314_v53 = vsel %vm398_vm2, %v5304_v2, %v5296_v49  ;;  %v5325_v40 = vmul.f32 %v13375_v59, %v5313_v50  ;;  %v5326_v4 = vmul.f32 %v13377_v60, %v5309_v17  ;;  %6241 = vrot.lane.b32.xlu1 %v12990_v51, %s14384_s27 }
 0x49e   : > { %v5327_v46 = vmul.f32 %v13379_v14, %v5314_v53  ;;  %v5328_v56 = vmul.f32 %v13381_v6, %v5310_v1  ;;  %6243 = vrot.lane.b32.xlu0 %v12995_v48, %s14384_s27 }
 0x49f   : > { %v5946_v44 = vpop.permute.xlu1 %5945 }
 0x4a0   : > { %v9123_v31 = vpack.c.bf16 %v5327_v46, %v5325_v40  ;;  %v5948_v36 = vpop.permute.xlu0 %5947  ;;  %v9124_v8 = vpack.c.bf16 %v5328_v56, %v5326_v4 }
 0x4a1   : > { %6249 = vrot.lane.b32.xlu1 %v13015_v42, %s14384_s27 }
 0x4a2   : > { %6251 = vrot.lane.b32.xlu0 %v13018_v57, %s14384_s27  ;;  %7531 = vmatprep.subr.bf16.mxu1 %v9124_v8  ;;  %s8958_s27 = sshll.u32 %s9625_s25, 12 }
 0x4a3   : > { %7532 = vmatpush1.bf16.msra.mxu1 %v9123_v31  ;;  %v5954_v38 = vpop.permute.xlu1 %5953 }
 0x4a4   : > { %v5956_v5 = vpop.permute.xlu0 %5955  ;;  %v5959_v24 = vsel %vm467_vm1, %v5946_v44, %v5954_v38  ;;  %v5963_v52 = vsel %vm467_vm1, %v5954_v38, %v5946_v44 }
 0x4a5   : > { %v5960_v25 = vsel %vm467_vm1, %v5948_v36, %v5956_v5  ;;  %v5964_v13 = vsel %vm467_vm1, %v5956_v5, %v5948_v36  ;;  %v5977_v45 = vmul.f32 %v5963_v52, %v13230_v22  ;;  %v5978_v34 = vmul.f32 %v5959_v24, %v13232_v9  ;;  %5525 = vrot.lane.b32.xlu1 %v12663_v19, %s9562_s30  ;;  %v13423_v22 = vld [vmem:[#allocation7 + $0x20] sm:$0xff]  ;;  %v13425_v9 = vld [vmem:[#allocation7 + $0x28] sm:$0xff] }
 0x4a6   : > { %v5979_v3 = vmul.f32 %v5964_v13, %v13234_v23  ;;  %v5980_v28 = vmul.f32 %v5960_v25, %v13236_v7  ;;  %5527 = vrot.lane.b32.xlu0 %v12668_v58, %s9562_s30  ;;  %v13427_v23 = vld [vmem:[#allocation7 + $0x30] sm:$0xff]  ;;  %v13429_v7 = vld [vmem:[#allocation7 + $0x38] sm:$0xff] }
 0x4a7   : > { %v5230_v37 = vpop.permute.xlu1 %5229 }
 0x4a8   : > { %v9149_v61 = vpack.c.bf16 %v5979_v3, %v5977_v45  ;;  %v5232_v18 = vpop.permute.xlu0 %5231  ;;  %v9150_v0 = vpack.c.bf16 %v5980_v28, %v5978_v34 }
 0x4a9   : > { %5533 = vrot.lane.b32.xlu1 %v12681_v11, %s9562_s30 }
 0x4aa   : > { %5535 = vrot.lane.b32.xlu0 %v12686_v26, %s9562_s30  ;;  %7631 = vmatprep.subr.bf16.mxu0 %v9150_v0 }
 0x4ab   : > { %7632 = vmatpush1.bf16.msra.mxu0 %v9149_v61  ;;  %v5238_v49 = vpop.permute.xlu1 %5237 }
 0x4ac   : > { %v5240_v30 = vpop.permute.xlu0 %5239  ;;  %v5243_v39 = vsel %vm329_vm3, %v5230_v37, %v5238_v49  ;;  %v5247_v2 = vsel %vm329_vm3, %v5238_v49, %v5230_v37 }
 0x4ad   : > { %v5244_v17 = vsel %vm329_vm3, %v5232_v18, %v5240_v30  ;;  %v5248_v50 = vsel %vm329_vm3, %v5240_v30, %v5232_v18  ;;  %v5261_v1 = vmul.f32 %v13423_v22, %v5247_v2  ;;  %v5262_v53 = vmul.f32 %v13425_v9, %v5243_v39  ;;  %6177 = vrot.lane.b32.xlu1 %v12925_v10, %s14383_s7 }
 0x4ae   : > { %v5263_v40 = vmul.f32 %v13427_v23, %v5248_v50  ;;  %v5264_v4 = vmul.f32 %v13429_v7, %v5244_v17  ;;  %6179 = vrot.lane.b32.xlu0 %v12928_v15, %s14383_s7 }
 0x4af   : > { %v5942_v46 = vpop.permute.xlu1 %5941 }
 0x4b0   : > { %v9115_v56 = vpack.c.bf16 %v5263_v40, %v5261_v1  ;;  %v5944_v44 = vpop.permute.xlu0 %5943  ;;  %v9116_v31 = vpack.c.bf16 %v5264_v4, %v5262_v53 }
 0x4b1   : > { %6185 = vrot.lane.b32.xlu1 %v12942_v35, %s14383_s7 }
 0x4b2   : > { %6187 = vrot.lane.b32.xlu0 %v12944_v63, %s14383_s7  ;;  %7533 = vmatprep.subr.bf16.mxu1 %v9116_v31 }
 0x4b3   : > { %7534 = vmatpush1.bf16.msra.mxu1 %v9115_v56  ;;  %v5950_v36 = vpop.permute.xlu1 %5949 }
 0x4b4   : > { %v5952_v8 = vpop.permute.xlu0 %5951  ;;  %v5957_v38 = vsel %vm467_vm1, %v5942_v46, %v5950_v36  ;;  %v5961_v5 = vsel %vm467_vm1, %v5950_v36, %v5942_v46 }
 0x4b5   : > { %v5958_v24 = vsel %vm467_vm1, %v5944_v44, %v5952_v8  ;;  %v5962_v52 = vsel %vm467_vm1, %v5952_v8, %v5944_v44  ;;  %v5973_v25 = vmul.f32 %v5961_v5, %v13274_v54  ;;  %v5974_v13 = vmul.f32 %v5957_v38, %v13276_v12  ;;  %6173 = vrot.lane.b32.xlu1 %v12990_v51, %s14383_s7  ;;  %v13471_v54 = vld [vmem:[#allocation7] sm:$0xff]  ;;  %v13473_v12 = vld [vmem:[#allocation7 + $0x8] sm:$0xff] }
 0x4b6   : > { %v5975_v45 = vmul.f32 %v5962_v52, %v13278_v41  ;;  %v5976_v34 = vmul.f32 %v5958_v24, %v13280_v32  ;;  %6175 = vrot.lane.b32.xlu0 %v12995_v48, %s14383_s7  ;;  %v13475_v41 = vld [vmem:[#allocation7 + $0x10] sm:$0xff]  ;;  %v13477_v32 = vld [vmem:[#allocation7 + $0x18] sm:$0xff] }
 0x4b7   : > { %v5226_v3 = vpop.permute.xlu1 %5225 }
 0x4b8   : > { %v9141_v28 = vpack.c.bf16 %v5975_v45, %v5973_v25  ;;  %v5228_v37 = vpop.permute.xlu0 %5227  ;;  %v9142_v61 = vpack.c.bf16 %v5976_v34, %v5974_v13 }
 0x4b9   : > { %6181 = vrot.lane.b32.xlu1 %v13015_v42, %s14383_s7 }
 0x4ba   : > { %6183 = vrot.lane.b32.xlu0 %v13018_v57, %s14383_s7  ;;  %7633 = vmatprep.subr.bf16.mxu0 %v9142_v61  ;;  %s13903_s7 = scalar_lea.vmem [#allocation10], %s14473_s10 }
 0x4bb   : > { %7634 = vmatpush1.bf16.msra.mxu0 %v9141_v28  ;;  %v5234_v18 = vpop.permute.xlu1 %5233 }
 0x4bc   : > { %v5236_v0 = vpop.permute.xlu0 %5235  ;;  %v5241_v49 = vsel %vm329_vm3, %v5226_v3, %v5234_v18  ;;  %v5245_v30 = vsel %vm329_vm3, %v5234_v18, %v5226_v3 }
 0x4bd   : > { %v5242_v39 = vsel %vm329_vm3, %v5228_v37, %v5236_v0  ;;  %v5246_v2 = vsel %vm329_vm3, %v5236_v0, %v5228_v37  ;;  %v5257_v17 = vmul.f32 %v13471_v54, %v5245_v30  ;;  %v5258_v50 = vmul.f32 %v13473_v12, %v5241_v49  ;;  %6109 = vrot.lane.b32.xlu1 %v12925_v10, %s9562_s30 }
 0x4be   : > { %v5259_v1 = vmul.f32 %v13475_v41, %v5246_v2  ;;  %v5260_v53 = vmul.f32 %v13477_v32, %v5242_v39  ;;  %6111 = vrot.lane.b32.xlu0 %v12928_v15, %s9562_s30 }
 0x4bf   : > { %v5878_v40 = vpop.permute.xlu1 %5877 }
 0x4c0   : > { %v9107_v4 = vpack.c.bf16 %v5259_v1, %v5257_v17  ;;  %v5880_v46 = vpop.permute.xlu0 %5879  ;;  %v9108_v56 = vpack.c.bf16 %v5260_v53, %v5258_v50 }
 0x4c1   : > { %6117 = vrot.lane.b32.xlu1 %v12942_v35, %s9562_s30 }
 0x4c2   : > { %6119 = vrot.lane.b32.xlu0 %v12944_v63, %s9562_s30  ;;  %7535 = vmatprep.subr.bf16.mxu1 %v9108_v56 }
 0x4c3   : > { %7536 = vmatpush1.bf16.msra.mxu1 %v9107_v4  ;;  %v5886_v44 = vpop.permute.xlu1 %5885 }
 0x4c4   : > { %v5888_v31 = vpop.permute.xlu0 %5887  ;;  %v5891_v36 = vsel %vm398_vm2, %v5878_v40, %v5886_v44  ;;  %v5895_v8 = vsel %vm398_vm2, %v5886_v44, %v5878_v40 }
 0x4c5   : > { %v5892_v38 = vsel %vm398_vm2, %v5880_v46, %v5888_v31  ;;  %v5896_v5 = vsel %vm398_vm2, %v5888_v31, %v5880_v46  ;;  %v5909_v24 = vmul.f32 %v5895_v8, %v13327_v29  ;;  %v5910_v52 = vmul.f32 %v5891_v36, %v13329_v62  ;;  %6105 = vrot.lane.b32.xlu1 %v12990_v51, %s9562_s30  ;;  %v13519_v29 = vld [vmem:[#allocation7 + $0x1e0] sm:$0xff]  ;;  %v13521_v62 = vld [vmem:[#allocation7 + $0x1e8] sm:$0xff] }
 0x4c6   : > { %v5911_v25 = vmul.f32 %v5896_v5, %v13331_v33  ;;  %v5912_v13 = vmul.f32 %v5892_v38, %v13333_v27  ;;  %6107 = vrot.lane.b32.xlu0 %v12995_v48, %s9562_s30  ;;  %v13523_v33 = vld [vmem:[#allocation7 + $0x1f0] sm:$0xff]  ;;  %v13525_v27 = vld [vmem:[#allocation7 + $0x1f8] sm:$0xff] }
 0x4c7   : > { %v5666_v45 = vpop.permute.xlu1 %5665 }
 0x4c8   : > { %v9133_v34 = vpack.c.bf16 %v5911_v25, %v5909_v24  ;;  %v5668_v3 = vpop.permute.xlu0 %5667  ;;  %v9134_v28 = vpack.c.bf16 %v5912_v13, %v5910_v52 }
 0x4c9   : > { %6113 = vrot.lane.b32.xlu1 %v13015_v42, %s9562_s30 }
 0x4ca   : > { %6115 = vrot.lane.b32.xlu0 %v13018_v57, %s9562_s30  ;;  %7635 = vmatprep.subr.bf16.mxu0 %v9134_v28  ;;  %s14000_s30 = scalar_lea.hbm %s14054_s6, %s8958_s27 }
 0x4cb   : > { %7636 = vmatpush1.bf16.msra.mxu0 %v9133_v34  ;;  %v5674_v37 = vpop.permute.xlu1 %5673 }
 0x4cc   : > { %v5676_v61 = vpop.permute.xlu0 %5675  ;;  %v5679_v18 = vsel %vm771_vm4, %v5666_v45, %v5674_v37  ;;  %v5683_v0 = vsel %vm771_vm4, %v5674_v37, %v5666_v45  ;;  %v6530_v37 = vld [vmem:[%s14053_s5 + $0x8] sm:$0xff] }
 0x4cd   : > { %v5680_v49 = vsel %vm771_vm4, %v5668_v3, %v5676_v61  ;;  %v5684_v30 = vsel %vm771_vm4, %v5676_v61, %v5668_v3  ;;  %v5697_v39 = vmul.f32 %v13519_v29, %v5679_v18  ;;  %v5698_v2 = vmul.f32 %v13521_v62, %v5683_v0  ;;  %6313 = vrot.lane.b32.xlu1 %v12925_v10, %s14385_s16  ;;  %v13576_v3 = vld [vmem:[#allocation7 + $0x1d8] sm:$0xff] }
 0x4ce   : > { %v5699_v17 = vmul.f32 %v13523_v33, %v5680_v49  ;;  %v5700_v50 = vmul.f32 %v13525_v27, %v5684_v30  ;;  %6315 = vrot.lane.b32.xlu0 %v12928_v15, %s14385_s16 }
 0x4cf   : > { %v5874_v1 = vpop.permute.xlu1 %5873 }
 0x4d0   : > { %v9227_v53 = vpack.c.bf16 %v5699_v17, %v5697_v39  ;;  %v5876_v40 = vpop.permute.xlu0 %5875  ;;  %v9228_v4 = vpack.c.bf16 %v5700_v50, %v5698_v2 }
 0x4d1   : > { %6321 = vrot.lane.b32.xlu1 %v12942_v35, %s14385_s16 }
 0x4d2   : > { %6323 = vrot.lane.b32.xlu0 %v12944_v63, %s14385_s16  ;;  %7537 = vmatprep.subr.bf16.mxu1 %v9228_v4 }
 0x4d3   : > { %7538 = vmatpush2.bf16.msra.mxu1 %v9227_v53  ;;  %v5882_v46 = vpop.permute.xlu1 %5881 }
 0x4d4   : > { %v5884_v56 = vpop.permute.xlu0 %5883  ;;  %v5889_v44 = vsel %vm398_vm2, %v5874_v1, %v5882_v46  ;;  %v5893_v31 = vsel %vm398_vm2, %v5882_v46, %v5874_v1  ;;  %v6531_v1 = vld [vmem:[%s14053_s5 + $0x10] sm:$0xff] }
 0x4d5   : > { %v5890_v36 = vsel %vm398_vm2, %v5876_v40, %v5884_v56  ;;  %v5894_v8 = vsel %vm398_vm2, %v5884_v56, %v5876_v40  ;;  %v5905_v38 = vmul.f32 %v5893_v31, %v13375_v59  ;;  %v5906_v5 = vmul.f32 %v5889_v44, %v13377_v60  ;;  %6309 = vrot.lane.b32.xlu1 %v12990_v51, %s14385_s16  ;;  %v13567_v59 = vld [vmem:[#allocation7 + $0x1c0] sm:$0xff]  ;;  %v13569_v60 = vld [vmem:[#allocation7 + $0x1c8] sm:$0xff]  ;;  %v6532_v40 = vld [vmem:[%s14053_s5 + $0x18] sm:$0xff] }
 0x4d6   : > { %v5907_v24 = vmul.f32 %v5894_v8, %v13379_v14  ;;  %v5908_v52 = vmul.f32 %v5890_v36, %v13381_v6  ;;  %6311 = vrot.lane.b32.xlu0 %v12995_v48, %s14385_s16  ;;  %v6529_v14 = vld [vmem:[%s14053_s5] sm:$0xff]  ;;  %v13574_v6 = vld [vmem:[#allocation7 + $0x1d0] sm:$0xff] }
 0x4d7   : > { %v5662_v25 = vpop.permute.xlu1 %5661 }
 0x4d8   : > { %v9125_v13 = vpack.c.bf16 %v5907_v24, %v5905_v38  ;;  %v5664_v45 = vpop.permute.xlu0 %5663  ;;  %v9126_v34 = vpack.c.bf16 %v5908_v52, %v5906_v5 }
 0x4d9   : > { %6317 = vrot.lane.b32.xlu1 %v13015_v42, %s14385_s16 }
 0x4da   : > { %6319 = vrot.lane.b32.xlu0 %v13018_v57, %s14385_s16  ;;  %7637 = vmatprep.subr.bf16.mxu0 %v9126_v34  ;;  %s7879_s16 = sshll.u32 %s13903_s7, 4  ;;  %s14003_s16 = int_to_ptr.vmem [resolvable:$true] %s7879_s16 }
 0x4db   : > { %7638 = vmatpush1.bf16.msra.mxu0 %v9125_v13  ;;  %v5670_v28 = vpop.permute.xlu1 %5669  ;;  %s9481_s25 = scalar_lea.vmem %s14003_s16, 4096 }
 0x4dc   : > { %v5672_v61 = vpop.permute.xlu0 %5671  ;;  %v5677_v18 = vsel %vm771_vm4, %v5662_v25, %v5670_v28  ;;  %v5681_v0 = vsel %vm771_vm4, %v5670_v28, %v5662_v25  ;;  %p9482_p10 = scmp.ne.s32.totalorder %s14003_s16, %s9481_s25 }
 0x4dd   : > { %v5678_v49 = vsel %vm771_vm4, %v5664_v45, %v5672_v61  ;;  %v5682_v30 = vsel %vm771_vm4, %v5672_v61, %v5664_v45  ;;  %v5693_v39 = vmul.f32 %v13567_v59, %v5677_v18  ;;  %v5694_v2 = vmul.f32 %v13569_v60, %v5681_v0  ;;  %6535 = vperm.xlu1 %9329, %v6529_v14   ;;  %v13613_v61 = vld [vmem:[#allocation7 + $0x1a8] sm:$0xff]  ;;  %v13615_v18 = vld [vmem:[#allocation7 + $0x1b0] sm:$0xff]  ;;  %v13617_v0 = vld [vmem:[#allocation7 + $0x1b8] sm:$0xff] }
 0x4de   : > { %v5695_v17 = vmul.f32 %v13574_v6, %v5678_v49  ;;  %v5696_v50 = vmul.f32 %v13576_v3, %v5682_v30  ;;  %6540 = vperm.xlu0 %9328, %v6530_v37   ;;  %v13611_v37 = vld [vmem:[#allocation7 + $0x1a0] sm:$0xff]  ;;  %p9483_p7 = pnand %p9482_p10, %p14474_p2 }
 0x4df   : > { %v5810_v53 = vpop.permute.xlu1 %5809 }
 0x4e0   : > { %v9219_v4 = vpack.c.bf16 %v5695_v17, %v5693_v39  ;;  %v5812_v46 = vpop.permute.xlu0 %5811  ;;  %v9220_v56 = vpack.c.bf16 %v5696_v50, %v5694_v2  ;;  %p9484_p12 = pneg %p9483_p7 }
 0x4e1   : > { %6545 = vperm.xlu1 %9329, %v6531_v1  }
 0x4e2   : > { %6550 = vperm.xlu0 %9328, %v6532_v40   ;;  %7539 = vmatprep.subr.bf16.mxu1 %v9220_v56 }
 0x4e3   : > { %7540 = vmatpush2.bf16.msra.mxu1 %v9219_v4  ;;  %v5818_v44 = vpop.permute.xlu1 %5817 }
 0x4e4   : > { %v5820_v31 = vpop.permute.xlu0 %5819  ;;  %v5823_v36 = vsel %vm329_vm3, %v5810_v53, %v5818_v44  ;;  %v5827_v8 = vsel %vm329_vm3, %v5818_v44, %v5810_v53 }
 0x4e5   : > { %v5824_v38 = vsel %vm329_vm3, %v5812_v46, %v5820_v31  ;;  %v5828_v5 = vsel %vm329_vm3, %v5820_v31, %v5812_v46  ;;  %v5841_v24 = vmul.f32 %v5827_v8, %v13423_v22  ;;  %v5842_v52 = vmul.f32 %v5823_v36, %v13425_v9 }
 0x4e6   : > { %v5843_v25 = vmul.f32 %v5828_v5, %v13427_v23  ;;  %v5844_v13 = vmul.f32 %v5824_v38, %v13429_v7 }
 0x4e7   : > { %v5598_v45 = vpop.permute.xlu1 %5597 }
 0x4e8   : > { %v9117_v34 = vpack.c.bf16 %v5843_v25, %v5841_v24  ;;  %v5600_v14 = vpop.permute.xlu0 %5599  ;;  %v9118_v28 = vpack.c.bf16 %v5844_v13, %v5842_v52 }
 0x4ea   : > { %7639 = vmatprep.subr.bf16.mxu0 %v9118_v28  ;;  %v13645_v28 = vld [vmem:[#allocation7 + $0x188] sm:$0xff] }
 0x4eb   : > { %7640 = vmatpush1.bf16.msra.mxu0 %v9117_v34  ;;  %v5606_v22 = vpop.permute.xlu1 %5605 }
 0x4ec   : > { %v5608_v9 = vpop.permute.xlu0 %5607  ;;  %v5611_v23 = vsel %vm702_vm5, %v5598_v45, %v5606_v22  ;;  %v5615_v7 = vsel %vm702_vm5, %v5606_v22, %v5598_v45  ;;  %v13647_v22 = vld [vmem:[#allocation7 + $0x190] sm:$0xff] }
 0x4ed   : > { %v5612_v49 = vsel %vm702_vm5, %v5600_v14, %v5608_v9  ;;  %v5616_v30 = vsel %vm702_vm5, %v5608_v9, %v5600_v14  ;;  %v5629_v39 = vmul.f32 %v13611_v37, %v5611_v23  ;;  %v5630_v2 = vmul.f32 %v13613_v61, %v5615_v7  ;;  %v13643_v14 = vld [vmem:[#allocation7 + $0x180] sm:$0xff]  ;;  %v13649_v9 = vld [vmem:[#allocation7 + $0x198] sm:$0xff] }
 0x4ee   : > { %v5631_v17 = vmul.f32 %v13615_v18, %v5612_v49  ;;  %v5632_v50 = vmul.f32 %v13617_v0, %v5616_v30 }
 0x4ef   : > { %v5806_v1 = vpop.permute.xlu1 %5805 }
 0x4f0   : > { %v9211_v53 = vpack.c.bf16 %v5631_v17, %v5629_v39  ;;  %v5808_v40 = vpop.permute.xlu0 %5807  ;;  %v9212_v4 = vpack.c.bf16 %v5632_v50, %v5630_v2 }
 0x4f2   : > { %7541 = vmatprep.subr.bf16.mxu1 %v9212_v4 }
 0x4f3   : > { %7542 = vmatpush2.bf16.msra.mxu1 %v9211_v53  ;;  %v5814_v46 = vpop.permute.xlu1 %5813 }
 0x4f4   : > { %v5816_v56 = vpop.permute.xlu0 %5815  ;;  %v5821_v44 = vsel %vm329_vm3, %v5806_v1, %v5814_v46  ;;  %v5825_v31 = vsel %vm329_vm3, %v5814_v46, %v5806_v1 }
 0x4f5   : > { %v5822_v36 = vsel %vm329_vm3, %v5808_v40, %v5816_v56  ;;  %v5826_v8 = vsel %vm329_vm3, %v5816_v56, %v5808_v40  ;;  %v5837_v38 = vmul.f32 %v5825_v31, %v13471_v54  ;;  %v5838_v5 = vmul.f32 %v5821_v44, %v13473_v12 }
 0x4f6   : > { %v5839_v24 = vmul.f32 %v5826_v8, %v13475_v41  ;;  %v5840_v52 = vmul.f32 %v5822_v36, %v13477_v32 }
 0x4f7   : > { %v5594_v25 = vpop.permute.xlu1 %5593 }
 0x4f8   : > { %v9109_v13 = vpack.c.bf16 %v5839_v24, %v5837_v38  ;;  %v5596_v45 = vpop.permute.xlu0 %5595  ;;  %v9110_v34 = vpack.c.bf16 %v5840_v52, %v5838_v5 }
 0x4fa   : > { %7641 = vmatprep.subr.bf16.mxu0 %v9110_v34  ;;  %v13677_v34 = vld [vmem:[#allocation7 + $0x168] sm:$0xff] }
 0x4fb   : > { %7642 = vmatpush1.bf16.msra.mxu0 %v9109_v13  ;;  %v5602_v54 = vpop.permute.xlu1 %5601 }
 0x4fc   : > { %v5604_v12 = vpop.permute.xlu0 %5603  ;;  %v5609_v41 = vsel %vm702_vm5, %v5594_v25, %v5602_v54  ;;  %v5613_v32 = vsel %vm702_vm5, %v5602_v54, %v5594_v25  ;;  %v13679_v54 = vld [vmem:[#allocation7 + $0x170] sm:$0xff] }
 0x4fd   : > { %v5610_v23 = vsel %vm702_vm5, %v5596_v45, %v5604_v12  ;;  %v5614_v7 = vsel %vm702_vm5, %v5604_v12, %v5596_v45  ;;  %v5625_v49 = vmul.f32 %v13643_v14, %v5609_v41  ;;  %v5626_v30 = vmul.f32 %v13645_v28, %v5613_v32  ;;  %v13675_v45 = vld [vmem:[#allocation7 + $0x160] sm:$0xff]  ;;  %v13681_v12 = vld [vmem:[#allocation7 + $0x178] sm:$0xff] }
 0x4fe   : > { %v5627_v39 = vmul.f32 %v13647_v22, %v5610_v23  ;;  %v5628_v2 = vmul.f32 %v13649_v9, %v5614_v7 }
 0x4ff   : > { %v6246_v17 = vpop.permute.xlu1 %6245 }
 0x500   : > { %v9203_v50 = vpack.c.bf16 %v5627_v39, %v5625_v49  ;;  %v6248_v1 = vpop.permute.xlu0 %6247  ;;  %v9204_v53 = vpack.c.bf16 %v5628_v2, %v5626_v30 }
 0x502   : > { %7543 = vmatprep.subr.bf16.mxu1 %v9204_v53 }
 0x503   : > { %7544 = vmatpush2.bf16.msra.mxu1 %v9203_v50  ;;  %v6254_v40 = vpop.permute.xlu1 %6253 }
 0x504   : > { %v6256_v4 = vpop.permute.xlu0 %6255  ;;  %v6259_v46 = vsel %vm771_vm4, %v6246_v17, %v6254_v40  ;;  %v6263_v56 = vsel %vm771_vm4, %v6254_v40, %v6246_v17 }
 0x505   : > { %v6260_v44 = vsel %vm771_vm4, %v6248_v1, %v6256_v4  ;;  %v6264_v31 = vsel %vm771_vm4, %v6256_v4, %v6248_v1  ;;  %v6277_v36 = vmul.f32 %v6259_v46, %v13519_v29  ;;  %v6278_v8 = vmul.f32 %v6263_v56, %v13521_v62 }
 0x506   : > { %v6279_v38 = vmul.f32 %v6260_v44, %v13523_v33  ;;  %v6280_v5 = vmul.f32 %v6264_v31, %v13525_v27 }
 0x507   : > { %v5530_v24 = vpop.permute.xlu1 %5529 }
 0x508   : > { %v9229_v52 = vpack.c.bf16 %v6279_v38, %v6277_v36  ;;  %v5532_v25 = vpop.permute.xlu0 %5531  ;;  %v9230_v13 = vpack.c.bf16 %v6280_v5, %v6278_v8 }
 0x50a   : > { %7643 = vmatprep.subr.bf16.mxu0 %v9230_v13  ;;  %v13709_v13 = vld [vmem:[#allocation7 + $0x148] sm:$0xff] }
 0x50b   : > { %7644 = vmatpush2.bf16.msra.mxu0 %v9229_v52  ;;  %v5538_v29 = vpop.permute.xlu1 %5537 }
 0x50c   : > { %v5540_v62 = vpop.permute.xlu0 %5539  ;;  %v5543_v33 = vsel %vm633_vm6, %v5530_v24, %v5538_v29  ;;  %v5547_v27 = vsel %vm633_vm6, %v5538_v29, %v5530_v24  ;;  %v13711_v29 = vld [vmem:[#allocation7 + $0x150] sm:$0xff] }
 0x50d   : > { %v5544_v41 = vsel %vm633_vm6, %v5532_v25, %v5540_v62  ;;  %v5548_v32 = vsel %vm633_vm6, %v5540_v62, %v5532_v25  ;;  %v5561_v23 = vmul.f32 %v13675_v45, %v5543_v33  ;;  %v5562_v7 = vmul.f32 %v13677_v34, %v5547_v27  ;;  %v13707_v25 = vld [vmem:[#allocation7 + $0x140] sm:$0xff]  ;;  %v13713_v62 = vld [vmem:[#allocation7 + $0x158] sm:$0xff] }
 0x50e   : > { %v5563_v49 = vmul.f32 %v13679_v54, %v5544_v41  ;;  %v5564_v30 = vmul.f32 %v13681_v12, %v5548_v32 }
 0x50f   : > { %v6242_v39 = vpop.permute.xlu1 %6241 }
 0x510   : > { %v9195_v2 = vpack.c.bf16 %v5563_v49, %v5561_v23  ;;  %v6244_v17 = vpop.permute.xlu0 %6243  ;;  %v9196_v50 = vpack.c.bf16 %v5564_v30, %v5562_v7 }
 0x512   : > { %7545 = vmatprep.subr.bf16.mxu1 %v9196_v50  ;;  %v9180_v50 = vpack.c.bf16 %v12647_v47, %v12642_v21 }
 0x513   : > { %7546 = vmatpush2.bf16.msra.mxu1 %v9195_v2  ;;  %v6250_v1 = vpop.permute.xlu1 %6249 }
 0x514   : > { %v6252_v53 = vpop.permute.xlu0 %6251  ;;  %v6257_v40 = vsel %vm771_vm4, %v6242_v39, %v6250_v1  ;;  %v6261_v4 = vsel %vm771_vm4, %v6250_v1, %v6242_v39 }
 0x515   : > { %v6258_v46 = vsel %vm771_vm4, %v6244_v17, %v6252_v53  ;;  %v6262_v56 = vsel %vm771_vm4, %v6252_v53, %v6244_v17  ;;  %v6273_v44 = vmul.f32 %v6257_v40, %v13567_v59  ;;  %v6274_v31 = vmul.f32 %v6261_v4, %v13569_v60  ;;  %v13727_v17 = vpop.f32.mrf.mxu0 }
 0x516   : > { %v6275_v36 = vmul.f32 %v6258_v46, %v13574_v6  ;;  %v6276_v8 = vmul.f32 %v6262_v56, %v13576_v3  ;;  %v9179_v46 = vpack.c.bf16 %v12627_v20, %v12623_v55  ;;  %v13737_v56 = vpop.f32.mrf.mxu1  ;;  %v9172_v55 = vpack.c.bf16 %v12686_v26, %v12681_v11 }
 0x517   : > { %v5526_v38 = vpop.permute.xlu1 %5525 }
 0x518   : > { %v9221_v5 = vpack.c.bf16 %v6275_v36, %v6273_v44  ;;  %v5528_v24 = vpop.permute.xlu0 %5527  ;;  %v9222_v52 = vpack.c.bf16 %v6276_v8, %v6274_v31  ;;  %v13745_v36 = vpop.f32.mrf.mxu0 }
 0x51a   : > { %7645 = vmatprep.subr.bf16.mxu0 %v9222_v52 }
 0x51b   : > { %7646 = vmatpush2.bf16.msra.mxu0 %v9221_v5  ;;  %v5534_v59 = vpop.permute.xlu1 %5533 }
 0x51c   : > { %v5536_v60 = vpop.permute.xlu0 %5535  ;;  %v5541_v6 = vsel %vm633_vm6, %v5526_v38, %v5534_v59  ;;  %v5545_v3 = vsel %vm633_vm6, %v5534_v59, %v5526_v38  ;;  %v13751_v59 = vpop.f32.mrf.mxu1 }
 0x51d   : > { %v5542_v33 = vsel %vm633_vm6, %v5528_v24, %v5536_v60  ;;  %v5546_v27 = vsel %vm633_vm6, %v5536_v60, %v5528_v24  ;;  %v5557_v41 = vmul.f32 %v13707_v25, %v5541_v6  ;;  %v5558_v32 = vmul.f32 %v13709_v13, %v5545_v3 }
 0x51e   : > { %v5559_v23 = vmul.f32 %v13711_v29, %v5542_v33  ;;  %v5560_v7 = vmul.f32 %v13713_v62, %v5546_v27  ;;  %v13761_v60 = vpop.f32.mrf.mxu1 }
 0x51f   : > { %v6178_v49 = vpop.permute.xlu1 %6177 }
 0x520   : > { %v9187_v30 = vpack.c.bf16 %v5559_v23, %v5557_v41  ;;  %v6180_v39 = vpop.permute.xlu0 %6179  ;;  %v9188_v2 = vpack.c.bf16 %v5560_v7, %v5558_v32  ;;  %v13773_v32 = vld [vmem:[#allocation9] ss:$12 sps:$4 sm:$0xff]   ;;  %v13776_v7 = vld [vmem:[#allocation9 + $0x1c] ss:$12 sps:$4 sm:$0xff]  }
 0x522   : > { %7547 = vmatprep.subr.bf16.mxu1 %v9188_v2 }
 0x523   : > { %7548 = vmatpush2.bf16.msra.mxu1 %v9187_v30  ;;  %v6186_v1 = vpop.permute.xlu1 %6185 }
 0x524   : > { %v6188_v53 = vpop.permute.xlu0 %6187  ;;  %v6191_v40 = vsel %vm702_vm5, %v6178_v49, %v6186_v1  ;;  %v6195_v4 = vsel %vm702_vm5, %v6186_v1, %v6178_v49  ;;  %7549 = vmatprep.subr.bf16.mxu1 %v9180_v50 }
 0x525   : > { %v6192_v44 = vsel %vm702_vm5, %v6180_v39, %v6188_v53  ;;  %v6196_v21 = vsel %vm702_vm5, %v6188_v53, %v6180_v39  ;;  %v6209_v47 = vmul.f32 %v6191_v40, %v13611_v37  ;;  %v6210_v31 = vmul.f32 %v6195_v4, %v13613_v61  ;;  %v13755_v61 = vpop.f32.mrf.mxu0  ;;  %v13779_v39 = vpop.f32.mrf.mxu1 }
 0x526   : > { %v6211_v8 = vmul.f32 %v6192_v44, %v13615_v18  ;;  %v6212_v38 = vmul.f32 %v6196_v21, %v13617_v0  ;;  %v9171_v37 = vpack.c.bf16 %v12668_v58, %v12663_v19 }
 0x527   : > { %7550 = vmatpush2.bf16.msra.mxu1 %v9179_v46  ;;  %v6174_v20 = vpop.permute.xlu1 %6173  ;;  %v13769_v33 = vpop.f32.mrf.mxu0 }
 0x528   : > { %v9213_v5 = vpack.c.bf16 %v6211_v8, %v6209_v47  ;;  %v6176_v24 = vpop.permute.xlu0 %6175  ;;  %7551 = vmatprep.subr.bf16.mxu1 %v9172_v55  ;;  %v9214_v52 = vpack.c.bf16 %v6212_v38, %v6210_v31  ;;  %v13787_v1 = vpop.f32.mrf.mxu1  ;;  %v13799_v31 = vld [vmem:[#allocation9 + $0x18] ss:$12 sps:$4 sm:$0xff]  }
 0x52a   : > { %7647 = vmatprep.subr.bf16.mxu0 %v9214_v52 }
 0x52b   : > { %7552 = vmatpush2.bf16.msra.mxu1 %v9171_v37  ;;  %7648 = vmatpush2.bf16.msra.mxu0 %v9213_v5  ;;  %v6182_v18 = vpop.permute.xlu1 %6181  ;;  %v13803_v5 = vpop.f32.mrf.mxu1 }
 0x52c   : > { %v6184_v0 = vpop.permute.xlu0 %6183  ;;  %v6189_v11 = vsel %vm702_vm5, %v6174_v20, %v6182_v18  ;;  %v6193_v26 = vsel %vm702_vm5, %v6182_v18, %v6174_v20 }
 0x52d   : > { %v6190_v6 = vsel %vm702_vm5, %v6176_v24, %v6184_v0  ;;  %v6194_v19 = vsel %vm702_vm5, %v6184_v0, %v6176_v24  ;;  %v6205_v58 = vmul.f32 %v6189_v11, %v13643_v14  ;;  %v6206_v3 = vmul.f32 %v6193_v26, %v13645_v28  ;;  %v13781_v28 = vpop.f32.mrf.mxu0  ;;  %v13811_v52 = vpop.f32.mrf.mxu1 }
 0x52e   : > { %v6207_v27 = vmul.f32 %v6190_v6, %v13647_v22  ;;  %v6208_v41 = vmul.f32 %v6194_v19, %v13649_v9  ;;  %7554 = vmatmul.mubr.bf16.vlgmr.msra.gmra.mxu1 %v13773_v32 }
 0x52f   : > { %v6110_v23 = vpop.permute.xlu1 %6109  ;;  %7563 = vmatprep.mubr.bf16.mxu1 %v13776_v7  ;;  %v13795_v44 = vpop.f32.mrf.mxu0 }
 0x530   : > { %v9205_v49 = vpack.c.bf16 %v6207_v27, %v6205_v58  ;;  %v6112_v30 = vpop.permute.xlu0 %6111  ;;  %v9206_v14 = vpack.c.bf16 %v6208_v41, %v6206_v3 }
 0x532   : > { %7649 = vmatprep.subr.bf16.mxu0 %v9206_v14  ;;  %v6339_v14 = vld [vmem:[#allocation7 + $0x230] sm:$0xff] }
 0x533   : > { %7650 = vmatpush2.bf16.msra.mxu0 %v9205_v49  ;;  %v6118_v22 = vpop.permute.xlu1 %6117 }
 0x534   : > { %v6120_v9 = vpop.permute.xlu0 %6119  ;;  %v6123_v2 = vsel %vm633_vm6, %v6110_v23, %v6118_v22  ;;  %v6127_v50 = vsel %vm633_vm6, %v6118_v22, %v6110_v23  ;;  %v13823_v23 = vpop.f32.mrf.mxu1  ;;  %v6340_v22 = vld [vmem:[#allocation7 + $0x238] sm:$0xff] }
 0x535   : > { %v6124_v53 = vsel %vm633_vm6, %v6112_v30, %v6120_v9  ;;  %v6128_v40 = vsel %vm633_vm6, %v6120_v9, %v6112_v30  ;;  %v6141_v4 = vmul.f32 %v6123_v2, %v13675_v45  ;;  %v6142_v46 = vmul.f32 %v6127_v50, %v13677_v34  ;;  %v13805_v45 = vpop.f32.mrf.mxu0  ;;  %v6337_v30 = vld [vmem:[#allocation7 + $0x220] sm:$0xff] }
 0x536   : > { %v6143_v21 = vmul.f32 %v6124_v53, %v13679_v54  ;;  %v6144_v47 = vmul.f32 %v6128_v40, %v13681_v12  ;;  %7564 = vmatmul.mubr.bf16.gmra.mxu1 %v13799_v31  ;;  %v9181_v50 = vpack.c.bf16 %v12928_v15, %v12925_v10  ;;  %v13835_v53 = vpop.f32.mrf.mxu1 }
 0x537   : > { %v6106_v8 = vpop.permute.xlu1 %6105  ;;  %7712 = vmatprep.mubr.bf16.mxu1 %v14457_v16  ;;  %v13819_v26 = vpop.f32.mrf.mxu0 }
 0x538   : > { %v9197_v38 = vpack.c.bf16 %v6143_v21, %v6141_v4  ;;  %v6108_v55 = vpop.permute.xlu0 %6107  ;;  %v9198_v20 = vpack.c.bf16 %v6144_v47, %v6142_v46 }
 0x539   : > { %v13825_v49 = vpop.f32.mrf.mxu0 }
 0x53a   : > { %7651 = vmatprep.subr.bf16.mxu0 %v9198_v20  ;;  %v7504_v20 = vpop.f32.mrf.mxu1 }
 0x53b   : > { %7652 = vmatpush2.bf16.msra.mxu0 %v9197_v38  ;;  %v6114_v34 = vpop.permute.xlu1 %6113  ;;  %v7451_v46 = vpop.f32.mrf.mxu0 }
 0x53c   : > { %v6116_v54 = vpop.permute.xlu0 %6115  ;;  %v6121_v12 = vsel %vm633_vm6, %v6106_v8, %v6114_v34  ;;  %v6125_v24 = vsel %vm633_vm6, %v6114_v34, %v6106_v8  ;;  %v9174_v8 = vpack.c.bf16 %v13018_v57, %v13015_v42  ;;  %v9173_v34 = vpack.c.bf16 %v12995_v48, %v12990_v51 }
 0x53d   : > { %v6122_v37 = vsel %vm633_vm6, %v6108_v55, %v6116_v54  ;;  %v6126_v18 = vsel %vm633_vm6, %v6116_v54, %v6108_v55  ;;  %v6137_v0 = vmul.f32 %v6121_v12, %v13707_v25  ;;  %v6138_v11 = vmul.f32 %v6125_v24, %v13709_v13  ;;  %v6338_v13 = vld [vmem:[#allocation7 + $0x228] sm:$0xff]  ;;  %v7453_v54 = vpop.f32.mrf.mxu0  ;;  %v6333_v12 = vld [vmem:[#allocation7 + $0x200] sm:$0xff] }
 0x53e   : > { %v6139_v6 = vmul.f32 %v6122_v37, %v13711_v29  ;;  %v6140_v19 = vmul.f32 %v6126_v18, %v13713_v62  ;;  %v9182_v25 = vpack.c.bf16 %v12944_v63, %v12942_v35  ;;  %v6334_v24 = vld [vmem:[#allocation7 + $0x208] sm:$0xff]  ;;  %v6335_v37 = vld [vmem:[#allocation7 + $0x210] sm:$0xff]  ;;  %v6336_v18 = vld [vmem:[#allocation7 + $0x218] sm:$0xff] }
 0x53f   : > { %v6314_v58 = vpop.permute.xlu1 %6313 }
 0x540   : > { %v9189_v3 = vpack.c.bf16 %v6139_v6, %v6137_v0  ;;  %v6316_v27 = vpop.permute.xlu0 %6315  ;;  %v9190_v41 = vpack.c.bf16 %v6140_v19, %v6138_v11  ;;  %v7506_v6 = vpop.f32.mrf.mxu1 }
 0x542   : > { %7653 = vmatprep.subr.bf16.mxu0 %v9190_v41 }
 0x543   : > { %7654 = vmatpush2.bf16.msra.mxu0 %v9189_v3  ;;  %v6322_v29 = vpop.permute.xlu1 %6321  ;;  %v7455_v3 = vpop.f32.mrf.mxu0 }
 0x544   : > { %v6324_v9 = vpop.permute.xlu0 %6323  ;;  %7655 = vmatprep.subr.bf16.mxu0 %v9182_v25  ;;  %v6327_v62 = vsel %vm840_vm7, %v6314_v58, %v6322_v29  ;;  %v6331_v2 = vsel %vm840_vm7, %v6322_v29, %v6314_v58  ;;  %v9399_v29 = vld [vmem:[#allocation9 + $0x8] ss:$12 sps:$4 sm:$0xff]  }
 0x545   : > { %v6328_v35 = vsel %vm840_vm7, %v6316_v27, %v6324_v9  ;;  %v6332_v63 = vsel %vm840_vm7, %v6324_v9, %v6316_v27  ;;  %v6345_v40 = vmul.f32 %v6337_v30, %v6327_v62  ;;  %v6346_v4 = vmul.f32 %v6338_v13, %v6331_v2  ;;  %v7508_v13 = vpop.f32.mrf.mxu1 }
 0x546   : > { %v6347_v21 = vmul.f32 %v6339_v14, %v6328_v35  ;;  %v6348_v47 = vmul.f32 %v6340_v22, %v6332_v63  ;;  %v13855_v14 = vpop.f32.mrf.mxu0 }
 0x547   : > { %7656 = vmatpush2.bf16.msra.mxu0 %v9181_v50  ;;  %v6310_v38 = vpop.permute.xlu1 %6309  ;;  %v13857_v22 = vpop.f32.mrf.mxu1 }
 0x548   : > { %v9245_v55 = vpack.c.bf16 %v6347_v21, %v6345_v40  ;;  %v6312_v10 = vpop.permute.xlu0 %6311  ;;  %7657 = vmatprep.subr.bf16.mxu0 %v9174_v8  ;;  %v9246_v15 = vpack.c.bf16 %v6348_v47, %v6346_v4  ;;  %v13859_v43 = vpop.f32.mrf.mxu0  ;;  %v7765_v4 = vld [vmem:[%s9743_s20] sm:$0xff] }
 0x54a   : > { %7692 = vmatprep.subr.bf16.mxu1 %v9246_v15  ;;  %v7463_v35 = vpop.f32.mrf.mxu0  ;;  %v8613_v15 = vld [vmem:[%s9743_s20 + $0x40] sm:$0xff] }
 0x54b   : > { %7658 = vmatpush2.bf16.msra.mxu0 %v9173_v34  ;;  %7693 = vmatpush1.bf16.msra.mxu1 %v9245_v55  ;;  %v6318_v0 = vpop.permute.xlu1 %6317  ;;  %v8614_v34 = vld [vmem:[%s9743_s20 + $0x48] sm:$0xff] }
 0x54c   : > { %v6320_v42 = vpop.permute.xlu0 %6319  ;;  %v6325_v57 = vsel %vm840_vm7, %v6310_v38, %v6318_v0  ;;  %v6329_v11 = vsel %vm840_vm7, %v6318_v0, %v6310_v38 }
 0x54d   : > { %v6326_v51 = vsel %vm840_vm7, %v6312_v10, %v6320_v42  ;;  %v6330_v48 = vsel %vm840_vm7, %v6320_v42, %v6312_v10  ;;  %v6341_v19 = vmul.f32 %v6333_v12, %v6325_v57  ;;  %v6342_v58 = vmul.f32 %v6334_v24, %v6329_v11  ;;  %v7766_v10 = vld [vmem:[%s9743_s20 + $0x8] sm:$0xff]  ;;  %v8615_v12 = vld [vmem:[%s9743_s20 + $0x50] sm:$0xff]  ;;  %v8616_v24 = vld [vmem:[%s9743_s20 + $0x58] sm:$0xff] }
 0x54e   : > { %v6343_v27 = vmul.f32 %v6335_v37, %v6326_v51  ;;  %v6344_v41 = vmul.f32 %v6336_v18, %v6330_v48  ;;  %7660 = vmatmul.mubr.bf16.vlgmr.msra.gmra.mxu0 %v13773_v32  ;;  %v9400_v11 = vld [vmem:[#allocation9 + $0x20] ss:$12 sps:$4 sm:$0xff]  }
 0x54f   : > { %7669 = vmatprep.mubr.bf16.mxu0 %v13776_v7  ;;  %v13866_v7 = vpop.f32.mrf.mxu1 }
 0x550   : > { %v9237_v25 = vpack.c.bf16 %v6343_v27, %v6341_v19  ;;  %v9238_v30 = vpack.c.bf16 %v6344_v41, %v6342_v58 }
 0x552   : > { %7694 = vmatprep.subr.bf16.mxu1 %v9238_v30 }
 0x553   : > { %7695 = vmatpush1.bf16.msra.mxu1 %v9237_v25 }
 0x556   : > { %7670 = vmatmul.mubr.bf16.gmra.mxu0 %v13799_v31  ;;  %8611 = vmatmul.mubr.msk.bf16.vlgmr.msra.gmra.mxu1 %vm3562_vm8, %v9399_v29 }
 0x557   : > { %7722 = vmatprep.mubr.bf16.mxu1 %v14457_v16 }
 0x558   : > { %v13864_v32 = vpop.permute.xlu1 %6535 }
 0x559   : > { %v13868_v9 = vpop.permute.xlu0 %6540  ;;  %v7344_v62 = vadd.f32 %v13737_v56, %v13864_v32  ;;  %v7346_v31 = vadd.f32 %v13751_v59, %v13864_v32  ;;  %v7450_v2 = vadd.f32 %v13825_v49, %v13864_v32  ;;  %v7452_v50 = vadd.f32 %v7451_v46, %v13864_v32  ;;  %v7767_v59 = vld [vmem:[%s9743_s20 + $0x10] sm:$0xff]  ;;  %v7768_v49 = vld [vmem:[%s9743_s20 + $0x18] sm:$0xff] }
 0x55a   : > { %v7348_v16 = vadd.f32 %v13761_v60, %v13868_v9  ;;  %v7350_v63 = vadd.f32 %v13779_v39, %v13868_v9  ;;  %v7454_v56 = vadd.f32 %v7453_v54, %v13868_v9  ;;  %v7456_v40 = vadd.f32 %v7455_v3, %v13868_v9  ;;  %v7516_v54 = vpop.f32.mrf.mxu1 }
 0x55b   : > { %v7397_v46 = vadd.f32 %v13727_v17, %v7344_v62  ;;  %v7399_v21 = vadd.f32 %v13745_v36, %v7346_v31  ;;  %v7503_v60 = vadd.f32 %v13835_v53, %v7450_v2  ;;  %v7505_v47 = vadd.f32 %v7504_v20, %v7452_v50  ;;  %v7465_v36 = vpop.f32.mrf.mxu0  ;;  %v7771_v50 = vld [vmem:[%s9743_s20 + $0x30] sm:$0xff] }
 0x55c   : > { %v7401_v8 = vadd.f32 %v13755_v61, %v7348_v16  ;;  %v7403_v39 = vadd.f32 %v13769_v33, %v7350_v63  ;;  %v7507_v38 = vadd.f32 %v7506_v6, %v7454_v56  ;;  %v7509_v55 = vadd.f32 %v7508_v13, %v7456_v40  ;;  %v13898_v33 = vpop.permute.xlu1 %6545  ;;  %v7518_v25 = vpop.f32.mrf.mxu1  ;;  %v7769_v56 = vld [vmem:[%s9743_s20 + $0x20] sm:$0xff] }
 0x55d   : > { %v7733_v37 = vmax.f32 %v7397_v46, 0.0  ;;  %v7734_v18 = vmax.f32 %v7399_v21, 0.0  ;;  %v7735_v17 = vmax.f32 %v7503_v60, 0.0  ;;  %v7736_v0 = vmax.f32 %v7505_v47, 0.0  ;;  %v13896_v57 = vpop.permute.xlu0 %6550  ;;  %v8620_v46 = vld [vmem:[%s9743_s20 + $0x78] sm:$0xff] }
 0x55e   : > { %v7741_v42 = vmax.f32 %v7401_v8, 0.0  ;;  %v7742_v53 = vmax.f32 %v7403_v39, 0.0  ;;  %v7743_v20 = vmax.f32 %v7507_v38, 0.0  ;;  %v7744_v61 = vmax.f32 %v7509_v55, 0.0  ;;  %8612 = vmatmul.mubr.msk.bf16.gmra.mxu1 %vm3562_vm8, %v9400_v11  ;;  %v8629_v11 = vld [vmem:[%s9743_s20 + $0x80] sm:$0xff] }
 0x55f   : > { %v7773_v6 = vadd.f32 %v7765_v4, %v7733_v37  ;;  %v7774_v51 = vadd.f32 %v7766_v10, %v7734_v18  ;;  %v7797_v48 = vadd.f32 %v8613_v15, %v7735_v17  ;;  %v7798_v19 = vadd.f32 %v8614_v34, %v7736_v0 }
 0x560   : > { %v7775_v58 = vadd.f32 %v7767_v59, %v7741_v42  ;;  %v7776_v3 = vadd.f32 %v7768_v49, %v7742_v53  ;;  %v7799_v27 = vadd.f32 %v8615_v12, %v7743_v20  ;;  %v7800_v41 = vadd.f32 %v8616_v24, %v7744_v61  ;;  %v7770_v59 = vld [vmem:[%s9743_s20 + $0x28] sm:$0xff]  ;;  %v7608_v24 = vpop.f32.mrf.mxu0 }
 0x561   : > { %7781 = vst [vmem:[%s13903_s7] sm:$0xff] %v7773_v6  ;;  %7782 = vst [vmem:[%s13903_s7 + $0x8] sm:$0xff] %v7774_v51  ;;  %v7358_v30 = vadd.f32 %v13811_v52, %v13896_v57  ;;  %v7360_v13 = vadd.f32 %v13823_v23, %v13896_v57  ;;  %v7466_v29 = vadd.f32 %v7465_v36, %v13896_v57 }
 0x562   : > { %8621 = vst [vmem:[%s13903_s7 + $0x40] sm:$0xff] %v7797_v48  ;;  %8622 = vst [vmem:[%s13903_s7 + $0x48] sm:$0xff] %v7798_v19  ;;  %v7354_v62 = vadd.f32 %v13787_v1, %v13898_v33  ;;  %v7356_v31 = vadd.f32 %v13803_v5, %v13898_v33  ;;  %v7460_v52 = vadd.f32 %v13855_v14, %v13898_v33  ;;  %v7772_v1 = vld [vmem:[%s9743_s20 + $0x38] sm:$0xff]  ;;  %v8617_v14 = vld [vmem:[%s9743_s20 + $0x60] sm:$0xff]  ;;  %v7610_v37 = vpop.f32.mrf.mxu0 }
 0x563   : > { %7783 = vst [vmem:[%s13903_s7 + $0x10] sm:$0xff] %v7775_v58  ;;  %7784 = vst [vmem:[%s13903_s7 + $0x18] sm:$0xff] %v7776_v3  ;;  %v7462_v23 = vadd.f32 %v13859_v43, %v13898_v33  ;;  %v7464_v2 = vadd.f32 %v7463_v35, %v13896_v57  ;;  %v7411_v16 = vadd.f32 %v13805_v45, %v7358_v30  ;;  %v8618_v45 = vld [vmem:[%s9743_s20 + $0x68] sm:$0xff] }
 0x564   : > { %8623 = vst [vmem:[%s13903_s7 + $0x50] sm:$0xff] %v7799_v27  ;;  %8624 = vst [vmem:[%s13903_s7 + $0x58] sm:$0xff] %v7800_v41  ;;  %v7413_v63 = vadd.f32 %v13819_v26, %v7360_v13  ;;  %v7407_v5 = vadd.f32 %v13781_v28, %v7354_v62  ;;  %v7519_v40 = vadd.f32 %v7518_v25, %v7466_v29  ;;  %v8619_v26 = vld [vmem:[%s9743_s20 + $0x70] sm:$0xff]  ;;  %v7612_v18 = vpop.f32.mrf.mxu0  ;;  %v8630_v58 = vld [vmem:[%s9743_s20 + $0x88] sm:$0xff] }
 0x565   : > { %v7409_v49 = vadd.f32 %v13795_v44, %v7356_v31  ;;  %v7513_v43 = vadd.f32 %v13857_v22, %v7460_v52  ;;  %v7515_v35 = vadd.f32 %v13866_v7, %v7462_v23  ;;  %v7517_v4 = vadd.f32 %v7516_v54, %v7464_v2  ;;  %v8631_v29 = vld [vmem:[%s9743_s20 + $0x90] sm:$0xff] }
 0x566   : > { %v7757_v21 = vmax.f32 %v7411_v16, 0.0  ;;  %v7758_v60 = vmax.f32 %v7413_v63, 0.0  ;;  %v7749_v47 = vmax.f32 %v7407_v5, 0.0  ;;  %v7760_v28 = vmax.f32 %v7519_v40, 0.0  ;;  %v7614_v17 = vpop.f32.mrf.mxu0 }
 0x567   : > { %v7750_v8 = vmax.f32 %v7409_v49, 0.0  ;;  %v7751_v39 = vmax.f32 %v7513_v43, 0.0  ;;  %v7752_v44 = vmax.f32 %v7515_v35, 0.0  ;;  %v7759_v22 = vmax.f32 %v7517_v4, 0.0 }
 0x568   : > { %v7779_v7 = vadd.f32 %v7771_v50, %v7757_v21  ;;  %v7780_v38 = vadd.f32 %v7772_v1, %v7758_v60  ;;  %v7777_v55 = vadd.f32 %v7769_v56, %v7749_v47  ;;  %v7804_v10 = vadd.f32 %v8620_v46, %v7760_v28  ;;  %v7618_v53 = vpop.f32.mrf.mxu0  ;;  %v8632_v50 = vld [vmem:[%s9743_s20 + $0x98] sm:$0xff]  ;;  %v8634_v46 = vld [vmem:[%s9743_s20 + $0xa8] sm:$0xff] }
 0x569   : > { %v7778_v15 = vadd.f32 %v7770_v59, %v7750_v8  ;;  %v7801_v34 = vadd.f32 %v8617_v14, %v7751_v39  ;;  %v7802_v54 = vadd.f32 %v8618_v45, %v7752_v44  ;;  %v7803_v12 = vadd.f32 %v8619_v26, %v7759_v22  ;;  %v8633_v59 = vld [vmem:[%s9743_s20 + $0xa0] sm:$0xff]  ;;  %v8635_v8 = vld [vmem:[%s9743_s20 + $0xb0] sm:$0xff] }
 0x56a   : > { %7787 = vst [vmem:[%s13903_s7 + $0x30] sm:$0xff] %v7779_v7  ;;  %7788 = vst [vmem:[%s13903_s7 + $0x38] sm:$0xff] %v7780_v38  ;;  %v7620_v27 = vpop.f32.mrf.mxu0  ;;  %v8636_v7 = vld [vmem:[%s9743_s20 + $0xb8] sm:$0xff] }
 0x56b   : > { %7785 = vst [vmem:[%s13903_s7 + $0x20] sm:$0xff] %v7777_v55  ;;  %8628 = vst [vmem:[%s13903_s7 + $0x78] sm:$0xff] %v7804_v10 }
 0x56c   : > { %7786 = vst [vmem:[%s13903_s7 + $0x28] sm:$0xff] %v7778_v15  ;;  %8625 = vst [vmem:[%s13903_s7 + $0x60] sm:$0xff] %v7801_v34  ;;  %v7622_v16 = vpop.f32.mrf.mxu0 }
 0x56d   : > { %8626 = vst [vmem:[%s13903_s7 + $0x68] sm:$0xff] %v7802_v54  ;;  %8627 = vst [vmem:[%s13903_s7 + $0x70] sm:$0xff] %v7803_v12 }
 0x56e   : > { %v7624_v60 = vpop.f32.mrf.mxu0 }
 0x5ee   : > { %v7555_v0 = vpop.f32.mrf.mxu1 }
 0x5ef   : > { %v7556_v36 = vadd.f32 %v7555_v0, %v13864_v32 }
 0x5f0   : > { %v7557_v42 = vpop.f32.mrf.mxu1 }
 0x5f1   : > { %v7609_v20 = vadd.f32 %v7608_v24, %v7556_v36  ;;  %v7558_v61 = vadd.f32 %v7557_v42, %v13864_v32  ;;  %v8645_v36 = vld [vmem:[%s9743_s20 + $0xc0] sm:$0xff] }
 0x5f2   : > { %v7559_v6 = vpop.f32.mrf.mxu1 }
 0x5f3   : > { %v7737_v51 = vmax.f32 %v7609_v20, 0.0  ;;  %v7611_v48 = vadd.f32 %v7610_v37, %v7558_v61  ;;  %v7560_v19 = vadd.f32 %v7559_v6, %v13868_v9  ;;  %v8646_v6 = vld [vmem:[%s9743_s20 + $0xc8] sm:$0xff] }
 0x5f4   : > { %v7561_v3 = vpop.f32.mrf.mxu1 }
 0x5f5   : > { %v7822_v41 = vadd.f32 %v8629_v11, %v7737_v51  ;;  %v7738_v25 = vmax.f32 %v7611_v48, 0.0  ;;  %v7613_v30 = vadd.f32 %v7612_v18, %v7560_v19  ;;  %v7562_v13 = vadd.f32 %v7561_v3, %v13868_v9 }
 0x5f6   : > { %v7565_v62 = vpop.f32.mrf.mxu1 }
 0x5f7   : > { %8637 = vst [vmem:[%s13903_s7 + $0x80] sm:$0xff] %v7822_v41  ;;  %v7823_v31 = vadd.f32 %v8630_v58, %v7738_v25  ;;  %v7745_v52 = vmax.f32 %v7613_v30, 0.0  ;;  %v7615_v23 = vadd.f32 %v7614_v17, %v7562_v13  ;;  %v7566_v2 = vadd.f32 %v7565_v62, %v13898_v33  ;;  %v8648_v62 = vld [vmem:[%s9743_s20 + $0xd8] sm:$0xff] }
 0x5f8   : > { %v7567_v1 = vpop.f32.mrf.mxu1 }
 0x5f9   : > { %8638 = vst [vmem:[%s13903_s7 + $0x88] sm:$0xff] %v7823_v31  ;;  %v7824_v63 = vadd.f32 %v8631_v29, %v7745_v52  ;;  %v7746_v56 = vmax.f32 %v7615_v23, 0.0  ;;  %v7568_v5 = vadd.f32 %v7567_v1, %v13898_v33  ;;  %v7619_v40 = vadd.f32 %v7618_v53, %v7566_v2  ;;  %v8649_v1 = vld [vmem:[%s9743_s20 + $0xe0] sm:$0xff] }
 0x5fa   : > { %v7569_v14 = vpop.f32.mrf.mxu1 }
 0x5fb   : > { %8639 = vst [vmem:[%s13903_s7 + $0x90] sm:$0xff] %v7824_v63  ;;  %v7825_v49 = vadd.f32 %v8632_v50, %v7746_v56  ;;  %v7753_v43 = vmax.f32 %v7619_v40, 0.0  ;;  %v7570_v35 = vadd.f32 %v7569_v14, %v13896_v57  ;;  %v7621_v4 = vadd.f32 %v7620_v27, %v7568_v5 }
 0x5fc   : > { %v7571_v21 = vpop.f32.mrf.mxu1 }
 0x5fd   : > { %8640 = vst [vmem:[%s13903_s7 + $0x98] sm:$0xff] %v7825_v49  ;;  %v7826_v45 = vadd.f32 %v8633_v59, %v7753_v43  ;;  %v7754_v47 = vmax.f32 %v7621_v4, 0.0  ;;  %v7572_v26 = vadd.f32 %v7571_v21, %v13896_v57  ;;  %v7623_v28 = vadd.f32 %v7622_v16, %v7570_v35  ;;  %v8651_v4 = vld [vmem:[%s9743_s20 + $0xf0] sm:$0xff] }
 0x5ff   : > { %8641 = vst [vmem:[%s13903_s7 + $0xa0] sm:$0xff] %v7826_v45  ;;  %v7827_v39 = vadd.f32 %v8634_v46, %v7754_v47  ;;  %v7761_v44 = vmax.f32 %v7623_v28, 0.0  ;;  %v7625_v22 = vadd.f32 %v7624_v60, %v7572_v26  ;;  %v8652_v47 = vld [vmem:[%s9743_s20 + $0xf8] sm:$0xff] }
 0x601   : > { %8642 = vst [vmem:[%s13903_s7 + $0xa8] sm:$0xff] %v7827_v39  ;;  %v7828_v38 = vadd.f32 %v8635_v8, %v7761_v44  ;;  %v7762_v55 = vmax.f32 %v7625_v22, 0.0 }
 0x603   : > { %8643 = vst [vmem:[%s13903_s7 + $0xb0] sm:$0xff] %v7828_v38  ;;  %v7829_v10 = vadd.f32 %v8636_v7, %v7762_v55 }
 0x605   : > { %8644 = vst [vmem:[%s13903_s7 + $0xb8] sm:$0xff] %v7829_v10 }
 0x60e   : > { %v7661_v15 = vpop.f32.mrf.mxu0 }
 0x60f   : > { %v7662_v24 = vadd.f32 %v7661_v15, %v13864_v32 }
 0x610   : > { %v7663_v34 = vpop.f32.mrf.mxu0 }
 0x611   : > { %v7664_v17 = vadd.f32 %v7663_v34, %v13864_v32  ;;  %v8647_v32 = vld [vmem:[%s9743_s20 + $0xd0] sm:$0xff] }
 0x612   : > { %v7665_v54 = vpop.f32.mrf.mxu0 }
 0x613   : > { %v7666_v20 = vadd.f32 %v7665_v54, %v13868_v9 }
 0x614   : > { %v7667_v12 = vpop.f32.mrf.mxu0 }
 0x615   : > { %v7668_v48 = vadd.f32 %v7667_v12, %v13868_v9 }
 0x616   : > { %v7671_v37 = vpop.f32.mrf.mxu0  ;;  %v7714_v18 = vpop.f32.mrf.mxu1 }
 0x617   : > { %v7715_v0 = vadd.f32 %v7714_v18, %v7662_v24  ;;  %v7672_v25 = vadd.f32 %v7671_v37, %v13898_v33 }
 0x618   : > { %v7673_v42 = vpop.f32.mrf.mxu0  ;;  %v7716_v53 = vpop.f32.mrf.mxu1 }
 0x619   : > { %v7739_v61 = vmax.f32 %v7715_v0, 0.0  ;;  %v7717_v11 = vadd.f32 %v7716_v53, %v7664_v17  ;;  %v7674_v52 = vadd.f32 %v7673_v42, %v13898_v33  ;;  %v8650_v33 = vld [vmem:[%s9743_s20 + $0xe8] sm:$0xff]  ;;  %s9567_s20 = smov [#allocation10]  }
 0x61a   : > { %v7718_v51 = vpop.f32.mrf.mxu1  ;;  %v7675_v27 = vpop.f32.mrf.mxu0  ;;  %s9485_s18 = sshll.u32 %s9567_s20, 4  ;;  %s9486_s18 = int_to_ptr.vmem [resolvable:$false] %s9485_s18 }
 0x61b   : > { %v7847_v19 = vadd.f32 %v8645_v36, %v7739_v61  ;;  %v7740_v58 = vmax.f32 %v7717_v11, 0.0  ;;  %v7719_v3 = vadd.f32 %v7718_v51, %v7666_v20  ;;  %v7676_v63 = vadd.f32 %v7675_v27, %v13896_v57  ;;  %s9487_s8 = scalar_lea.vmem %s9486_s18, 8192  ;;  %p9488_p13 = scmp.lt.s32.totalorder %s14003_s16, %s9486_s18 }
 0x61c   : > { %v7720_v41 = vpop.f32.mrf.mxu1  ;;  %v7677_v50 = vpop.f32.mrf.mxu0  ;;  %p9489_p0 = scmp.lt.s32.totalorder %s9487_s8, %s9481_s25 }
 0x61d   : > { %8653 = vst [vmem:[%s13903_s7 + $0xc0] sm:$0xff] %v7847_v19  ;;  %v7848_v30 = vadd.f32 %v8646_v6, %v7740_v58  ;;  %v7747_v13 = vmax.f32 %v7719_v3, 0.0  ;;  %v7721_v29 = vadd.f32 %v7720_v41, %v7668_v48  ;;  %v7678_v14 = vadd.f32 %v7677_v50, %v13896_v57 }
 0x61e   : > { %v7724_v31 = vpop.f32.mrf.mxu1  ;;  %p9490_p5 = por %p9489_p0, %p9488_p13 }
 0x61f   : > { %8654 = vst [vmem:[%s13903_s7 + $0xc8] sm:$0xff] %v7848_v30  ;;  %v7849_v9 = vadd.f32 %v8647_v32, %v7747_v13  ;;  %v7748_v23 = vmax.f32 %v7721_v29, 0.0  ;;  %v7725_v2 = vadd.f32 %v7724_v31, %v7672_v25 }
 0x620   : > { %v7726_v16 = vpop.f32.mrf.mxu1  ;;  %p9491_p3 = pnand %p9490_p5, %p9484_p12 }
 0x621   : > { %8655 = vst [vmem:[%s13903_s7 + $0xd0] sm:$0xff] %v7849_v9  ;;  %v7850_v56 = vadd.f32 %v8648_v62, %v7748_v23  ;;  %v7755_v5 = vmax.f32 %v7725_v2, 0.0  ;;  %v7727_v40 = vadd.f32 %v7726_v16, %v7674_v52 }
 0x622   : > { %v7728_v59 = vpop.f32.mrf.mxu1 }
 0x623   : > { %8656 = vst [vmem:[%s13903_s7 + $0xd8] sm:$0xff] %v7850_v56  ;;  %v7851_v49 = vadd.f32 %v8649_v1, %v7755_v5  ;;  %v7756_v43 = vmax.f32 %v7727_v40, 0.0  ;;  %v7729_v35 = vadd.f32 %v7728_v59, %v7676_v63 }
 0x624   : > { %v7730_v46 = vpop.f32.mrf.mxu1 }
 0x625   : > { %8657 = vst [vmem:[%s13903_s7 + $0xe0] sm:$0xff] %v7851_v49  ;;  %v7852_v21 = vadd.f32 %v8650_v33, %v7756_v43  ;;  %v7763_v60 = vmax.f32 %v7729_v35, 0.0  ;;  %v7731_v45 = vadd.f32 %v7730_v46, %v7678_v14 }
 0x627   : > { %8658 = vst [vmem:[%s13903_s7 + $0xe8] sm:$0xff] %v7852_v21  ;;  %v7853_v26 = vadd.f32 %v8651_v4, %v7763_v60  ;;  %v7764_v57 = vmax.f32 %v7731_v45, 0.0 }
 0x629   : > { %8659 = vst [vmem:[%s13903_s7 + $0xf0] sm:$0xff] %v7853_v26  ;;  %v7854_v28 = vadd.f32 %v8652_v47, %v7764_v57 }
 0x62b   : > { %8660 = vst [vmem:[%s13903_s7 + $0xf8] sm:$0xff] %v7854_v28 }
 0x62c   : > { %9494 = shalt.err (!%p9491_p3)
}
 0x62d   : > { %s9495_s15 = scalar_lea.hbm %s14000_s30, 4096  ;;  %s9499_s7 = scalar_lea.hbm %s14054_s6, 8192 }
 0x62e   : > { %p9496_p11 = scmp.ne.s32.totalorder %s14000_s30, %s9495_s15  ;;  %p9500_p4 = scmp.lt.s32.totalorder %s14000_s30, %s14054_s6 }
 0x62f   : > { %p9501_p6 = scmp.lt.s32.totalorder %s9499_s7, %s9495_s15 }
 0x630   : > { %p9497_p9 = pnand %p9496_p11, %p14474_p2 }
 0x631   : > { %p9502_p8 = por %p9501_p6, %p9500_p4 }
 0x632   : > { %p9498_p1 = pneg %p9497_p9 }
 0x634   : > { %p9503_p10 = pnand %p9502_p8, %p9498_p1 }
 0x636   : > { %9506 = shalt.err (!%p9503_p10)
}
 0x637   : > { %s9568_s19 = smov 256  }
 0x638   : > { %9257 = dma.vmem_to_hbm [thread:$0]  (%p14474_p2), %s14003_s16, 4096, %s14000_s30, %s7865_s13, %s9568_s19, %s9568_s19, %s9559_s29  }
 0x639 PF: > { %s7894_s25 = sand.u32 1, %s9537_s21   ;;  %p14475_p7 = scmp.ne.s32.totalorder %s14203_s28, 0 }
 0x63a   : > { %p14476_p12 = scmp.ge.s32.totalorder %s9549_s24, 2  ;;  %s7895_s20 = scalar_lea.sflag [#allocation6], %s7894_s25 }
 0x63c   : > { %p9271_p13 = pnand %p14476_p12, %p14475_p7 }
 0x63e   : > { %p9272_p0 = pneg %p9271_p13 }
 0x640   : > { %9532 = dma.done.wait (%p9272_p0), %s7895_s20, 4096  }
 0x641   : > { %9534 = vsyncadd (%p9272_p0), %s7895_s20, 4294963200  ;;  %p20_p5 = scmp.ge.s32.totalorder %s9679_s26, 4   ;;  %s14477_s21 = smov %s9541_s22 }
 0x642   : > { %s14478_s22 = smov %s9545_s23  ;;  %s14479_s23 = smov %s9688_s9 }
 0x643   : > { %s14480_s24 = smov %s9679_s26  ;;  %22 = sbr.rel (!%p20_p5) target bundleno = 6 (0x6), region = 103 }
 0x648   :  { %7900 = vsyncpa [#allocation5], 1 }
 0x649   :  { %7902 = vsyncpa [#allocation5 + $0x1], 1 }
 0x64a   :  { %7903 = vsyncpa [#allocation8], 1 }
 0x64b   :  { %7904 = vsyncpa [#allocation6], 1 }
 0x64c   :  { %7906 = vsyncpa [#allocation6 + $0x1], 1 }

</bundles_post_ra>
